<compile_context>
chip_gen: v7x
topology: tpu7x:2x2x1
jax: 0.10.0
libtpu: 0.0.40
codegen_flags: <defaults>
</compile_context>

<pallas_src>
import functools

import jax
import jax.numpy as jnp
from jax import lax
from jax.experimental import pallas as pl
from jax.experimental.pallas import tpu as pltpu

EPS = 1e-5
NEG_SLOPE = 0.2

# (parity, tap) -> kernel index of the 4-wide transposed-conv kernel,
# None = this tap does not contribute for that parity.
_K_OF_TAP = ((3, 1, None), (None, 2, 0))


def _convt_stats_kernel(xp_ref, w_ref, y_ref, sum_ref, sq_ref):
    """Parity-decomposed ConvTranspose (9 tap matmuls, bf16 MXU / f32 acc)
    + per-grid-step BN partial statistics."""
    nb, hp, wp, cin = xp_ref.shape
    h, w = hp - 2, wp - 2
    m_blk = nb * h * w
    ncol = w_ref.shape[-1]

    acc = jnp.zeros((m_blk, ncol), jnp.float32)
    for th in range(3):
        for tw in range(3):
            # Shared 3x3 tap window, sliced straight out of the padded slab.
            xs = xp_ref[:, th:th + h, tw:tw + w, :].reshape(m_blk, cin)
            acc = acc + jnp.dot(xs, w_ref[3 * th + tw],
                                preferred_element_type=jnp.float32)

    # Un-normalized conv output, stored bf16 (halves the HBM round-trip).
    y_ref[...] = acc.astype(y_ref.dtype)

    # Partial BN stats from the f32 accumulator, folded to 8 sublane rows;
    # the final cross-row / cross-tile reduction happens in f32 JAX glue.
    if m_blk % 8 == 0:
        r = acc.reshape(m_blk // 8, 8, ncol)
        psum = jnp.sum(r, axis=0)
        psq = jnp.sum(r * r, axis=0)
    else:
        psum = jnp.pad(jnp.sum(acc, axis=0, keepdims=True), ((0, 7), (0, 0)))
        psq = jnp.pad(jnp.sum(acc * acc, axis=0, keepdims=True), ((0, 7), (0, 0)))
    sum_ref[0] = psum
    sq_ref[0] = psq


def _bn_leakyrelu_kernel(y_ref, scale_ref, shift_ref, out_ref):
    """Per-column affine normalization (f32) + LeakyReLU(0.2)."""
    z = y_ref[...].astype(jnp.float32) * scale_ref[...] + shift_ref[...]
    out_ref[...] = jnp.where(z >= 0, z, NEG_SLOPE * z)


def _build_tap_weights(w_ct, cout_p):
    """ConvTranspose2d weight (Cin, Cout, 4, 4) -> (9, Cin, 4*cout_p) bf16.

    Tap index t = 3*tap_h + tap_w over the shared 3x3 input window; columns
    ordered (parity = 2*ph + pw, co), co zero-padded up to cout_p.
    """
    cin, cout = w_ct.shape[0], w_ct.shape[1]
    wt = jnp.zeros((9, cin, 4 * cout_p), jnp.float32)
    for th in range(3):
        for tw in range(3):
            for ph in range(2):
                kh = _K_OF_TAP[ph][th]
                if kh is None:
                    continue
                for pw in range(2):
                    kw = _K_OF_TAP[pw][tw]
                    if kw is None:
                        continue
                    c0 = (2 * ph + pw) * cout_p
                    wt = wt.at[3 * th + tw, :, c0:c0 + cout].set(
                        w_ct[:, :, kh, kw].astype(jnp.float32))
    return wt.astype(jnp.bfloat16)


def _round_up(x, m):
    return (x + m - 1) // m * m


def _pick_ncol(cout):
    """Matmul / intermediate column width: lane-dense only when it is cheap."""
    c4 = 4 * cout
    if c4 <= 128:
        return c4                       # full-dim block; avoid 4x pad blow-up
    if c4 <= 256:
        return _round_up(c4, 128)
    return _round_up(c4, 256)           # fill the 256-wide MXU on v6e/v7x


def _pick_group(n, hw, target_rows):
    """Images per grid step so block_m = nb*H*W targets ~1-2k rows."""
    nb = max(1, min(n, target_rows // max(hw, 1)))
    while nb < n and (nb * hw) % 8 != 0:
        nb += 1
    if (nb * hw) % 8 != 0:
        nb = n                          # single group: block == full array dim
    return nb


@functools.partial(jax.jit, static_argnames=("target_rows",))
def upsample_block(x_nchw, w_ct, gamma, beta, *, target_rows=1024):
    """Forward pass of UpSampleBlock (drop_out=False). Input/output NCHW f32."""
    n, cin, h, w = x_nchw.shape
    cout = w_ct.shape[1]
    ho, wo = 2 * h, 2 * w

    ncol = _pick_ncol(cout)
    cout_p = ncol // 4
    nb = _pick_group(n, h * w, target_rows)
    ngroups = pl.cdiv(n, nb)
    n_pad = ngroups * nb
    m = n * h * w
    m_blk = nb * h * w
    m_pad = ngroups * m_blk

    # Only wrapper-side prep: NHWC bf16 + 1-pixel spatial halo (no 9x im2col).
    x_nhwc = jnp.transpose(x_nchw, (0, 2, 3, 1)).astype(jnp.bfloat16)
    xp = jnp.pad(x_nhwc, ((0, n_pad - n), (1, 1), (1, 1), (0, 0)))
    w_taps = _build_tap_weights(w_ct, cout_p)

    grid = (ngroups,)

    # ---- Pass 1: conv-as-9-tap-matmuls + per-step BN partial stats ----------
    cost1 = pl.CostEstimate(
        flops=2 * m_pad * 9 * cin * ncol,
        transcendentals=0,
        bytes_accessed=(n_pad * (h + 2) * (w + 2) * cin * 2
                        + 9 * cin * ncol * 2
                        + m_pad * ncol * 2
                        + 2 * ngroups * 8 * ncol * 4),
    )
    y_flat, sum_parts, sq_parts = pl.pallas_call(
        _convt_stats_kernel,
        out_shape=(
            jax.ShapeDtypeStruct((m_pad, ncol), jnp.bfloat16),
            jax.ShapeDtypeStruct((ngroups, 8, ncol), jnp.float32),
            jax.ShapeDtypeStruct((ngroups, 8, ncol), jnp.float32),
        ),
        grid_spec=pltpu.PrefetchScalarGridSpec(
            num_scalar_prefetch=0,
            grid=grid,
            in_specs=[
                pl.BlockSpec((nb, h + 2, w + 2, cin), lambda g: (g, 0, 0, 0)),
                # Grid-invariant tap weights stay VMEM-resident.  (On v7x one
                # can add pipeline_mode=pl.Buffered(1) to drop the second
                # weight buffer under the 64 MiB VMEM budget.)
                pl.BlockSpec((9, cin, ncol), lambda g: (0, 0, 0)),
            ],
            out_specs=[
                pl.BlockSpec((m_blk, ncol), lambda g: (g, 0)),
                pl.BlockSpec((1, 8, ncol), lambda g: (g, 0, 0)),
                pl.BlockSpec((1, 8, ncol), lambda g: (g, 0, 0)),
            ],
        ),
        compiler_params=pltpu.CompilerParams(
            # Per-step partial stats => no carried state: fully parallel and
            # megacore-shardable on v7x.
            dimension_semantics=("parallel",),
            vmem_limit_bytes=48 * 1024 * 1024,
        ),
        cost_estimate=cost1,
    )(xp, w_taps)

    # ---- Tiny BN finalization in plain JAX (tree-reduce, fold parities) -----
    count = jnp.float32(n * ho * wo)               # true positions per channel
    ch_sum = sum_parts.sum(axis=(0, 1)).reshape(4, cout_p).sum(axis=0)
    ch_sq = sq_parts.sum(axis=(0, 1)).reshape(4, cout_p).sum(axis=0)
    mean = ch_sum / count
    var = jnp.maximum(ch_sq / count - mean * mean, 0.0)
    inv_std = lax.rsqrt(var + EPS)
    gamma_p = jnp.zeros((cout_p,), jnp.float32).at[:cout].set(gamma.astype(jnp.float32))
    beta_p = jnp.zeros((cout_p,), jnp.float32).at[:cout].set(beta.astype(jnp.float32))
    scale = gamma_p * inv_std
    shift = beta_p - mean * scale
    scale_full = jnp.tile(scale, 4).reshape(1, ncol)
    shift_full = jnp.tile(shift, 4).reshape(1, ncol)

    # TODO(synk): drop_out=True would insert training-mode Dropout(0.5) here
    # (pltpu.prng_seed / pltpu.prng_random_bits); default drop_out=False path.

    # ---- Pass 2: normalize + LeakyReLU, bf16 in / f32 out, fully parallel ---
    cost2 = pl.CostEstimate(
        flops=3 * m_pad * ncol,
        transcendentals=0,
        bytes_accessed=m_pad * ncol * (2 + 4) + 2 * ncol * 4,
    )
    out_flat = pl.pallas_call(
        _bn_leakyrelu_kernel,
        out_shape=jax.ShapeDtypeStruct((m_pad, ncol), jnp.float32),
        grid_spec=pltpu.PrefetchScalarGridSpec(
            num_scalar_prefetch=0,
            grid=grid,
            in_specs=[
                pl.BlockSpec((m_blk, ncol), lambda g: (g, 0)),
                pl.BlockSpec((1, ncol), lambda g: (0, 0)),
                pl.BlockSpec((1, ncol), lambda g: (0, 0)),
            ],
            out_specs=pl.BlockSpec((m_blk, ncol), lambda g: (g, 0)),
        ),
        compiler_params=pltpu.CompilerParams(
            dimension_semantics=("parallel",),
            vmem_limit_bytes=48 * 1024 * 1024,
        ),
        cost_estimate=cost2,
    )(y_flat, scale_full, shift_full)

    # (n, h, w, ph, pw, co) -> NCHW with output pixel (2h+ph, 2w+pw).
    # A consumer that accepts NHWC can skip this transpose (one extra HBM
    # round-trip of the output); folding it into pass 2 only pays off when
    # cout_p >= 128 (lane-dense stores), not for small Cout.
    y6 = out_flat[:m].reshape(n, h, w, 2, 2, cout_p)[..., :cout]
    return jnp.transpose(y6, (0, 5, 1, 3, 2, 4)).reshape(n, cout, ho, wo)


def _reference(x_nchw, w_ct, gamma, beta):
    """Pure-JAX reference mirroring the PyTorch module (training-mode BN)."""
    w_conv = jnp.transpose(w_ct, (1, 0, 2, 3))[:, :, ::-1, ::-1]  # OIHW, flipped
    y = lax.conv_general_dilated(
        x_nchw.astype(jnp.float32), w_conv.astype(jnp.float32),
        window_strides=(1, 1), padding=((2, 2), (2, 2)),
        lhs_dilation=(2, 2),
        dimension_numbers=("NCHW", "OIHW", "NCHW"))
    mean = jnp.mean(y, axis=(0, 2, 3), keepdims=True)
    var = jnp.mean((y - mean) ** 2, axis=(0, 2, 3), keepdims=True)
    z = (y - mean) / jnp.sqrt(var + EPS)
    z = z * gamma.reshape(1, -1, 1, 1) + beta.reshape(1, -1, 1, 1)
    return jnp.where(z >= 0, z, NEG_SLOPE * z)


if __name__ == "__main__":
    key = jax.random.PRNGKey(0)
    k_x, k_w, k_g, k_b = jax.random.split(key, 4)

    N, Cin, H, W = 2, 4, 16, 16
    Cout = 8

    x = jax.random.normal(k_x, (N, Cin, H, W), dtype=jnp.float32)
    # ConvTranspose2d weight shape: (in_channels, out_channels, kH, kW)
    w_ct = 0.1 * jax.random.normal(k_w, (Cin, Cout, 4, 4), dtype=jnp.float32)
    gamma = 1.0 + 0.1 * jax.random.normal(k_g, (Cout,), dtype=jnp.float32)
    beta = 0.1 * jax.random.normal(k_b, (Cout,), dtype=jnp.float32)

    out = jax.block_until_ready(upsample_block(x, w_ct, gamma, beta))
    assert out.shape == (N, Cout, 2 * H, 2 * W), out.shape

    # Structural check: reference fed bf16-rounded inputs (isolates the
    # intentional bf16 quantization from algorithmic error).  Tolerance is
    # looser than before because the conv intermediate is now stored in bf16.
    ref_bf16_in = _reference(
        x.astype(jnp.bfloat16).astype(jnp.float32),
        w_ct.astype(jnp.bfloat16).astype(jnp.float32), gamma, beta)
    err_strict = float(jnp.max(jnp.abs(out - ref_bf16_in)))
    assert err_strict < 3e-2, err_strict

    # Looser end-to-end check against the full-f32 module semantics.
    ref_f32 = _reference(x, w_ct, gamma, beta)
    err_full = float(jnp.max(jnp.abs(out - ref_f32)))
    assert err_full < 8e-2, err_full

    print("KERNEL_OK")
</pallas_src>

<mosaic_0001>
module attributes {stable_mosaic.version = 11 : i64} {
  func.func @_convt_stats_kernel(%arg0: i32, %arg1: memref<2x18x18x4xbf16, #tpu.memory_space<vmem>>, %arg2: memref<9x4x32xbf16, #tpu.memory_space<vmem>>, %arg3: memref<512x32xbf16, #tpu.memory_space<vmem>>, %arg4: memref<1x8x32xf32, #tpu.memory_space<vmem>>, %arg5: memref<1x8x32xf32, #tpu.memory_space<vmem>>) attributes {dimension_semantics = [#tpu.dimension_semantics<parallel>], iteration_bounds = array<i64: 1>, scalar_prefetch = 0 : i64, scratch_operands = 0 : i64, tpu.core_type = #tpu.core_type<tc>, window_params = [{transform_indices = @transform_0, window_bounds = array<i64: 2, 18, 18, 4>}, {pipeline_mode = #tpu.pipeline_mode<synchronous>, transform_indices = @transform_1, window_bounds = array<i64: 9, 4, 32>}, {transform_indices = @transform_2, window_bounds = array<i64: 512, 32>}, {transform_indices = @transform_3, window_bounds = array<i64: 1, 8, 32>}, {transform_indices = @transform_4, window_bounds = array<i64: 1, 8, 32>}]} {
    %cst = arith.constant 0.000000e+00 : f32
    %0 = vector.broadcast %cst : f32 to vector<512x32xf32>
    %c0 = arith.constant 0 : index
    %c0_0 = arith.constant 0 : index
    %c0_1 = arith.constant 0 : index
    %c0_2 = arith.constant 0 : index
    %1 = vector.load %arg1[%c0, %c0_0, %c0_1, %c0_2] : memref<2x18x18x4xbf16, #tpu.memory_space<vmem>>, vector<2x16x16x4xbf16>
    %2 = vector.shape_cast %1 : vector<2x16x16x4xbf16> to vector<512x4xbf16>
    %c0_3 = arith.constant 0 : index
    %c0_4 = arith.constant 0 : index
    %c0_5 = arith.constant 0 : index
    %3 = vector.load %arg2[%c0_3, %c0_4, %c0_5] : memref<9x4x32xbf16, #tpu.memory_space<vmem>>, vector<1x4x32xbf16>
    %4 = vector.shape_cast %3 : vector<1x4x32xbf16> to vector<4x32xbf16>
    %cst_6 = arith.constant dense<0.000000e+00> : vector<512x32xf32>
    %5 = tpu.matmul %2, %4, %cst_6 {dimension_numbers = #tpu.dot_dimension_numbers<[1], [0], [0], [1], [0, 0, 1, 1], [], []>} : vector<512x4xbf16>, vector<4x32xbf16>, vector<512x32xf32> -> vector<512x32xf32>
    %6 = arith.addf %0, %5 : vector<512x32xf32>
    %c0_7 = arith.constant 0 : index
    %c0_8 = arith.constant 0 : index
    %c1 = arith.constant 1 : index
    %c0_9 = arith.constant 0 : index
    %7 = vector.load %arg1[%c0_7, %c0_8, %c1, %c0_9] : memref<2x18x18x4xbf16, #tpu.memory_space<vmem>>, vector<2x16x16x4xbf16>
    %8 = vector.shape_cast %7 : vector<2x16x16x4xbf16> to vector<512x4xbf16>
    %c1_10 = arith.constant 1 : index
    %c0_11 = arith.constant 0 : index
    %c0_12 = arith.constant 0 : index
    %9 = vector.load %arg2[%c1_10, %c0_11, %c0_12] : memref<9x4x32xbf16, #tpu.memory_space<vmem>>, vector<1x4x32xbf16>
    %10 = vector.shape_cast %9 : vector<1x4x32xbf16> to vector<4x32xbf16>
    %cst_13 = arith.constant dense<0.000000e+00> : vector<512x32xf32>
    %11 = tpu.matmul %8, %10, %cst_13 {dimension_numbers = #tpu.dot_dimension_numbers<[1], [0], [0], [1], [0, 0, 1, 1], [], []>} : vector<512x4xbf16>, vector<4x32xbf16>, vector<512x32xf32> -> vector<512x32xf32>
    %12 = arith.addf %6, %11 : vector<512x32xf32>
    %c0_14 = arith.constant 0 : index
    %c0_15 = arith.constant 0 : index
    %c2 = arith.constant 2 : index
    %c0_16 = arith.constant 0 : index
    %13 = vector.load %arg1[%c0_14, %c0_15, %c2, %c0_16] : memref<2x18x18x4xbf16, #tpu.memory_space<vmem>>, vector<2x16x16x4xbf16>
    %14 = vector.shape_cast %13 : vector<2x16x16x4xbf16> to vector<512x4xbf16>
    %c2_17 = arith.constant 2 : index
    %c0_18 = arith.constant 0 : index
    %c0_19 = arith.constant 0 : index
    %15 = vector.load %arg2[%c2_17, %c0_18, %c0_19] : memref<9x4x32xbf16, #tpu.memory_space<vmem>>, vector<1x4x32xbf16>
    %16 = vector.shape_cast %15 : vector<1x4x32xbf16> to vector<4x32xbf16>
    %cst_20 = arith.constant dense<0.000000e+00> : vector<512x32xf32>
    %17 = tpu.matmul %14, %16, %cst_20 {dimension_numbers = #tpu.dot_dimension_numbers<[1], [0], [0], [1], [0, 0, 1, 1], [], []>} : vector<512x4xbf16>, vector<4x32xbf16>, vector<512x32xf32> -> vector<512x32xf32>
    %18 = arith.addf %12, %17 : vector<512x32xf32>
    %c0_21 = arith.constant 0 : index
    %c1_22 = arith.constant 1 : index
    %c0_23 = arith.constant 0 : index
    %c0_24 = arith.constant 0 : index
    %19 = vector.load %arg1[%c0_21, %c1_22, %c0_23, %c0_24] : memref<2x18x18x4xbf16, #tpu.memory_space<vmem>>, vector<2x16x16x4xbf16>
    %20 = vector.shape_cast %19 : vector<2x16x16x4xbf16> to vector<512x4xbf16>
    %c3 = arith.constant 3 : index
    %c0_25 = arith.constant 0 : index
    %c0_26 = arith.constant 0 : index
    %21 = vector.load %arg2[%c3, %c0_25, %c0_26] : memref<9x4x32xbf16, #tpu.memory_space<vmem>>, vector<1x4x32xbf16>
    %22 = vector.shape_cast %21 : vector<1x4x32xbf16> to vector<4x32xbf16>
    %cst_27 = arith.constant dense<0.000000e+00> : vector<512x32xf32>
    %23 = tpu.matmul %20, %22, %cst_27 {dimension_numbers = #tpu.dot_dimension_numbers<[1], [0], [0], [1], [0, 0, 1, 1], [], []>} : vector<512x4xbf16>, vector<4x32xbf16>, vector<512x32xf32> -> vector<512x32xf32>
    %24 = arith.addf %18, %23 : vector<512x32xf32>
    %c0_28 = arith.constant 0 : index
    %c1_29 = arith.constant 1 : index
    %c1_30 = arith.constant 1 : index
    %c0_31 = arith.constant 0 : index
    %25 = vector.load %arg1[%c0_28, %c1_29, %c1_30, %c0_31] : memref<2x18x18x4xbf16, #tpu.memory_space<vmem>>, vector<2x16x16x4xbf16>
    %26 = vector.shape_cast %25 : vector<2x16x16x4xbf16> to vector<512x4xbf16>
    %c4 = arith.constant 4 : index
    %c0_32 = arith.constant 0 : index
    %c0_33 = arith.constant 0 : index
    %27 = vector.load %arg2[%c4, %c0_32, %c0_33] : memref<9x4x32xbf16, #tpu.memory_space<vmem>>, vector<1x4x32xbf16>
    %28 = vector.shape_cast %27 : vector<1x4x32xbf16> to vector<4x32xbf16>
    %cst_34 = arith.constant dense<0.000000e+00> : vector<512x32xf32>
    %29 = tpu.matmul %26, %28, %cst_34 {dimension_numbers = #tpu.dot_dimension_numbers<[1], [0], [0], [1], [0, 0, 1, 1], [], []>} : vector<512x4xbf16>, vector<4x32xbf16>, vector<512x32xf32> -> vector<512x32xf32>
    %30 = arith.addf %24, %29 : vector<512x32xf32>
    %c0_35 = arith.constant 0 : index
    %c1_36 = arith.constant 1 : index
    %c2_37 = arith.constant 2 : index
    %c0_38 = arith.constant 0 : index
    %31 = vector.load %arg1[%c0_35, %c1_36, %c2_37, %c0_38] : memref<2x18x18x4xbf16, #tpu.memory_space<vmem>>, vector<2x16x16x4xbf16>
    %32 = vector.shape_cast %31 : vector<2x16x16x4xbf16> to vector<512x4xbf16>
    %c5 = arith.constant 5 : index
    %c0_39 = arith.constant 0 : index
    %c0_40 = arith.constant 0 : index
    %33 = vector.load %arg2[%c5, %c0_39, %c0_40] : memref<9x4x32xbf16, #tpu.memory_space<vmem>>, vector<1x4x32xbf16>
    %34 = vector.shape_cast %33 : vector<1x4x32xbf16> to vector<4x32xbf16>
    %cst_41 = arith.constant dense<0.000000e+00> : vector<512x32xf32>
    %35 = tpu.matmul %32, %34, %cst_41 {dimension_numbers = #tpu.dot_dimension_numbers<[1], [0], [0], [1], [0, 0, 1, 1], [], []>} : vector<512x4xbf16>, vector<4x32xbf16>, vector<512x32xf32> -> vector<512x32xf32>
    %36 = arith.addf %30, %35 : vector<512x32xf32>
    %c0_42 = arith.constant 0 : index
    %c2_43 = arith.constant 2 : index
    %c0_44 = arith.constant 0 : index
    %c0_45 = arith.constant 0 : index
    %37 = vector.load %arg1[%c0_42, %c2_43, %c0_44, %c0_45] : memref<2x18x18x4xbf16, #tpu.memory_space<vmem>>, vector<2x16x16x4xbf16>
    %38 = vector.shape_cast %37 : vector<2x16x16x4xbf16> to vector<512x4xbf16>
    %c6 = arith.constant 6 : index
    %c0_46 = arith.constant 0 : index
    %c0_47 = arith.constant 0 : index
    %39 = vector.load %arg2[%c6, %c0_46, %c0_47] : memref<9x4x32xbf16, #tpu.memory_space<vmem>>, vector<1x4x32xbf16>
    %40 = vector.shape_cast %39 : vector<1x4x32xbf16> to vector<4x32xbf16>
    %cst_48 = arith.constant dense<0.000000e+00> : vector<512x32xf32>
    %41 = tpu.matmul %38, %40, %cst_48 {dimension_numbers = #tpu.dot_dimension_numbers<[1], [0], [0], [1], [0, 0, 1, 1], [], []>} : vector<512x4xbf16>, vector<4x32xbf16>, vector<512x32xf32> -> vector<512x32xf32>
    %42 = arith.addf %36, %41 : vector<512x32xf32>
    %c0_49 = arith.constant 0 : index
    %c2_50 = arith.constant 2 : index
    %c1_51 = arith.constant 1 : index
    %c0_52 = arith.constant 0 : index
    %43 = vector.load %arg1[%c0_49, %c2_50, %c1_51, %c0_52] : memref<2x18x18x4xbf16, #tpu.memory_space<vmem>>, vector<2x16x16x4xbf16>
    %44 = vector.shape_cast %43 : vector<2x16x16x4xbf16> to vector<512x4xbf16>
    %c7 = arith.constant 7 : index
    %c0_53 = arith.constant 0 : index
    %c0_54 = arith.constant 0 : index
    %45 = vector.load %arg2[%c7, %c0_53, %c0_54] : memref<9x4x32xbf16, #tpu.memory_space<vmem>>, vector<1x4x32xbf16>
    %46 = vector.shape_cast %45 : vector<1x4x32xbf16> to vector<4x32xbf16>
    %cst_55 = arith.constant dense<0.000000e+00> : vector<512x32xf32>
    %47 = tpu.matmul %44, %46, %cst_55 {dimension_numbers = #tpu.dot_dimension_numbers<[1], [0], [0], [1], [0, 0, 1, 1], [], []>} : vector<512x4xbf16>, vector<4x32xbf16>, vector<512x32xf32> -> vector<512x32xf32>
    %48 = arith.addf %42, %47 : vector<512x32xf32>
    %c0_56 = arith.constant 0 : index
    %c2_57 = arith.constant 2 : index
    %c2_58 = arith.constant 2 : index
    %c0_59 = arith.constant 0 : index
    %49 = vector.load %arg1[%c0_56, %c2_57, %c2_58, %c0_59] : memref<2x18x18x4xbf16, #tpu.memory_space<vmem>>, vector<2x16x16x4xbf16>
    %50 = vector.shape_cast %49 : vector<2x16x16x4xbf16> to vector<512x4xbf16>
    %c8 = arith.constant 8 : index
    %c0_60 = arith.constant 0 : index
    %c0_61 = arith.constant 0 : index
    %51 = vector.load %arg2[%c8, %c0_60, %c0_61] : memref<9x4x32xbf16, #tpu.memory_space<vmem>>, vector<1x4x32xbf16>
    %52 = vector.shape_cast %51 : vector<1x4x32xbf16> to vector<4x32xbf16>
    %cst_62 = arith.constant dense<0.000000e+00> : vector<512x32xf32>
    %53 = tpu.matmul %50, %52, %cst_62 {dimension_numbers = #tpu.dot_dimension_numbers<[1], [0], [0], [1], [0, 0, 1, 1], [], []>} : vector<512x4xbf16>, vector<4x32xbf16>, vector<512x32xf32> -> vector<512x32xf32>
    %54 = arith.addf %48, %53 : vector<512x32xf32>
    %55 = arith.truncf %54 : vector<512x32xf32> to vector<512x32xbf16>
    %c0_63 = arith.constant 0 : index
    %c0_64 = arith.constant 0 : index
    %56 = vector.load %arg3[%c0_63, %c0_64] : memref<512x32xbf16, #tpu.memory_space<vmem>>, vector<512x32xbf16>
    tpu.vector_store %arg3[%c0_63, %c0_64], %55 {strides = array<i32>} : memref<512x32xbf16, #tpu.memory_space<vmem>>, vector<512x32xbf16>,
    %57 = vector.shape_cast %54 : vector<512x32xf32> to vector<64x8x32xf32>
    %cst_65 = arith.constant dense<0.000000e+00> : vector<8x32xf32>
    %58 = vector.multi_reduction <add>, %57, %cst_65 [0] : vector<64x8x32xf32> to vector<8x32xf32>
    %59 = arith.mulf %57, %57 : vector<64x8x32xf32>
    %cst_66 = arith.constant dense<0.000000e+00> : vector<8x32xf32>
    %60 = vector.multi_reduction <add>, %59, %cst_66 [0] : vector<64x8x32xf32> to vector<8x32xf32>
    %c0_67 = arith.constant 0 : index
    %c0_68 = arith.constant 0 : index
    %c0_69 = arith.constant 0 : index
    %61 = vector.load %arg4[%c0_67, %c0_68, %c0_69] : memref<1x8x32xf32, #tpu.memory_space<vmem>>, vector<1x8x32xf32>
    %62 = vector.shape_cast %61 : vector<1x8x32xf32> to vector<8x32xf32>
    %63 = vector.shape_cast %58 : vector<8x32xf32> to vector<1x8x32xf32>
    tpu.vector_store %arg4[%c0_67, %c0_68, %c0_69], %63 {strides = array<i32>} : memref<1x8x32xf32, #tpu.memory_space<vmem>>, vector<1x8x32xf32>,
    %c0_70 = arith.constant 0 : index
    %c0_71 = arith.constant 0 : index
    %c0_72 = arith.constant 0 : index
    %64 = vector.load %arg5[%c0_70, %c0_71, %c0_72] : memref<1x8x32xf32, #tpu.memory_space<vmem>>, vector<1x8x32xf32>
    %65 = vector.shape_cast %64 : vector<1x8x32xf32> to vector<8x32xf32>
    %66 = vector.shape_cast %60 : vector<8x32xf32> to vector<1x8x32xf32>
    tpu.vector_store %arg5[%c0_70, %c0_71, %c0_72], %66 {strides = array<i32>} : memref<1x8x32xf32, #tpu.memory_space<vmem>>, vector<1x8x32xf32>,
    return
  }
  func.func @transform_0(%arg0: i32) -> (i32, i32, i32, i32) {
    %c0_i32 = arith.constant 0 : i32
    %c0_i32_0 = arith.constant 0 : i32
    %c0_i32_1 = arith.constant 0 : i32
    %c0_i32_2 = arith.constant 0 : i32
    return %arg0, %c0_i32, %c0_i32_0, %c0_i32_1 : i32, i32, i32, i32
  }
  func.func @transform_1(%arg0: i32) -> (i32, i32, i32) {
    %c0_i32 = arith.constant 0 : i32
    %c0_i32_0 = arith.constant 0 : i32
    %c0_i32_1 = arith.constant 0 : i32
    %c0_i32_2 = arith.constant 0 : i32
    return %c0_i32, %c0_i32_0, %c0_i32_1 : i32, i32, i32
  }
  func.func @transform_2(%arg0: i32) -> (i32, i32) {
    %c0_i32 = arith.constant 0 : i32
    %c0_i32_0 = arith.constant 0 : i32
    return %arg0, %c0_i32 : i32, i32
  }
  func.func @transform_3(%arg0: i32) -> (i32, i32, i32) {
    %c0_i32 = arith.constant 0 : i32
    %c0_i32_0 = arith.constant 0 : i32
    %c0_i32_1 = arith.constant 0 : i32
    return %arg0, %c0_i32, %c0_i32_0 : i32, i32, i32
  }
  func.func @transform_4(%arg0: i32) -> (i32, i32, i32) {
    %c0_i32 = arith.constant 0 : i32
    %c0_i32_0 = arith.constant 0 : i32
    %c0_i32_1 = arith.constant 0 : i32
    return %arg0, %c0_i32, %c0_i32_0 : i32, i32, i32
  }
}

module attributes {stable_mosaic.version = 11 : i64} {
  func.func @_bn_leakyrelu_kernel(%arg0: i32, %arg1: memref<512x32xbf16, #tpu.memory_space<vmem>>, %arg2: memref<1x32xf32, #tpu.memory_space<vmem>>, %arg3: memref<1x32xf32, #tpu.memory_space<vmem>>, %arg4: memref<512x32xf32, #tpu.memory_space<vmem>>) attributes {dimension_semantics = [#tpu.dimension_semantics<parallel>], iteration_bounds = array<i64: 1>, scalar_prefetch = 0 : i64, scratch_operands = 0 : i64, tpu.core_type = #tpu.core_type<tc>, window_params = [{transform_indices = @transform_0, window_bounds = array<i64: 512, 32>}, {pipeline_mode = #tpu.pipeline_mode<synchronous>, transform_indices = @transform_1, window_bounds = array<i64: 1, 32>}, {pipeline_mode = #tpu.pipeline_mode<synchronous>, transform_indices = @transform_2, window_bounds = array<i64: 1, 32>}, {transform_indices = @transform_3, window_bounds = array<i64: 512, 32>}]} {
    %c0 = arith.constant 0 : index
    %c0_0 = arith.constant 0 : index
    %0 = vector.load %arg1[%c0, %c0_0] : memref<512x32xbf16, #tpu.memory_space<vmem>>, vector<512x32xbf16>
    %1 = arith.extf %0 : vector<512x32xbf16> to vector<512x32xf32>
    %c0_1 = arith.constant 0 : index
    %c0_2 = arith.constant 0 : index
    %2 = vector.load %arg2[%c0_1, %c0_2] : memref<1x32xf32, #tpu.memory_space<vmem>>, vector<1x32xf32>
    %3 = vector.broadcast %2 : vector<1x32xf32> to vector<512x32xf32>
    %4 = arith.mulf %1, %3 : vector<512x32xf32>
    %c0_3 = arith.constant 0 : index
    %c0_4 = arith.constant 0 : index
    %5 = vector.load %arg3[%c0_3, %c0_4] : memref<1x32xf32, #tpu.memory_space<vmem>>, vector<1x32xf32>
    %6 = vector.broadcast %5 : vector<1x32xf32> to vector<512x32xf32>
    %7 = arith.addf %4, %6 : vector<512x32xf32>
    %cst = arith.constant 0.000000e+00 : f32
    %8 = vector.broadcast %cst : f32 to vector<512x32xf32>
    %9 = arith.cmpf oge, %7, %8 : vector<512x32xf32>
    %cst_5 = arith.constant 2.000000e-01 : f32
    %10 = vector.broadcast %cst_5 : f32 to vector<512x32xf32>
    %11 = arith.mulf %10, %7 : vector<512x32xf32>
    %12 = arith.select %9, %7, %11 : vector<512x32xi1>, vector<512x32xf32>
    %c0_6 = arith.constant 0 : index
    %c0_7 = arith.constant 0 : index
    %13 = vector.load %arg4[%c0_6, %c0_7] : memref<512x32xf32, #tpu.memory_space<vmem>>, vector<512x32xf32>
    tpu.vector_store %arg4[%c0_6, %c0_7], %12 {strides = array<i32>} : memref<512x32xf32, #tpu.memory_space<vmem>>, vector<512x32xf32>,
    return
  }
  func.func @transform_0(%arg0: i32) -> (i32, i32) {
    %c0_i32 = arith.constant 0 : i32
    %c0_i32_0 = arith.constant 0 : i32
    return %arg0, %c0_i32 : i32, i32
  }
  func.func @transform_1(%arg0: i32) -> (i32, i32) {
    %c0_i32 = arith.constant 0 : i32
    %c0_i32_0 = arith.constant 0 : i32
    %c0_i32_1 = arith.constant 0 : i32
    return %c0_i32, %c0_i32_0 : i32, i32
  }
  func.func @transform_2(%arg0: i32) -> (i32, i32) {
    %c0_i32 = arith.constant 0 : i32
    %c0_i32_0 = arith.constant 0 : i32
    %c0_i32_1 = arith.constant 0 : i32
    return %c0_i32, %c0_i32_0 : i32, i32
  }
  func.func @transform_3(%arg0: i32) -> (i32, i32) {
    %c0_i32 = arith.constant 0 : i32
    %c0_i32_0 = arith.constant 0 : i32
    return %arg0, %c0_i32 : i32, i32
  }
}

</mosaic_0001>

<bundles_post_ra>
// kernel: tile.19
= control target key start
LH: loop header
LB: loop body
LE: loop exit
PB: predicated region body
PF: predicated region fallthrough
CT: control target
= control target key end

     0   :  { %vm7_vm0 = vcmask 64512   ;;  %s37_s8 = smov 8   ;;  %s38_s9 = smov 16   ;;  %vm13_vm1 = vcmask 261312   ;;  %vm19_vm2 = vcmask 195712   ;;  %vm25_vm3 = vcmask 130112   ;;  %s55_s0 = inlined_call_operand.vmem [shape: f32[4,8], index: 0, kind: input, shape index: {}]   ;;  %s56_s1 = inlined_call_operand.vmem [shape: f32[1,32], index: 1, kind: output, shape index: {}]  }
   0x1   :  { %v4_v0 = vld [vmem:[%s55_s0] sm:$0xf]  ;;  %s36_s0 = smov 24  }
   0x2   :  { %5 = vst [vmem:[#allocation1] sm:$0xf] %v4_v0 }
   0x9   :  { %v10_v1 = vld [vmem:[#allocation1 + $0x3] sm:$0x1]   ;;  %v22_v2 = vld [vmem:[#allocation1 + $0x1] sm:$0x1]   ;;  %v6_v3 = vld [vmem:[#allocation1] sm:$0x1]  }
   0xa   :  { %11 = vrot.lane.b32.xlu0 %v10_v1, %s36_s0  ;;  %23 = vrot.lane.b32.xlu1 %v22_v2, %s37_s8  ;;  %v16_v4 = vld [vmem:[#allocation1 + $0x2] sm:$0x1]   ;;  %8 = vst.msk [vmem:[#allocation0] sm:$0x1] %vm7_vm0, %v6_v3  }
   0xe   :  { %17 = vrot.lane.b32.xlu0 %v16_v4, %s38_s9 }
  0x7c   :  { %v12_v5 = vpop.permute.xlu0 %11   ;;  %v24_v6 = vpop.permute.xlu1 %23  }
  0x7d   :  { %14 = vst.msk [vmem:[#allocation0] sm:$0x1] %vm13_vm1, %v12_v5  }
  0x80   :  { %v18_v7 = vpop.permute.xlu0 %17  }
  0x81   :  { %20 = vst.msk [vmem:[#allocation0] sm:$0x1] %vm19_vm2, %v18_v7  }
  0x82   :  { %26 = vst.msk [vmem:[#allocation0] sm:$0x1] %vm25_vm3, %v24_v6  }
  0x89   :  { %v30_v8 = vld [vmem:[#allocation0] sm:$0x1] }
  0x8a   :  { %32 = vst [vmem:[%s56_s1] sm:$0x1] %v30_v8 }

// kernel: tile.18
= control target key start
LH: loop header
LB: loop body
LE: loop exit
PB: predicated region body
PF: predicated region fallthrough
CT: control target
= control target key end

     0   :  { %s22_s0 = inlined_call_operand.vmem [shape: f32[8], index: 0, kind: input, shape index: {}]   ;;  %s23_s1 = inlined_call_operand.vmem [shape: f32[4,8], index: 1, kind: output, shape index: {}]  }
   0x1   :  { %v4_v0 = vld [vmem:[%s22_s0] ss:$0 sm:$0xff] }
   0x2   :  { %5 = vst [vmem:[%s23_s1] sm:$0xf] %v4_v0 }

// kernel: upsample_block.3
= control target key start
LH: loop header
LB: loop body
LE: loop exit
PB: predicated region body
PF: predicated region fallthrough
CT: control target
= control target key end

     0   :  { %vm476_vm0 = vcmask 261120   ;;  %s1216_s0 = inlined_call_operand.vmem [shape: bf16[512,32], index: 0, kind: input, shape index: {}]   ;;  %s1217_s1 = inlined_call_operand.vmem [shape: f32[1,32], index: 1, kind: input, shape index: {}]   ;;  %s1218_s2 = inlined_call_operand.vmem [shape: f32[1,32], index: 2, kind: input, shape index: {}]   ;;  %s1219_s3 = inlined_call_operand.vmem [shape: f32[512,32], index: 3, kind: output, shape index: {}]  }
   0x1   :  { %v548_v0 = vld [vmem:[%s1216_s0] sm:$0xff]   ;;  %v675_v4 = vld [vmem:[%s1216_s0 + $0x8] sm:$0xff]   ;;  %v676_v5 = vld [vmem:[%s1216_s0 + $0x10] sm:$0xff]  }
   0x2   :  { %v732_v1 = vld [vmem:[%s1217_s1] ss:$0 sm:$0xff]  ;;  %v549_v2 = vunpack.c.l.bf16 %v548_v0  ;;  %v550_v3 = vunpack.c.h.bf16 %v548_v0  ;;  %v677_v6 = vld [vmem:[%s1216_s0 + $0x18] sm:$0xff]   ;;  %v553_v8 = vunpack.c.l.bf16 %v675_v4  ;;  %v554_v9 = vunpack.c.h.bf16 %v675_v4  ;;  %v679_v36 = vld [vmem:[%s1216_s0 + $0x28] sm:$0xff]  }
   0x3   :  { %v746_v7 = vld [vmem:[%s1218_s2] ss:$0 sm:$0xff]  ;;  %v557_v10 = vunpack.c.l.bf16 %v676_v5  ;;  %v558_v11 = vunpack.c.h.bf16 %v676_v5  ;;  %v561_v14 = vunpack.c.l.bf16 %v677_v6  ;;  %v562_v15 = vunpack.c.h.bf16 %v677_v6  ;;  %v680_v48 = vld [vmem:[%s1216_s0 + $0x30] sm:$0xff]   ;;  %v681_v55 = vld [vmem:[%s1216_s0 + $0x38] sm:$0xff]  }
   0x4   :  { %v149_v12 = vmul.f32 %v549_v2, %v732_v1  ;;  %v150_v13 = vmul.f32 %v550_v3, %v732_v1  ;;  %v151_v16 = vmul.f32 %v553_v8, %v732_v1  ;;  %v152_v17 = vmul.f32 %v554_v9, %v732_v1  ;;  %v678_v28 = vld [vmem:[%s1216_s0 + $0x20] sm:$0xff]  }
   0x5   :  { %v153_v18 = vmul.f32 %v557_v10, %v732_v1  ;;  %v154_v19 = vmul.f32 %v558_v11, %v732_v1  ;;  %v155_v22 = vmul.f32 %v561_v14, %v732_v1  ;;  %v156_v23 = vmul.f32 %v562_v15, %v732_v1  ;;  %v682_v14 = vld [vmem:[%s1216_s0 + $0x40] sm:$0xff]  }
   0x6   :  { %v220_v20 = vadd.f32 %v746_v7, %v149_v12  ;;  %v221_v21 = vadd.f32 %v746_v7, %v150_v13  ;;  %v222_v24 = vadd.f32 %v746_v7, %v151_v16  ;;  %v223_v25 = vadd.f32 %v746_v7, %v152_v17 }
   0x7   :  { %v224_v26 = vadd.f32 %v746_v7, %v153_v18  ;;  %v225_v27 = vadd.f32 %v746_v7, %v154_v19  ;;  %v226_v41 = vadd.f32 %v746_v7, %v155_v22  ;;  %v227_v42 = vadd.f32 %v746_v7, %v156_v23  ;;  %v683_v19 = vld [vmem:[%s1216_s0 + $0x48] sm:$0xff]  }
   0x8   :  { %vm284_vm1 = vcmp.ge.f32.partialorder %v220_v20, 0.0  ;;  %v348_v29 = vmul.f32 0.2, %v220_v20  ;;  %vm285_vm2 = vcmp.ge.f32.partialorder %v221_v21, 0.0  ;;  %v349_v30 = vmul.f32 0.2, %v221_v21 }
   0x9   :  { %vm286_vm3 = vcmp.ge.f32.partialorder %v222_v24, 0.0  ;;  %v350_v31 = vmul.f32 0.2, %v222_v24  ;;  %vm287_vm4 = vcmp.ge.f32.partialorder %v223_v25, 0.0  ;;  %v351_v32 = vmul.f32 0.2, %v223_v25 }
   0xa   :  { %v412_v33 = vsel %vm284_vm1, %v220_v20, %v348_v29  ;;  %v413_v34 = vsel %vm285_vm2, %v221_v21, %v349_v30  ;;  %vm288_vm5 = vcmp.ge.f32.partialorder %v224_v26, 0.0  ;;  %v352_v35 = vmul.f32 0.2, %v224_v26  ;;  %v684_v30 = vld [vmem:[%s1216_s0 + $0x50] sm:$0xff]  }
   0xb   :  { %477 = vst.msk [vmem:[%s1219_s3] sm:$0xff] %vm476_vm0, %v412_v33  ;;  %478 = vst.msk [vmem:[%s1219_s3 + $0x8] sm:$0xff] %vm476_vm0, %v413_v34  ;;  %v414_v37 = vsel %vm286_vm3, %v222_v24, %v350_v31  ;;  %v415_v38 = vsel %vm287_vm4, %v223_v25, %v351_v32  ;;  %vm289_vm6 = vcmp.ge.f32.partialorder %v225_v27, 0.0  ;;  %v353_v39 = vmul.f32 0.2, %v225_v27 }
   0xc   :  { %479 = vst.msk [vmem:[%s1219_s3 + $0x10] sm:$0xff] %vm476_vm0, %v414_v37  ;;  %480 = vst.msk [vmem:[%s1219_s3 + $0x18] sm:$0xff] %vm476_vm0, %v415_v38  ;;  %v416_v40 = vsel %vm288_vm5, %v224_v26, %v352_v35  ;;  %v565_v43 = vunpack.c.l.bf16 %v678_v28  ;;  %v566_v45 = vunpack.c.h.bf16 %v678_v28  ;;  %v569_v46 = vunpack.c.l.bf16 %v679_v36  ;;  %v685_v37 = vld [vmem:[%s1216_s0 + $0x58] sm:$0xff]  }
   0xd   :  { %481 = vst.msk [vmem:[%s1219_s3 + $0x20] sm:$0xff] %vm476_vm0, %v416_v40  ;;  %v417_v44 = vsel %vm289_vm6, %v225_v27, %v353_v39  ;;  %v570_v47 = vunpack.c.h.bf16 %v679_v36  ;;  %vm290_vm7 = vcmp.ge.f32.partialorder %v226_v41, 0.0  ;;  %v354_v49 = vmul.f32 0.2, %v226_v41 }
   0xe   :  { %482 = vst.msk [vmem:[%s1219_s3 + $0x28] sm:$0xff] %vm476_vm0, %v417_v44  ;;  %vm291_vm8 = vcmp.ge.f32.partialorder %v227_v42, 0.0  ;;  %v355_v50 = vmul.f32 0.2, %v227_v42  ;;  %v157_v51 = vmul.f32 %v565_v43, %v732_v1  ;;  %v158_v52 = vmul.f32 %v566_v45, %v732_v1 }
   0xf   :  { %v159_v53 = vmul.f32 %v569_v46, %v732_v1  ;;  %v160_v54 = vmul.f32 %v570_v47, %v732_v1  ;;  %v418_v56 = vsel %vm290_vm7, %v226_v41, %v354_v49  ;;  %v573_v58 = vunpack.c.l.bf16 %v680_v48 }
  0x10   :  { %v419_v57 = vsel %vm291_vm8, %v227_v42, %v355_v50  ;;  %v574_v59 = vunpack.c.h.bf16 %v680_v48  ;;  %483 = vst.msk [vmem:[%s1219_s3 + $0x30] sm:$0xff] %vm476_vm0, %v418_v56  ;;  %v228_v60 = vadd.f32 %v746_v7, %v157_v51  ;;  %v229_v61 = vadd.f32 %v746_v7, %v158_v52 }
  0x11   :  { %484 = vst.msk [vmem:[%s1219_s3 + $0x38] sm:$0xff] %vm476_vm0, %v419_v57  ;;  %v230_v62 = vadd.f32 %v746_v7, %v159_v53  ;;  %v231_v63 = vadd.f32 %v746_v7, %v160_v54  ;;  %v161_v0 = vmul.f32 %v573_v58, %v732_v1  ;;  %v577_v3 = vunpack.c.l.bf16 %v681_v55  ;;  %v686_v58 = vld [vmem:[%s1216_s0 + $0x60] sm:$0xff]  }
  0x12   :  { %v162_v2 = vmul.f32 %v574_v59, %v732_v1  ;;  %v578_v4 = vunpack.c.h.bf16 %v681_v55  ;;  %vm292_vm9 = vcmp.ge.f32.partialorder %v228_v60, 0.0  ;;  %v356_v5 = vmul.f32 0.2, %v228_v60 }
  0x13   :  { %vm293_vm10 = vcmp.ge.f32.partialorder %v229_v61, 0.0  ;;  %v357_v6 = vmul.f32 0.2, %v229_v61  ;;  %vm294_vm11 = vcmp.ge.f32.partialorder %v230_v62, 0.0  ;;  %v358_v8 = vmul.f32 0.2, %v230_v62 }
  0x14   :  { %vm295_vm12 = vcmp.ge.f32.partialorder %v231_v63, 0.0  ;;  %v359_v9 = vmul.f32 0.2, %v231_v63  ;;  %v420_v10 = vsel %vm292_vm9, %v228_v60, %v356_v5  ;;  %v232_v12 = vadd.f32 %v746_v7, %v161_v0 }
  0x15   :  { %v421_v11 = vsel %vm293_vm10, %v229_v61, %v357_v6  ;;  %v233_v13 = vadd.f32 %v746_v7, %v162_v2  ;;  %485 = vst.msk [vmem:[%s1219_s3 + $0x40] sm:$0xff] %vm476_vm0, %v420_v10  ;;  %v422_v15 = vsel %vm294_vm11, %v230_v62, %v358_v8  ;;  %v163_v17 = vmul.f32 %v577_v3, %v732_v1 }
  0x16   :  { %486 = vst.msk [vmem:[%s1219_s3 + $0x48] sm:$0xff] %vm476_vm0, %v421_v11  ;;  %v423_v16 = vsel %vm295_vm12, %v231_v63, %v359_v9  ;;  %v164_v18 = vmul.f32 %v578_v4, %v732_v1  ;;  %487 = vst.msk [vmem:[%s1219_s3 + $0x50] sm:$0xff] %vm476_vm0, %v422_v15  ;;  %vm296_vm13 = vcmp.ge.f32.partialorder %v232_v12, 0.0  ;;  %v360_v20 = vmul.f32 0.2, %v232_v12  ;;  %v687_v63 = vld [vmem:[%s1216_s0 + $0x68] sm:$0xff]  }
  0x17   :  { %488 = vst.msk [vmem:[%s1219_s3 + $0x58] sm:$0xff] %vm476_vm0, %v423_v16  ;;  %vm297_vm14 = vcmp.ge.f32.partialorder %v233_v13, 0.0  ;;  %v361_v21 = vmul.f32 0.2, %v233_v13  ;;  %v234_v22 = vadd.f32 %v746_v7, %v163_v17  ;;  %v581_v24 = vunpack.c.l.bf16 %v682_v14 }
  0x18   :  { %v235_v23 = vadd.f32 %v746_v7, %v164_v18  ;;  %v582_v25 = vunpack.c.h.bf16 %v682_v14  ;;  %v424_v26 = vsel %vm296_vm13, %v232_v12, %v360_v20  ;;  %v585_v28 = vunpack.c.l.bf16 %v683_v19  ;;  %v688_v12 = vld [vmem:[%s1216_s0 + $0x70] sm:$0xff]  }
  0x19   :  { %v425_v27 = vsel %vm297_vm14, %v233_v13, %v361_v21  ;;  %v586_v29 = vunpack.c.h.bf16 %v683_v19  ;;  %489 = vst.msk [vmem:[%s1219_s3 + $0x60] sm:$0xff] %vm476_vm0, %v424_v26  ;;  %vm298_vm15 = vcmp.ge.f32.partialorder %v234_v22, 0.0  ;;  %v362_v31 = vmul.f32 0.2, %v234_v22  ;;  %v689_v19 = vld [vmem:[%s1216_s0 + $0x78] sm:$0xff]  }
  0x1a   :  { %490 = vst.msk [vmem:[%s1219_s3 + $0x68] sm:$0xff] %vm476_vm0, %v425_v27  ;;  %vm299_vm1 = vcmp.ge.f32.partialorder %v235_v23, 0.0  ;;  %v363_v32 = vmul.f32 0.2, %v235_v23  ;;  %v165_v33 = vmul.f32 %v581_v24, %v732_v1  ;;  %v166_v34 = vmul.f32 %v582_v25, %v732_v1 }
  0x1b   :  { %v167_v35 = vmul.f32 %v585_v28, %v732_v1  ;;  %v168_v36 = vmul.f32 %v586_v29, %v732_v1  ;;  %v426_v38 = vsel %vm298_vm15, %v234_v22, %v362_v31  ;;  %v589_v40 = vunpack.c.l.bf16 %v684_v30 }
  0x1c   :  { %v427_v39 = vsel %vm299_vm1, %v235_v23, %v363_v32  ;;  %v590_v41 = vunpack.c.h.bf16 %v684_v30  ;;  %491 = vst.msk [vmem:[%s1219_s3 + $0x70] sm:$0xff] %vm476_vm0, %v426_v38  ;;  %v236_v42 = vadd.f32 %v746_v7, %v165_v33  ;;  %v237_v43 = vadd.f32 %v746_v7, %v166_v34 }
  0x1d   :  { %492 = vst.msk [vmem:[%s1219_s3 + $0x78] sm:$0xff] %vm476_vm0, %v427_v39  ;;  %v238_v44 = vadd.f32 %v746_v7, %v167_v35  ;;  %v239_v45 = vadd.f32 %v746_v7, %v168_v36  ;;  %v169_v46 = vmul.f32 %v589_v40, %v732_v1  ;;  %v593_v48 = vunpack.c.l.bf16 %v685_v37  ;;  %v690_v40 = vld [vmem:[%s1216_s0 + $0x80] sm:$0xff]  }
  0x1e   :  { %v170_v47 = vmul.f32 %v590_v41, %v732_v1  ;;  %v594_v49 = vunpack.c.h.bf16 %v685_v37  ;;  %vm300_vm2 = vcmp.ge.f32.partialorder %v236_v42, 0.0  ;;  %v364_v50 = vmul.f32 0.2, %v236_v42 }
  0x1f   :  { %vm301_vm3 = vcmp.ge.f32.partialorder %v237_v43, 0.0  ;;  %v365_v51 = vmul.f32 0.2, %v237_v43  ;;  %vm302_vm4 = vcmp.ge.f32.partialorder %v238_v44, 0.0  ;;  %v366_v52 = vmul.f32 0.2, %v238_v44 }
  0x20   :  { %vm303_vm5 = vcmp.ge.f32.partialorder %v239_v45, 0.0  ;;  %v367_v53 = vmul.f32 0.2, %v239_v45  ;;  %v428_v54 = vsel %vm300_vm2, %v236_v42, %v364_v50  ;;  %v240_v56 = vadd.f32 %v746_v7, %v169_v46 }
  0x21   :  { %v429_v55 = vsel %vm301_vm3, %v237_v43, %v365_v51  ;;  %v241_v57 = vadd.f32 %v746_v7, %v170_v47  ;;  %493 = vst.msk [vmem:[%s1219_s3 + $0x80] sm:$0xff] %vm476_vm0, %v428_v54  ;;  %v430_v59 = vsel %vm302_vm4, %v238_v44, %v366_v52  ;;  %v171_v61 = vmul.f32 %v593_v48, %v732_v1 }
  0x22   :  { %494 = vst.msk [vmem:[%s1219_s3 + $0x88] sm:$0xff] %vm476_vm0, %v429_v55  ;;  %v431_v60 = vsel %vm303_vm5, %v239_v45, %v367_v53  ;;  %v172_v62 = vmul.f32 %v594_v49, %v732_v1  ;;  %495 = vst.msk [vmem:[%s1219_s3 + $0x90] sm:$0xff] %vm476_vm0, %v430_v59  ;;  %vm304_vm6 = vcmp.ge.f32.partialorder %v240_v56, 0.0  ;;  %v368_v0 = vmul.f32 0.2, %v240_v56  ;;  %v691_v45 = vld [vmem:[%s1216_s0 + $0x88] sm:$0xff]  }
  0x23   :  { %496 = vst.msk [vmem:[%s1219_s3 + $0x98] sm:$0xff] %vm476_vm0, %v431_v60  ;;  %vm305_vm7 = vcmp.ge.f32.partialorder %v241_v57, 0.0  ;;  %v369_v2 = vmul.f32 0.2, %v241_v57  ;;  %v242_v3 = vadd.f32 %v746_v7, %v171_v61  ;;  %v597_v5 = vunpack.c.l.bf16 %v686_v58 }
  0x24   :  { %v243_v4 = vadd.f32 %v746_v7, %v172_v62  ;;  %v598_v6 = vunpack.c.h.bf16 %v686_v58  ;;  %v432_v8 = vsel %vm304_vm6, %v240_v56, %v368_v0  ;;  %v601_v10 = vunpack.c.l.bf16 %v687_v63  ;;  %v692_v56 = vld [vmem:[%s1216_s0 + $0x90] sm:$0xff]  }
  0x25   :  { %v433_v9 = vsel %vm305_vm7, %v241_v57, %v369_v2  ;;  %v602_v11 = vunpack.c.h.bf16 %v687_v63  ;;  %497 = vst.msk [vmem:[%s1219_s3 + $0xa0] sm:$0xff] %vm476_vm0, %v432_v8  ;;  %vm306_vm8 = vcmp.ge.f32.partialorder %v242_v3, 0.0  ;;  %v370_v13 = vmul.f32 0.2, %v242_v3  ;;  %v693_v63 = vld [vmem:[%s1216_s0 + $0x98] sm:$0xff]  }
  0x26   :  { %498 = vst.msk [vmem:[%s1219_s3 + $0xa8] sm:$0xff] %vm476_vm0, %v433_v9  ;;  %vm307_vm9 = vcmp.ge.f32.partialorder %v243_v4, 0.0  ;;  %v371_v14 = vmul.f32 0.2, %v243_v4  ;;  %v173_v15 = vmul.f32 %v597_v5, %v732_v1  ;;  %v174_v16 = vmul.f32 %v598_v6, %v732_v1 }
  0x27   :  { %v175_v17 = vmul.f32 %v601_v10, %v732_v1  ;;  %v176_v18 = vmul.f32 %v602_v11, %v732_v1  ;;  %v434_v20 = vsel %vm306_vm8, %v242_v3, %v370_v13  ;;  %v605_v22 = vunpack.c.l.bf16 %v688_v12 }
  0x28   :  { %v435_v21 = vsel %vm307_vm9, %v243_v4, %v371_v14  ;;  %v606_v23 = vunpack.c.h.bf16 %v688_v12  ;;  %499 = vst.msk [vmem:[%s1219_s3 + $0xb0] sm:$0xff] %vm476_vm0, %v434_v20  ;;  %v244_v24 = vadd.f32 %v746_v7, %v173_v15  ;;  %v245_v25 = vadd.f32 %v746_v7, %v174_v16 }
  0x29   :  { %500 = vst.msk [vmem:[%s1219_s3 + $0xb8] sm:$0xff] %vm476_vm0, %v435_v21  ;;  %v246_v26 = vadd.f32 %v746_v7, %v175_v17  ;;  %v247_v27 = vadd.f32 %v746_v7, %v176_v18  ;;  %v177_v28 = vmul.f32 %v605_v22, %v732_v1  ;;  %v609_v30 = vunpack.c.l.bf16 %v689_v19  ;;  %v694_v22 = vld [vmem:[%s1216_s0 + $0xa0] sm:$0xff]  }
  0x2a   :  { %v178_v29 = vmul.f32 %v606_v23, %v732_v1  ;;  %v610_v31 = vunpack.c.h.bf16 %v689_v19  ;;  %vm308_vm10 = vcmp.ge.f32.partialorder %v244_v24, 0.0  ;;  %v372_v32 = vmul.f32 0.2, %v244_v24 }
  0x2b   :  { %vm309_vm11 = vcmp.ge.f32.partialorder %v245_v25, 0.0  ;;  %v373_v33 = vmul.f32 0.2, %v245_v25  ;;  %vm310_vm12 = vcmp.ge.f32.partialorder %v246_v26, 0.0  ;;  %v374_v34 = vmul.f32 0.2, %v246_v26 }
  0x2c   :  { %vm311_vm13 = vcmp.ge.f32.partialorder %v247_v27, 0.0  ;;  %v375_v35 = vmul.f32 0.2, %v247_v27  ;;  %v436_v36 = vsel %vm308_vm10, %v244_v24, %v372_v32  ;;  %v248_v38 = vadd.f32 %v746_v7, %v177_v28 }
  0x2d   :  { %v437_v37 = vsel %vm309_vm11, %v245_v25, %v373_v33  ;;  %v249_v39 = vadd.f32 %v746_v7, %v178_v29  ;;  %501 = vst.msk [vmem:[%s1219_s3 + $0xc0] sm:$0xff] %vm476_vm0, %v436_v36  ;;  %v438_v41 = vsel %vm310_vm12, %v246_v26, %v374_v34  ;;  %v179_v43 = vmul.f32 %v609_v30, %v732_v1 }
  0x2e   :  { %502 = vst.msk [vmem:[%s1219_s3 + $0xc8] sm:$0xff] %vm476_vm0, %v437_v37  ;;  %v439_v42 = vsel %vm311_vm13, %v247_v27, %v375_v35  ;;  %v180_v44 = vmul.f32 %v610_v31, %v732_v1  ;;  %503 = vst.msk [vmem:[%s1219_s3 + $0xd0] sm:$0xff] %vm476_vm0, %v438_v41  ;;  %vm312_vm14 = vcmp.ge.f32.partialorder %v248_v38, 0.0  ;;  %v376_v46 = vmul.f32 0.2, %v248_v38  ;;  %v695_v27 = vld [vmem:[%s1216_s0 + $0xa8] sm:$0xff]  }
  0x2f   :  { %504 = vst.msk [vmem:[%s1219_s3 + $0xd8] sm:$0xff] %vm476_vm0, %v439_v42  ;;  %vm313_vm15 = vcmp.ge.f32.partialorder %v249_v39, 0.0  ;;  %v377_v47 = vmul.f32 0.2, %v249_v39  ;;  %v250_v48 = vadd.f32 %v746_v7, %v179_v43  ;;  %v613_v50 = vunpack.c.l.bf16 %v690_v40 }
  0x30   :  { %v251_v49 = vadd.f32 %v746_v7, %v180_v44  ;;  %v614_v51 = vunpack.c.h.bf16 %v690_v40  ;;  %v440_v52 = vsel %vm312_vm14, %v248_v38, %v376_v46  ;;  %v617_v54 = vunpack.c.l.bf16 %v691_v45  ;;  %v696_v38 = vld [vmem:[%s1216_s0 + $0xb0] sm:$0xff]  }
  0x31   :  { %v441_v53 = vsel %vm313_vm15, %v249_v39, %v377_v47  ;;  %v618_v55 = vunpack.c.h.bf16 %v691_v45  ;;  %505 = vst.msk [vmem:[%s1219_s3 + $0xe0] sm:$0xff] %vm476_vm0, %v440_v52  ;;  %vm314_vm1 = vcmp.ge.f32.partialorder %v250_v48, 0.0  ;;  %v378_v57 = vmul.f32 0.2, %v250_v48  ;;  %v697_v45 = vld [vmem:[%s1216_s0 + $0xb8] sm:$0xff]  }
  0x32   :  { %506 = vst.msk [vmem:[%s1219_s3 + $0xe8] sm:$0xff] %vm476_vm0, %v441_v53  ;;  %vm315_vm2 = vcmp.ge.f32.partialorder %v251_v49, 0.0  ;;  %v379_v58 = vmul.f32 0.2, %v251_v49  ;;  %v181_v59 = vmul.f32 %v613_v50, %v732_v1  ;;  %v182_v60 = vmul.f32 %v614_v51, %v732_v1 }
  0x33   :  { %v183_v61 = vmul.f32 %v617_v54, %v732_v1  ;;  %v184_v62 = vmul.f32 %v618_v55, %v732_v1  ;;  %v442_v0 = vsel %vm314_vm1, %v250_v48, %v378_v57  ;;  %v621_v3 = vunpack.c.l.bf16 %v692_v56 }
  0x34   :  { %v443_v2 = vsel %vm315_vm2, %v251_v49, %v379_v58  ;;  %v622_v4 = vunpack.c.h.bf16 %v692_v56  ;;  %507 = vst.msk [vmem:[%s1219_s3 + $0xf0] sm:$0xff] %vm476_vm0, %v442_v0  ;;  %v252_v5 = vadd.f32 %v746_v7, %v181_v59  ;;  %v253_v6 = vadd.f32 %v746_v7, %v182_v60 }
  0x35   :  { %508 = vst.msk [vmem:[%s1219_s3 + $0xf8] sm:$0xff] %vm476_vm0, %v443_v2  ;;  %v254_v8 = vadd.f32 %v746_v7, %v183_v61  ;;  %v255_v9 = vadd.f32 %v746_v7, %v184_v62  ;;  %v185_v10 = vmul.f32 %v621_v3, %v732_v1  ;;  %v625_v12 = vunpack.c.l.bf16 %v693_v63  ;;  %v698_v3 = vld [vmem:[%s1216_s0 + $0xc0] sm:$0xff]  }
  0x36   :  { %v186_v11 = vmul.f32 %v622_v4, %v732_v1  ;;  %v626_v13 = vunpack.c.h.bf16 %v693_v63  ;;  %vm316_vm3 = vcmp.ge.f32.partialorder %v252_v5, 0.0  ;;  %v380_v14 = vmul.f32 0.2, %v252_v5 }
  0x37   :  { %vm317_vm4 = vcmp.ge.f32.partialorder %v253_v6, 0.0  ;;  %v381_v15 = vmul.f32 0.2, %v253_v6  ;;  %vm318_vm5 = vcmp.ge.f32.partialorder %v254_v8, 0.0  ;;  %v382_v16 = vmul.f32 0.2, %v254_v8 }
  0x38   :  { %vm319_vm6 = vcmp.ge.f32.partialorder %v255_v9, 0.0  ;;  %v383_v17 = vmul.f32 0.2, %v255_v9  ;;  %v444_v18 = vsel %vm316_vm3, %v252_v5, %v380_v14  ;;  %v256_v20 = vadd.f32 %v746_v7, %v185_v10 }
  0x39   :  { %v445_v19 = vsel %vm317_vm4, %v253_v6, %v381_v15  ;;  %v257_v21 = vadd.f32 %v746_v7, %v186_v11  ;;  %509 = vst.msk [vmem:[%s1219_s3 + $0x100] sm:$0xff] %vm476_vm0, %v444_v18  ;;  %v446_v23 = vsel %vm318_vm5, %v254_v8, %v382_v16  ;;  %v187_v25 = vmul.f32 %v625_v12, %v732_v1 }
  0x3a   :  { %510 = vst.msk [vmem:[%s1219_s3 + $0x108] sm:$0xff] %vm476_vm0, %v445_v19  ;;  %v447_v24 = vsel %vm319_vm6, %v255_v9, %v383_v17  ;;  %v188_v26 = vmul.f32 %v626_v13, %v732_v1  ;;  %511 = vst.msk [vmem:[%s1219_s3 + $0x110] sm:$0xff] %vm476_vm0, %v446_v23  ;;  %vm320_vm7 = vcmp.ge.f32.partialorder %v256_v20, 0.0  ;;  %v384_v28 = vmul.f32 0.2, %v256_v20  ;;  %v699_v9 = vld [vmem:[%s1216_s0 + $0xc8] sm:$0xff]  }
  0x3b   :  { %512 = vst.msk [vmem:[%s1219_s3 + $0x118] sm:$0xff] %vm476_vm0, %v447_v24  ;;  %vm321_vm8 = vcmp.ge.f32.partialorder %v257_v21, 0.0  ;;  %v385_v29 = vmul.f32 0.2, %v257_v21  ;;  %v258_v30 = vadd.f32 %v746_v7, %v187_v25  ;;  %v629_v32 = vunpack.c.l.bf16 %v694_v22 }
  0x3c   :  { %v259_v31 = vadd.f32 %v746_v7, %v188_v26  ;;  %v630_v33 = vunpack.c.h.bf16 %v694_v22  ;;  %v448_v34 = vsel %vm320_vm7, %v256_v20, %v384_v28  ;;  %v633_v36 = vunpack.c.l.bf16 %v695_v27  ;;  %v700_v20 = vld [vmem:[%s1216_s0 + $0xd0] sm:$0xff]  }
  0x3d   :  { %v449_v35 = vsel %vm321_vm8, %v257_v21, %v385_v29  ;;  %v634_v37 = vunpack.c.h.bf16 %v695_v27  ;;  %513 = vst.msk [vmem:[%s1219_s3 + $0x120] sm:$0xff] %vm476_vm0, %v448_v34  ;;  %vm322_vm9 = vcmp.ge.f32.partialorder %v258_v30, 0.0  ;;  %v386_v39 = vmul.f32 0.2, %v258_v30  ;;  %v701_v27 = vld [vmem:[%s1216_s0 + $0xd8] sm:$0xff]  }
  0x3e   :  { %514 = vst.msk [vmem:[%s1219_s3 + $0x128] sm:$0xff] %vm476_vm0, %v449_v35  ;;  %vm323_vm10 = vcmp.ge.f32.partialorder %v259_v31, 0.0  ;;  %v387_v40 = vmul.f32 0.2, %v259_v31  ;;  %v189_v41 = vmul.f32 %v629_v32, %v732_v1  ;;  %v190_v42 = vmul.f32 %v630_v33, %v732_v1 }
  0x3f   :  { %v191_v43 = vmul.f32 %v633_v36, %v732_v1  ;;  %v192_v44 = vmul.f32 %v634_v37, %v732_v1  ;;  %v450_v46 = vsel %vm322_vm9, %v258_v30, %v386_v39  ;;  %v637_v48 = vunpack.c.l.bf16 %v696_v38 }
  0x40   :  { %v451_v47 = vsel %vm323_vm10, %v259_v31, %v387_v40  ;;  %v638_v49 = vunpack.c.h.bf16 %v696_v38  ;;  %515 = vst.msk [vmem:[%s1219_s3 + $0x130] sm:$0xff] %vm476_vm0, %v450_v46  ;;  %v260_v50 = vadd.f32 %v746_v7, %v189_v41  ;;  %v261_v51 = vadd.f32 %v746_v7, %v190_v42 }
  0x41   :  { %516 = vst.msk [vmem:[%s1219_s3 + $0x138] sm:$0xff] %vm476_vm0, %v451_v47  ;;  %v262_v52 = vadd.f32 %v746_v7, %v191_v43  ;;  %v263_v53 = vadd.f32 %v746_v7, %v192_v44  ;;  %v193_v54 = vmul.f32 %v637_v48, %v732_v1  ;;  %v641_v56 = vunpack.c.l.bf16 %v697_v45  ;;  %v702_v48 = vld [vmem:[%s1216_s0 + $0xe0] sm:$0xff]  }
  0x42   :  { %v194_v55 = vmul.f32 %v638_v49, %v732_v1  ;;  %v642_v57 = vunpack.c.h.bf16 %v697_v45  ;;  %vm324_vm11 = vcmp.ge.f32.partialorder %v260_v50, 0.0  ;;  %v388_v58 = vmul.f32 0.2, %v260_v50 }
  0x43   :  { %vm325_vm12 = vcmp.ge.f32.partialorder %v261_v51, 0.0  ;;  %v389_v59 = vmul.f32 0.2, %v261_v51  ;;  %vm326_vm13 = vcmp.ge.f32.partialorder %v262_v52, 0.0  ;;  %v390_v60 = vmul.f32 0.2, %v262_v52 }
  0x44   :  { %vm327_vm14 = vcmp.ge.f32.partialorder %v263_v53, 0.0  ;;  %v391_v61 = vmul.f32 0.2, %v263_v53  ;;  %v452_v62 = vsel %vm324_vm11, %v260_v50, %v388_v58  ;;  %v264_v0 = vadd.f32 %v746_v7, %v193_v54 }
  0x45   :  { %v453_v63 = vsel %vm325_vm12, %v261_v51, %v389_v59  ;;  %v265_v2 = vadd.f32 %v746_v7, %v194_v55  ;;  %517 = vst.msk [vmem:[%s1219_s3 + $0x140] sm:$0xff] %vm476_vm0, %v452_v62  ;;  %v454_v4 = vsel %vm326_vm13, %v262_v52, %v390_v60  ;;  %v195_v6 = vmul.f32 %v641_v56, %v732_v1 }
  0x46   :  { %518 = vst.msk [vmem:[%s1219_s3 + $0x148] sm:$0xff] %vm476_vm0, %v453_v63  ;;  %v455_v5 = vsel %vm327_vm14, %v263_v53, %v391_v61  ;;  %v196_v8 = vmul.f32 %v642_v57, %v732_v1  ;;  %519 = vst.msk [vmem:[%s1219_s3 + $0x150] sm:$0xff] %vm476_vm0, %v454_v4  ;;  %vm328_vm15 = vcmp.ge.f32.partialorder %v264_v0, 0.0  ;;  %v392_v10 = vmul.f32 0.2, %v264_v0  ;;  %v703_v53 = vld [vmem:[%s1216_s0 + $0xe8] sm:$0xff]  }
  0x47   :  { %520 = vst.msk [vmem:[%s1219_s3 + $0x158] sm:$0xff] %vm476_vm0, %v455_v5  ;;  %vm329_vm1 = vcmp.ge.f32.partialorder %v265_v2, 0.0  ;;  %v393_v11 = vmul.f32 0.2, %v265_v2  ;;  %v266_v12 = vadd.f32 %v746_v7, %v195_v6  ;;  %v645_v14 = vunpack.c.l.bf16 %v698_v3 }
  0x48   :  { %v267_v13 = vadd.f32 %v746_v7, %v196_v8  ;;  %v646_v15 = vunpack.c.h.bf16 %v698_v3  ;;  %v456_v16 = vsel %vm328_vm15, %v264_v0, %v392_v10  ;;  %v649_v18 = vunpack.c.l.bf16 %v699_v9  ;;  %v704_v0 = vld [vmem:[%s1216_s0 + $0xf0] sm:$0xff]  }
  0x49   :  { %v457_v17 = vsel %vm329_vm1, %v265_v2, %v393_v11  ;;  %v650_v19 = vunpack.c.h.bf16 %v699_v9  ;;  %521 = vst.msk [vmem:[%s1219_s3 + $0x160] sm:$0xff] %vm476_vm0, %v456_v16  ;;  %vm330_vm2 = vcmp.ge.f32.partialorder %v266_v12, 0.0  ;;  %v394_v21 = vmul.f32 0.2, %v266_v12  ;;  %v705_v9 = vld [vmem:[%s1216_s0 + $0xf8] sm:$0xff]  }
  0x4a   :  { %522 = vst.msk [vmem:[%s1219_s3 + $0x168] sm:$0xff] %vm476_vm0, %v457_v17  ;;  %vm331_vm3 = vcmp.ge.f32.partialorder %v267_v13, 0.0  ;;  %v395_v22 = vmul.f32 0.2, %v267_v13  ;;  %v197_v23 = vmul.f32 %v645_v14, %v732_v1  ;;  %v198_v24 = vmul.f32 %v646_v15, %v732_v1 }
  0x4b   :  { %v199_v25 = vmul.f32 %v649_v18, %v732_v1  ;;  %v200_v26 = vmul.f32 %v650_v19, %v732_v1  ;;  %v458_v28 = vsel %vm330_vm2, %v266_v12, %v394_v21  ;;  %v653_v30 = vunpack.c.l.bf16 %v700_v20 }
  0x4c   :  { %v459_v29 = vsel %vm331_vm3, %v267_v13, %v395_v22  ;;  %v654_v31 = vunpack.c.h.bf16 %v700_v20  ;;  %523 = vst.msk [vmem:[%s1219_s3 + $0x170] sm:$0xff] %vm476_vm0, %v458_v28  ;;  %v268_v32 = vadd.f32 %v746_v7, %v197_v23  ;;  %v269_v33 = vadd.f32 %v746_v7, %v198_v24 }
  0x4d   :  { %524 = vst.msk [vmem:[%s1219_s3 + $0x178] sm:$0xff] %vm476_vm0, %v459_v29  ;;  %v270_v34 = vadd.f32 %v746_v7, %v199_v25  ;;  %v271_v35 = vadd.f32 %v746_v7, %v200_v26  ;;  %v201_v36 = vmul.f32 %v653_v30, %v732_v1  ;;  %v657_v38 = vunpack.c.l.bf16 %v701_v27 }
  0x4e   :  { %v202_v37 = vmul.f32 %v654_v31, %v732_v1  ;;  %v658_v39 = vunpack.c.h.bf16 %v701_v27  ;;  %vm332_vm4 = vcmp.ge.f32.partialorder %v268_v32, 0.0  ;;  %v396_v40 = vmul.f32 0.2, %v268_v32 }
  0x4f   :  { %vm333_vm5 = vcmp.ge.f32.partialorder %v269_v33, 0.0  ;;  %v397_v41 = vmul.f32 0.2, %v269_v33  ;;  %vm334_vm6 = vcmp.ge.f32.partialorder %v270_v34, 0.0  ;;  %v398_v42 = vmul.f32 0.2, %v270_v34 }
  0x50   :  { %vm335_vm7 = vcmp.ge.f32.partialorder %v271_v35, 0.0  ;;  %v399_v43 = vmul.f32 0.2, %v271_v35  ;;  %v460_v44 = vsel %vm332_vm4, %v268_v32, %v396_v40  ;;  %v272_v46 = vadd.f32 %v746_v7, %v201_v36 }
  0x51   :  { %v461_v45 = vsel %vm333_vm5, %v269_v33, %v397_v41  ;;  %v273_v47 = vadd.f32 %v746_v7, %v202_v37  ;;  %525 = vst.msk [vmem:[%s1219_s3 + $0x180] sm:$0xff] %vm476_vm0, %v460_v44  ;;  %v462_v49 = vsel %vm334_vm6, %v270_v34, %v398_v42  ;;  %v203_v51 = vmul.f32 %v657_v38, %v732_v1 }
  0x52   :  { %526 = vst.msk [vmem:[%s1219_s3 + $0x188] sm:$0xff] %vm476_vm0, %v461_v45  ;;  %v463_v50 = vsel %vm335_vm7, %v271_v35, %v399_v43  ;;  %v204_v52 = vmul.f32 %v658_v39, %v732_v1  ;;  %527 = vst.msk [vmem:[%s1219_s3 + $0x190] sm:$0xff] %vm476_vm0, %v462_v49  ;;  %vm336_vm8 = vcmp.ge.f32.partialorder %v272_v46, 0.0  ;;  %v400_v54 = vmul.f32 0.2, %v272_v46 }
  0x53   :  { %528 = vst.msk [vmem:[%s1219_s3 + $0x198] sm:$0xff] %vm476_vm0, %v463_v50  ;;  %vm337_vm9 = vcmp.ge.f32.partialorder %v273_v47, 0.0  ;;  %v401_v55 = vmul.f32 0.2, %v273_v47  ;;  %v274_v56 = vadd.f32 %v746_v7, %v203_v51  ;;  %v661_v58 = vunpack.c.l.bf16 %v702_v48 }
  0x54   :  { %v275_v57 = vadd.f32 %v746_v7, %v204_v52  ;;  %v662_v59 = vunpack.c.h.bf16 %v702_v48  ;;  %v464_v60 = vsel %vm336_vm8, %v272_v46, %v400_v54  ;;  %v665_v62 = vunpack.c.l.bf16 %v703_v53 }
  0x55   :  { %v465_v61 = vsel %vm337_vm9, %v273_v47, %v401_v55  ;;  %v666_v63 = vunpack.c.h.bf16 %v703_v53  ;;  %529 = vst.msk [vmem:[%s1219_s3 + $0x1a0] sm:$0xff] %vm476_vm0, %v464_v60  ;;  %vm338_vm10 = vcmp.ge.f32.partialorder %v274_v56, 0.0  ;;  %v402_v2 = vmul.f32 0.2, %v274_v56 }
  0x56   :  { %530 = vst.msk [vmem:[%s1219_s3 + $0x1a8] sm:$0xff] %vm476_vm0, %v465_v61  ;;  %vm339_vm11 = vcmp.ge.f32.partialorder %v275_v57, 0.0  ;;  %v403_v3 = vmul.f32 0.2, %v275_v57  ;;  %v205_v4 = vmul.f32 %v661_v58, %v732_v1  ;;  %v206_v5 = vmul.f32 %v662_v59, %v732_v1 }
  0x57   :  { %v207_v6 = vmul.f32 %v665_v62, %v732_v1  ;;  %v208_v8 = vmul.f32 %v666_v63, %v732_v1  ;;  %v466_v10 = vsel %vm338_vm10, %v274_v56, %v402_v2  ;;  %v669_v12 = vunpack.c.l.bf16 %v704_v0 }
  0x58   :  { %v467_v11 = vsel %vm339_vm11, %v275_v57, %v403_v3  ;;  %v670_v13 = vunpack.c.h.bf16 %v704_v0  ;;  %531 = vst.msk [vmem:[%s1219_s3 + $0x1b0] sm:$0xff] %vm476_vm0, %v466_v10  ;;  %v276_v14 = vadd.f32 %v746_v7, %v205_v4  ;;  %v277_v15 = vadd.f32 %v746_v7, %v206_v5 }
  0x59   :  { %532 = vst.msk [vmem:[%s1219_s3 + $0x1b8] sm:$0xff] %vm476_vm0, %v467_v11  ;;  %v278_v16 = vadd.f32 %v746_v7, %v207_v6  ;;  %v279_v17 = vadd.f32 %v746_v7, %v208_v8  ;;  %v209_v18 = vmul.f32 %v669_v12, %v732_v1  ;;  %v673_v20 = vunpack.c.l.bf16 %v705_v9 }
  0x5a   :  { %v210_v19 = vmul.f32 %v670_v13, %v732_v1  ;;  %v674_v21 = vunpack.c.h.bf16 %v705_v9  ;;  %vm340_vm12 = vcmp.ge.f32.partialorder %v276_v14, 0.0  ;;  %v404_v22 = vmul.f32 0.2, %v276_v14 }
  0x5b   :  { %vm341_vm13 = vcmp.ge.f32.partialorder %v277_v15, 0.0  ;;  %v405_v23 = vmul.f32 0.2, %v277_v15  ;;  %vm342_vm14 = vcmp.ge.f32.partialorder %v278_v16, 0.0  ;;  %v406_v24 = vmul.f32 0.2, %v278_v16 }
  0x5c   :  { %vm343_vm15 = vcmp.ge.f32.partialorder %v279_v17, 0.0  ;;  %v407_v25 = vmul.f32 0.2, %v279_v17  ;;  %v468_v26 = vsel %vm340_vm12, %v276_v14, %v404_v22  ;;  %v280_v28 = vadd.f32 %v746_v7, %v209_v18 }
  0x5d   :  { %v469_v27 = vsel %vm341_vm13, %v277_v15, %v405_v23  ;;  %v281_v29 = vadd.f32 %v746_v7, %v210_v19  ;;  %533 = vst.msk [vmem:[%s1219_s3 + $0x1c0] sm:$0xff] %vm476_vm0, %v468_v26  ;;  %v470_v30 = vsel %vm342_vm14, %v278_v16, %v406_v24  ;;  %v211_v32 = vmul.f32 %v673_v20, %v732_v1 }
  0x5e   :  { %534 = vst.msk [vmem:[%s1219_s3 + $0x1c8] sm:$0xff] %vm476_vm0, %v469_v27  ;;  %v471_v31 = vsel %vm343_vm15, %v279_v17, %v407_v25  ;;  %v212_v33 = vmul.f32 %v674_v21, %v732_v1  ;;  %535 = vst.msk [vmem:[%s1219_s3 + $0x1d0] sm:$0xff] %vm476_vm0, %v470_v30  ;;  %vm344_vm1 = vcmp.ge.f32.partialorder %v280_v28, 0.0  ;;  %v408_v34 = vmul.f32 0.2, %v280_v28 }
  0x5f   :  { %536 = vst.msk [vmem:[%s1219_s3 + $0x1d8] sm:$0xff] %vm476_vm0, %v471_v31  ;;  %vm345_vm2 = vcmp.ge.f32.partialorder %v281_v29, 0.0  ;;  %v409_v35 = vmul.f32 0.2, %v281_v29  ;;  %v282_v36 = vadd.f32 %v746_v7, %v211_v32 }
  0x60   :  { %v283_v37 = vadd.f32 %v746_v7, %v212_v33  ;;  %v472_v38 = vsel %vm344_vm1, %v280_v28, %v408_v34 }
  0x61   :  { %v473_v1 = vsel %vm345_vm2, %v281_v29, %v409_v35  ;;  %537 = vst.msk [vmem:[%s1219_s3 + $0x1e0] sm:$0xff] %vm476_vm0, %v472_v38  ;;  %vm346_vm3 = vcmp.ge.f32.partialorder %v282_v36, 0.0  ;;  %v410_v39 = vmul.f32 0.2, %v282_v36 }
  0x62   :  { %538 = vst.msk [vmem:[%s1219_s3 + $0x1e8] sm:$0xff] %vm476_vm0, %v473_v1  ;;  %vm347_vm4 = vcmp.ge.f32.partialorder %v283_v37, 0.0  ;;  %v411_v40 = vmul.f32 0.2, %v283_v37 }
  0x63   :  { %v474_v41 = vsel %vm346_vm3, %v282_v36, %v410_v39 }
  0x64   :  { %v475_v42 = vsel %vm347_vm4, %v283_v37, %v411_v40  ;;  %539 = vst.msk [vmem:[%s1219_s3 + $0x1f0] sm:$0xff] %vm476_vm0, %v474_v41 }
  0x65   :  { %540 = vst.msk [vmem:[%s1219_s3 + $0x1f8] sm:$0xff] %vm476_vm0, %v475_v42 }

// kernel: upsample_block.2
= control target key start
LH: loop header
LB: loop body
LE: loop exit
PB: predicated region body
PF: predicated region fallthrough
CT: control target
= control target key end

     0   :  { %vm1078_vm0 = vcmask 1041408   ;;  %vm112_vm1 = vsmask.f32 3328  ;;  %vm113_vm2 = vsmask.f32 7440  ;;  %vm981_vm4 = vcmask 31744   ;;  %s17014_s1 = inlined_call_operand.vmem [shape: bf16[9,4,32], index: 1, kind: input, shape index: {}]   ;;  %s17015_s0 = inlined_call_operand.vmem [shape: bf16[2,18,18,4], index: 0, kind: input, shape index: {}]   ;;  %s17016_s2 = inlined_call_operand.vmem [shape: bf16[512,32], index: 2, kind: output, shape index: {0}]   ;;  %s17017_s3 = inlined_call_operand.vmem [shape: f32[1,8,32], index: 3, kind: output, shape index: {1}]   ;;  %s17018_s4 = inlined_call_operand.vmem [shape: f32[1,8,32], index: 4, kind: output, shape index: {2}]  }
   0x1   :  { %v9436_v0 = vld [vmem:[%s17014_s1 + $0x2] sm:$0x3]  ;;  %v9887_v1 = vld [vmem:[%s17014_s1 + $0x8] sm:$0x3]  ;;  %v16_v5 = vld [vmem:[%s17015_s0 + $0x4] sm:$0xf] }
   0x2   :  { %v15_v2 = vld [vmem:[%s17015_s0] sm:$0xf]  ;;  %12033 = vmatprep.subr.msk.bf16.mxu1 %vm1078_vm0, %v9436_v0  ;;  %12037 = vmatprep.subr.msk.bf16.mxu0 %vm1078_vm0, %v9887_v1  ;;  %v1080_v3 = vsel %vm1078_vm0, %v9436_v0, 0  ;;  %v12394_v4 = vsel %vm1078_vm0, %v9887_v1, 0  ;;  %v80_v6 = vld [vmem:[%s17015_s0 + $0x8] sm:$0x1]  ;;  %vm12435_vm3 = vmor %vm112_vm1, %vm113_vm2 }
   0x3   :  { %17031 = vst [vmem:[#allocation2_spill] sm:$0xff] %v12394_v4  ;;  %10926 = vmatpush3.bf16.msra.mxu1 %v1080_v3  ;;  %11190 = vmatpush3.bf16.msra.mxu0 %v12394_v4  ;;  %v116_v7 = vshrl.u32 %v15_v2, 16  ;;  %v119_v8 = vshll.u32 %v15_v2, 16  ;;  %v125_v9 = vshll.u32 %v16_v5, 16  ;;  %v129_v10 = vshrl.u32 %v16_v5, 16 }
   0x4   :  { %v79_v11 = vld [vmem:[%s17014_s1] sm:$0x3]  ;;  %v135_v12 = vshll.u32 %v80_v6, 16  ;;  %v9791_v13 = vld [vmem:[%s17015_s0 + $0xc] sm:$0xf]  ;;  %vm2015_vm5 = vcmask 1042432  }
   0x5   :  { %12034 = vmatprep.subr.msk.bf16.mxu1 %vm1078_vm0, %v79_v11  ;;  %v12413_v14 = vld [vmem:[%s17015_s0 + $0x10] sm:$0xf]  ;;  %v118_v15 = vrot.slane %v116_v7, 4  ;;  %v121_v16 = vrot.slane %v119_v8, 5  ;;  %v127_v17 = vrot.slane %v125_v9, 5  ;;  %v131_v18 = vrot.slane %v129_v10, 4 }
   0x6   :  { %v12418_v19 = vld [vmem:[%s17015_s0 + $0x14] sm:$0x1]  ;;  %v137_v20 = vrot.slane %v135_v12, 5  ;;  %v3568_v21 = vshrl.u32 %v9791_v13, 16  ;;  %v3571_v22 = vshll.u32 %v9791_v13, 16  ;;  %v3577_v23 = vshll.u32 %v12413_v14, 16 }
   0x7   :  { %v12424_v24 = vld [vmem:[%s17014_s1 + $0xa] sm:$0x3]  ;;  %v122_v25 = vor.u32 %v121_v16, %v118_v15  ;;  %v132_v26 = vor.u32 %v131_v18, %v127_v17  ;;  %v3581_v27 = vshrl.u32 %v12413_v14, 16  ;;  %v3587_v28 = vshll.u32 %v12418_v19, 16  ;;  %v17_v29 = vld [vmem:[%s17015_s0 + $0xc] sm:$0xf] }
   0x8   :  { %12039 = vmatprep.subr.msk.bf16.mxu0 %vm1078_vm0, %v12424_v24  ;;  %v3570_v31 = vrot.slane %v3568_v21, 4  ;;  %v3573_v32 = vrot.slane %v3571_v22, 5  ;;  %v3579_v33 = vrot.slane %v3577_v23, 5  ;;  %v18_v34 = vld [vmem:[%s17015_s0 + $0x10] sm:$0xf]  ;;  %v140_v41 = vshrl.u32 %v17_v29, 16 }
   0x9   :  { %v123_v35 = vrot.slane %v122_v25, 4  ;;  %v133_v36 = vrot.slane %v132_v26, 4  ;;  %v3583_v37 = vrot.slane %v3581_v27, 4  ;;  %v3589_v39 = vrot.slane %v3587_v28, 5  ;;  %v81_v40 = vld [vmem:[%s17015_s0 + $0x14] sm:$0x1] }
   0xa   :  { %v3574_v38 = vor.u32 %v3573_v32, %v3570_v31  ;;  %v143_v42 = vshll.u32 %v17_v29, 16  ;;  %v149_v46 = vshll.u32 %v18_v34, 16  ;;  %v142_v49 = vrot.slane %v140_v41, 4  ;;  %v9794_v55 = vld [vmem:[%s17015_s0 + $0x18] sm:$0xf] }
   0xb   :  { %v128_v43 = vsel %vm12435_vm3, %v123_v35, %v127_v17  ;;  %v138_v44 = vsel %vm12435_vm3, %v133_v36, %v137_v20  ;;  %v3584_v45 = vor.u32 %v3583_v37, %v3579_v33  ;;  %v153_v53 = vshrl.u32 %v18_v34, 16  ;;  %v12460_v60 = vld [vmem:[%s17015_s0 + $0x1c] sm:$0xf]  ;;  %v12465_v61 = vld [vmem:[%s17015_s0 + $0x20] sm:$0x1] }
   0xc   :  { %v9437_v47 = vcombine.low %v128_v43, %v138_v44  ;;  %v3575_v48 = vrot.slane %v3574_v38, 4  ;;  %v145_v50 = vrot.slane %v143_v42, 5  ;;  %v151_v52 = vrot.slane %v149_v46, 5  ;;  %v19_v16 = vld [vmem:[%s17015_s0 + $0x18] sm:$0xf] }
   0xd   :  { %v3585_v51 = vrot.slane %v3584_v45, 4  ;;  %v159_v54 = vshll.u32 %v81_v40, 16  ;;  %v5015_v57 = vrot.slane %v12413_v14, 5  ;;  %v5018_v58 = vrot.slane %v12418_v19, 5  ;;  %v20_v22 = vld [vmem:[%s17015_s0 + $0x1c] sm:$0xf] }
   0xe   :  { %10927 = vmatprep.mubr.msk.bf16.mxu1 %vm981_vm4, %v9437_v47  ;;  %v3580_v56 = vsel %vm12435_vm3, %v3575_v48, %v3579_v33  ;;  %v146_v59 = vor.u32 %v145_v50, %v142_v49  ;;  %v155_v63 = vrot.slane %v153_v53, 4  ;;  %v1628_v1 = vsel %vm1078_vm0, %v79_v11, 0  ;;  %v82_v28 = vld [vmem:[%s17015_s0 + $0x20] sm:$0x1]  ;;  %v9797_v34 = vld [vmem:[%s17015_s0 + $0x24] sm:$0xf] }
   0xf   :  { %v3590_v62 = vsel %vm12435_vm3, %v3585_v51, %v3589_v39  ;;  %v161_v0 = vrot.slane %v159_v54, 5  ;;  %v3592_v5 = vshrl.u32 %v9794_v55, 16  ;;  %v3595_v6 = vshll.u32 %v9794_v55, 16  ;;  %v9798_v42 = vld [vmem:[%s17015_s0 + $0x28] sm:$0xf] }
  0x10   :  { %v9888_v2 = vcombine.low %v3580_v56, %v3590_v62  ;;  %v147_v3 = vrot.slane %v146_v59, 4  ;;  %v156_v7 = vor.u32 %v155_v63, %v151_v52  ;;  %v3601_v8 = vshll.u32 %v12460_v60, 16  ;;  %v9799_v46 = vld [vmem:[%s17015_s0 + $0x2c] sm:$0x1]  ;;  %v52_v19 = vld [vmem:[%s17015_s0 + $0xf4] sm:$0xf] }
  0x11   :  { %v3605_v9 = vshrl.u32 %v12460_v60, 16  ;;  %v3611_v10 = vshll.u32 %v12465_v61, 16  ;;  %v3594_v13 = vrot.slane %v3592_v5, 4  ;;  %v3597_v15 = vrot.slane %v3595_v6, 5 }
  0x12   :  { %11191 = vmatprep.mubr.msk.bf16.mxu0 %vm981_vm4, %v9888_v2  ;;  %v152_v12 = vsel %vm12435_vm3, %v147_v3, %v151_v52  ;;  %v5022_v11 = vrot.slane %v12460_v60, 5  ;;  %v157_v17 = vrot.slane %v156_v7, 4  ;;  %v3603_v18 = vrot.slane %v3601_v8, 5  ;;  %v21_v52 = vld [vmem:[%s17015_s0 + $0x24] sm:$0xf] }
  0x13   :  { %v3607_v20 = vrot.slane %v3605_v9, 4  ;;  %v3613_v21 = vrot.slane %v3611_v10, 5  ;;  %v3598_v23 = vor.u32 %v3597_v15, %v3594_v13  ;;  %v5025_v26 = vrot.slane %v12465_v61, 5  ;;  %v9800_v13 = vld [vmem:[%s17015_s0 + $0x30] sm:$0xf] }
  0x14   :  { %v12485_v25 = vrot.slane %v5022_v11, 4  ;;  %v5432_v27 = vsel %vm1078_vm0, %v12424_v24, 0  ;;  %v162_v29 = vsel %vm12435_vm3, %v157_v17, %v161_v0  ;;  %v164_v32 = vshrl.u32 %v19_v16, 16 }
  0x15   :  { %v3608_v31 = vor.u32 %v3607_v20, %v3603_v18  ;;  %v167_v33 = vshll.u32 %v19_v16, 16  ;;  %v9438_v35 = vcombine.low %v152_v12, %v162_v29  ;;  %v3599_v36 = vrot.slane %v3598_v23, 4  ;;  %v83_v12 = vld [vmem:[%s17015_s0 + $0x2c] sm:$0x1] }
  0x16   :  { %v173_v37 = vshll.u32 %v20_v22, 16  ;;  %v177_v38 = vshrl.u32 %v20_v22, 16  ;;  %v166_v24 = vrot.slane %v164_v32, 4  ;;  %v183_v41 = vshll.u32 %v82_v28, 16 }
  0x17   :  { %v3609_v39 = vrot.slane %v3608_v31, 4  ;;  %v169_v40 = vrot.slane %v167_v33, 5  ;;  %10928 = vmatmul.mubr.msk.bf16.vlgmr.msra.gmra.mrb[0].mxu1 %vm981_vm4, %v9438_v35  ;;  %v3604_v43 = vsel %vm12435_vm3, %v3599_v36, %v3603_v18  ;;  %v3616_v47 = vshrl.u32 %v9797_v34, 16  ;;  %v9802_v36 = vld [vmem:[%s17015_s0 + $0x38] sm:$0x1] }
  0x18   :  { %v175_v44 = vrot.slane %v173_v37, 5  ;;  %v179_v45 = vrot.slane %v177_v38, 4  ;;  %10992 = vmatpush3.bf16.msra.mxu1 %v1628_v1  ;;  %v185_v50 = vrot.slane %v183_v41, 5  ;;  %v3619_v51 = vshll.u32 %v9797_v34, 16  ;;  %v22_v1 = vld [vmem:[%s17015_s0 + $0x28] sm:$0xf] }
  0x19   :  { %v3614_v48 = vsel %vm12435_vm3, %v3609_v39, %v3613_v21  ;;  %v170_v49 = vor.u32 %v169_v40, %v166_v24  ;;  %v3618_v55 = vrot.slane %v3616_v47, 4  ;;  %v3625_v56 = vshll.u32 %v9798_v42, 16  ;;  %v23_v41 = vld [vmem:[%s17015_s0 + $0x30] sm:$0xf] }
  0x1a   :  { %v9889_v53 = vcombine.low %v3604_v43, %v3614_v48  ;;  %v180_v54 = vor.u32 %v179_v45, %v175_v44  ;;  %v3621_v62 = vrot.slane %v3619_v51, 5  ;;  %v3629_v63 = vshrl.u32 %v9798_v42, 16 }
  0x1b   :  { %v171_v59 = vrot.slane %v170_v49, 4  ;;  %v3635_v0 = vshll.u32 %v9799_v46, 16  ;;  %v3627_v3 = vrot.slane %v3625_v56, 5  ;;  %v188_v5 = vshrl.u32 %v21_v52, 16  ;;  %v24_v46 = vld [vmem:[%s17015_s0 + $0x34] sm:$0xf] }
  0x1c   :  { %11192 = vmatmul.mubr.msk.bf16.vlgmr.msra.gmra.mrb[0].mxu0 %vm981_vm4, %v9889_v53  ;;  %v181_v2 = vrot.slane %v180_v54, 4  ;;  %v191_v6 = vshll.u32 %v21_v52, 16  ;;  %v3622_v8 = vor.u32 %v3621_v62, %v3618_v55  ;;  %v3631_v9 = vrot.slane %v3629_v63, 4  ;;  %v84_v54 = vld [vmem:[%s17015_s0 + $0x38] sm:$0x1] }
  0x1d   :  { %11256 = vmatpush3.bf16.msra.mxu0 %v5432_v27  ;;  %v176_v7 = vsel %vm12435_vm3, %v171_v59, %v175_v44  ;;  %v3637_v10 = vrot.slane %v3635_v0, 5  ;;  %v190_v16 = vrot.slane %v188_v5, 4  ;;  %v197_v18 = vshll.u32 %v22_v1, 16  ;;  %v9801_v27 = vld [vmem:[%s17015_s0 + $0x34] sm:$0xf] }
  0x1e   :  { %v186_v15 = vsel %vm12435_vm3, %v181_v2, %v185_v50  ;;  %v193_v17 = vrot.slane %v191_v6, 5  ;;  %v3623_v21 = vrot.slane %v3622_v8, 4  ;;  %v3632_v22 = vor.u32 %v3631_v9, %v3627_v3  ;;  %v9803_v0 = vld [vmem:[%s17015_s0 + $0x3c] sm:$0xf]  ;;  %v9804_v6 = vld [vmem:[%s17015_s0 + $0x40] sm:$0xf] }
  0x1f   :  { %v9439_v20 = vcombine.low %v176_v7, %v186_v15  ;;  %v201_v23 = vshrl.u32 %v22_v1, 16  ;;  %v199_v29 = vrot.slane %v197_v18, 5  ;;  %v207_v31 = vshll.u32 %v83_v12, 16 }
  0x20   :  { %v194_v28 = vor.u32 %v193_v17, %v190_v16  ;;  %v3640_v32 = vshrl.u32 %v9800_v13, 16  ;;  %v3628_v33 = vsel %vm12435_vm3, %v3623_v21, %v3627_v3  ;;  %v3633_v34 = vrot.slane %v3632_v22, 4 }
  0x21   :  { %10931 = vmatprep.mubr.msk.bf16.mxu1 %vm981_vm4, %v9439_v20  ;;  %v203_v35 = vrot.slane %v201_v23, 4  ;;  %v3643_v37 = vshll.u32 %v9800_v13, 16  ;;  %v209_v39 = vrot.slane %v207_v31, 5  ;;  %v3649_v40 = vshll.u32 %v9801_v27, 16  ;;  %v9805_v20 = vld [vmem:[%s17015_s0 + $0x44] sm:$0x1] }
  0x22   :  { %v195_v38 = vrot.slane %v194_v28, 4  ;;  %v3642_v24 = vrot.slane %v3640_v32, 4  ;;  %v3638_v42 = vsel %vm12435_vm3, %v3633_v34, %v3637_v10  ;;  %v3653_v45 = vshrl.u32 %v9801_v27, 16  ;;  %v25_v23 = vld [vmem:[%s17015_s0 + $0x3c] sm:$0xf] }
  0x23   :  { %v204_v43 = vor.u32 %v203_v35, %v199_v29  ;;  %v3645_v44 = vrot.slane %v3643_v37, 5  ;;  %v9890_v47 = vcombine.low %v3628_v33, %v3638_v42  ;;  %v3651_v49 = vrot.slane %v3649_v40, 5 }
  0x24   :  { %v200_v48 = vsel %vm12435_vm3, %v195_v38, %v199_v29  ;;  %v3659_v50 = vshll.u32 %v9802_v36, 16  ;;  %v3655_v53 = vrot.slane %v3653_v45, 4  ;;  %v212_v55 = vshrl.u32 %v23_v41, 16  ;;  %v9806_v45 = vld [vmem:[%s17015_s0 + $0x48] sm:$0xf] }
  0x25   :  { %v205_v51 = vrot.slane %v204_v43, 4  ;;  %v3646_v52 = vor.u32 %v3645_v44, %v3642_v24  ;;  %11195 = vmatprep.mubr.msk.bf16.mxu0 %vm981_vm4, %v9890_v47  ;;  %v215_v59 = vshll.u32 %v23_v41, 16  ;;  %v221_v62 = vshll.u32 %v24_v46, 16  ;;  %v85_v43 = vld [vmem:[%s17015_s0 + $0x44] sm:$0x1] }
  0x26   :  { %v3661_v56 = vrot.slane %v3659_v50, 5  ;;  %v225_v63 = vshrl.u32 %v24_v46, 16  ;;  %v3656_v3 = vor.u32 %v3655_v53, %v3651_v49  ;;  %v214_v5 = vrot.slane %v212_v55, 4 }
  0x27   :  { %v210_v1 = vsel %vm12435_vm3, %v205_v51, %v209_v39  ;;  %v3647_v2 = vrot.slane %v3646_v52, 4  ;;  %v217_v8 = vrot.slane %v215_v59, 5  ;;  %v223_v9 = vrot.slane %v221_v62, 5  ;;  %v26_v39 = vld [vmem:[%s17015_s0 + $0x40] sm:$0xf] }
  0x28   :  { %v9440_v7 = vcombine.low %v200_v48, %v210_v1  ;;  %v227_v10 = vrot.slane %v225_v63, 4  ;;  %v3657_v13 = vrot.slane %v3656_v3, 4  ;;  %v231_v15 = vshll.u32 %v84_v54, 16  ;;  %v9808_v3 = vld [vmem:[%s17015_s0 + $0x50] sm:$0x1] }
  0x29   :  { %v3652_v12 = vsel %vm12435_vm3, %v3647_v2, %v3651_v49  ;;  %v3664_v16 = vshrl.u32 %v9803_v0, 16  ;;  %v218_v17 = vor.u32 %v217_v8, %v214_v5  ;;  %v3667_v21 = vshll.u32 %v9803_v0, 16  ;;  %v27_v5 = vld [vmem:[%s17015_s0 + $0x48] sm:$0xf] }
  0x2a   :  { %10932 = vmatmul.mubr.msk.bf16.gmra.mrb[4].mxu1 %vm981_vm4, %v9440_v7  ;;  %v228_v18 = vor.u32 %v227_v10, %v223_v9  ;;  %v3673_v22 = vshll.u32 %v9804_v6, 16  ;;  %v3662_v27 = vsel %vm12435_vm3, %v3657_v13, %v3661_v56  ;;  %v233_v28 = vrot.slane %v231_v15, 5  ;;  %v9807_v56 = vld [vmem:[%s17015_s0 + $0x4c] sm:$0xf] }
  0x2b   :  { %v3666_v29 = vrot.slane %v3664_v16, 4  ;;  %v3677_v31 = vshrl.u32 %v9804_v6, 16  ;;  %v9891_v32 = vcombine.low %v3652_v12, %v3662_v27  ;;  %v219_v33 = vrot.slane %v218_v17, 4 }
  0x2c   :  { %v229_v34 = vrot.slane %v228_v18, 4  ;;  %v3669_v35 = vrot.slane %v3667_v21, 5  ;;  %v3675_v36 = vrot.slane %v3673_v22, 5  ;;  %v3683_v38 = vshll.u32 %v9805_v20, 16  ;;  %v28_v20 = vld [vmem:[%s17015_s0 + $0x4c] sm:$0xf] }
  0x2d   :  { %v3679_v37 = vrot.slane %v3677_v31, 4  ;;  %v236_v24 = vshrl.u32 %v25_v23, 16  ;;  %11196 = vmatmul.mubr.msk.bf16.gmra.mrb[4].mxu0 %vm981_vm4, %v9891_v32  ;;  %v224_v40 = vsel %vm12435_vm3, %v219_v33, %v223_v9  ;;  %v239_v44 = vshll.u32 %v25_v23, 16 }
  0x2e   :  { %v234_v41 = vsel %vm12435_vm3, %v229_v34, %v233_v28  ;;  %v3670_v42 = vor.u32 %v3669_v35, %v3666_v29  ;;  %v3685_v48 = vrot.slane %v3683_v38, 5  ;;  %v245_v52 = vshll.u32 %v26_v39, 16  ;;  %v86_v28 = vld [vmem:[%s17015_s0 + $0x50] sm:$0x1]  ;;  %v9809_v35 = vld [vmem:[%s17015_s0 + $0x54] sm:$0xf] }
  0x2f   :  { %v9441_v46 = vcombine.low %v224_v40, %v234_v41  ;;  %v3680_v47 = vor.u32 %v3679_v37, %v3675_v36  ;;  %v238_v49 = vrot.slane %v236_v24, 4  ;;  %v241_v51 = vrot.slane %v239_v44, 5  ;;  %v9810_v24 = vld [vmem:[%s17015_s0 + $0x58] sm:$0xf] }
  0x30   :  { %v3671_v50 = vrot.slane %v3670_v42, 4  ;;  %v249_v53 = vshrl.u32 %v26_v39, 16  ;;  %v255_v55 = vshll.u32 %v85_v43, 16  ;;  %v3688_v59 = vshrl.u32 %v9806_v45, 16 }
  0x31   :  { %10935 = vmatprep.mubr.msk.bf16.mxu1 %vm981_vm4, %v9441_v46  ;;  %v3681_v54 = vrot.slane %v3680_v47, 4  ;;  %v3691_v62 = vshll.u32 %v9806_v45, 16  ;;  %v242_v0 = vor.u32 %v241_v51, %v238_v49  ;;  %v247_v1 = vrot.slane %v245_v52, 5  ;;  %v9811_v47 = vld [vmem:[%s17015_s0 + $0x5c] sm:$0x1] }
  0x32   :  { %v3676_v63 = vsel %vm12435_vm3, %v3671_v50, %v3675_v36  ;;  %v251_v2 = vrot.slane %v249_v53, 4  ;;  %v257_v7 = vrot.slane %v255_v55, 5  ;;  %v3690_v8 = vrot.slane %v3688_v59, 4  ;;  %v29_v59 = vld [vmem:[%s17015_s0 + $0x54] sm:$0xf] }
  0x33   :  { %v3686_v6 = vsel %vm12435_vm3, %v3681_v54, %v3685_v48  ;;  %v3693_v9 = vrot.slane %v3691_v62, 5  ;;  %v243_v12 = vrot.slane %v242_v0, 4  ;;  %v3697_v15 = vshll.u32 %v9807_v56, 16 }
  0x34   :  { %v9892_v10 = vcombine.low %v3676_v63, %v3686_v6  ;;  %v252_v13 = vor.u32 %v251_v2, %v247_v1  ;;  %v3701_v17 = vshrl.u32 %v9807_v56, 16  ;;  %v3707_v18 = vshll.u32 %v9808_v3, 16  ;;  %v30_v2 = vld [vmem:[%s17015_s0 + $0x58] sm:$0xf] }
  0x35   :  { %v3694_v16 = vor.u32 %v3693_v9, %v3690_v8  ;;  %v260_v21 = vshrl.u32 %v27_v5, 16  ;;  %v248_v22 = vsel %vm12435_vm3, %v243_v12, %v247_v1  ;;  %v3699_v27 = vrot.slane %v3697_v15, 5 }
  0x36   :  { %11199 = vmatprep.mubr.msk.bf16.mxu0 %vm981_vm4, %v9892_v10  ;;  %v253_v23 = vrot.slane %v252_v13, 4  ;;  %v263_v29 = vshll.u32 %v27_v5, 16  ;;  %v3703_v32 = vrot.slane %v3701_v17, 4  ;;  %v3709_v33 = vrot.slane %v3707_v18, 5  ;;  %v87_v10 = vld [vmem:[%s17015_s0 + $0x5c] sm:$0x1] }
  0x37   :  { %v3695_v31 = vrot.slane %v3694_v16, 4  ;;  %v262_v34 = vrot.slane %v260_v21, 4  ;;  %v269_v38 = vshll.u32 %v28_v20, 16  ;;  %v273_v39 = vshrl.u32 %v28_v20, 16  ;;  %v9812_v20 = vld [vmem:[%s17015_s0 + $0x60] sm:$0xf] }
  0x38   :  { %v258_v36 = vsel %vm12435_vm3, %v253_v23, %v257_v7  ;;  %v265_v37 = vrot.slane %v263_v29, 5  ;;  %v3704_v42 = vor.u32 %v3703_v32, %v3699_v27  ;;  %v279_v43 = vshll.u32 %v86_v28, 16  ;;  %v9813_v28 = vld [vmem:[%s17015_s0 + $0x64] sm:$0xf] }
  0x39   :  { %v9442_v40 = vcombine.low %v248_v22, %v258_v36  ;;  %v3700_v41 = vsel %vm12435_vm3, %v3695_v31, %v3699_v27  ;;  %v271_v45 = vrot.slane %v269_v38, 5  ;;  %v275_v46 = vrot.slane %v273_v39, 4  ;;  %v9814_v36 = vld [vmem:[%s17015_s0 + $0x68] sm:$0x1] }
  0x3a   :  { %v266_v44 = vor.u32 %v265_v37, %v262_v34  ;;  %v3712_v48 = vshrl.u32 %v9809_v35, 16  ;;  %v3705_v49 = vrot.slane %v3704_v42, 4  ;;  %v281_v50 = vrot.slane %v279_v43, 5  ;;  %v31_v42 = vld [vmem:[%s17015_s0 + $0x60] sm:$0xf] }
  0x3b   :  { %10936 = vmatmul.mubr.msk.bf16.gmra.mrb[8].mxu1 %vm981_vm4, %v9442_v40  ;;  %v3715_v51 = vshll.u32 %v9809_v35, 16  ;;  %v3721_v52 = vshll.u32 %v9810_v24, 16  ;;  %v276_v54 = vor.u32 %v275_v46, %v271_v45  ;;  %v3725_v56 = vshrl.u32 %v9810_v24, 16 }
  0x3c   :  { %v267_v53 = vrot.slane %v266_v44, 4  ;;  %v3714_v55 = vrot.slane %v3712_v48, 4  ;;  %v3710_v62 = vsel %vm12435_vm3, %v3705_v49, %v3709_v33  ;;  %v3731_v1 = vshll.u32 %v9811_v47, 16  ;;  %v32_v47 = vld [vmem:[%s17015_s0 + $0x64] sm:$0xf] }
  0x3d   :  { %v3717_v63 = vrot.slane %v3715_v51, 5  ;;  %v3723_v0 = vrot.slane %v3721_v52, 5  ;;  %v9893_v3 = vcombine.low %v3700_v41, %v3710_v62  ;;  %v277_v6 = vrot.slane %v276_v54, 4  ;;  %v88_v54 = vld [vmem:[%s17015_s0 + $0x68] sm:$0x1] }
  0x3e   :  { %v272_v5 = vsel %vm12435_vm3, %v267_v53, %v271_v45  ;;  %v3727_v7 = vrot.slane %v3725_v56, 4  ;;  %v3733_v9 = vrot.slane %v3731_v1, 5  ;;  %v284_v12 = vshrl.u32 %v29_v59, 16  ;;  %v9815_v1 = vld [vmem:[%s17015_s0 + $0x6c] sm:$0xf] }
  0x3f   :  { %v3718_v8 = vor.u32 %v3717_v63, %v3714_v55  ;;  %v287_v13 = vshll.u32 %v29_v59, 16  ;;  %11200 = vmatmul.mubr.msk.bf16.gmra.mrb[8].mxu0 %vm981_vm4, %v9893_v3  ;;  %v282_v15 = vsel %vm12435_vm3, %v277_v6, %v281_v50  ;;  %v293_v17 = vshll.u32 %v30_v2, 16 }
  0x40   :  { %v3728_v16 = vor.u32 %v3727_v7, %v3723_v0  ;;  %v297_v18 = vshrl.u32 %v30_v2, 16  ;;  %v9443_v21 = vcombine.low %v272_v5, %v282_v15  ;;  %v286_v23 = vrot.slane %v284_v12, 4  ;;  %v9816_v7 = vld [vmem:[%s17015_s0 + $0x70] sm:$0xf] }
  0x41   :  { %v3719_v22 = vrot.slane %v3718_v8, 4  ;;  %v289_v27 = vrot.slane %v287_v13, 5  ;;  %v295_v31 = vrot.slane %v293_v17, 5  ;;  %v303_v33 = vshll.u32 %v87_v10, 16 }
  0x42   :  { %v3729_v29 = vrot.slane %v3728_v16, 4  ;;  %v299_v32 = vrot.slane %v297_v18, 4  ;;  %10939 = vmatprep.mubr.msk.bf16.mxu1 %vm981_vm4, %v9443_v21  ;;  %v3736_v37 = vshrl.u32 %v9812_v20, 16  ;;  %v3739_v38 = vshll.u32 %v9812_v20, 16  ;;  %v9817_v16 = vld [vmem:[%s17015_s0 + $0x74] sm:$0x1] }
  0x43   :  { %v3724_v34 = vsel %vm12435_vm3, %v3719_v22, %v3723_v0  ;;  %v290_v35 = vor.u32 %v289_v27, %v286_v23  ;;  %v305_v40 = vrot.slane %v303_v33, 5  ;;  %v3745_v41 = vshll.u32 %v9813_v28, 16 }
  0x44   :  { %v3734_v39 = vsel %vm12435_vm3, %v3729_v29, %v3733_v9  ;;  %v300_v24 = vor.u32 %v299_v32, %v295_v31  ;;  %v3738_v45 = vrot.slane %v3736_v37, 4  ;;  %v3741_v46 = vrot.slane %v3739_v38, 5  ;;  %v33_v32 = vld [vmem:[%s17015_s0 + $0x6c] sm:$0xf]  ;;  %v34_v37 = vld [vmem:[%s17015_s0 + $0x70] sm:$0xf] }
  0x45   :  { %v9894_v43 = vcombine.low %v3724_v34, %v3734_v39  ;;  %v291_v44 = vrot.slane %v290_v35, 4  ;;  %v3747_v49 = vrot.slane %v3745_v41, 5  ;;  %v3749_v50 = vshrl.u32 %v9813_v28, 16  ;;  %v12686_v38 = vld [vmem:[%s17014_s1 + $0xc] sm:$0x3] }
  0x46   :  { %v301_v48 = vrot.slane %v300_v24, 4  ;;  %v3755_v51 = vshll.u32 %v9814_v36, 16  ;;  %v3742_v53 = vor.u32 %v3741_v46, %v3738_v45  ;;  %v308_v55 = vshrl.u32 %v31_v42, 16  ;;  %12040 = vmatprep.subr.msk.bf16.mxu0 %vm1078_vm0, %v12686_v38 }
  0x47   :  { %11203 = vmatprep.mubr.msk.bf16.mxu0 %vm981_vm4, %v9894_v43  ;;  %v296_v52 = vsel %vm12435_vm3, %v291_v44, %v295_v31  ;;  %v311_v56 = vshll.u32 %v31_v42, 16  ;;  %v3751_v62 = vrot.slane %v3749_v50, 4  ;;  %v317_v0 = vshll.u32 %v32_v47, 16  ;;  %v89_v42 = vld [vmem:[%s17015_s0 + $0x74] sm:$0x1] }
  0x48   :  { %v306_v59 = vsel %vm12435_vm3, %v301_v48, %v305_v40  ;;  %v3757_v63 = vrot.slane %v3755_v51, 5  ;;  %v3743_v3 = vrot.slane %v3742_v53, 4  ;;  %v310_v5 = vrot.slane %v308_v55, 4  ;;  %v9818_v51 = vld [vmem:[%s17015_s0 + $0x78] sm:$0xf] }
  0x49   :  { %v9444_v2 = vcombine.low %v296_v52, %v306_v59  ;;  %v313_v6 = vrot.slane %v311_v56, 5  ;;  %v3752_v8 = vor.u32 %v3751_v62, %v3747_v49  ;;  %v319_v9 = vrot.slane %v317_v0, 5  ;;  %v9819_v56 = vld [vmem:[%s17015_s0 + $0x7c] sm:$0xf] }
  0x4a   :  { %v321_v10 = vshrl.u32 %v32_v47, 16  ;;  %v327_v12 = vshll.u32 %v88_v54, 16  ;;  %v3748_v13 = vsel %vm12435_vm3, %v3743_v3, %v3747_v49  ;;  %v3760_v17 = vshrl.u32 %v9815_v1, 16 }
  0x4b   :  { %10940 = vmatmul.mubr.msk.bf16.gmra.mrb[12].mxu1 %vm981_vm4, %v9444_v2  ;;  %v314_v15 = vor.u32 %v313_v6, %v310_v5  ;;  %v3763_v18 = vshll.u32 %v9815_v1, 16  ;;  %v3753_v20 = vrot.slane %v3752_v8, 4  ;;  %v3769_v23 = vshll.u32 %v9816_v7, 16  ;;  %v9820_v5 = vld [vmem:[%s17015_s0 + $0x80] sm:$0x1] }
  0x4c   :  { %v323_v21 = vrot.slane %v321_v10, 4  ;;  %v329_v22 = vrot.slane %v327_v12, 5  ;;  %v3762_v28 = vrot.slane %v3760_v17, 4  ;;  %v3773_v31 = vshrl.u32 %v9816_v7, 16  ;;  %v35_v12 = vld [vmem:[%s17015_s0 + $0x78] sm:$0xf] }
  0x4d   :  { %v315_v27 = vrot.slane %v314_v15, 4  ;;  %v3765_v29 = vrot.slane %v3763_v18, 5  ;;  %v3758_v33 = vsel %vm12435_vm3, %v3753_v20, %v3757_v63  ;;  %v3771_v35 = vrot.slane %v3769_v23, 5  ;;  %v36_v18 = vld [vmem:[%s17015_s0 + $0x7c] sm:$0xf] }
  0x4e   :  { %v324_v34 = vor.u32 %v323_v21, %v319_v9  ;;  %v3779_v36 = vshll.u32 %v9817_v16, 16  ;;  %v9895_v39 = vcombine.low %v3748_v13, %v3758_v33  ;;  %v3775_v41 = vrot.slane %v3773_v31, 4 }
  0x4f   :  { %v320_v24 = vsel %vm12435_vm3, %v315_v27, %v319_v9  ;;  %v3766_v40 = vor.u32 %v3765_v29, %v3762_v28  ;;  %v332_v45 = vshrl.u32 %v33_v32, 16  ;;  %v335_v46 = vshll.u32 %v33_v32, 16 }
  0x50   :  { %v325_v43 = vrot.slane %v324_v34, 4  ;;  %v3781_v44 = vrot.slane %v3779_v36, 5  ;;  %11204 = vmatmul.mubr.msk.bf16.gmra.mrb[12].mxu0 %vm981_vm4, %v9895_v39  ;;  %v3776_v48 = vor.u32 %v3775_v41, %v3771_v35  ;;  %v341_v49 = vshll.u32 %v34_v37, 16 }
  0x51   :  { %v3767_v47 = vrot.slane %v3766_v40, 4  ;;  %v345_v50 = vshrl.u32 %v34_v37, 16  ;;  %v334_v53 = vrot.slane %v332_v45, 4  ;;  %v337_v54 = vrot.slane %v335_v46, 5  ;;  %v9821_v37 = vld [vmem:[%s17015_s0 + $0x84] sm:$0xf] }
  0x52   :  { %v330_v52 = vsel %vm12435_vm3, %v325_v43, %v329_v22  ;;  %v351_v55 = vshll.u32 %v89_v42, 16  ;;  %v3777_v63 = vrot.slane %v3776_v48, 4  ;;  %v343_v0 = vrot.slane %v341_v49, 5  ;;  %v9822_v42 = vld [vmem:[%s17015_s0 + $0x88] sm:$0xf] }
  0x53   :  { %v9445_v59 = vcombine.low %v320_v24, %v330_v52  ;;  %v3772_v62 = vsel %vm12435_vm3, %v3767_v47, %v3771_v35  ;;  %v338_v1 = vor.u32 %v337_v54, %v334_v53  ;;  %v347_v2 = vrot.slane %v345_v50, 4  ;;  %v90_v35 = vld [vmem:[%s17015_s0 + $0x80] sm:$0x1]  ;;  %v9823_v53 = vld [vmem:[%s17015_s0 + $0x8c] sm:$0x1] }
  0x54   :  { %v353_v3 = vrot.slane %v351_v55, 5  ;;  %v3784_v6 = vshrl.u32 %v9818_v51, 16  ;;  %v3782_v7 = vsel %vm12435_vm3, %v3777_v63, %v3781_v44  ;;  %v3787_v8 = vshll.u32 %v9818_v51, 16 }
  0x55   :  { %10943 = vmatprep.mubr.msk.bf16.mxu1 %vm981_vm4, %v9445_v59  ;;  %v3793_v9 = vshll.u32 %v9819_v56, 16  ;;  %v3797_v10 = vshrl.u32 %v9819_v56, 16  ;;  %v9896_v13 = vcombine.low %v3772_v62, %v3782_v7  ;;  %v339_v15 = vrot.slane %v338_v1, 4  ;;  %v37_v56 = vld [vmem:[%s17015_s0 + $0x84] sm:$0xf] }
  0x56   :  { %v348_v16 = vor.u32 %v347_v2, %v343_v0  ;;  %v3786_v17 = vrot.slane %v3784_v6, 4  ;;  %v3789_v20 = vrot.slane %v3787_v8, 5  ;;  %v3803_v23 = vshll.u32 %v9820_v5, 16  ;;  %v38_v1 = vld [vmem:[%s17015_s0 + $0x88] sm:$0xf] }
  0x57   :  { %v3795_v21 = vrot.slane %v3793_v9, 5  ;;  %v3799_v22 = vrot.slane %v3797_v10, 4  ;;  %11207 = vmatprep.mubr.msk.bf16.mxu0 %vm981_vm4, %v9896_v13  ;;  %v344_v27 = vsel %vm12435_vm3, %v339_v15, %v343_v0  ;;  %v356_v29 = vshrl.u32 %v35_v12, 16  ;;  %v91_v10 = vld [vmem:[%s17015_s0 + $0x8c] sm:$0x1] }
  0x58   :  { %v349_v28 = vrot.slane %v348_v16, 4  ;;  %v359_v31 = vshll.u32 %v35_v12, 16  ;;  %v3790_v32 = vor.u32 %v3789_v20, %v3786_v17  ;;  %v3805_v34 = vrot.slane %v3803_v23, 5 }
  0x59   :  { %v3800_v33 = vor.u32 %v3799_v22, %v3795_v21  ;;  %v365_v36 = vshll.u32 %v36_v18, 16  ;;  %v358_v24 = vrot.slane %v356_v29, 4  ;;  %v369_v41 = vshrl.u32 %v36_v18, 16  ;;  %v9824_v18 = vld [vmem:[%s17015_s0 + $0x90] sm:$0xf] }
  0x5a   :  { %v354_v39 = vsel %vm12435_vm3, %v349_v28, %v353_v3  ;;  %v361_v40 = vrot.slane %v359_v31, 5  ;;  %v3791_v44 = vrot.slane %v3790_v32, 4  ;;  %v375_v49 = vshll.u32 %v90_v35, 16  ;;  %v9825_v32 = vld [vmem:[%s17015_s0 + $0x94] sm:$0xf] }
  0x5b   :  { %v9446_v43 = vcombine.low %v344_v27, %v354_v39  ;;  %v3801_v45 = vrot.slane %v3800_v33, 4  ;;  %v367_v46 = vrot.slane %v365_v36, 5  ;;  %v371_v48 = vrot.slane %v369_v41, 4 }
  0x5c   :  { %v362_v47 = vor.u32 %v361_v40, %v358_v24  ;;  %v3808_v50 = vshrl.u32 %v9821_v37, 16  ;;  %v3796_v51 = vsel %vm12435_vm3, %v3791_v44, %v3795_v21  ;;  %v3811_v54 = vshll.u32 %v9821_v37, 16  ;;  %v9826_v40 = vld [vmem:[%s17015_s0 + $0x98] sm:$0x1] }
  0x5d   :  { %10944 = vmatmul.mubr.msk.bf16.gmra.mrb[16].mxu1 %vm981_vm4, %v9446_v43  ;;  %v3806_v52 = vsel %vm12435_vm3, %v3801_v45, %v3805_v34  ;;  %v3817_v55 = vshll.u32 %v9822_v42, 16  ;;  %v372_v63 = vor.u32 %v371_v48, %v367_v46  ;;  %v377_v0 = vrot.slane %v375_v49, 5 }
  0x5e   :  { %v9897_v59 = vcombine.low %v3796_v51, %v3806_v52  ;;  %v363_v62 = vrot.slane %v362_v47, 4  ;;  %v3810_v2 = vrot.slane %v3808_v50, 4  ;;  %v3813_v3 = vrot.slane %v3811_v54, 5  ;;  %v40_v51 = vld [vmem:[%s17015_s0 + $0x94] sm:$0xf] }
  0x5f   :  { %v3819_v5 = vrot.slane %v3817_v55, 5  ;;  %v3821_v6 = vshrl.u32 %v9822_v42, 16  ;;  %v373_v8 = vrot.slane %v372_v63, 4  ;;  %v3827_v9 = vshll.u32 %v9823_v53, 16  ;;  %v92_v63 = vld [vmem:[%s17015_s0 + $0x98] sm:$0x1] }
  0x60   :  { %11208 = vmatmul.mubr.msk.bf16.gmra.mrb[16].mxu0 %vm981_vm4, %v9897_v59  ;;  %v368_v7 = vsel %vm12435_vm3, %v363_v62, %v367_v46  ;;  %v380_v12 = vshrl.u32 %v37_v56, 16  ;;  %v3814_v13 = vor.u32 %v3813_v3, %v3810_v2  ;;  %v383_v16 = vshll.u32 %v37_v56, 16  ;;  %v39_v46 = vld [vmem:[%s17015_s0 + $0x90] sm:$0xf] }
  0x61   :  { %v3823_v15 = vrot.slane %v3821_v6, 4  ;;  %v389_v17 = vshll.u32 %v38_v1, 16  ;;  %v378_v20 = vsel %vm12435_vm3, %v373_v8, %v377_v0  ;;  %v3829_v21 = vrot.slane %v3827_v9, 5  ;;  %v9827_v6 = vld [vmem:[%s17015_s0 + $0x9c] sm:$0xf] }
  0x62   :  { %v382_v22 = vrot.slane %v380_v12, 4  ;;  %v393_v23 = vshrl.u32 %v38_v1, 16  ;;  %v9447_v27 = vcombine.low %v368_v7, %v378_v20  ;;  %v3815_v28 = vrot.slane %v3814_v13, 4  ;;  %v9828_v12 = vld [vmem:[%s17015_s0 + $0xa0] sm:$0xf] }
  0x63   :  { %v3824_v29 = vor.u32 %v3823_v15, %v3819_v5  ;;  %v385_v31 = vrot.slane %v383_v16, 5  ;;  %v391_v33 = vrot.slane %v389_v17, 5  ;;  %v399_v35 = vshll.u32 %v91_v10, 16 }
  0x64   :  { %v395_v34 = vrot.slane %v393_v23, 4  ;;  %v3832_v36 = vshrl.u32 %v9824_v18, 16  ;;  %10947 = vmatprep.mubr.msk.bf16.mxu1 %vm981_vm4, %v9447_v27  ;;  %v3820_v37 = vsel %vm12435_vm3, %v3815_v28, %v3819_v5  ;;  %v3835_v41 = vshll.u32 %v9824_v18, 16 }
  0x65   :  { %v3825_v39 = vrot.slane %v3824_v29, 4  ;;  %v386_v24 = vor.u32 %v385_v31, %v382_v22  ;;  %v401_v43 = vrot.slane %v399_v35, 5  ;;  %v3841_v45 = vshll.u32 %v9825_v32, 16 }
  0x66   :  { %v396_v42 = vor.u32 %v395_v34, %v391_v33  ;;  %v3834_v44 = vrot.slane %v3832_v36, 4  ;;  %v3837_v49 = vrot.slane %v3835_v41, 5  ;;  %v3845_v50 = vshrl.u32 %v9825_v32, 16  ;;  %v41_v32 = vld [vmem:[%s17015_s0 + $0x9c] sm:$0xf] }
  0x67   :  { %v3830_v47 = vsel %vm12435_vm3, %v3825_v39, %v3829_v21  ;;  %v387_v48 = vrot.slane %v386_v24, 4  ;;  %v3843_v54 = vrot.slane %v3841_v45, 5  ;;  %v3851_v55 = vshll.u32 %v9826_v40, 16  ;;  %v9829_v21 = vld [vmem:[%s17015_s0 + $0xa4] sm:$0x1] }
  0x68   :  { %v9898_v52 = vcombine.low %v3820_v37, %v3830_v47  ;;  %v397_v53 = vrot.slane %v396_v42, 4  ;;  %v3838_v59 = vor.u32 %v3837_v49, %v3834_v44  ;;  %v3847_v62 = vrot.slane %v3845_v50, 4  ;;  %v42_v37 = vld [vmem:[%s17015_s0 + $0xa0] sm:$0xf] }
  0x69   :  { %v392_v56 = vsel %vm12435_vm3, %v387_v48, %v391_v33  ;;  %v404_v0 = vshrl.u32 %v39_v46, 16  ;;  %v3853_v2 = vrot.slane %v3851_v55, 5  ;;  %v407_v3 = vshll.u32 %v39_v46, 16  ;;  %v93_v48 = vld [vmem:[%s17015_s0 + $0xa4] sm:$0x1] }
  0x6a   :  { %11211 = vmatprep.mubr.msk.bf16.mxu0 %vm981_vm4, %v9898_v52  ;;  %v402_v1 = vsel %vm12435_vm3, %v397_v53, %v401_v43  ;;  %v413_v5 = vshll.u32 %v40_v51, 16  ;;  %v3839_v8 = vrot.slane %v3838_v59, 4  ;;  %v3848_v9 = vor.u32 %v3847_v62, %v3843_v54  ;;  %v9830_v55 = vld [vmem:[%s17015_s0 + $0xa8] sm:$0xf] }
  0x6b   :  { %v9448_v7 = vcombine.low %v392_v56, %v402_v1  ;;  %v406_v10 = vrot.slane %v404_v0, 4  ;;  %v409_v13 = vrot.slane %v407_v3, 5  ;;  %v417_v16 = vshrl.u32 %v40_v51, 16  ;;  %v9831_v0 = vld [vmem:[%s17015_s0 + $0xac] sm:$0xf] }
  0x6c   :  { %v415_v15 = vrot.slane %v413_v5, 5  ;;  %v423_v17 = vshll.u32 %v92_v63, 16  ;;  %v3844_v18 = vsel %vm12435_vm3, %v3839_v8, %v3843_v54  ;;  %v3849_v20 = vrot.slane %v3848_v9, 4  ;;  %v9832_v8 = vld [vmem:[%s17015_s0 + $0xb0] sm:$0x1] }
  0x6d   :  { %10948 = vmatmul.mubr.msk.bf16.gmra.mrb[20].mxu1 %vm981_vm4, %v9448_v7  ;;  %v3856_v22 = vshrl.u32 %v9827_v6, 16  ;;  %v3859_v23 = vshll.u32 %v9827_v6, 16  ;;  %v410_v27 = vor.u32 %v409_v13, %v406_v10  ;;  %v419_v28 = vrot.slane %v417_v16, 4 }
  0x6e   :  { %v425_v29 = vrot.slane %v423_v17, 5  ;;  %v3865_v31 = vshll.u32 %v9828_v12, 16  ;;  %v3854_v33 = vsel %vm12435_vm3, %v3849_v20, %v3853_v2  ;;  %v3869_v36 = vshrl.u32 %v9828_v12, 16  ;;  %v43_v17 = vld [vmem:[%s17015_s0 + $0xa8] sm:$0xf] }
  0x6f   :  { %v3858_v34 = vrot.slane %v3856_v22, 4  ;;  %v3861_v35 = vrot.slane %v3859_v23, 5  ;;  %v9899_v39 = vcombine.low %v3844_v18, %v3854_v33  ;;  %v411_v24 = vrot.slane %v410_v27, 4  ;;  %v44_v23 = vld [vmem:[%s17015_s0 + $0xac] sm:$0xf] }
  0x70   :  { %v420_v40 = vor.u32 %v419_v28, %v415_v15  ;;  %v3867_v41 = vrot.slane %v3865_v31, 5  ;;  %v3871_v43 = vrot.slane %v3869_v36, 4  ;;  %v3875_v44 = vshll.u32 %v9829_v21, 16 }
  0x71   :  { %v3862_v42 = vor.u32 %v3861_v35, %v3858_v34  ;;  %v428_v45 = vshrl.u32 %v41_v32, 16  ;;  %11212 = vmatmul.mubr.msk.bf16.gmra.mrb[20].mxu0 %vm981_vm4, %v9899_v39  ;;  %v416_v46 = vsel %vm12435_vm3, %v411_v24, %v415_v15  ;;  %v431_v49 = vshll.u32 %v41_v32, 16  ;;  %v94_v34 = vld [vmem:[%s17015_s0 + $0xb0] sm:$0x1] }
  0x72   :  { %v421_v47 = vrot.slane %v420_v40, 4  ;;  %v437_v50 = vshll.u32 %v42_v37, 16  ;;  %v3872_v52 = vor.u32 %v3871_v43, %v3867_v41  ;;  %v3877_v53 = vrot.slane %v3875_v44, 5 }
  0x73   :  { %v3863_v51 = vrot.slane %v3862_v42, 4  ;;  %v430_v54 = vrot.slane %v428_v45, 4  ;;  %v433_v59 = vrot.slane %v431_v49, 5  ;;  %v441_v63 = vshrl.u32 %v42_v37, 16  ;;  %v9834_v42 = vld [vmem:[%s17015_s0 + $0xb8] sm:$0xf] }
  0x74   :  { %v426_v56 = vsel %vm12435_vm3, %v421_v47, %v425_v29  ;;  %v439_v62 = vrot.slane %v437_v50, 5  ;;  %v3873_v3 = vrot.slane %v3872_v52, 4  ;;  %v447_v5 = vshll.u32 %v93_v48, 16  ;;  %v9597_v47 = vld [vmem:[%s17014_s1 + $0x4] sm:$0x3] }
  0x75   :  { %v9449_v1 = vcombine.low %v416_v46, %v426_v56  ;;  %v3868_v2 = vsel %vm12435_vm3, %v3863_v51, %v3867_v41  ;;  %v434_v6 = vor.u32 %v433_v59, %v430_v54  ;;  %v443_v7 = vrot.slane %v441_v63, 4  ;;  %v9833_v41 = vld [vmem:[%s17015_s0 + $0xb4] sm:$0xf]  ;;  %12035 = vmatprep.subr.msk.bf16.mxu1 %vm1078_vm0, %v9597_v47 }
  0x76   :  { %v3880_v9 = vshrl.u32 %v9830_v55, 16  ;;  %v3883_v10 = vshll.u32 %v9830_v55, 16  ;;  %v3878_v12 = vsel %vm12435_vm3, %v3873_v3, %v3877_v53  ;;  %v449_v13 = vrot.slane %v447_v5, 5 }
  0x77   :  { %10951 = vmatprep.mubr.msk.bf16.mxu1 %vm981_vm4, %v9449_v1  ;;  %v3889_v15 = vshll.u32 %v9831_v0, 16  ;;  %v3893_v16 = vshrl.u32 %v9831_v0, 16  ;;  %v9900_v18 = vcombine.low %v3868_v2, %v3878_v12  ;;  %v435_v20 = vrot.slane %v434_v6, 4  ;;  %v45_v1 = vld [vmem:[%s17015_s0 + $0xb4] sm:$0xf] }
  0x78   :  { %v444_v21 = vor.u32 %v443_v7, %v439_v62  ;;  %v3882_v22 = vrot.slane %v3880_v9, 4  ;;  %v3885_v27 = vrot.slane %v3883_v10, 5  ;;  %v3899_v31 = vshll.u32 %v9832_v8, 16  ;;  %v46_v7 = vld [vmem:[%s17015_s0 + $0xb8] sm:$0xf] }
  0x79   :  { %v3891_v28 = vrot.slane %v3889_v15, 5  ;;  %v3895_v29 = vrot.slane %v3893_v16, 4  ;;  %11215 = vmatprep.mubr.msk.bf16.mxu0 %vm981_vm4, %v9900_v18  ;;  %v440_v32 = vsel %vm12435_vm3, %v435_v20, %v439_v62  ;;  %v452_v35 = vshrl.u32 %v43_v17, 16  ;;  %v9835_v62 = vld [vmem:[%s17015_s0 + $0xbc] sm:$0x1] }
  0x7a   :  { %v445_v33 = vrot.slane %v444_v21, 4  ;;  %v455_v36 = vshll.u32 %v43_v17, 16  ;;  %v3886_v37 = vor.u32 %v3885_v27, %v3882_v22  ;;  %v3901_v24 = vrot.slane %v3899_v31, 5  ;;  %v95_v17 = vld [vmem:[%s17015_s0 + $0xbc] sm:$0x1] }
  0x7b   :  { %v3896_v39 = vor.u32 %v3895_v29, %v3891_v28  ;;  %v461_v40 = vshll.u32 %v44_v23, 16  ;;  %v454_v44 = vrot.slane %v452_v35, 4  ;;  %v465_v46 = vshrl.u32 %v44_v23, 16  ;;  %v9836_v27 = vld [vmem:[%s17015_s0 + $0xc0] sm:$0xf] }
  0x7c   :  { %v450_v43 = vsel %vm12435_vm3, %v445_v33, %v449_v13  ;;  %v457_v45 = vrot.slane %v455_v36, 5  ;;  %v3887_v49 = vrot.slane %v3886_v37, 4  ;;  %v471_v54 = vshll.u32 %v94_v34, 16  ;;  %v9837_v37 = vld [vmem:[%s17015_s0 + $0xc4] sm:$0xf] }
  0x7d   :  { %v9450_v48 = vcombine.low %v440_v32, %v450_v43  ;;  %v3897_v50 = vrot.slane %v3896_v39, 4  ;;  %v463_v51 = vrot.slane %v461_v40, 5  ;;  %v467_v53 = vrot.slane %v465_v46, 4 }
  0x7e   :  { %v458_v52 = vor.u32 %v457_v45, %v454_v44  ;;  %v3904_v55 = vshrl.u32 %v9833_v41, 16  ;;  %v3892_v56 = vsel %vm12435_vm3, %v3887_v49, %v3891_v28  ;;  %v3907_v63 = vshll.u32 %v9833_v41, 16  ;;  %v9838_v45 = vld [vmem:[%s17015_s0 + $0xc8] sm:$0x1] }
  0x7f   :  { %10952 = vmatmul.mubr.msk.bf16.gmra.mrb[24].mxu1 %vm981_vm4, %v9450_v48  ;;  %v3902_v59 = vsel %vm12435_vm3, %v3897_v50, %v3901_v24  ;;  %v3913_v0 = vshll.u32 %v9834_v42, 16  ;;  %v468_v5 = vor.u32 %v467_v53, %v463_v51  ;;  %v473_v6 = vrot.slane %v471_v54, 5 }
  0x80   :  { %v9901_v2 = vcombine.low %v3892_v56, %v3902_v59  ;;  %v459_v3 = vrot.slane %v458_v52, 4  ;;  %v3906_v8 = vrot.slane %v3904_v55, 4  ;;  %v3909_v9 = vrot.slane %v3907_v63, 5  ;;  %v48_v56 = vld [vmem:[%s17015_s0 + $0xdc] sm:$0xf] }
  0x81   :  { %v3915_v10 = vrot.slane %v3913_v0, 5  ;;  %v3917_v12 = vshrl.u32 %v9834_v42, 16  ;;  %v469_v15 = vrot.slane %v468_v5, 4  ;;  %v3923_v16 = vshll.u32 %v9835_v62, 16  ;;  %v96_v5 = vld [vmem:[%s17015_s0 + $0xe0] sm:$0x1] }
  0x82   :  { %11216 = vmatmul.mubr.msk.bf16.gmra.mrb[24].mxu0 %vm981_vm4, %v9901_v2  ;;  %v464_v13 = vsel %vm12435_vm3, %v459_v3, %v463_v51  ;;  %v476_v18 = vshrl.u32 %v45_v1, 16  ;;  %v3910_v20 = vor.u32 %v3909_v9, %v3906_v8  ;;  %v479_v22 = vshll.u32 %v45_v1, 16  ;;  %v47_v51 = vld [vmem:[%s17015_s0 + $0xd8] sm:$0xf] }
  0x83   :  { %v3919_v21 = vrot.slane %v3917_v12, 4  ;;  %v485_v23 = vshll.u32 %v46_v7, 16  ;;  %v474_v28 = vsel %vm12435_vm3, %v469_v15, %v473_v6  ;;  %v3925_v29 = vrot.slane %v3923_v16, 5 }
  0x84   :  { %v478_v31 = vrot.slane %v476_v18, 4  ;;  %v489_v32 = vshrl.u32 %v46_v7, 16  ;;  %v9451_v33 = vcombine.low %v464_v13, %v474_v28  ;;  %v3911_v34 = vrot.slane %v3910_v20, 4  ;;  %v49_v18 = vld [vmem:[%s17015_s0 + $0xe4] sm:$0xf] }
  0x85   :  { %v3920_v35 = vor.u32 %v3919_v21, %v3915_v10  ;;  %v481_v36 = vrot.slane %v479_v22, 5  ;;  %v487_v39 = vrot.slane %v485_v23, 5  ;;  %v495_v40 = vshll.u32 %v95_v17, 16  ;;  %v9952_v17 = vld [vmem:[%s17015_s0 + $0xc] sm:$0xe] }
  0x86   :  { %v491_v24 = vrot.slane %v489_v32, 4  ;;  %v3928_v41 = vshrl.u32 %v9836_v27, 16  ;;  %10955 = vmatprep.mubr.msk.bf16.mxu1 %vm981_vm4, %v9451_v33  ;;  %v3916_v42 = vsel %vm12435_vm3, %v3911_v34, %v3915_v10  ;;  %v3931_v46 = vshll.u32 %v9836_v27, 16  ;;  %v50_v27 = vld [vmem:[%s17015_s0 + $0xe8] sm:$0xf] }
  0x87   :  { %v3921_v43 = vrot.slane %v3920_v35, 4  ;;  %v482_v44 = vor.u32 %v481_v36, %v478_v31  ;;  %v497_v48 = vrot.slane %v495_v40, 5  ;;  %v3937_v50 = vshll.u32 %v9837_v37, 16 }
  0x88   :  { %v492_v47 = vor.u32 %v491_v24, %v487_v39  ;;  %v3930_v49 = vrot.slane %v3928_v41, 4  ;;  %v3933_v54 = vrot.slane %v3931_v46, 5  ;;  %v3941_v55 = vshrl.u32 %v9837_v37, 16 }
  0x89   :  { %v3926_v52 = vsel %vm12435_vm3, %v3921_v43, %v3925_v29  ;;  %v483_v53 = vrot.slane %v482_v44, 4  ;;  %v3939_v63 = vrot.slane %v3937_v50, 5  ;;  %v3947_v0 = vshll.u32 %v9838_v45, 16  ;;  %v9953_v45 = vld [vmem:[%s17015_s0 + $0x18] sm:$0xe] }
  0x8a   :  { %v9902_v59 = vcombine.low %v3916_v42, %v3926_v52  ;;  %v493_v62 = vrot.slane %v492_v47, 4  ;;  %v3934_v2 = vor.u32 %v3933_v54, %v3930_v49  ;;  %v3943_v3 = vrot.slane %v3941_v55, 4  ;;  %v51_v50 = vld [vmem:[%s17015_s0 + $0xf0] sm:$0xf] }
  0x8b   :  { %v488_v1 = vsel %vm12435_vm3, %v483_v53, %v487_v39  ;;  %v500_v6 = vshrl.u32 %v47_v51, 16  ;;  %v3949_v8 = vrot.slane %v3947_v0, 5  ;;  %v503_v9 = vshll.u32 %v47_v51, 16  ;;  %v97_v39 = vld [vmem:[%s17015_s0 + $0xec] sm:$0x1] }
  0x8c   :  { %11219 = vmatprep.mubr.msk.bf16.mxu0 %vm981_vm4, %v9902_v59  ;;  %v498_v7 = vsel %vm12435_vm3, %v493_v62, %v497_v48  ;;  %v509_v10 = vshll.u32 %v48_v56, 16  ;;  %v3935_v13 = vrot.slane %v3934_v2, 4  ;;  %v3944_v15 = vor.u32 %v3943_v3, %v3939_v63  ;;  %v9954_v59 = vld [vmem:[%s17015_s0 + $0x24] sm:$0xe] }
  0x8d   :  { %v9452_v12 = vcombine.low %v488_v1, %v498_v7  ;;  %v502_v16 = vrot.slane %v500_v6, 4  ;;  %v505_v20 = vrot.slane %v503_v9, 5  ;;  %v513_v22 = vshrl.u32 %v48_v56, 16 }
  0x8e   :  { %v511_v21 = vrot.slane %v509_v10, 5  ;;  %v519_v23 = vshll.u32 %v96_v5, 16  ;;  %v3940_v28 = vsel %vm12435_vm3, %v3935_v13, %v3939_v63  ;;  %v3945_v29 = vrot.slane %v3944_v15, 4 }
  0x8f   :  { %10956 = vmatmul.mubr.msk.bf16.gmra.mrb[28].mxu1 %vm981_vm4, %v9452_v12  ;;  %vm2016_vm6 = vcmask 1046532   ;;  %v506_v31 = vor.u32 %v505_v20, %v502_v16  ;;  %v515_v32 = vrot.slane %v513_v22, 4  ;;  %v9984_v35 = vrot.slane %v9952_v17, 9  ;;  %v53_v12 = vld [vmem:[%s17015_s0 + $0xfc] sm:$0xf] }
  0x90   :  { %v521_v33 = vrot.slane %v519_v23, 5  ;;  %vm12910_vm7 = vmor %vm2015_vm5, %vm2016_vm6  ;;  %v3950_v36 = vsel %vm12435_vm3, %v3945_v29, %v3949_v8  ;;  %v5017_v37 = vrot.slane %v5015_v57, 4  ;;  %v524_v24 = vshrl.u32 %v49_v18, 16  ;;  %v12139_v20 = vld [vmem:[%s17015_s0 + $0x28] sm:$0xf] }
  0x91   :  { %v527_v40 = vshll.u32 %v49_v18, 16  ;;  %v9903_v41 = vcombine.low %v3940_v28, %v3950_v36  ;;  %v507_v42 = vrot.slane %v506_v31, 4  ;;  %v516_v43 = vor.u32 %v515_v32, %v511_v21  ;;  %v54_v22 = vld [vmem:[%s17015_s0 + $0x100] sm:$0xf]  ;;  %v12140_v28 = vld [vmem:[%s17015_s0 + $0x2c] sm:$0x1] }
  0x92   :  { %v5016_v44 = vsel %vm12910_vm7, %v9984_v35, %v5015_v57  ;;  %v5019_v46 = vsel %vm12910_vm7, %v5017_v37, %v5018_v58  ;;  %v526_v47 = vrot.slane %v524_v24, 4  ;;  %v533_v49 = vshll.u32 %v50_v27, 16  ;;  %v98_v58 = vld [vmem:[%s17015_s0 + $0xf8] sm:$0x1]  ;;  %v99_v31 = vld [vmem:[%s17015_s0 + $0x104] sm:$0x1] }
  0x93   :  { %v529_v48 = vrot.slane %v527_v40, 5  ;;  %11220 = vmatmul.mubr.msk.bf16.gmra.mrb[28].mxu0 %vm981_vm4, %v9903_v41  ;;  %v512_v14 = vsel %vm12435_vm3, %v507_v42, %v511_v21  ;;  %v517_v57 = vrot.slane %v516_v43, 4  ;;  %v10017_v51 = vcombine.low %v5016_v44, %v5019_v46  ;;  %v55_v43 = vld [vmem:[%s17015_s0 + $0x108] sm:$0xf]  ;;  %v56_v44 = vld [vmem:[%s17015_s0 + $0x10c] sm:$0xf] }
  0x94   :  { %v537_v52 = vshrl.u32 %v50_v27, 16  ;;  %v535_v54 = vrot.slane %v533_v49, 5  ;;  %v543_v55 = vshll.u32 %v97_v39, 16  ;;  %v9985_v56 = vrot.slane %v9953_v45, 9  ;;  %v9955_v39 = vld [vmem:[%s17015_s0 + $0x30] sm:$0xe] }
  0x95   :  { %v530_v53 = vor.u32 %v529_v48, %v526_v47  ;;  %v522_v62 = vsel %vm12435_vm3, %v517_v57, %v521_v33  ;;  %11257 = vmatprep.mubr.msk.bf16.mxu0 %vm981_vm4, %v10017_v51  ;;  %v5026_v0 = vsel %vm12910_vm7, %v12485_v25, %v5025_v26  ;;  %v6111_v1 = vsel %vm1078_vm0, %v12686_v38, 0 }
  0x96   :  { %v539_v63 = vrot.slane %v537_v52, 4  ;;  %v9453_v2 = vcombine.low %v512_v14, %v522_v62  ;;  %v545_v5 = vrot.slane %v543_v55, 5  ;;  %v5023_v6 = vsel %vm12910_vm7, %v9985_v56, %v5022_v11  ;;  %v12141_v55 = vld [vmem:[%s17015_s0 + $0x34] sm:$0xf] }
  0x97   :  { %v531_v3 = vrot.slane %v530_v53, 4  ;;  %v10018_v8 = vcombine.low %v5023_v6, %v5026_v0  ;;  %v548_v9 = vshrl.u32 %v51_v50, 16  ;;  %v551_v10 = vshll.u32 %v51_v50, 16  ;;  %v100_v0 = vld [vmem:[%s17015_s0 + $0x110] sm:$0x1] }
  0x98   :  { %v540_v7 = vor.u32 %v539_v63, %v535_v54  ;;  %10959 = vmatprep.mubr.msk.bf16.mxu1 %vm981_vm4, %v9453_v2  ;;  %v557_v25 = vshll.u32 %v52_v19, 16  ;;  %v561_v26 = vshrl.u32 %v52_v19, 16  ;;  %v567_v38 = vshll.u32 %v98_v58, 16 }
  0x99   :  { %v536_v61 = vsel %vm12435_vm3, %v531_v3, %v535_v54  ;;  %v550_v13 = vrot.slane %v548_v9, 4  ;;  %v553_v15 = vrot.slane %v551_v10, 5  ;;  %v9986_v11 = vrot.slane %v9954_v59, 9  ;;  %v12142_v59 = vld [vmem:[%s17015_s0 + $0x38] sm:$0x1] }
  0x9a   :  { %v541_v60 = vrot.slane %v540_v7, 4  ;;  %v559_v16 = vrot.slane %v557_v25, 5  ;;  %v563_v17 = vrot.slane %v561_v26, 4  ;;  %v569_v18 = vrot.slane %v567_v38, 5  ;;  %v9956_v9 = vld [vmem:[%s17015_s0 + $0x3c] sm:$0xe] }
  0x9b   :  { %v5029_v21 = vrot.slane %v12139_v20, 5  ;;  %11258 = vmatmul.mubr.msk.bf16.vlgmr.msra.gmra.mrb[0].mxu0 %vm981_vm4, %v10018_v8  ;;  %v554_v27 = vor.u32 %v553_v15, %v550_v13  ;;  %v5032_v29 = vrot.slane %v12140_v28, 5  ;;  %v572_v32 = vshrl.u32 %v53_v12, 16  ;;  %v57_v38 = vld [vmem:[%s17015_s0 + $0x114] sm:$0xf] }
  0x9c   :  { %v546_v23 = vsel %vm12435_vm3, %v541_v60, %v545_v5  ;;  %11322 = vmatpush3.bf16.msra.mxu0 %v6111_v1  ;;  %v564_v35 = vor.u32 %v563_v17, %v559_v16  ;;  %v575_v41 = vshll.u32 %v53_v12, 16  ;;  %v581_v42 = vshll.u32 %v54_v22, 16 }
  0x9d   :  { %v9454_v33 = vcombine.low %v536_v61, %v546_v23  ;;  %v5030_v36 = vsel %vm12910_vm7, %v9986_v11, %v5029_v21  ;;  %v5031_v37 = vrot.slane %v5029_v21, 4  ;;  %v555_v24 = vrot.slane %v554_v27, 4  ;;  %v58_v11 = vld [vmem:[%s17015_s0 + $0x118] sm:$0xf]  ;;  %v12143_v27 = vld [vmem:[%s17015_s0 + $0x40] sm:$0xf] }
  0x9e   :  { %v574_v40 = vrot.slane %v572_v32, 4  ;;  %v565_v45 = vrot.slane %v564_v35, 4  ;;  %v585_v47 = vshrl.u32 %v54_v22, 16  ;;  %v591_v48 = vshll.u32 %v99_v31, 16  ;;  %v12144_v31 = vld [vmem:[%s17015_s0 + $0x44] sm:$0x1] }
  0x9f   :  { %10960 = vmatmul.mubr.msk.bf16.gmra.mrb[32].mxu1 %vm981_vm4, %v9454_v33  ;;  %v5033_v46 = vsel %vm12910_vm7, %v5031_v37, %v5032_v29  ;;  %v560_v49 = vsel %vm12435_vm3, %v555_v24, %v559_v16  ;;  %v577_v14 = vrot.slane %v575_v41, 5  ;;  %v583_v57 = vrot.slane %v581_v42, 5  ;;  %v101_v33 = vld [vmem:[%s17015_s0 + $0x11c] sm:$0x1] }
  0xa0   :  { %v10019_v50 = vcombine.low %v5030_v36, %v5033_v46  ;;  %v570_v51 = vsel %vm12435_vm3, %v565_v45, %v569_v18  ;;  %v587_v52 = vrot.slane %v585_v47, 4  ;;  %v593_v19 = vrot.slane %v591_v48, 5  ;;  %v9957_v45 = vld [vmem:[%s17015_s0 + $0x48] sm:$0xe] }
  0xa1   :  { %v9987_v58 = vrot.slane %v9955_v39, 9  ;;  %v9455_v53 = vcombine.low %v560_v49, %v570_v51  ;;  %v578_v54 = vor.u32 %v577_v14, %v574_v40  ;;  %v5036_v56 = vrot.slane %v12141_v55, 5  ;;  %v60_v14 = vld [vmem:[%s17015_s0 + $0x124] sm:$0xf]  ;;  %v12145_v55 = vld [vmem:[%s17015_s0 + $0x4c] sm:$0xf] }
  0xa2   :  { %11261 = vmatprep.mubr.msk.bf16.mxu0 %vm981_vm4, %v10019_v50  ;;  %v5039_v62 = vrot.slane %v12142_v59, 5  ;;  %v588_v63 = vor.u32 %v587_v52, %v583_v57  ;;  %v596_v1 = vshrl.u32 %v55_v43, 16  ;;  %v599_v2 = vshll.u32 %v55_v43, 16  ;;  %v59_v50 = vld [vmem:[%s17015_s0 + $0x120] sm:$0xf] }
  0xa3   :  { %v605_v3 = vshll.u32 %v56_v44, 16  ;;  %10963 = vmatprep.mubr.msk.bf16.mxu1 %vm981_vm4, %v9455_v53  ;;  %v579_v5 = vrot.slane %v578_v54, 4  ;;  %v5037_v6 = vsel %vm12910_vm7, %v9987_v58, %v5036_v56  ;;  %v5038_v7 = vrot.slane %v5036_v56, 4  ;;  %v102_v58 = vld [vmem:[%s17015_s0 + $0x128] sm:$0x1] }
  0xa4   :  { %v609_v8 = vshrl.u32 %v56_v44, 16  ;;  %v589_v10 = vrot.slane %v588_v63, 4  ;;  %v598_v61 = vrot.slane %v596_v1, 4  ;;  %v601_v25 = vrot.slane %v599_v2, 5  ;;  %v12146_v59 = vld [vmem:[%s17015_s0 + $0x50] sm:$0x1] }
  0xa5   :  { %v607_v26 = vrot.slane %v605_v3, 5  ;;  %v584_v12 = vsel %vm12435_vm3, %v579_v5, %v583_v57  ;;  %v5040_v60 = vsel %vm12910_vm7, %v5038_v7, %v5039_v62  ;;  %v615_v15 = vshll.u32 %v100_v0, 16  ;;  %v9958_v63 = vld [vmem:[%s17015_s0 + $0x54] sm:$0xe] }
  0xa6   :  { %v611_v13 = vrot.slane %v609_v8, 4  ;;  %v594_v16 = vsel %vm12435_vm3, %v589_v10, %v593_v19  ;;  %v10020_v17 = vcombine.low %v5037_v6, %v5040_v60  ;;  %v602_v18 = vor.u32 %v601_v25, %v598_v61 }
  0xa7   :  { %v9988_v20 = vrot.slane %v9956_v9, 9  ;;  %v9456_v21 = vcombine.low %v584_v12, %v594_v16  ;;  %v617_v23 = vrot.slane %v615_v15, 5  ;;  %v5043_v28 = vrot.slane %v12143_v27, 5  ;;  %v61_v9 = vld [vmem:[%s17015_s0 + $0x12c] sm:$0xf] }
  0xa8   :  { %v612_v22 = vor.u32 %v611_v13, %v607_v26  ;;  %11262 = vmatmul.mubr.msk.bf16.gmra.mrb[4].mxu0 %vm981_vm4, %v10020_v17  ;;  %v603_v29 = vrot.slane %v602_v18, 4  ;;  %v5046_v32 = vrot.slane %v12144_v31, 5  ;;  %v620_v35 = vshrl.u32 %v57_v38, 16 }
  0xa9   :  { %v623_v36 = vshll.u32 %v57_v38, 16  ;;  %10964 = vmatmul.mubr.msk.bf16.gmra.mrb[36].mxu1 %vm981_vm4, %v9456_v21  ;;  %v5044_v39 = vsel %vm12910_vm7, %v9988_v20, %v5043_v28  ;;  %v5045_v24 = vrot.slane %v5043_v28, 4  ;;  %v629_v40 = vshll.u32 %v58_v11, 16  ;;  %v62_v38 = vld [vmem:[%s17015_s0 + $0x130] sm:$0xf] }
  0xaa   :  { %v613_v37 = vrot.slane %v612_v22, 4  ;;  %v608_v41 = vsel %vm12435_vm3, %v603_v29, %v607_v26  ;;  %v622_v42 = vrot.slane %v620_v35, 4  ;;  %v633_v44 = vshrl.u32 %v58_v11, 16  ;;  %v103_v20 = vld [vmem:[%s17015_s0 + $0x134] sm:$0x1] }
  0xab   :  { %v625_v43 = vrot.slane %v623_v36, 5  ;;  %v5047_v47 = vsel %vm12910_vm7, %v5045_v24, %v5046_v32  ;;  %v631_v48 = vrot.slane %v629_v40, 5  ;;  %v639_v49 = vshll.u32 %v101_v33, 16  ;;  %v10306_v21 = vld [vmem:[%s17014_s1 + $0xe] sm:$0x3] }
  0xac   :  { %v618_v46 = vsel %vm12435_vm3, %v613_v37, %v617_v23  ;;  %v10021_v51 = vcombine.low %v5044_v39, %v5047_v47  ;;  %v635_v19 = vrot.slane %v633_v44, 4  ;;  %v9989_v54 = vrot.slane %v9957_v45, 9  ;;  %v12147_v28 = vld [vmem:[%s17015_s0 + $0x58] sm:$0xf]  ;;  %12041 = vmatprep.subr.msk.bf16.mxu0 %vm1078_vm0, %v10306_v21  ;;  %v12148_v32 = vld [vmem:[%s17015_s0 + $0x5c] sm:$0x1] }
  0xad   :  { %v9457_v57 = vcombine.low %v608_v41, %v618_v46  ;;  %v626_v52 = vor.u32 %v625_v43, %v622_v42  ;;  %v641_v53 = vrot.slane %v639_v49, 5  ;;  %v5050_v56 = vrot.slane %v12145_v55, 5  ;;  %v9959_v37 = vld [vmem:[%s17015_s0 + $0x60] sm:$0xe]  ;;  %v63_v42 = vld [vmem:[%s17015_s0 + $0x138] sm:$0xf] }
  0xae   :  { %v5053_v62 = vrot.slane %v12146_v59, 5  ;;  %11265 = vmatprep.mubr.msk.bf16.mxu0 %vm981_vm4, %v10021_v51  ;;  %v636_v1 = vor.u32 %v635_v19, %v631_v48  ;;  %v644_v2 = vshrl.u32 %v59_v50, 16  ;;  %v647_v3 = vshll.u32 %v59_v50, 16  ;;  %v12149_v55 = vld [vmem:[%s17015_s0 + $0x64] sm:$0xf] }
  0xaf   :  { %10967 = vmatprep.mubr.msk.bf16.mxu1 %vm981_vm4, %v9457_v57  ;;  %v627_v0 = vrot.slane %v626_v52, 4  ;;  %v5051_v5 = vsel %vm12910_vm7, %v9989_v54, %v5050_v56  ;;  %v5052_v6 = vrot.slane %v5050_v56, 4  ;;  %v653_v7 = vshll.u32 %v60_v14, 16  ;;  %v12150_v59 = vld [vmem:[%s17015_s0 + $0x68] sm:$0x1] }
  0xb0   :  { %v657_v8 = vshrl.u32 %v60_v14, 16  ;;  %v637_v61 = vrot.slane %v636_v1, 4  ;;  %v646_v25 = vrot.slane %v644_v2, 4  ;;  %v649_v26 = vrot.slane %v647_v3, 5  ;;  %v64_v14 = vld [vmem:[%s17015_s0 + $0x13c] sm:$0xf] }
  0xb1   :  { %v632_v10 = vsel %vm12435_vm3, %v627_v0, %v631_v48  ;;  %v5054_v12 = vsel %vm12910_vm7, %v5052_v6, %v5053_v62  ;;  %v655_v60 = vrot.slane %v653_v7, 5  ;;  %v663_v15 = vshll.u32 %v102_v58, 16  ;;  %v104_v58 = vld [vmem:[%s17015_s0 + $0x140] sm:$0x1] }
  0xb2   :  { %v659_v13 = vrot.slane %v657_v8, 4  ;;  %v642_v11 = vsel %vm12435_vm3, %v637_v61, %v641_v53  ;;  %v10022_v16 = vcombine.low %v5051_v5, %v5054_v12  ;;  %v650_v17 = vor.u32 %v649_v26, %v646_v25 }
  0xb3   :  { %v9990_v18 = vrot.slane %v9958_v63, 9  ;;  %v9458_v22 = vcombine.low %v632_v10, %v642_v11  ;;  %v665_v27 = vrot.slane %v663_v15, 5  ;;  %v5057_v29 = vrot.slane %v12147_v28, 5  ;;  %v9960_v63 = vld [vmem:[%s17015_s0 + $0x6c] sm:$0xe] }
  0xb4   :  { %v660_v23 = vor.u32 %v659_v13, %v655_v60  ;;  %11266 = vmatmul.mubr.msk.bf16.gmra.mrb[8].mxu0 %vm981_vm4, %v10022_v16  ;;  %v651_v31 = vrot.slane %v650_v17, 4  ;;  %v5060_v33 = vrot.slane %v12148_v32, 5  ;;  %v668_v35 = vshrl.u32 %v61_v9, 16  ;;  %v105_v28 = vld [vmem:[%s17015_s0 + $0x14c] sm:$0x1] }
  0xb5   :  { %v671_v36 = vshll.u32 %v61_v9, 16  ;;  %10968 = vmatmul.mubr.msk.bf16.gmra.mrb[40].mxu1 %vm981_vm4, %v9458_v22  ;;  %v5058_v24 = vsel %vm12910_vm7, %v9990_v18, %v5057_v29  ;;  %v5059_v40 = vrot.slane %v5057_v29, 4  ;;  %v677_v41 = vshll.u32 %v62_v38, 16  ;;  %v65_v9 = vld [vmem:[%s17015_s0 + $0x144] sm:$0xf] }
  0xb6   :  { %v661_v39 = vrot.slane %v660_v23, 4  ;;  %v656_v43 = vsel %vm12435_vm3, %v651_v31, %v655_v60  ;;  %v670_v44 = vrot.slane %v668_v35, 4  ;;  %v681_v46 = vshrl.u32 %v62_v38, 16  ;;  %v66_v38 = vld [vmem:[%s17015_s0 + $0x148] sm:$0xf] }
  0xb7   :  { %v673_v45 = vrot.slane %v671_v36, 5  ;;  %v5061_v48 = vsel %vm12910_vm7, %v5059_v40, %v5060_v33  ;;  %v679_v49 = vrot.slane %v677_v41, 5  ;;  %v687_v50 = vshll.u32 %v103_v20, 16  ;;  %v12151_v23 = vld [vmem:[%s17015_s0 + $0x70] sm:$0xf] }
  0xb8   :  { %v666_v47 = vsel %vm12435_vm3, %v661_v39, %v665_v27  ;;  %v10023_v51 = vcombine.low %v5058_v24, %v5061_v48  ;;  %v683_v19 = vrot.slane %v681_v46, 4  ;;  %v9991_v54 = vrot.slane %v9959_v37, 9  ;;  %v12152_v31 = vld [vmem:[%s17015_s0 + $0x74] sm:$0x1]  ;;  %v9961_v36 = vld [vmem:[%s17015_s0 + $0x78] sm:$0xe] }
  0xb9   :  { %v9459_v57 = vcombine.low %v656_v43, %v666_v47  ;;  %v674_v52 = vor.u32 %v673_v45, %v670_v44  ;;  %v689_v53 = vrot.slane %v687_v50, 5  ;;  %v5064_v56 = vrot.slane %v12149_v55, 5  ;;  %v67_v41 = vld [vmem:[%s17015_s0 + $0x150] sm:$0xf]  ;;  %v68_v46 = vld [vmem:[%s17015_s0 + $0x154] sm:$0xf] }
  0xba   :  { %v5067_v62 = vrot.slane %v12150_v59, 5  ;;  %11269 = vmatprep.mubr.msk.bf16.mxu0 %vm981_vm4, %v10023_v51  ;;  %v684_v1 = vor.u32 %v683_v19, %v679_v49  ;;  %v692_v2 = vshrl.u32 %v63_v42, 16  ;;  %v695_v3 = vshll.u32 %v63_v42, 16  ;;  %v106_v19 = vld [vmem:[%s17015_s0 + $0x158] sm:$0x1] }
  0xbb   :  { %10971 = vmatprep.mubr.msk.bf16.mxu1 %vm981_vm4, %v9459_v57  ;;  %v675_v0 = vrot.slane %v674_v52, 4  ;;  %v5065_v5 = vsel %vm12910_vm7, %v9991_v54, %v5064_v56  ;;  %v5066_v6 = vrot.slane %v5064_v56, 4  ;;  %v701_v7 = vshll.u32 %v64_v14, 16  ;;  %v12153_v54 = vld [vmem:[%s17015_s0 + $0x7c] sm:$0xf] }
  0xbc   :  { %v705_v8 = vshrl.u32 %v64_v14, 16  ;;  %v685_v61 = vrot.slane %v684_v1, 4  ;;  %v694_v25 = vrot.slane %v692_v2, 4  ;;  %v697_v26 = vrot.slane %v695_v3, 5  ;;  %v12154_v56 = vld [vmem:[%s17015_s0 + $0x80] sm:$0x1] }
  0xbd   :  { %v680_v10 = vsel %vm12435_vm3, %v675_v0, %v679_v49  ;;  %v5068_v12 = vsel %vm12910_vm7, %v5066_v6, %v5067_v62  ;;  %v703_v60 = vrot.slane %v701_v7, 5  ;;  %v711_v15 = vshll.u32 %v104_v58, 16  ;;  %v9962_v62 = vld [vmem:[%s17015_s0 + $0x84] sm:$0xe] }
  0xbe   :  { %v707_v13 = vrot.slane %v705_v8, 4  ;;  %v690_v11 = vsel %vm12435_vm3, %v685_v61, %v689_v53  ;;  %v10024_v16 = vcombine.low %v5065_v5, %v5068_v12  ;;  %v698_v17 = vor.u32 %v697_v26, %v694_v25  ;;  %v69_v8 = vld [vmem:[%s17015_s0 + $0x15c] sm:$0xf]  ;;  %v70_v26 = vld [vmem:[%s17015_s0 + $0x160] sm:$0xf] }
  0xbf   :  { %v9992_v18 = vrot.slane %v9960_v63, 9  ;;  %v9460_v20 = vcombine.low %v680_v10, %v690_v11  ;;  %v713_v22 = vrot.slane %v711_v15, 5  ;;  %v5071_v27 = vrot.slane %v12151_v23, 5  ;;  %v12155_v23 = vld [vmem:[%s17015_s0 + $0x88] sm:$0xf] }
  0xc0   :  { %v708_v21 = vor.u32 %v707_v13, %v703_v60  ;;  %11270 = vmatmul.mubr.msk.bf16.gmra.mrb[12].mxu0 %vm981_vm4, %v10024_v16  ;;  %v699_v29 = vrot.slane %v698_v17, 4  ;;  %v5074_v32 = vrot.slane %v12152_v31, 5  ;;  %v716_v33 = vshrl.u32 %v65_v9, 16 }
  0xc1   :  { %v719_v35 = vshll.u32 %v65_v9, 16  ;;  %10972 = vmatmul.mubr.msk.bf16.gmra.mrb[44].mxu1 %vm981_vm4, %v9460_v20  ;;  %v5072_v39 = vsel %vm12910_vm7, %v9992_v18, %v5071_v27  ;;  %v5073_v24 = vrot.slane %v5071_v27, 4  ;;  %v725_v40 = vshll.u32 %v66_v38, 16  ;;  %v107_v18 = vld [vmem:[%s17015_s0 + $0x164] sm:$0x1] }
  0xc2   :  { %v709_v37 = vrot.slane %v708_v21, 4  ;;  %v704_v42 = vsel %vm12435_vm3, %v699_v29, %v703_v60  ;;  %v718_v43 = vrot.slane %v716_v33, 4  ;;  %v729_v45 = vshrl.u32 %v66_v38, 16  ;;  %v12156_v29 = vld [vmem:[%s17015_s0 + $0x8c] sm:$0x1] }
  0xc3   :  { %v721_v44 = vrot.slane %v719_v35, 5  ;;  %v5075_v48 = vsel %vm12910_vm7, %v5073_v24, %v5074_v32  ;;  %v727_v49 = vrot.slane %v725_v40, 5  ;;  %v735_v50 = vshll.u32 %v105_v28, 16  ;;  %v9963_v35 = vld [vmem:[%s17015_s0 + $0x90] sm:$0xe] }
  0xc4   :  { %v714_v47 = vsel %vm12435_vm3, %v709_v37, %v713_v22  ;;  %v10025_v57 = vcombine.low %v5072_v39, %v5075_v48  ;;  %v731_v52 = vrot.slane %v729_v45, 4  ;;  %v9993_v53 = vrot.slane %v9961_v36, 9  ;;  %v13219_v40 = vld [vmem:[%s17015_s0 + $0x168] sm:$0xf] }
  0xc5   :  { %v9461_v14 = vcombine.low %v704_v42, %v714_v47  ;;  %v722_v51 = vor.u32 %v721_v44, %v718_v43  ;;  %v737_v58 = vrot.slane %v735_v50, 5  ;;  %v5078_v55 = vrot.slane %v12153_v54, 5 }
  0xc6   :  { %v5081_v59 = vrot.slane %v12154_v56, 5  ;;  %11273 = vmatprep.mubr.msk.bf16.mxu0 %vm981_vm4, %v10025_v57  ;;  %v732_v0 = vor.u32 %v731_v52, %v727_v49  ;;  %v740_v1 = vshrl.u32 %v67_v41, 16  ;;  %v743_v2 = vshll.u32 %v67_v41, 16  ;;  %v108_v52 = vld [vmem:[%s17015_s0 + $0x170] sm:$0x1] }
  0xc7   :  { %10975 = vmatprep.mubr.msk.bf16.mxu1 %vm981_vm4, %v9461_v14  ;;  %v723_v63 = vrot.slane %v722_v51, 4  ;;  %v5079_v3 = vsel %vm12910_vm7, %v9993_v53, %v5078_v55  ;;  %v5080_v5 = vrot.slane %v5078_v55, 4  ;;  %v749_v6 = vshll.u32 %v68_v46, 16  ;;  %v12157_v53 = vld [vmem:[%s17015_s0 + $0x94] sm:$0xf] }
  0xc8   :  { %v753_v7 = vshrl.u32 %v68_v46, 16  ;;  %v733_v10 = vrot.slane %v732_v0, 4  ;;  %v742_v61 = vrot.slane %v740_v1, 4  ;;  %v745_v25 = vrot.slane %v743_v2, 5  ;;  %v12158_v55 = vld [vmem:[%s17015_s0 + $0x98] sm:$0x1] }
  0xc9   :  { %v728_v9 = vsel %vm12435_vm3, %v723_v63, %v727_v49  ;;  %v5082_v38 = vsel %vm12910_vm7, %v5080_v5, %v5081_v59  ;;  %v751_v12 = vrot.slane %v749_v6, 5  ;;  %v759_v13 = vshll.u32 %v106_v19, 16  ;;  %v13230_v49 = vld [vmem:[%s17015_s0 + $0x16c] sm:$0xf]  ;;  %v9964_v59 = vld [vmem:[%s17015_s0 + $0x9c] sm:$0xe] }
  0xca   :  { %v755_v60 = vrot.slane %v753_v7, 4  ;;  %v738_v15 = vsel %vm12435_vm3, %v733_v10, %v737_v58  ;;  %v10026_v11 = vcombine.low %v5079_v3, %v5082_v38  ;;  %v746_v16 = vor.u32 %v745_v25, %v742_v61  ;;  %v13255_v7 = vld [vmem:[%s17015_s0 + $0x174] sm:$0xf]  ;;  %v13262_v25 = vld [vmem:[%s17015_s0 + $0x178] sm:$0xf] }
  0xcb   :  { %v9994_v17 = vrot.slane %v9962_v62, 9  ;;  %v9462_v20 = vcombine.low %v728_v9, %v738_v15  ;;  %v761_v22 = vrot.slane %v759_v13, 5  ;;  %v5085_v27 = vrot.slane %v12155_v23, 5  ;;  %v109_v23 = vld [vmem:[%s17015_s0 + $0x17c] sm:$0x1] }
  0xcc   :  { %v756_v21 = vor.u32 %v755_v60, %v751_v12  ;;  %11274 = vmatmul.mubr.msk.bf16.gmra.mrb[16].mxu0 %vm981_vm4, %v10026_v11  ;;  %v747_v28 = vrot.slane %v746_v16, 4  ;;  %v5088_v31 = vrot.slane %v12156_v29, 5  ;;  %v764_v32 = vshrl.u32 %v69_v8, 16 }
  0xcd   :  { %v767_v33 = vshll.u32 %v69_v8, 16  ;;  %10976 = vmatmul.mubr.msk.bf16.gmra.mrb[48].mxu1 %vm981_vm4, %v9462_v20  ;;  %v5086_v37 = vsel %vm12910_vm7, %v9994_v17, %v5085_v27  ;;  %v5087_v39 = vrot.slane %v5085_v27, 4  ;;  %v773_v24 = vshll.u32 %v70_v26, 16 }
  0xce   :  { %v757_v36 = vrot.slane %v756_v21, 4  ;;  %v752_v41 = vsel %vm12435_vm3, %v747_v28, %v751_v12  ;;  %v766_v42 = vrot.slane %v764_v32, 4  ;;  %v777_v44 = vshrl.u32 %v70_v26, 16  ;;  %v12159_v21 = vld [vmem:[%s17015_s0 + $0xa0] sm:$0xf] }
  0xcf   :  { %v769_v43 = vrot.slane %v767_v33, 5  ;;  %v5089_v46 = vsel %vm12910_vm7, %v5087_v39, %v5088_v31  ;;  %v775_v47 = vrot.slane %v773_v24, 5  ;;  %v783_v48 = vshll.u32 %v107_v18, 16  ;;  %v12160_v28 = vld [vmem:[%s17015_s0 + $0xa4] sm:$0x1] }
  0xd0   :  { %v762_v45 = vsel %vm12435_vm3, %v757_v36, %v761_v22  ;;  %v10027_v14 = vcombine.low %v5086_v37, %v5089_v46  ;;  %v779_v51 = vrot.slane %v777_v44, 4  ;;  %v9995_v58 = vrot.slane %v9963_v35, 9  ;;  %v9965_v33 = vld [vmem:[%s17015_s0 + $0xa8] sm:$0xe]  ;;  %v13290_v24 = vld [vmem:[%s17015_s0 + $0x180] sm:$0xf] }
  0xd1   :  { %v9463_v50 = vcombine.low %v752_v41, %v762_v45  ;;  %v770_v57 = vor.u32 %v769_v43, %v766_v42  ;;  %v785_v19 = vrot.slane %v783_v48, 5  ;;  %v5092_v54 = vrot.slane %v12157_v53, 5  ;;  %v13298_v45 = vld [vmem:[%s17015_s0 + $0x184] sm:$0xf] }
  0xd2   :  { %v5095_v56 = vrot.slane %v12158_v55, 5  ;;  %11277 = vmatprep.mubr.msk.bf16.mxu0 %vm981_vm4, %v10027_v14  ;;  %v780_v63 = vor.u32 %v779_v51, %v775_v47  ;;  %v788_v0 = vshrl.u32 %v13219_v40, 16  ;;  %v791_v1 = vshll.u32 %v13219_v40, 16 }
  0xd3   :  { %10979 = vmatprep.mubr.msk.bf16.mxu1 %vm981_vm4, %v9463_v50  ;;  %v771_v62 = vrot.slane %v770_v57, 4  ;;  %v5093_v2 = vsel %vm12910_vm7, %v9995_v58, %v5092_v54  ;;  %v5094_v3 = vrot.slane %v5092_v54, 4  ;;  %v797_v5 = vshll.u32 %v13230_v49, 16  ;;  %v12161_v54 = vld [vmem:[%s17015_s0 + $0xac] sm:$0xf] }
  0xd4   :  { %v801_v6 = vshrl.u32 %v13230_v49, 16  ;;  %v781_v9 = vrot.slane %v780_v63, 4  ;;  %v790_v10 = vrot.slane %v788_v0, 4  ;;  %v793_v61 = vrot.slane %v791_v1, 5 }
  0xd5   :  { %v776_v8 = vsel %vm12435_vm3, %v771_v62, %v775_v47  ;;  %v5096_v26 = vsel %vm12910_vm7, %v5094_v3, %v5095_v56  ;;  %v799_v38 = vrot.slane %v797_v5, 5  ;;  %v807_v60 = vshll.u32 %v108_v52, 16  ;;  %v12162_v56 = vld [vmem:[%s17015_s0 + $0xb0] sm:$0x1]  ;;  %v9966_v62 = vld [vmem:[%s17015_s0 + $0xb4] sm:$0xe] }
  0xd6   :  { %v803_v12 = vrot.slane %v801_v6, 4  ;;  %v786_v13 = vsel %vm12435_vm3, %v781_v9, %v785_v19  ;;  %v10028_v15 = vcombine.low %v5093_v2, %v5096_v26  ;;  %v794_v11 = vor.u32 %v793_v61, %v790_v10  ;;  %v110_v19 = vld [vmem:[%s17015_s0 + $0x188] sm:$0x1]  ;;  %v13327_v9 = vld [vmem:[%s17015_s0 + $0x18c] sm:$0xf] }
  0xd7   :  { %v9996_v16 = vrot.slane %v9964_v59, 9  ;;  %v9464_v17 = vcombine.low %v776_v8, %v786_v13  ;;  %v809_v20 = vrot.slane %v807_v60, 5  ;;  %v5099_v22 = vrot.slane %v12159_v21, 5  ;;  %v111_v21 = vld [vmem:[%s17015_s0 + $0x194] sm:$0x1] }
  0xd8   :  { %v804_v18 = vor.u32 %v803_v12, %v799_v38  ;;  %11278 = vmatmul.mubr.msk.bf16.gmra.mrb[20].mxu0 %vm981_vm4, %v10028_v15  ;;  %v795_v27 = vrot.slane %v794_v11, 4  ;;  %v5102_v29 = vrot.slane %v12160_v28, 5  ;;  %v812_v31 = vshrl.u32 %v13255_v7, 16  ;;  %v13334_v12 = vld [vmem:[%s17015_s0 + $0x190] sm:$0xf] }
  0xd9   :  { %v815_v32 = vshll.u32 %v13255_v7, 16  ;;  %10980 = vmatmul.mubr.msk.bf16.gmra.mrb[52].mxu1 %vm981_vm4, %v9464_v17  ;;  %v5100_v36 = vsel %vm12910_vm7, %v9996_v16, %v5099_v22  ;;  %v5101_v37 = vrot.slane %v5099_v22, 4  ;;  %v821_v39 = vshll.u32 %v13262_v25, 16  ;;  %v12163_v28 = vld [vmem:[%s17015_s0 + $0xb8] sm:$0xf] }
  0xda   :  { %v805_v35 = vrot.slane %v804_v18, 4  ;;  %v800_v41 = vsel %vm12435_vm3, %v795_v27, %v799_v38  ;;  %v814_v42 = vrot.slane %v812_v31, 4  ;;  %v825_v44 = vshrl.u32 %v13262_v25, 16 }
  0xdb   :  { %v817_v43 = vrot.slane %v815_v32, 5  ;;  %v5103_v47 = vsel %vm12910_vm7, %v5101_v37, %v5102_v29  ;;  %v823_v48 = vrot.slane %v821_v39, 5  ;;  %v831_v50 = vshll.u32 %v109_v23, 16  ;;  %v12164_v32 = vld [vmem:[%s17015_s0 + $0xbc] sm:$0x1] }
  0xdc   :  { %v810_v46 = vsel %vm12435_vm3, %v805_v35, %v809_v20  ;;  %v10029_v57 = vcombine.low %v5100_v36, %v5103_v47  ;;  %v827_v52 = vrot.slane %v825_v44, 4  ;;  %v9997_v53 = vrot.slane %v9965_v33, 9  ;;  %v9967_v37 = vld [vmem:[%s17015_s0 + $0xc0] sm:$0xe] }
  0xdd   :  { %v9465_v14 = vcombine.low %v800_v41, %v810_v46  ;;  %v818_v51 = vor.u32 %v817_v43, %v814_v42  ;;  %v833_v58 = vrot.slane %v831_v50, 5  ;;  %v5106_v55 = vrot.slane %v12161_v54, 5  ;;  %v9840_v50 = vld [vmem:[%s17015_s0 + $0xe8] sm:$0xf] }
  0xde   :  { %v5109_v59 = vrot.slane %v12162_v56, 5  ;;  %11281 = vmatprep.mubr.msk.bf16.mxu0 %vm981_vm4, %v10029_v57  ;;  %v828_v0 = vor.u32 %v827_v52, %v823_v48  ;;  %v836_v1 = vshrl.u32 %v13290_v24, 16  ;;  %v839_v2 = vshll.u32 %v13290_v24, 16 }
  0xdf   :  { %10983 = vmatprep.mubr.msk.bf16.mxu1 %vm981_vm4, %v9465_v14  ;;  %v819_v63 = vrot.slane %v818_v51, 4  ;;  %v5107_v3 = vsel %vm12910_vm7, %v9997_v53, %v5106_v55  ;;  %v5108_v5 = vrot.slane %v5106_v55, 4  ;;  %v845_v6 = vshll.u32 %v13298_v45, 16  ;;  %v9841_v14 = vld [vmem:[%s17015_s0 + $0xec] sm:$0x1] }
  0xe0   :  { %v849_v8 = vshrl.u32 %v13298_v45, 16  ;;  %v829_v61 = vrot.slane %v828_v0, 4  ;;  %v838_v26 = vrot.slane %v836_v1, 4  ;;  %v841_v38 = vrot.slane %v839_v2, 5  ;;  %v12166_v0 = vld [vmem:[%s17015_s0 + $0xc8] sm:$0x1] }
  0xe1   :  { %v824_v10 = vsel %vm12435_vm3, %v819_v63, %v823_v48  ;;  %v5110_v60 = vsel %vm12910_vm7, %v5108_v5, %v5109_v59  ;;  %v847_v13 = vrot.slane %v845_v6, 5  ;;  %v855_v11 = vshll.u32 %v110_v19, 16 }
  0xe2   :  { %v851_v15 = vrot.slane %v849_v8, 4  ;;  %v834_v16 = vsel %vm12435_vm3, %v829_v61, %v833_v58  ;;  %v10030_v17 = vcombine.low %v5107_v3, %v5110_v60  ;;  %v842_v18 = vor.u32 %v841_v38, %v838_v26  ;;  %v9968_v58 = vld [vmem:[%s17015_s0 + $0xe4] sm:$0xe]  ;;  %v9969_v8 = vld [vmem:[%s17015_s0 + $0xf0] sm:$0xe] }
  0xe3   :  { %v9998_v20 = vrot.slane %v9966_v62, 9  ;;  %v9466_v22 = vcombine.low %v824_v10, %v834_v16  ;;  %v857_v27 = vrot.slane %v855_v11, 5  ;;  %v5113_v29 = vrot.slane %v12163_v28, 5  ;;  %v12165_v62 = vld [vmem:[%s17015_s0 + $0xc4] sm:$0xf] }
  0xe4   :  { %v852_v23 = vor.u32 %v851_v15, %v847_v13  ;;  %11282 = vmatmul.mubr.msk.bf16.gmra.mrb[24].mxu0 %vm981_vm4, %v10030_v17  ;;  %v843_v31 = vrot.slane %v842_v18, 4  ;;  %v5116_v33 = vrot.slane %v12164_v32, 5  ;;  %v860_v35 = vshrl.u32 %v13327_v9, 16  ;;  %v13391_v60 = vld [vmem:[%s17015_s0 + $0xf4] sm:$0xf] }
  0xe5   :  { %v863_v36 = vshll.u32 %v13327_v9, 16  ;;  %10984 = vmatmul.mubr.msk.bf16.gmra.mrb[56].mxu1 %vm981_vm4, %v9466_v22  ;;  %v5114_v41 = vsel %vm12910_vm7, %v9998_v20, %v5113_v29  ;;  %v5115_v42 = vrot.slane %v5113_v29, 4  ;;  %v869_v43 = vshll.u32 %v13334_v12, 16  ;;  %v13398_v11 = vld [vmem:[%s17015_s0 + $0xf8] sm:$0x1] }
  0xe6   :  { %v853_v39 = vrot.slane %v852_v23, 4  ;;  %v848_v44 = vsel %vm12435_vm3, %v843_v31, %v847_v13  ;;  %v862_v46 = vrot.slane %v860_v35, 4  ;;  %v873_v48 = vshrl.u32 %v13334_v12, 16  ;;  %v9846_v16 = vld [vmem:[%s17015_s0 + $0x100] sm:$0xf] }
  0xe7   :  { %v865_v47 = vrot.slane %v863_v36, 5  ;;  %v5117_v51 = vsel %vm12910_vm7, %v5115_v42, %v5116_v33  ;;  %v871_v52 = vrot.slane %v869_v43, 5  ;;  %v879_v19 = vshll.u32 %v111_v21, 16  ;;  %v9847_v21 = vld [vmem:[%s17015_s0 + $0x104] sm:$0x1] }
  0xe8   :  { %v858_v57 = vsel %vm12435_vm3, %v853_v39, %v857_v27  ;;  %v10031_v54 = vcombine.low %v5114_v41, %v5117_v51  ;;  %v875_v56 = vrot.slane %v873_v48, 4  ;;  %v9999_v59 = vrot.slane %v9967_v37, 9  ;;  %v12167_v27 = vld [vmem:[%s17015_s0] sm:$0xf]  ;;  %v13418_v28 = vld [vmem:[%s17015_s0 + $0x4] sm:$0xf] }
  0xe9   :  { %v9467_v53 = vcombine.low %v848_v44, %v858_v57  ;;  %v866_v55 = vor.u32 %v865_v47, %v862_v46  ;;  %v5120_v63 = vrot.slane %v12165_v62, 5  ;;  %v5123_v1 = vrot.slane %v12166_v0, 5  ;;  %v9970_v31 = vld [vmem:[%s17015_s0 + $0xfc] sm:$0xe]  ;;  %v9849_v36 = vld [vmem:[%s17015_s0 + $0x10c] sm:$0xf] }
  0xea   :  { %11285 = vmatprep.mubr.msk.bf16.mxu0 %vm981_vm4, %v10031_v54  ;;  %v876_v3 = vor.u32 %v875_v56, %v871_v52  ;;  %v881_v5 = vrot.slane %v879_v19, 5  ;;  %v10000_v6 = vrot.slane %v9968_v58, 9  ;;  %v5127_v26 = vrot.slane %v9840_v50, 5  ;;  %v9850_v41 = vld [vmem:[%s17015_s0 + $0x110] sm:$0x1] }
  0xeb   :  { %10987 = vmatprep.mubr.msk.bf16.mxu1 %vm981_vm4, %v9467_v53  ;;  %v867_v2 = vrot.slane %v866_v55, 4  ;;  %v5121_v10 = vsel %vm12910_vm7, %v9999_v59, %v5120_v63  ;;  %v5122_v61 = vrot.slane %v5120_v63, 4  ;;  %v5130_v38 = vrot.slane %v9841_v14, 5  ;;  %v9971_v46 = vld [vmem:[%s17015_s0 + $0x108] sm:$0xe] }
  0xec   :  { %v877_v15 = vrot.slane %v876_v3, 4  ;;  %v5128_v18 = vsel %vm12910_vm7, %v10000_v6, %v5127_v26  ;;  %v5129_v20 = vrot.slane %v5127_v26, 4  ;;  %v9501_v29 = vcombine.low %v12167_v27, %v13418_v28  ;;  %v9852_v14 = vld [vmem:[%s17015_s0 + $0x118] sm:$0xf]  ;;  %v9972_v57 = vld [vmem:[%s17015_s0 + $0x114] sm:$0xe] }
  0xed   :  { %v872_v13 = vsel %vm12435_vm3, %v867_v2, %v871_v52  ;;  %v5124_v17 = vsel %vm12910_vm7, %v5122_v61, %v5123_v1  ;;  %v10001_v35 = vrot.slane %v9969_v8, 9  ;;  %v5134_v39 = vrot.slane %v13391_v60, 5  ;;  %v9853_v19 = vld [vmem:[%s17015_s0 + $0x11c] sm:$0x1]  ;;  %v12169_v58 = vld [vmem:[%s17015_s0 + $0xc] sm:$0xf] }
  0xee   :  { %v882_v22 = vsel %vm12435_vm3, %v877_v15, %v881_v5  ;;  %v10032_v23 = vcombine.low %v5121_v10, %v5124_v17  ;;  %v5131_v33 = vsel %vm12910_vm7, %v5129_v20, %v5130_v38  ;;  %v5137_v42 = vrot.slane %v13398_v11, 5  ;;  %v13460_v53 = vld [vmem:[%s17015_s0 + $0x10] sm:$0xf]  ;;  %v9855_v62 = vld [vmem:[%s17015_s0 + $0x124] sm:$0xf] }
  0xef   :  { %v9468_v32 = vcombine.low %v872_v13, %v882_v22  ;;  %v10033_v37 = vcombine.low %v5128_v18, %v5131_v33  ;;  %v10002_v43 = vrot.slane %v9970_v31, 9  ;;  %v5141_v44 = vrot.slane %v9846_v16, 5  ;;  %v9858_v3 = vld [vmem:[%s17015_s0 + $0x130] sm:$0xf]  ;;  %v12171_v5 = vld [vmem:[%s17015_s0 + $0x18] sm:$0xf] }
  0xf0   :  { %11286 = vmatmul.mubr.msk.bf16.gmra.mrb[28].mxu0 %vm981_vm4, %v10032_v23  ;;  %v5135_v47 = vsel %vm12910_vm7, %v10001_v35, %v5134_v39  ;;  %v5136_v48 = vrot.slane %v5134_v39, 4  ;;  %v5144_v50 = vrot.slane %v9847_v21, 5  ;;  %v9502_v54 = vcombine.low %v12169_v58, %v13460_v53  ;;  %v13479_v6 = vld [vmem:[%s17015_s0 + $0x1c] sm:$0xf]  ;;  %v12173_v38 = vld [vmem:[%s17014_s1 + $0x4] sm:$0x3] }
  0xf1   :  { %10988 = vmatmul.mubr.msk.bf16.gmra.mrb[60].mxu1 %vm981_vm4, %v9468_v32  ;;  %11289 = vmatprep.mubr.msk.bf16.mxu0 %vm981_vm4, %v10033_v37  ;;  %v5142_v51 = vsel %vm12910_vm7, %v10002_v43, %v5141_v44  ;;  %v5143_v52 = vrot.slane %v5141_v44, 4  ;;  %v10003_v56 = vrot.slane %v9971_v46, 9  ;;  %v5148_v59 = vrot.slane %v9849_v36, 5  ;;  %v9973_v16 = vld [vmem:[%s17015_s0 + $0x120] sm:$0xe] }
  0xf2   :  { %10993 = vmatprep.mubr.msk.bf16.mxu1 %vm981_vm4, %v9501_v29  ;;  %v5138_v55 = vsel %vm12910_vm7, %v5136_v48, %v5137_v42  ;;  %v5151_v1 = vrot.slane %v9850_v41, 5  ;;  %v10004_v2 = vrot.slane %v9972_v57, 9  ;;  %v9503_v8 = vcombine.low %v12171_v5, %v13479_v6  ;;  %v13492_v17 = vld [vmem:[%s17014_s1 + $0x6] sm:$0x3]  ;;  %v9856_v29 = vld [vmem:[%s17015_s0 + $0x128] sm:$0x1] }
  0xf3   :  { %v10034_v63 = vcombine.low %v5135_v47, %v5138_v55  ;;  %v5145_v0 = vsel %vm12910_vm7, %v5143_v52, %v5144_v50  ;;  %v5150_v61 = vrot.slane %v5148_v59, 4  ;;  %v5155_v26 = vrot.slane %v9852_v14, 5  ;;  %v9974_v31 = vld [vmem:[%s17015_s0 + $0x12c] sm:$0xe]  ;;  %v9859_v33 = vld [vmem:[%s17015_s0 + $0x134] sm:$0x1] }
  0xf4   :  { %v10035_v10 = vcombine.low %v5142_v51, %v5145_v0  ;;  %v2437_v13 = vsel %vm1078_vm0, %v12173_v38, 0  ;;  %v5158_v15 = vrot.slane %v9853_v19, 5  ;;  %v5149_v20 = vsel %vm12910_vm7, %v10003_v56, %v5148_v59  ;;  %v12174_v35 = vld [vmem:[%s17015_s0 + $0x24] sm:$0xf]  ;;  %v13523_v36 = vld [vmem:[%s17015_s0 + $0x28] sm:$0xf] }
  0xf5   :  { %v5157_v18 = vrot.slane %v5155_v26, 4  ;;  %v5152_v21 = vsel %vm12910_vm7, %v5150_v61, %v5151_v1  ;;  %v5162_v22 = vrot.slane %v9855_v62, 5  ;;  %v5156_v23 = vsel %vm12910_vm7, %v10004_v2, %v5155_v26  ;;  %v9861_v42 = vld [vmem:[%s17015_s0 + $0x13c] sm:$0xf]  ;;  %v12176_v48 = vld [vmem:[%s17015_s0 + $0x30] sm:$0xf] }
  0xf6   :  { %v5169_v32 = vrot.slane %v9858_v3, 5  ;;  %v9504_v37 = vcombine.low %v12174_v35, %v13523_v36  ;;  %v10036_v39 = vcombine.low %v5149_v20, %v5152_v21  ;;  %v10005_v41 = vrot.slane %v9973_v16, 9  ;;  %v13535_v50 = vld [vmem:[%s17015_s0 + $0x34] sm:$0xf]  ;;  %v9864_v52 = vld [vmem:[%s17015_s0 + $0x148] sm:$0xf] }
  0xf7   :  { %v5159_v27 = vsel %vm12910_vm7, %v5157_v18, %v5158_v15  ;;  %v5164_v44 = vrot.slane %v5162_v22, 4  ;;  %v5165_v46 = vrot.slane %v9856_v29, 5  ;;  %v10006_v47 = vrot.slane %v9974_v31, 9  ;;  %v9862_v59 = vld [vmem:[%s17015_s0 + $0x140] sm:$0x1] }
  0xf8   :  { %11290 = vmatmul.mubr.msk.bf16.gmra.mrb[32].mxu0 %vm981_vm4, %v10034_v63  ;;  %v10037_v43 = vcombine.low %v5156_v23, %v5159_v27  ;;  %v9505_v14 = vcombine.low %v12176_v48, %v13535_v50  ;;  %v5171_v57 = vrot.slane %v5169_v32, 4  ;;  %v5172_v51 = vrot.slane %v9859_v33, 5  ;;  %v9975_v62 = vld [vmem:[%s17015_s0 + $0x138] sm:$0xe]  ;;  %v9865_v0 = vld [vmem:[%s17015_s0 + $0x14c] sm:$0x1] }
  0xf9   :  { %10994 = vmatmul.mubr.msk.bf16.vlgmr.msra.gmra.mrb[0].mxu1 %vm981_vm4, %v9502_v54  ;;  %11293 = vmatprep.mubr.msk.bf16.mxu0 %vm981_vm4, %v10035_v10  ;;  %v5163_v19 = vsel %vm12910_vm7, %v10005_v41, %v5162_v22  ;;  %v5166_v58 = vsel %vm12910_vm7, %v5164_v44, %v5165_v46  ;;  %v5176_v54 = vrot.slane %v9861_v42, 5  ;;  %v5170_v55 = vsel %vm12910_vm7, %v10006_v47, %v5169_v32  ;;  %v9976_v1 = vld [vmem:[%s17015_s0 + $0x144] sm:$0xe]  ;;  %v12178_v2 = vld [vmem:[%s17015_s0 + $0x3c] sm:$0xf] }
  0xfa   :  { %11058 = vmatpush3.bf16.msra.mxu1 %v2437_v13  ;;  %10997 = vmatprep.mubr.msk.bf16.mxu1 %vm981_vm4, %v9503_v8  ;;  %v5173_v56 = vsel %vm12910_vm7, %v5171_v57, %v5172_v51  ;;  %v5183_v63 = vrot.slane %v9864_v52, 5  ;;  %v13571_v3 = vld [vmem:[%s17015_s0 + $0x40] sm:$0xf]  ;;  %v10038_v8 = vcombine.low %v5163_v19, %v5166_v58  ;;  %v10007_v61 = vrot.slane %v9975_v62, 9  ;;  %v12180_v13 = vld [vmem:[%s17015_s0 + $0x48] sm:$0xf] }
  0xfb   :  { %12036 = vmatprep.subr.msk.bf16.mxu1 %vm1078_vm0, %v13492_v17  ;;  %v9506_v5 = vcombine.low %v12178_v2, %v13571_v3  ;;  %v10039_v10 = vcombine.low %v5170_v55, %v5173_v56  ;;  %v5178_v26 = vrot.slane %v5176_v54, 4  ;;  %v5179_v38 = vrot.slane %v9862_v59, 5  ;;  %v13580_v15 = vld [vmem:[%s17015_s0 + $0x4c] sm:$0xf]  ;;  %v9867_v22 = vld [vmem:[%s17015_s0 + $0x154] sm:$0xf] }
  0xfc   :  { %v9507_v16 = vcombine.low %v12180_v13, %v13580_v15  ;;  %v10008_v18 = vrot.slane %v9976_v1, 9  ;;  %v5185_v20 = vrot.slane %v5183_v63, 4  ;;  %v5186_v21 = vrot.slane %v9865_v0, 5  ;;  %v9870_v23 = vld [vmem:[%s17015_s0 + $0x160] sm:$0xf] }
  0xfd   :  { %v5177_v27 = vsel %vm12910_vm7, %v10007_v61, %v5176_v54  ;;  %v5180_v29 = vsel %vm12910_vm7, %v5178_v26, %v5179_v38  ;;  %v5190_v31 = vrot.slane %v9867_v22, 5  ;;  %v9868_v35 = vld [vmem:[%s17015_s0 + $0x158] sm:$0x1]  ;;  %v9871_v41 = vld [vmem:[%s17015_s0 + $0x164] sm:$0x1]  ;;  %vm9038_vm8 = vcmask 257024  }
  0xfe   :  { %v5184_v32 = vsel %vm12910_vm7, %v10008_v18, %v5183_v63  ;;  %v5187_v33 = vsel %vm12910_vm7, %v5185_v20, %v5186_v21  ;;  %v9978_v42 = vld [vmem:[%s17015_s0 + $0x15c] sm:$0xe]  ;;  %v13619_v44 = vld [vmem:[%s17015_s0 + $0x58] sm:$0xf]  ;;  %v10040_v47 = vcombine.low %v5177_v27, %v5180_v29  ;;  %v5193_v51 = vrot.slane %v9868_v35, 5 }
  0xff   :  { %v10041_v48 = vcombine.low %v5184_v32, %v5187_v33  ;;  %v5192_v57 = vrot.slane %v5190_v31, 4  ;;  %v12184_v52 = vld [vmem:[%s17015_s0 + $0x60] sm:$0xf]  ;;  %v13628_v19 = vld [vmem:[%s17015_s0 + $0x64] sm:$0xf]  ;;  %v10010_v54 = vrot.slane %v9978_v42, 9 }
 0x100   :  { %11294 = vmatmul.mubr.msk.bf16.gmra.mrb[36].mxu0 %vm981_vm4, %v10036_v39  ;;  %v5197_v39 = vrot.slane %v9870_v23, 5  ;;  %v9509_v58 = vcombine.low %v12184_v52, %v13628_v19  ;;  %v5200_v56 = vrot.slane %v9871_v41, 5  ;;  %v9873_v59 = vld [vmem:[%s17015_s0 + $0x16c] sm:$0xf]  ;;  %v9876_v62 = vld [vmem:[%s17015_s0 + $0x178] sm:$0xf] }
 0x101   :  { %10998 = vmatmul.mubr.msk.bf16.gmra.mrb[4].mxu1 %vm981_vm4, %v9504_v37  ;;  %11297 = vmatprep.mubr.msk.bf16.mxu0 %vm981_vm4, %v10037_v43  ;;  %v9977_v37 = vld [vmem:[%s17015_s0 + $0x150] sm:$0xe]  ;;  %v12182_v43 = vld [vmem:[%s17015_s0 + $0x54] sm:$0xf]  ;;  %v5194_v0 = vsel %vm12910_vm7, %v5192_v57, %v5193_v51  ;;  %v5204_v1 = vrot.slane %v9873_v59, 5  ;;  %v5211_v61 = vrot.slane %v9876_v62, 5 }
 0x102   :  { %11001 = vmatprep.mubr.msk.bf16.mxu1 %vm981_vm4, %v9505_v14  ;;  %v9508_v46 = vcombine.low %v12182_v43, %v13619_v44  ;;  %v10009_v14 = vrot.slane %v9977_v37, 9  ;;  %v5199_v55 = vrot.slane %v5197_v39, 4  ;;  %v5198_v2 = vsel %vm12910_vm7, %v10010_v54, %v5197_v39  ;;  %v9877_v26 = vld [vmem:[%s17015_s0 + $0x17c] sm:$0x1]  ;;  %v9980_v38 = vld [vmem:[%s17015_s0 + $0x174] sm:$0xe] }
 0x103   :  { %v12186_v13 = vld [vmem:[%s17015_s0 + $0x6c] sm:$0xf]  ;;  %v5206_v23 = vrot.slane %v5204_v1, 4  ;;  %v12188_v29 = vld [vmem:[%s17015_s0 + $0x78] sm:$0xf]  ;;  %v10012_v33 = vrot.slane %v9980_v38, 9 }
 0x104   :  { %v5191_v63 = vsel %vm12910_vm7, %v10009_v14, %v5190_v31  ;;  %v13676_v31 = vld [vmem:[%s17015_s0 + $0x7c] sm:$0xf]  ;;  %v5213_v35 = vrot.slane %v5211_v61, 4  ;;  %v5214_v37 = vrot.slane %v9877_v26, 5  ;;  %v9879_v39 = vld [vmem:[%s17015_s0 + $0x184] sm:$0xf] }
 0x105   :  { %v10042_v20 = vcombine.low %v5191_v63, %v5194_v0  ;;  %v9511_v32 = vcombine.low %v12188_v29, %v13676_v31  ;;  %v9882_v41 = vld [vmem:[%s17015_s0 + $0x190] sm:$0xf]  ;;  %v9880_v14 = vld [vmem:[%s17015_s0 + $0x188] sm:$0x1]  ;;  %v9981_v57 = vld [vmem:[%s17015_s0 + $0x180] sm:$0xe] }
 0x106   :  { %v5225_v51 = vrot.slane %v9882_v41, 5  ;;  %v9883_v52 = vld [vmem:[%s17015_s0 + $0x194] sm:$0x1]  ;;  %v12190_v54 = vld [vmem:[%s17015_s0 + $0x84] sm:$0xf]  ;;  %v10013_v63 = vrot.slane %v9981_v57, 9 }
 0x107   :  { %v5228_v26 = vrot.slane %v9883_v52, 5  ;;  %v9885_v38 = vld [vmem:[%s17015_s0 + $0x19c] sm:$0xf]  ;;  %v13780_v52 = vld [vmem:[%s17015_s0 + $0xb8] sm:$0xf]  ;;  %vm9103_vm9 = vcmask 261120  }
 0x108   :  { %11298 = vmatmul.mubr.msk.bf16.gmra.mrb[40].mxu0 %vm981_vm4, %v10038_v8  ;;  %v9874_v8 = vld [vmem:[%s17015_s0 + $0x170] sm:$0x1]  ;;  %v12194_v29 = vld [vmem:[%s17015_s0 + $0x9c] sm:$0xf] }
 0x109   :  { %11002 = vmatmul.mubr.msk.bf16.gmra.mrb[8].mxu1 %vm981_vm4, %v9506_v5  ;;  %11301 = vmatprep.mubr.msk.bf16.mxu0 %vm981_vm4, %v10039_v10  ;;  %v5201_v5 = vsel %vm12910_vm7, %v5199_v55, %v5200_v56  ;;  %v9979_v10 = vld [vmem:[%s17015_s0 + $0x168] sm:$0xe]  ;;  %v5207_v27 = vrot.slane %v9874_v8, 5 }
 0x10a   :  { %11005 = vmatprep.mubr.msk.bf16.mxu1 %vm981_vm4, %v9507_v16  ;;  %v13667_v16 = vld [vmem:[%s17015_s0 + $0x70] sm:$0xf]  ;;  %v10043_v21 = vcombine.low %v5198_v2, %v5201_v5  ;;  %v10011_v22 = vrot.slane %v9979_v10, 9  ;;  %v13715_v55 = vld [vmem:[%s17015_s0 + $0x88] sm:$0xf] }
 0x10b   :  { %v9510_v18 = vcombine.low %v12186_v13, %v13667_v16  ;;  %v5208_v43 = vsel %vm12910_vm7, %v5206_v23, %v5207_v27  ;;  %v9512_v56 = vcombine.low %v12190_v54, %v13715_v55  ;;  %v12192_v2 = vld [vmem:[%s17015_s0 + $0x90] sm:$0xf]  ;;  %v13724_v5 = vld [vmem:[%s17015_s0 + $0x94] sm:$0xf]  ;;  %v9886_v23 = vld [vmem:[%s17015_s0 + $0x1a0] sm:$0x1] }
 0x10c   :  { %v5205_v42 = vsel %vm12910_vm7, %v10011_v22, %v5204_v1  ;;  %v5221_v1 = vrot.slane %v9880_v14, 5  ;;  %v9513_v8 = vcombine.low %v12192_v2, %v13724_v5  ;;  %v9983_v27 = vld [vmem:[%s17015_s0 + $0x198] sm:$0xe] }
 0x10d   :  { %v10044_v59 = vcombine.low %v5205_v42, %v5208_v43  ;;  %v5235_v42 = vrot.slane %v9886_v23, 5  ;;  %v12196_v43 = vld [vmem:[%s17015_s0 + $0xa8] sm:$0xf]  ;;  %v12060_v54 = vld [vmem:[%s17015_s0 + $0x18] sm:$0xff]  }
 0x110   :  { %11302 = vmatmul.mubr.msk.bf16.gmra.mrb[44].mxu0 %vm981_vm4, %v10040_v47  ;;  %v5212_v47 = vsel %vm12910_vm7, %v10012_v33, %v5211_v61  ;;  %v5227_v61 = vrot.slane %v5225_v51, 4 }
 0x111   :  { %11006 = vmatmul.mubr.msk.bf16.gmra.mrb[12].mxu1 %vm981_vm4, %v9508_v46  ;;  %11305 = vmatprep.mubr.msk.bf16.mxu0 %vm981_vm4, %v10041_v48  ;;  %v5218_v46 = vrot.slane %v9879_v39, 5  ;;  %v5215_v48 = vsel %vm12910_vm7, %v5213_v35, %v5214_v37  ;;  %v10015_v39 = vrot.slane %v9983_v27, 9  ;;  %v12068_v27 = vld [vmem:[%s17015_s0 + $0x48] sm:$0xff]  }
 0x112   :  { %11009 = vmatprep.mubr.msk.bf16.mxu1 %vm981_vm4, %v9509_v58  ;;  %v9982_v58 = vld [vmem:[%s17015_s0 + $0x18c] sm:$0xe]  ;;  %v10045_v62 = vcombine.low %v5212_v47, %v5215_v48  ;;  %v5229_v22 = vsel %vm12910_vm7, %v5227_v61, %v5228_v26  ;;  %v12205_v61 = vld [vmem:[%s17015_s0 + $0xf0] sm:$0xf]  ;;  %v13821_v26 = vld [vmem:[%s17015_s0 + $0xf4] sm:$0xf] }
 0x113   :  { %v5220_v0 = vrot.slane %v5218_v46, 4  ;;  %v10014_v10 = vrot.slane %v9982_v58, 9  ;;  %v5219_v13 = vsel %vm12910_vm7, %v10013_v63, %v5218_v46  ;;  %v13763_v46 = vld [vmem:[%s17015_s0 + $0xac] sm:$0xf]  ;;  %v12062_v63 = vld [vmem:[%s17015_s0 + $0x24] sm:$0xff]  }
 0x114   :  { %v9515_v47 = vcombine.low %v12196_v43, %v13763_v46  ;;  %v12072_v43 = vld [vmem:[%s17015_s0 + $0x60] sm:$0xff]  }
 0x118   :  { %11306 = vmatmul.mubr.msk.bf16.gmra.mrb[48].mxu0 %vm981_vm4, %v10042_v20  ;;  %v5232_v20 = vrot.slane %v9885_v38, 5  ;;  %v9519_v38 = vcombine.low %v12205_v61, %v13821_v26 }
 0x119   :  { %11010 = vmatmul.mubr.msk.bf16.gmra.mrb[16].mxu1 %vm981_vm4, %v9510_v18  ;;  %11309 = vmatprep.mubr.msk.bf16.mxu0 %vm981_vm4, %v10043_v21  ;;  %v5222_v18 = vsel %vm12910_vm7, %v5220_v0, %v5221_v1  ;;  %v5226_v21 = vsel %vm12910_vm7, %v10014_v10, %v5225_v51  ;;  %v12198_v51 = vld [vmem:[%s17015_s0 + $0xb4] sm:$0xf]  ;;  %v12202_v0 = vld [vmem:[%s17015_s0 + $0xe4] sm:$0xf]  ;;  %v13808_v1 = vld [vmem:[%s17015_s0 + $0xe8] sm:$0xf] }
 0x11a   :  { %11013 = vmatprep.mubr.msk.bf16.mxu1 %vm981_vm4, %v9511_v32  ;;  %v13754_v32 = vld [vmem:[%s17015_s0 + $0xa0] sm:$0xf]  ;;  %v10046_v35 = vcombine.low %v5219_v13, %v5222_v18  ;;  %v10047_v37 = vcombine.low %v5226_v21, %v5229_v22  ;;  %v5234_v41 = vrot.slane %v5232_v20, 4  ;;  %v5233_v48 = vsel %vm12910_vm7, %v10015_v39, %v5232_v20  ;;  %v12064_v13 = vld [vmem:[%s17015_s0 + $0x30] sm:$0xff]   ;;  %v12207_v21 = vld [vmem:[%s17015_s0 + $0xfc] sm:$0xf] }
 0x11b   :  { %v9514_v33 = vcombine.low %v12194_v29, %v13754_v32  ;;  %v9516_v58 = vcombine.low %v12198_v51, %v13780_v52  ;;  %v9518_v2 = vcombine.low %v12202_v0, %v13808_v1  ;;  %v13831_v18 = vld [vmem:[%s17014_s1 + $0x10] sm:$0x3]  ;;  %v12066_v20 = vld [vmem:[%s17015_s0 + $0x3c] sm:$0xff]   ;;  %v12209_v29 = vld [vmem:[%s17015_s0 + $0x108] sm:$0xf]  ;;  %v2111_v4 = vrot.slane %v13754_v32, 5 }
 0x11c   :  { %v5236_v14 = vsel %vm12910_vm7, %v5234_v41, %v5235_v42  ;;  %v13847_v22 = vld [vmem:[%s17015_s0 + $0x100] sm:$0xf]  ;;  %v12211_v39 = vld [vmem:[%s17015_s0 + $0x114] sm:$0xf]  ;;  %v13875_v41 = vld [vmem:[%s17015_s0 + $0x118] sm:$0xf] }
 0x11d   :  { %v10048_v57 = vcombine.low %v5233_v48, %v5236_v14  ;;  %v9520_v23 = vcombine.low %v12207_v21, %v13847_v22  ;;  %v9522_v42 = vcombine.low %v12211_v39, %v13875_v41  ;;  %v13887_v48 = vld [vmem:[%s17015_s0 + $0x124] sm:$0xf]  ;;  %v12215_v51 = vld [vmem:[%s17015_s0 + $0x12c] sm:$0xf]  ;;  %v12080_v21 = vld [vmem:[%s17015_s0 + $0x90] sm:$0xff]  }
 0x11e   :  { %v12236_v32 = vld [vmem:[%s17015_s0 + $0x8c] sm:$0x1] }
 0x120   :  { %11310 = vmatmul.mubr.msk.bf16.gmra.mrb[52].mxu0 %vm981_vm4, %v10044_v59  ;;  %v13792_v59 = vld [vmem:[%s17015_s0 + $0xdc] sm:$0xf] }
 0x121   :  { %11014 = vmatmul.mubr.msk.bf16.gmra.mrb[20].mxu1 %vm981_vm4, %v9512_v56  ;;  %11313 = vmatprep.mubr.msk.bf16.mxu0 %vm981_vm4, %v10045_v62  ;;  %v12200_v56 = vld [vmem:[%s17015_s0 + $0xd8] sm:$0xf] }
 0x122   :  { %11017 = vmatprep.mubr.msk.bf16.mxu1 %vm981_vm4, %v9513_v8  ;;  %v9517_v62 = vcombine.low %v12200_v56, %v13792_v59  ;;  %v12204_v8 = vld [vmem:[%s17014_s1 + $0xe] sm:$0x3]  ;;  %v12076_v56 = vld [vmem:[%s17015_s0 + $0x78] sm:$0xff]  }
 0x123   :  { %v7525_v10 = vsel %vm1078_vm0, %v12204_v8, 0  ;;  %v3989_v8 = vshrl.u32 %v13391_v60, 16 }
 0x125   :  { %v3991_v61 = vrot.slane %v3989_v8, 4 }
 0x128   :  { %11314 = vmatmul.mubr.msk.bf16.gmra.mrb[56].mxu0 %vm981_vm4, %v10046_v35 }
 0x129   :  { %11018 = vmatmul.mubr.msk.bf16.gmra.mrb[24].mxu1 %vm981_vm4, %v9514_v33  ;;  %11317 = vmatprep.mubr.msk.bf16.mxu0 %vm981_vm4, %v10047_v37  ;;  %v13859_v33 = vld [vmem:[%s17015_s0 + $0x10c] sm:$0xf]  ;;  %v12070_v37 = vld [vmem:[%s17015_s0 + $0x54] sm:$0xff]  }
 0x12a   :  { %11021 = vmatprep.mubr.msk.bf16.mxu1 %vm981_vm4, %v9515_v47  ;;  %v9521_v35 = vcombine.low %v12209_v29, %v13859_v33  ;;  %v12213_v47 = vld [vmem:[%s17015_s0 + $0x120] sm:$0xf] }
 0x12b   :  { %v9523_v14 = vcombine.low %v12213_v47, %v13887_v48  ;;  %v12223_v47 = vld [vmem:[%s17015_s0 + $0x8] sm:$0x1] }
 0x130   :  { %11318 = vmatmul.mubr.msk.bf16.gmra.mrb[60].mxu0 %vm981_vm4, %v10048_v57  ;;  %v12074_v57 = vld [vmem:[%s17015_s0 + $0x6c] sm:$0xff]  }
 0x131   :  { %11022 = vmatmul.mubr.msk.bf16.gmra.mrb[28].mxu1 %vm981_vm4, %v9516_v58  ;;  %11323 = vmatprep.mubr.msk.bf16.mxu0 %vm981_vm4, %v12060_v54  ;;  %v13903_v58 = vld [vmem:[%s17015_s0 + $0x130] sm:$0xf] }
 0x132   :  { %11025 = vmatprep.mubr.msk.bf16.mxu1 %vm981_vm4, %v9517_v62  ;;  %v9524_v54 = vcombine.low %v12215_v51, %v13903_v58  ;;  %v12217_v62 = vld [vmem:[%s17015_s0 + $0x138] sm:$0xf] }
 0x138   :  { %11324 = vmatmul.mubr.msk.bf16.vlgmr.msra.gmra.mrb[0].mxu0 %vm981_vm4, %v12062_v63  ;;  %v13915_v63 = vld [vmem:[%s17015_s0 + $0x13c] sm:$0xf] }
 0x139   :  { %11026 = vmatmul.mubr.msk.bf16.gmra.mrb[32].mxu1 %vm981_vm4, %v9518_v2  ;;  %11388 = vmatpush3.bf16.msra.mxu0 %v7525_v10  ;;  %v9525_v0 = vcombine.low %v12217_v62, %v13915_v63  ;;  %v3985_v2 = vshll.u32 %v13391_v60, 16  ;;  %v13935_v60 = vld [vmem:[%s17015_s0 + $0x148] sm:$0xf] }
 0x13a   :  { %11029 = vmatprep.mubr.msk.bf16.mxu1 %vm981_vm4, %v9519_v38  ;;  %11327 = vmatprep.mubr.msk.bf16.mxu0 %vm981_vm4, %v12064_v13  ;;  %v12078_v38 = vld [vmem:[%s17015_s0 + $0x84] sm:$0xff]   ;;  %17037 = vst [vmem:[#allocation4_spill] sm:$0xff] %v13935_v60 }
 0x13b   :  { %12042 = vmatprep.subr.msk.bf16.mxu0 %vm1078_vm0, %v13831_v18  ;;  %v13924_v10 = vrot.slane %v3985_v2, 5  ;;  %v12219_v13 = vld [vmem:[%s17015_s0 + $0x144] sm:$0xf] }
 0x13d   :  { %17036 = vst [vmem:[#allocation3_spill] sm:$0xff] %v13924_v10  ;;  %v3992_v39 = vor.u32 %v3991_v61, %v13924_v10  ;;  %v12225_v61 = vld [vmem:[%s17015_s0 + $0x15c] sm:$0xf] }
 0x13f   :  { %v13976_v62 = vrot.slane %v3992_v39, 4 }
 0x140   :  { %11328 = vmatmul.mubr.msk.bf16.gmra.mrb[4].mxu0 %vm981_vm4, %v12066_v20  ;;  %v9526_v20 = vcombine.low %v12219_v13, %v13935_v60  ;;  %v14357_v60 = vld [vmem:[%s17015_s0 + $0xe4] sm:$0xe] }
 0x141   :  { %11030 = vmatmul.mubr.msk.bf16.gmra.mrb[36].mxu1 %vm981_vm4, %v9520_v23  ;;  %11331 = vmatprep.mubr.msk.bf16.mxu0 %vm981_vm4, %v12068_v27  ;;  %v12221_v23 = vld [vmem:[%s17015_s0 + $0x150] sm:$0xf]  ;;  %v13947_v27 = vld [vmem:[%s17015_s0 + $0x154] sm:$0xf]  ;;  %17040 = vst [vmem:[#allocation7_spill] sm:$0xff] %v13976_v62 }
 0x142   :  { %11033 = vmatprep.mubr.msk.bf16.mxu1 %vm981_vm4, %v9521_v35  ;;  %17038 = vst [vmem:[#allocation5_spill] sm:$0xff] %v13947_v27  ;;  %v9527_v29 = vcombine.low %v12221_v23, %v13947_v27  ;;  %v3995_v35 = vshll.u32 %v13398_v11, 16  ;;  %v2020_v11 = vrot.slane %v13418_v28, 5  ;;  %v12082_v28 = vld [vmem:[%s17015_s0 + $0x9c] sm:$0xff]   ;;  %v2041_v23 = vrot.slane %v13523_v36, 5 }
 0x143   :  { %v9531_v36 = vcombine.low %v13290_v24, %v13298_v45  ;;  %v12234_v24 = vld [vmem:[%s17015_s0 + $0x74] sm:$0x1] }
 0x144   :  { %v2022_v39 = vrot.slane %v2020_v11, 4  ;;  %v2086_v45 = vrot.slane %v12234_v24, 5  ;;  %v1931_v24 = vld [vmem:[%s17015_s0 + $0x90] sm:$0xe] }
 0x148   :  { %11332 = vmatmul.mubr.msk.bf16.gmra.mrb[8].mxu0 %vm981_vm4, %v12070_v37  ;;  %v2027_v37 = vrot.slane %v13460_v53, 5  ;;  %v2034_v53 = vrot.slane %v13479_v6, 5  ;;  %v12084_v6 = vld [vmem:[%s17015_s0 + $0xa8] sm:$0xff]  }
 0x149   :  { %11034 = vmatmul.mubr.msk.bf16.gmra.mrb[40].mxu1 %vm981_vm4, %v9522_v42  ;;  %11335 = vmatprep.mubr.msk.bf16.mxu0 %vm981_vm4, %v12072_v43  ;;  %v1919_v42 = vld [vmem:[%s17015_s0] sm:$0xe]  ;;  %v1920_v43 = vld [vmem:[%s17015_s0 + $0xc] sm:$0xe] }
 0x14a   :  { %11037 = vmatprep.mubr.msk.bf16.mxu1 %vm981_vm4, %v9523_v14  ;;  %v2023_v14 = vrot.slane %v12223_v47, 5  ;;  %v9566_v2 = vrot.slane %v1920_v43, 9  ;;  %v2029_v8 = vrot.slane %v2027_v37, 4  ;;  %v2036_v43 = vrot.slane %v2034_v53, 4  ;;  %v12227_v47 = vld [vmem:[%s17015_s0 + $0x20] sm:$0x1] }
 0x150   :  { %11336 = vmatmul.mubr.msk.bf16.gmra.mrb[12].mxu0 %vm981_vm4, %v12074_v57  ;;  %v12224_v57 = vld [vmem:[%s17015_s0 + $0x14] sm:$0x1] }
 0x151   :  { %11038 = vmatmul.mubr.msk.bf16.gmra.mrb[44].mxu1 %vm981_vm4, %v9524_v54  ;;  %11339 = vmatprep.mubr.msk.bf16.mxu0 %vm981_vm4, %v12076_v56  ;;  %v2030_v51 = vrot.slane %v12224_v57, 5  ;;  %v13971_v54 = vrot.slane %v3995_v35, 5  ;;  %v1921_v56 = vld [vmem:[%s17015_s0 + $0x18] sm:$0xe]  ;;  %v2048_v35 = vrot.slane %v13535_v50, 5  ;;  %v14016_v50 = vsel %vm12910_vm7, %v9566_v2, %v2027_v37  ;;  %v12091_v57 = vld [vmem:[%s17015_s0 + $0xf0] sm:$0xff]  }
 0x152   :  { %11041 = vmatprep.mubr.msk.bf16.mxu1 %vm981_vm4, %v9525_v0  ;;  %v9565_v0 = vrot.slane %v1919_v42, 9  ;;  %v9567_v42 = vrot.slane %v1921_v56, 9  ;;  %v12228_v37 = vld [vmem:[%s17015_s0 + $0x2c] sm:$0x1] }
 0x153   :  { %17039 = vst [vmem:[#allocation6_spill] sm:$0xff] %v13971_v54  ;;  %v14020_v56 = vsel %vm12910_vm7, %v2029_v8, %v2030_v51  ;;  %v2050_v2 = vrot.slane %v2048_v35, 4  ;;  %v12229_v51 = vld [vmem:[%s17015_s0 + $0x38] sm:$0x1]  ;;  %v12093_v54 = vld [vmem:[%s17015_s0 + $0x108] sm:$0xff]  }
 0x154   :  { %v2051_v8 = vrot.slane %v12229_v51, 5 }
 0x158   :  { %11340 = vmatmul.mubr.msk.bf16.gmra.mrb[16].mxu0 %vm981_vm4, %v12078_v38  ;;  %v13990_v38 = vld [vmem:[%s17015_s0 + $0x160] sm:$0xf] }
 0x159   :  { %11042 = vmatmul.mubr.msk.bf16.gmra.mrb[48].mxu1 %vm981_vm4, %v9526_v20  ;;  %11343 = vmatprep.mubr.msk.bf16.mxu0 %vm981_vm4, %v12080_v21  ;;  %17041 = vst [vmem:[#allocation8_spill] sm:$0xff] %v13990_v38  ;;  %v9528_v13 = vcombine.low %v12225_v61, %v13990_v38  ;;  %v9529_v20 = vcombine.low %v13219_v40, %v13230_v49  ;;  %v1922_v21 = vld [vmem:[%s17015_s0 + $0x24] sm:$0xe]  ;;  %v2037_v40 = vrot.slane %v12227_v47, 5  ;;  %v2055_v61 = vrot.slane %v13571_v3, 5 }
 0x15a   :  { %11045 = vmatprep.mubr.msk.bf16.mxu1 %vm981_vm4, %v9527_v29  ;;  %v1923_v29 = vld [vmem:[%s17015_s0 + $0x30] sm:$0xe]  ;;  %v9530_v49 = vcombine.low %v13255_v7, %v13262_v25  ;;  %v9568_v47 = vrot.slane %v1922_v21, 9  ;;  %v1924_v25 = vld [vmem:[%s17015_s0 + $0x3c] sm:$0xe]  ;;  %v2043_v3 = vrot.slane %v2041_v23, 4  ;;  %v14036_v21 = vsel %vm12910_vm7, %v9565_v0, %v2020_v11 }
 0x15b   :  { %v9569_v7 = vrot.slane %v1923_v29, 9  ;;  %v14048_v29 = vsel %vm12910_vm7, %v2036_v43, %v2037_v40  ;;  %v2057_v51 = vrot.slane %v2055_v61, 4  ;;  %v12230_v11 = vld [vmem:[%s17015_s0 + $0x44] sm:$0x1]  ;;  %v2062_v0 = vrot.slane %v13580_v15, 5 }
 0x15c   :  { %v14068_v43 = vsel %vm12910_vm7, %v9568_v47, %v2041_v23  ;;  %v12088_v15 = vld [vmem:[%s17015_s0 + $0xc0] sm:$0xff]   ;;  %v1926_v23 = vld [vmem:[%s17015_s0 + $0x54] sm:$0xe] }
 0x15d   :  { %v14072_v40 = vsel %vm12910_vm7, %v9569_v7, %v2048_v35  ;;  %v2069_v35 = vrot.slane %v13619_v44, 5  ;;  %v2064_v7 = vrot.slane %v2062_v0, 4 }
 0x160   :  { %11344 = vmatmul.mubr.msk.bf16.gmra.mrb[20].mxu0 %vm981_vm4, %v12082_v28  ;;  %v2044_v28 = vrot.slane %v12228_v37, 5  ;;  %v9570_v37 = vrot.slane %v1924_v25, 9 }
 0x161   :  { %11046 = vmatmul.mubr.msk.bf16.gmra.mrb[52].mxu1 %vm981_vm4, %v9528_v13  ;;  %11347 = vmatprep.mubr.msk.bf16.mxu0 %vm981_vm4, %v12084_v6  ;;  %v14040_v6 = vsel %vm12910_vm7, %v2022_v39, %v2023_v14  ;;  %v14044_v13 = vsel %vm12910_vm7, %v9567_v42, %v2034_v53  ;;  %v2058_v14 = vrot.slane %v12230_v11, 5  ;;  %v12086_v53 = vld [vmem:[%s17015_s0 + $0xb4] sm:$0xff]   ;;  %v14064_v42 = vsel %vm1078_vm0, %v13492_v17, 0  ;;  %v1928_v39 = vld [vmem:[%s17015_s0 + $0x6c] sm:$0xe] }
 0x162   :  { %11049 = vmatprep.mubr.msk.bf16.mxu1 %vm981_vm4, %v9529_v20  ;;  %v1925_v20 = vld [vmem:[%s17015_s0 + $0x48] sm:$0xe]  ;;  %v14079_v25 = vsel %vm12910_vm7, %v2043_v3, %v2044_v28  ;;  %v14083_v17 = vsel %vm12910_vm7, %v2050_v2, %v2051_v8  ;;  %v12231_v3 = vld [vmem:[%s17015_s0 + $0x50] sm:$0x1]  ;;  %v1927_v2 = vld [vmem:[%s17015_s0 + $0x60] sm:$0xe]  ;;  %v14102_v44 = vsel %vm12910_vm7, %v9570_v37, %v2055_v61 }
 0x163   :  { %v9571_v11 = vrot.slane %v1925_v20, 9  ;;  %v2065_v28 = vrot.slane %v12231_v3, 5  ;;  %v2076_v8 = vrot.slane %v13628_v19, 5  ;;  %v14106_v20 = vsel %vm12910_vm7, %v2057_v51, %v2058_v14  ;;  %v1929_v51 = vld [vmem:[%s17015_s0 + $0x78] sm:$0xe] }
 0x164   :  { %v2083_v3 = vrot.slane %v13667_v16, 5  ;;  %v9572_v37 = vrot.slane %v1926_v23, 9  ;;  %v2090_v14 = vrot.slane %v13676_v31, 5  ;;  %v12232_v61 = vld [vmem:[%s17015_s0 + $0x5c] sm:$0x1]  ;;  %v9573_v19 = vrot.slane %v1927_v2, 9 }
 0x165   :  { %v14125_v16 = vsel %vm12910_vm7, %v9571_v11, %v2062_v0  ;;  %v2072_v23 = vrot.slane %v12232_v61, 5  ;;  %v12233_v0 = vld [vmem:[%s17015_s0 + $0x68] sm:$0x1]  ;;  %v9574_v11 = vrot.slane %v1928_v39, 9  ;;  %v14141_v47 = vsel %vm12910_vm7, %v2064_v7, %v2065_v28  ;;  %v1930_v61 = vld [vmem:[%s17015_s0 + $0x84] sm:$0xe] }
 0x166   :  { %v2085_v2 = vrot.slane %v2083_v3, 4  ;;  %v14154_v39 = vsel %vm12910_vm7, %v9572_v37, %v2069_v35  ;;  %v2092_v7 = vrot.slane %v2090_v14, 4  ;;  %v12235_v28 = vld [vmem:[%s17015_s0 + $0x80] sm:$0x1]  ;;  %v14172_v37 = vsel %vm12910_vm7, %v9573_v19, %v2076_v8 }
 0x167   :  { %v2093_v31 = vrot.slane %v12235_v28, 5  ;;  %v2104_v28 = vrot.slane %v13724_v5, 5 }
 0x168   :  { %11348 = vmatmul.mubr.msk.bf16.gmra.mrb[24].mxu0 %vm981_vm4, %v12086_v53  ;;  %v2071_v53 = vrot.slane %v2069_v35, 4  ;;  %v14190_v5 = vsel %vm12910_vm7, %v2085_v2, %v2086_v45  ;;  %v12237_v2 = vld [vmem:[%s17015_s0 + $0x98] sm:$0x1] }
 0x169   :  { %11050 = vmatmul.mubr.msk.bf16.gmra.mrb[56].mxu1 %vm981_vm4, %v9530_v49  ;;  %11351 = vmatprep.mubr.msk.bf16.mxu0 %vm981_vm4, %v12088_v15  ;;  %v2078_v49 = vrot.slane %v2076_v8, 4  ;;  %v2079_v15 = vrot.slane %v12233_v0, 5  ;;  %v12090_v0 = vld [vmem:[%s17015_s0 + $0xcc] sm:$0xff]   ;;  %v2118_v8 = vrot.slane %v13763_v46, 5  ;;  %v10210_v46 = vld [vmem:[%s17015_s0 + $0x18] sm:$0xf] }
 0x16a   :  { %11053 = vmatprep.mubr.msk.bf16.mxu1 %vm981_vm4, %v9531_v36  ;;  %v9575_v36 = vrot.slane %v1929_v51, 9  ;;  %v2097_v51 = vrot.slane %v13715_v55, 5  ;;  %v14168_v35 = vsel %vm12910_vm7, %v2071_v53, %v2072_v23  ;;  %v1932_v55 = vld [vmem:[%s17015_s0 + $0x9c] sm:$0xe]  ;;  %v14185_v53 = vsel %vm12910_vm7, %v9574_v11, %v2083_v3  ;;  %v1933_v3 = vld [vmem:[%s17015_s0 + $0xa8] sm:$0xe] }
 0x16b   :  { %v14181_v10 = vsel %vm12910_vm7, %v2078_v49, %v2079_v15  ;;  %v9576_v23 = vrot.slane %v1930_v61, 9  ;;  %v2100_v49 = vrot.slane %v12236_v32, 5  ;;  %v9577_v15 = vrot.slane %v1931_v24, 9  ;;  %v12239_v32 = vld [vmem:[%s17015_s0 + $0xb0] sm:$0x1] }
 0x16c   :  { %v14194_v19 = vsel %vm12910_vm7, %v9575_v36, %v2090_v14  ;;  %v14208_v14 = vsel %vm12910_vm7, %v2092_v7, %v2093_v31  ;;  %v2099_v11 = vrot.slane %v2097_v51, 4  ;;  %v2107_v45 = vrot.slane %v12237_v2, 5  ;;  %v12238_v31 = vld [vmem:[%s17015_s0 + $0xa4] sm:$0x1] }
 0x16d   :  { %v9578_v36 = vrot.slane %v1932_v55, 9  ;;  %v17042_v61 = vcombine.low %v13327_v9, %v13334_v12  ;;  %v2106_v24 = vrot.slane %v2104_v28, 4  ;;  %v2114_v7 = vrot.slane %v12238_v31, 5 }
 0x16e   :  { %v2121_v2 = vrot.slane %v12239_v32, 5  ;;  %v17043_v55 = vcombine.low %v14036_v21, %v14040_v6  ;;  %v9579_v9 = vrot.slane %v1933_v3, 9  ;;  %v2120_v12 = vrot.slane %v2118_v8, 4  ;;  %v12092_v21 = vld [vmem:[%s17015_s0 + $0xfc] sm:$0xff]  }
 0x16f   :  { %v14243_v3 = vsel %vm12910_vm7, %v9576_v23, %v2097_v51  ;;  %v10211_v32 = vld [vmem:[%s17015_s0 + $0x1c] sm:$0xf]  ;;  %v14258_v6 = vsel %vm12910_vm7, %v9577_v15, %v2104_v28  ;;  %v14262_v51 = vsel %vm12910_vm7, %v2106_v24, %v2107_v45  ;;  %v14266_v23 = vsel %vm12910_vm7, %v9578_v36, %v2111_v4  ;;  %v10214_v36 = vld [vmem:[%s17015_s0 + $0x28] sm:$0xf] }
 0x170   :  { %11352 = vmatmul.mubr.msk.bf16.gmra.mrb[28].mxu0 %vm981_vm4, %v12090_v0  ;;  %v2113_v0 = vrot.slane %v2111_v4, 4  ;;  %v14277_v28 = vsel %vm12910_vm7, %v9579_v9, %v2118_v8  ;;  %v14281_v15 = vsel %vm12910_vm7, %v2120_v12, %v2121_v2  ;;  %v10213_v4 = vld [vmem:[%s17015_s0 + $0x24] sm:$0xf]  ;;  %v1935_v8 = vld [vmem:[%s17015_s0 + $0xd8] sm:$0xe]  ;;  %v6576_v2 = vshrl.u32 %v10211_v32, 16 }
 0x171   :  { %11054 = vmatmul.mubr.msk.bf16.gmra.mrb[60].mxu1 %vm981_vm4, %v17042_v61  ;;  %11355 = vmatprep.mubr.msk.bf16.mxu0 %vm981_vm4, %v12091_v57  ;;  %v6563_v57 = vshrl.u32 %v10210_v46, 16  ;;  %v6566_v61 = vshll.u32 %v10210_v46, 16  ;;  %v14247_v46 = vsel %vm12910_vm7, %v2099_v11, %v2100_v49  ;;  %v1934_v49 = vld [vmem:[%s17015_s0 + $0xb4] sm:$0xe]  ;;  %17045 = vst [vmem:[#allocation10_spill] sm:$0xff] %v14277_v28  ;;  %17046 = vst [vmem:[#allocation11_spill] sm:$0xff] %v14281_v15 }
 0x172   :  { %11059 = vmatprep.mubr.msk.bf16.mxu1 %vm981_vm4, %v17043_v55  ;;  %v2125_v55 = vrot.slane %v13780_v52, 5  ;;  %v14270_v52 = vsel %vm12910_vm7, %v2113_v0, %v2114_v7  ;;  %v2132_v0 = vrot.slane %v13792_v59, 5  ;;  %v6572_v7 = vshll.u32 %v10211_v32, 16  ;;  %v10216_v9 = vld [vmem:[%s17015_s0 + $0x30] sm:$0xf] }
 0x173   :  { %17044 = vst [vmem:[#allocation9_spill] sm:$0xff] %v14270_v52  ;;  %v6565_v11 = vrot.slane %v6563_v57, 4  ;;  %v6568_v45 = vrot.slane %v6566_v61, 5  ;;  %v9580_v12 = vrot.slane %v1934_v49, 9  ;;  %v12240_v61 = vld [vmem:[%s17015_s0 + $0xbc] sm:$0x1]  ;;  %v17047_v31 = vcombine.low %v14016_v50, %v14020_v56 }
 0x174   :  { %v2127_v57 = vrot.slane %v2125_v55, 4  ;;  %v2128_v24 = vrot.slane %v12240_v61, 5  ;;  %v6590_v49 = vshll.u32 %v10213_v4, 16  ;;  %v10217_v50 = vld [vmem:[%s17015_s0 + $0x34] sm:$0xf]  ;;  %v9581_v56 = vrot.slane %v1935_v8, 9 }
 0x175   :  { %v10212_v61 = vld [vmem:[%s17015_s0 + $0x20] sm:$0x1]  ;;  %v6569_v32 = vor.u32 %v6568_v45, %v6565_v11  ;;  %v6596_v59 = vshll.u32 %v10214_v36, 16  ;;  %v2134_v62 = vrot.slane %v2132_v0, 4  ;;  %v14327_v38 = vrot.slane %v6572_v7, 5 }
 0x176   :  { %v6600_v27 = vshrl.u32 %v10214_v36, 16  ;;  %v6611_v8 = vshrl.u32 %v10216_v9, 16  ;;  %v6624_v11 = vshrl.u32 %v10217_v50, 16  ;;  %v12095_v45 = vld [vmem:[%s17015_s0 + $0x120] sm:$0xff]   ;;  %v14341_v36 = vsel %vm12910_vm7, %v9580_v12, %v2125_v55 }
 0x177   :  { %17049 = vst [vmem:[#allocation12_spill] sm:$0xff] %v14341_v36  ;;  %v14345_v7 = vsel %vm12910_vm7, %v2127_v57, %v2128_v24  ;;  %v6592_v12 = vrot.slane %v6590_v49, 5 }
 0x178   :  { %11356 = vmatmul.mubr.msk.bf16.gmra.mrb[32].mxu0 %vm981_vm4, %v12092_v21  ;;  %v6587_v21 = vshrl.u32 %v10213_v4, 16  ;;  %17050 = vst [vmem:[#allocation13_spill] sm:$0xff] %v14345_v7  ;;  %v6613_v49 = vrot.slane %v6611_v8, 4 }
 0x179   :  { %11060 = vmatmul.mubr.msk.bf16.vlgmr.msra.gmra.mrb[0].mxu1 %vm981_vm4, %v17047_v31  ;;  %11359 = vmatprep.mubr.msk.bf16.mxu0 %vm981_vm4, %v12093_v54  ;;  %v17048_v54 = vcombine.low %v14044_v13, %v14048_v29  ;;  %v12241_v31 = vld [vmem:[%s17015_s0 + $0xe0] sm:$0x1]  ;;  %v12242_v13 = vld [vmem:[%s17014_s1 + $0x8] sm:$0x3]  ;;  %v12094_v29 = vld [vmem:[%s17015_s0 + $0x114] sm:$0xff]  }
 0x17a   :  { %11124 = vmatpush3.bf16.msra.mxu1 %v14064_v42  ;;  %v2135_v4 = vrot.slane %v12241_v31, 5  ;;  %v6578_v42 = vrot.slane %v6576_v2, 4  ;;  %v6620_v31 = vshll.u32 %v10217_v50, 16  ;;  %v6582_v2 = vshll.u32 %v10212_v61, 16 }
 0x17b   :  { %11063 = vmatprep.mubr.msk.bf16.mxu1 %vm981_vm4, %v17048_v54  ;;  %12038 = vmatprep.subr.msk.bf16.mxu1 %vm1078_vm0, %v12242_v13  ;;  %v6614_v54 = vshll.u32 %v10216_v9, 16  ;;  %v14350_v9 = vsel %vm12910_vm7, %v9581_v56, %v2132_v0  ;;  %v14352_v50 = vrot.slane %v6569_v32, 4  ;;  %v6589_v55 = vrot.slane %v6587_v21, 4  ;;  %v10215_v0 = vld [vmem:[%s17015_s0 + $0x2c] sm:$0x1] }
 0x17c   :  { %17051 = vst [vmem:[#allocation14_spill] sm:$0xff] %v14350_v9  ;;  %v14361_v24 = vsel %vm12910_vm7, %v2134_v62, %v2135_v4  ;;  %v6579_v57 = vor.u32 %v6578_v42, %v14327_v38  ;;  %v14367_v56 = vrot.slane %v6596_v59, 5  ;;  %v6602_v32 = vrot.slane %v6600_v27, 4  ;;  %v10218_v21 = vld [vmem:[%s17015_s0 + $0x38] sm:$0x1] }
 0x17d   :  { %17052 = vst [vmem:[#allocation15_spill] sm:$0xff] %v14361_v24  ;;  %v6616_v61 = vrot.slane %v6614_v54, 5  ;;  %v14373_v13 = vrot.slane %v6620_v31, 5  ;;  %v6626_v62 = vrot.slane %v6624_v11, 4  ;;  %v17053_v4 = vcombine.low %v14068_v43, %v14079_v25 }
 0x17e   :  { %v14382_v59 = vrot.slane %v6582_v2, 5  ;;  %v9582_v42 = vrot.slane %v14357_v60, 9  ;;  %v17054_v54 = vcombine.low %v14072_v40, %v14083_v17  ;;  %v17055_v25 = vrot.slane %v13808_v1, 5  ;;  %v10219_v60 = vld [vmem:[%s17015_s0 + $0x3c] sm:$0xf] }
 0x17f   :  { %v6593_v11 = vor.u32 %v6592_v12, %v6589_v55  ;;  %v10220_v2 = vld [vmem:[%s17015_s0 + $0x40] sm:$0xf]  ;;  %v6575_v40 = vsel %vm12435_vm3, %v14352_v50, %v14327_v38  ;;  %v6603_v17 = vor.u32 %v6602_v32, %v14367_v56  ;;  %v1937_v55 = vld [vmem:[%s17015_s0 + $0xf0] sm:$0xe]  ;;  %v2146_v12 = vrot.slane %v13821_v26, 5  ;;  %v12097_v32 = vld [vmem:[%s17015_s0 + $0x138] sm:$0xff]  }
 0x180   :  { %11360 = vmatmul.mubr.msk.bf16.gmra.mrb[36].mxu0 %vm981_vm4, %v12094_v29  ;;  %v12243_v29 = vld [vmem:[%s17015_s0 + $0xec] sm:$0x1]  ;;  %v2141_v31 = vrot.slane %v17055_v25, 4  ;;  %v6627_v25 = vor.u32 %v6626_v62, %v14373_v13  ;;  %v1938_v38 = vld [vmem:[%s17015_s0 + $0xfc] sm:$0xe]  ;;  %v2153_v50 = vrot.slane %v13847_v22, 5 }
 0x181   :  { %11064 = vmatmul.mubr.msk.bf16.gmra.mrb[4].mxu1 %vm981_vm4, %v17053_v4  ;;  %11363 = vmatprep.mubr.msk.bf16.mxu0 %vm981_vm4, %v12095_v45  ;;  %v2142_v8 = vrot.slane %v12243_v29, 5  ;;  %v6606_v45 = vshll.u32 %v10215_v0, 16  ;;  %v6630_v0 = vshll.u32 %v10218_v21, 16  ;;  %v12096_v4 = vld [vmem:[%s17015_s0 + $0x12c] sm:$0xff]   ;;  %v6580_v29 = vrot.slane %v6579_v57, 4 }
 0x182   :  { %11067 = vmatprep.mubr.msk.bf16.mxu1 %vm981_vm4, %v17054_v54  ;;  %v6617_v54 = vor.u32 %v6616_v61, %v6613_v49  ;;  %v6635_v26 = vshrl.u32 %v10219_v60, 16  ;;  %v6638_v21 = vshll.u32 %v10219_v60, 16  ;;  %v6644_v43 = vshll.u32 %v10220_v2, 16  ;;  %v12244_v49 = vld [vmem:[%s17015_s0 + $0xf8] sm:$0x1] }
 0x183   :  { %v6648_v27 = vshrl.u32 %v10220_v2, 16  ;;  %v6594_v24 = vrot.slane %v6593_v11, 4  ;;  %v6608_v9 = vrot.slane %v6606_v45, 5  ;;  %v9583_v57 = vrot.slane %v1937_v55, 9  ;;  %v12245_v11 = vld [vmem:[%s17015_s0 + $0x104] sm:$0x1] }
 0x184   :  { %v2149_v61 = vrot.slane %v12244_v49, 5  ;;  %v6604_v62 = vrot.slane %v6603_v17, 4  ;;  %v2148_v7 = vrot.slane %v2146_v12, 4  ;;  %v6632_v36 = vrot.slane %v6630_v0, 5  ;;  %v10221_v2 = vld [vmem:[%s17015_s0 + $0x44] sm:$0x1] }
 0x185   :  { %v9584_v22 = vrot.slane %v1938_v38, 9  ;;  %v6618_v15 = vrot.slane %v6617_v54, 4  ;;  %v6628_v28 = vrot.slane %v6627_v25, 4  ;;  %v2155_v52 = vrot.slane %v2153_v50, 4 }
 0x186   :  { %v2156_v45 = vrot.slane %v12245_v11, 5  ;;  %v17056_v60 = vcombine.low %v14102_v44, %v14106_v20  ;;  %v6637_v17 = vrot.slane %v6635_v26, 4  ;;  %v6640_v55 = vrot.slane %v6638_v21, 5 }
 0x187   :  { %v14437_v0 = vrot.slane %v6644_v43, 5  ;;  %v17057_v54 = vcombine.low %v14125_v16, %v14141_v47  ;;  %v6585_v44 = vsel %vm12435_vm3, %v6580_v29, %v14382_v59  ;;  %v17058_v20 = vrot.slane %v13808_v1, 5  ;;  %v10222_v16 = vld [vmem:[%s17015_s0 + $0x48] sm:$0xf]  ;;  %v12099_v29 = vld [vmem:[%s17015_s0 + $0x150] sm:$0xff]  }
 0x188   :  { %11364 = vmatmul.mubr.msk.bf16.gmra.mrb[40].mxu0 %vm981_vm4, %v12096_v4  ;;  %v6650_v4 = vrot.slane %v6648_v27, 4  ;;  %v14454_v43 = vsel %vm12910_vm7, %v2141_v31, %v2142_v8  ;;  %v6599_v47 = vsel %vm12435_vm3, %v6594_v24, %v14367_v56  ;;  %v6609_v27 = vsel %vm12435_vm3, %v6604_v62, %v6608_v9  ;;  %v10223_v24 = vld [vmem:[%s17015_s0 + $0x4c] sm:$0xf]  ;;  %v12098_v9 = vld [vmem:[%s17015_s0 + $0x144] sm:$0xff]  }
 0x189   :  { %11068 = vmatmul.mubr.msk.bf16.gmra.mrb[8].mxu1 %vm981_vm4, %v17056_v60  ;;  %11367 = vmatprep.mubr.msk.bf16.mxu0 %vm981_vm4, %v12097_v32  ;;  %v14450_v25 = vsel %vm12910_vm7, %v9582_v42, %v17058_v20  ;;  %v14466_v1 = vsel %vm12910_vm7, %v9583_v57, %v2146_v12  ;;  %v14470_v59 = vsel %vm12910_vm7, %v2148_v7, %v2149_v61  ;;  %v6654_v31 = vshll.u32 %v10221_v2, 16  ;;  %v1939_v12 = vld [vmem:[%s17015_s0 + $0x108] sm:$0xe] }
 0x18a   :  { %11071 = vmatprep.mubr.msk.bf16.mxu1 %vm981_vm4, %v17057_v54  ;;  %v14474_v42 = vsel %vm12910_vm7, %v9584_v22, %v2153_v50  ;;  %v6623_v56 = vsel %vm12435_vm3, %v6618_v15, %v14373_v13  ;;  %v6633_v7 = vsel %vm12435_vm3, %v6628_v28, %v6632_v36  ;;  %v14489_v8 = vsel %vm12910_vm7, %v2155_v52, %v2156_v45  ;;  %v10228_v45 = vld [vmem:[%s17015_s0 + $0x60] sm:$0xf] }
 0x18b   :  { %v6641_v38 = vor.u32 %v6640_v55, %v6637_v17  ;;  %v6651_v50 = vor.u32 %v6650_v4, %v14437_v0  ;;  %v6659_v15 = vshrl.u32 %v10222_v16, 16  ;;  %v6662_v13 = vshll.u32 %v10222_v16, 16  ;;  %v12100_v16 = vld [vmem:[%s17015_s0 + $0x15c] sm:$0xff]  }
 0x18c   :  { %v14498_v32 = vcombine.low %v6575_v40, %v6585_v44  ;;  %v9615_v52 = vcombine.low %v14450_v25, %v14454_v43  ;;  %v6668_v28 = vshll.u32 %v10223_v24, 16  ;;  %v6672_v36 = vshrl.u32 %v10223_v24, 16  ;;  %v10225_v40 = vld [vmem:[%s17015_s0 + $0x54] sm:$0xf] }
 0x18d   :  { %v14502_v26 = vcombine.low %v6599_v47, %v6609_v27  ;;  %v14506_v21 = vsel %vm1078_vm0, %v13831_v18, 0  ;;  %v9616_v57 = vcombine.low %v14466_v1, %v14470_v59  ;;  %v9585_v49 = vrot.slane %v1939_v12, 9  ;;  %v10226_v18 = vld [vmem:[%s17015_s0 + $0x58] sm:$0xf] }
 0x18e   :  { %v14514_v61 = vcombine.low %v6623_v56, %v6633_v7  ;;  %v9617_v62 = vcombine.low %v14474_v42, %v14489_v8  ;;  %v6656_v22 = vrot.slane %v6654_v31, 5  ;;  %v2160_v11 = vrot.slane %v13859_v33, 5  ;;  %v10229_v33 = vld [vmem:[%s17015_s0 + $0x64] sm:$0xf]  ;;  %v1940_v56 = vld [vmem:[%s17015_s0 + $0x114] sm:$0xe] }
 0x18f   :  { %v17059_v60 = vcombine.low %v14154_v39, %v14168_v35  ;;  %v6642_v2 = vrot.slane %v6641_v38, 4  ;;  %v6652_v17 = vrot.slane %v6651_v50, 4  ;;  %v6661_v55 = vrot.slane %v6659_v15, 4  ;;  %v10224_v39 = vld [vmem:[%s17015_s0 + $0x50] sm:$0x1]  ;;  %v12101_v38 = vld [vmem:[%s17015_s0 + $0x168] sm:$0xff]  }
 0x190   :  { %11368 = vmatmul.mubr.msk.bf16.gmra.mrb[44].mxu0 %vm981_vm4, %v12098_v9  ;;  %v6664_v4 = vrot.slane %v6662_v13, 5  ;;  %v17060_v54 = vcombine.low %v14172_v37, %v14181_v10  ;;  %v14540_v35 = vrot.slane %v6668_v28, 5  ;;  %v6674_v44 = vrot.slane %v6672_v36, 4  ;;  %v12246_v10 = vld [vmem:[%s17015_s0 + $0x110] sm:$0x1] }
 0x191   :  { %11072 = vmatmul.mubr.msk.bf16.gmra.mrb[12].mxu1 %vm981_vm4, %v17059_v60  ;;  %11371 = vmatprep.mubr.msk.bf16.mxu0 %vm981_vm4, %v12099_v29  ;;  %v6683_v20 = vshrl.u32 %v10225_v40, 16  ;;  %v6686_v47 = vshll.u32 %v10225_v40, 16  ;;  %v14547_v27 = vsel %vm12910_vm7, %v9585_v49, %v2160_v11  ;;  %v2163_v37 = vrot.slane %v12246_v10, 5  ;;  %v10248_v8 = vld [vmem:[%s17015_s0 + $0xb0] sm:$0x1] }
 0x192   :  { %11075 = vmatprep.mubr.msk.bf16.mxu1 %vm981_vm4, %v17060_v54  ;;  %v6692_v24 = vshll.u32 %v10226_v18, 16  ;;  %v6696_v9 = vshrl.u32 %v10226_v18, 16  ;;  %v6707_v7 = vshrl.u32 %v10228_v45, 16  ;;  %v6710_v31 = vshll.u32 %v10228_v45, 16 }
 0x193   :  { %v6716_v12 = vshll.u32 %v10229_v33, 16  ;;  %v6720_v29 = vshrl.u32 %v10229_v33, 16  ;;  %v6647_v50 = vsel %vm12435_vm3, %v6642_v2, %v14437_v0  ;;  %v6657_v15 = vsel %vm12435_vm3, %v6652_v17, %v6656_v22  ;;  %v10227_v33 = vld [vmem:[%s17015_s0 + $0x5c] sm:$0x1]  ;;  %v10230_v22 = vld [vmem:[%s17015_s0 + $0x68] sm:$0x1] }
 0x194   :  { %v2162_v13 = vrot.slane %v2160_v11, 4  ;;  %v6678_v28 = vshll.u32 %v10224_v39, 16  ;;  %v6665_v36 = vor.u32 %v6664_v4, %v6661_v55  ;;  %v6675_v49 = vor.u32 %v6674_v44, %v14540_v35 }
 0x195   :  { %v6685_v40 = vrot.slane %v6683_v20, 4  ;;  %v6688_v18 = vrot.slane %v6686_v47, 5  ;;  %v9586_v45 = vrot.slane %v1940_v56, 9  ;;  %v2167_v60 = vrot.slane %v13875_v41, 5  ;;  %v12247_v20 = vld [vmem:[%s17015_s0 + $0x11c] sm:$0x1] }
 0x196   :  { %v14568_v54 = vrot.slane %v6692_v24, 5  ;;  %v6698_v0 = vrot.slane %v6696_v9, 4  ;;  %v6709_v11 = vrot.slane %v6707_v7, 4  ;;  %v6712_v2 = vrot.slane %v6710_v31, 5  ;;  %v10232_v9 = vld [vmem:[%s17015_s0 + $0x70] sm:$0xf] }
 0x197   :  { %v14574_v17 = vrot.slane %v6716_v12, 5  ;;  %v6722_v55 = vrot.slane %v6720_v29, 4  ;;  %v17061_v41 = vcombine.low %v14185_v53, %v14190_v5  ;;  %v14581_v4 = vcombine.low %v6647_v50, %v6657_v15  ;;  %v10231_v53 = vld [vmem:[%s17015_s0 + $0x6c] sm:$0xf]  ;;  %v12102_v12 = vld [vmem:[%s17015_s0 + $0x174] sm:$0xff]  }
 0x198   :  { %11372 = vmatmul.mubr.msk.bf16.gmra.mrb[48].mxu0 %vm981_vm4, %v12100_v16  ;;  %v14585_v39 = vsel %vm12910_vm7, %v2162_v13, %v2163_v37  ;;  %v14587_v44 = vrot.slane %v6678_v28, 5  ;;  %v2170_v47 = vrot.slane %v12247_v20, 5  ;;  %v17062_v5 = vcombine.low %v14194_v19, %v14208_v14  ;;  %v1941_v19 = vld [vmem:[%s17015_s0 + $0x120] sm:$0xe]  ;;  %v1942_v15 = vld [vmem:[%s17015_s0 + $0x12c] sm:$0xe] }
 0x199   :  { %11076 = vmatmul.mubr.msk.bf16.gmra.mrb[16].mxu1 %vm981_vm4, %v17061_v41  ;;  %11375 = vmatprep.mubr.msk.bf16.mxu0 %vm981_vm4, %v12101_v38  ;;  %v14599_v16 = vrot.slane %v6665_v36, 4  ;;  %v14601_v10 = vrot.slane %v6675_v49, 4  ;;  %v6689_v37 = vor.u32 %v6688_v18, %v6685_v40  ;;  %v6702_v24 = vshll.u32 %v10227_v33, 16  ;;  %v12103_v28 = vld [vmem:[%s17015_s0 + $0x180] sm:$0xff]   ;;  %v12248_v33 = vld [vmem:[%s17015_s0 + $0x128] sm:$0x1] }
 0x19a   :  { %11079 = vmatprep.mubr.msk.bf16.mxu1 %vm981_vm4, %v17062_v5  ;;  %v14608_v56 = vsel %vm12910_vm7, %v9586_v45, %v2167_v60  ;;  %v6699_v7 = vor.u32 %v6698_v0, %v14568_v54  ;;  %v2174_v14 = vrot.slane %v13887_v48, 5  ;;  %v6726_v31 = vshll.u32 %v10230_v22, 16 }
 0x19b   :  { %v2169_v29 = vrot.slane %v2167_v60, 4  ;;  %v6713_v38 = vor.u32 %v6712_v2, %v6709_v11  ;;  %v6723_v50 = vor.u32 %v6722_v55, %v14574_v17  ;;  %v2181_v13 = vrot.slane %v13903_v58, 5 }
 0x19c   :  { %v6731_v48 = vshrl.u32 %v10231_v53, 16  ;;  %v6734_v36 = vshll.u32 %v10231_v53, 16  ;;  %v6740_v49 = vshll.u32 %v10232_v9, 16  ;;  %v6744_v40 = vshrl.u32 %v10232_v9, 16  ;;  %v12249_v53 = vld [vmem:[%s17015_s0 + $0x134] sm:$0x1] }
 0x19d   :  { %v6690_v18 = vrot.slane %v6689_v37, 4  ;;  %v6704_v45 = vrot.slane %v6702_v24, 5  ;;  %v9587_v60 = vrot.slane %v1941_v19, 9  ;;  %v2177_v0 = vrot.slane %v12248_v33, 5  ;;  %v10233_v24 = vld [vmem:[%s17015_s0 + $0x74] sm:$0x1] }
 0x19e   :  { %v6700_v22 = vrot.slane %v6699_v7, 4  ;;  %v2176_v11 = vrot.slane %v2174_v14, 4  ;;  %v6728_v2 = vrot.slane %v6726_v31, 5  ;;  %v9588_v58 = vrot.slane %v1942_v15, 9  ;;  %v10235_v15 = vld [vmem:[%s17015_s0 + $0x7c] sm:$0xf] }
 0x19f   :  { %v6714_v55 = vrot.slane %v6713_v38, 4  ;;  %v6724_v41 = vrot.slane %v6723_v50, 4  ;;  %v2183_v20 = vrot.slane %v2181_v13, 4  ;;  %v2184_v5 = vrot.slane %v12249_v53, 5  ;;  %v10237_v33 = vld [vmem:[%s17015_s0 + $0x84] sm:$0xf] }
 0x1a0   :  { %11376 = vmatmul.mubr.msk.bf16.gmra.mrb[52].mxu0 %vm981_vm4, %v12102_v12  ;;  %v17063_v37 = vcombine.low %v14243_v3, %v14247_v46  ;;  %v6733_v9 = vrot.slane %v6731_v48, 4  ;;  %v6736_v7 = vrot.slane %v6734_v36, 5  ;;  %v14641_v19 = vrot.slane %v6740_v49, 5 }
 0x1a1   :  { %11379 = vmatprep.mubr.msk.bf16.mxu0 %vm981_vm4, %v12103_v28  ;;  %v6746_v31 = vrot.slane %v6744_v40, 4  ;;  %v17064_v12 = vcombine.low %v14258_v6, %v14262_v51  ;;  %v6671_v3 = vsel %vm12435_vm3, %v14599_v16, %v14540_v35  ;;  %v6681_v46 = vsel %vm12435_vm3, %v14601_v10, %v14587_v44  ;;  %v10234_v6 = vld [vmem:[%s17015_s0 + $0x78] sm:$0xf]  ;;  %v12104_v16 = vld [vmem:[%s17015_s0 + $0x18c] sm:$0xff]  }
 0x1a2   :  { %11080 = vmatmul.mubr.msk.bf16.gmra.mrb[20].mxu1 %vm981_vm4, %v17063_v37  ;;  %v14657_v38 = vsel %vm12910_vm7, %v2169_v29, %v2170_v47  ;;  %v14661_v50 = vsel %vm12910_vm7, %v9587_v60, %v2174_v14  ;;  %v6695_v51 = vsel %vm12435_vm3, %v6690_v18, %v14568_v54  ;;  %v6705_v35 = vsel %vm12435_vm3, %v6700_v22, %v6704_v45 }
 0x1a3   :  { %11083 = vmatprep.mubr.msk.bf16.mxu1 %vm981_vm4, %v17064_v12  ;;  %v14673_v44 = vsel %vm12910_vm7, %v2176_v11, %v2177_v0  ;;  %v14677_v47 = vsel %vm12910_vm7, %v9588_v58, %v2181_v13  ;;  %v6719_v10 = vsel %vm12435_vm3, %v6714_v55, %v14574_v17  ;;  %v6729_v54 = vsel %vm12435_vm3, %v6724_v41, %v6728_v2  ;;  %v12105_v13 = vld [vmem:[%s17015_s0 + $0x198] sm:$0xff]   ;;  %v10238_v58 = vld [vmem:[%s17015_s0 + $0x88] sm:$0xf]  ;;  %v10241_v12 = vld [vmem:[%s17015_s0 + $0x94] sm:$0xf] }
 0x1a4   :  { %v14689_v14 = vsel %vm12910_vm7, %v2183_v20, %v2184_v5  ;;  %v6750_v29 = vshll.u32 %v10233_v24, 16  ;;  %v6737_v28 = vor.u32 %v6736_v7, %v6733_v9  ;;  %v6747_v48 = vor.u32 %v6746_v31, %v14641_v19  ;;  %v1943_v17 = vld [vmem:[%s17015_s0 + $0x138] sm:$0xe]  ;;  %v10240_v5 = vld [vmem:[%s17015_s0 + $0x90] sm:$0xf] }
 0x1a5   :  { %v6755_v36 = vshrl.u32 %v10234_v6, 16  ;;  %v6758_v49 = vshll.u32 %v10234_v6, 16  ;;  %v9618_v40 = vcombine.low %v14547_v27, %v14585_v39  ;;  %v14703_v18 = vcombine.low %v6671_v3, %v6681_v46  ;;  %v17067_v3 = vld [vmem:[#allocation10_spill] sm:$0xff]  ;;  %v17068_v46 = vld [vmem:[#allocation11_spill] sm:$0xff]  ;;  %v17070_v41 = vld [vmem:[#allocation4_spill] sm:$0xff] }
 0x1a6   :  { %v9619_v45 = vcombine.low %v14608_v56, %v14657_v38  ;;  %v14712_v0 = vcombine.low %v6695_v51, %v6705_v35  ;;  %v2188_v22 = vrot.slane %v13915_v63, 5  ;;  %v6764_v11 = vshll.u32 %v10235_v15, 16  ;;  %v17065_v63 = vld [vmem:[#allocation9_spill] sm:$0xff]  ;;  %v10254_v56 = vld [vmem:[%s17015_s0 + $0xc8] sm:$0x1] }
 0x1a7   :  { %v6768_v2 = vshrl.u32 %v10235_v15, 16  ;;  %v14719_v55 = vcombine.low %v6719_v10, %v6729_v54  ;;  %v6752_v20 = vrot.slane %v6750_v29, 5  ;;  %v9589_v53 = vrot.slane %v1943_v17, 9  ;;  %v12106_v54 = vld [vmem:[%s17015_s0 + $0x1a4] sm:$0xff]   ;;  %v12250_v15 = vld [vmem:[%s17015_s0 + $0x140] sm:$0x1] }
 0x1a8   :  { %11380 = vmatmul.mubr.msk.bf16.gmra.mrb[56].mxu0 %vm981_vm4, %v12104_v16  ;;  %v17066_v37 = vcombine.low %v14266_v23, %v17065_v63  ;;  %v6738_v24 = vrot.slane %v6737_v28, 4  ;;  %v6748_v9 = vrot.slane %v6747_v48, 4  ;;  %v6757_v7 = vrot.slane %v6755_v36, 4  ;;  %v10236_v23 = vld [vmem:[%s17015_s0 + $0x80] sm:$0x1] }
 0x1a9   :  { %11383 = vmatprep.mubr.msk.bf16.mxu0 %vm981_vm4, %v12105_v13  ;;  %v6760_v31 = vrot.slane %v6758_v49, 5  ;;  %v17069_v6 = vcombine.low %v17067_v3, %v17068_v46  ;;  %v6779_v51 = vshrl.u32 %v10237_v33, 16  ;;  %v6782_v35 = vshll.u32 %v10237_v33, 16  ;;  %v1944_v17 = vld [vmem:[%s17015_s0 + $0x144] sm:$0xe] }
 0x1aa   :  { %11084 = vmatmul.mubr.msk.bf16.gmra.mrb[24].mxu1 %vm981_vm4, %v17066_v37  ;;  %v6788_v16 = vshll.u32 %v10238_v58, 16  ;;  %v6792_v10 = vshrl.u32 %v10238_v58, 16  ;;  %v2190_v29 = vrot.slane %v2188_v22, 4  ;;  %v2191_v13 = vrot.slane %v12250_v15, 5  ;;  %v10255_v38 = vld [vmem:[%s17015_s0 + $0xcc] sm:$0xf] }
 0x1ab   :  { %11087 = vmatprep.mubr.msk.bf16.mxu1 %vm981_vm4, %v17069_v6  ;;  %v14747_v28 = vrot.slane %v6764_v11, 5  ;;  %v6770_v48 = vrot.slane %v6768_v2, 4  ;;  %v6803_v36 = vshrl.u32 %v10240_v5, 16  ;;  %v6806_v49 = vshll.u32 %v10240_v5, 16  ;;  %v10239_v11 = vld [vmem:[%s17015_s0 + $0x8c] sm:$0x1] }
 0x1ac   :  { %v6812_v33 = vshll.u32 %v10241_v12, 16  ;;  %v6816_v58 = vshrl.u32 %v10241_v12, 16  ;;  %v6743_v63 = vsel %vm12435_vm3, %v6738_v24, %v14641_v19  ;;  %v6753_v37 = vsel %vm12435_vm3, %v6748_v9, %v6752_v20  ;;  %v10242_v9 = vld [vmem:[%s17015_s0 + $0x98] sm:$0x1] }
 0x1ad   :  { %v6761_v3 = vor.u32 %v6760_v31, %v6757_v7  ;;  %v6774_v46 = vshll.u32 %v10236_v23, 16  ;;  %v6781_v2 = vrot.slane %v6779_v51, 4  ;;  %v6784_v6 = vrot.slane %v6782_v35, 5  ;;  %v17071_v35 = vld [vmem:[#allocation12_spill] sm:$0xff] }
 0x1ae   :  { %v14760_v15 = vrot.slane %v6788_v16, 5  ;;  %v6794_v5 = vrot.slane %v6792_v10, 4  ;;  %v14764_v12 = vsel %vm12910_vm7, %v9589_v53, %v2188_v22  ;;  %v6771_v19 = vor.u32 %v6770_v48, %v14747_v28  ;;  %v17072_v16 = vld [vmem:[#allocation13_spill] sm:$0xff]  ;;  %v17074_v48 = vld [vmem:[#allocation14_spill] sm:$0xff] }
 0x1af   :  { %v9590_v24 = vrot.slane %v1944_v17, 9  ;;  %v2195_v20 = vrot.slane %v17070_v41, 5  ;;  %v6805_v7 = vrot.slane %v6803_v36, 4  ;;  %v6808_v31 = vrot.slane %v6806_v49, 5  ;;  %v17075_v17 = vld [vmem:[#allocation15_spill] sm:$0xff] }
 0x1b0   :  { %11384 = vmatmul.mubr.msk.bf16.gmra.mrb[60].mxu0 %vm981_vm4, %v12106_v54  ;;  %v14772_v23 = vrot.slane %v6812_v33, 5  ;;  %v6818_v51 = vrot.slane %v6816_v58, 4  ;;  %v17073_v22 = vcombine.low %v17071_v35, %v17072_v16  ;;  %v14780_v41 = vcombine.low %v6743_v63, %v6753_v37 }
 0x1b1   :  { %11389 = vmatprep.mubr.msk.bf16.mxu0 %vm981_vm4, %v14498_v32  ;;  %v14784_v53 = vsel %vm12910_vm7, %v2190_v29, %v2191_v13  ;;  %v14786_v10 = vrot.slane %v6761_v3, 4  ;;  %v6798_v54 = vshll.u32 %v10239_v11, 16  ;;  %v17076_v36 = vcombine.low %v17074_v48, %v17075_v17  ;;  %v12251_v32 = vld [vmem:[%s17015_s0 + $0x14c] sm:$0x1]  ;;  %v10243_v29 = vld [vmem:[%s17015_s0 + $0x9c] sm:$0xf] }
 0x1b2   :  { %11088 = vmatmul.mubr.msk.bf16.gmra.mrb[28].mxu1 %vm981_vm4, %v17073_v22  ;;  %v14792_v49 = vrot.slane %v6774_v46, 5  ;;  %v2198_v33 = vrot.slane %v12251_v32, 5  ;;  %v6785_v58 = vor.u32 %v6784_v6, %v6781_v2  ;;  %v6795_v63 = vor.u32 %v6794_v5, %v14760_v15  ;;  %v1945_v3 = vld [vmem:[%s17015_s0 + $0x150] sm:$0xe]  ;;  %v17077_v46 = vld [vmem:[#allocation5_spill] sm:$0xff] }
 0x1b3   :  { %11091 = vmatprep.mubr.msk.bf16.mxu1 %vm981_vm4, %v17076_v36  ;;  %v14803_v13 = vsel %vm12910_vm7, %v9590_v24, %v2195_v20  ;;  %v2197_v37 = vrot.slane %v2195_v20, 4  ;;  %v2202_v11 = vrot.slane %v17077_v46, 5  ;;  %v6822_v35 = vshll.u32 %v10242_v9, 16  ;;  %v1946_v5 = vld [vmem:[%s17015_s0 + $0x15c] sm:$0xe]  ;;  %v17078_v22 = vld [vmem:[#allocation8_spill] sm:$0xff] }
 0x1b4   :  { %v6772_v16 = vrot.slane %v6771_v19, 4  ;;  %v6809_v2 = vor.u32 %v6808_v31, %v6805_v7  ;;  %v6819_v6 = vor.u32 %v6818_v51, %v14772_v23  ;;  %v2209_v48 = vrot.slane %v17078_v22, 5  ;;  %v10244_v9 = vld [vmem:[%s17015_s0 + $0xa0] sm:$0xf]  ;;  %v12252_v36 = vld [vmem:[%s17015_s0 + $0x158] sm:$0x1] }
 0x1b5   :  { %v6767_v24 = vsel %vm12435_vm3, %v14786_v10, %v14747_v28  ;;  %v6800_v20 = vrot.slane %v6798_v54, 5  ;;  %v6827_v19 = vshrl.u32 %v10243_v29, 16  ;;  %v6830_v7 = vshll.u32 %v10243_v29, 16  ;;  %v12253_v28 = vld [vmem:[%s17015_s0 + $0x164] sm:$0x1] }
 0x1b6   :  { %v6786_v31 = vrot.slane %v6785_v58, 4  ;;  %v6796_v51 = vrot.slane %v6795_v63, 4  ;;  %v9591_v17 = vrot.slane %v1945_v3, 9  ;;  %v2205_v32 = vrot.slane %v12252_v36, 5  ;;  %v10246_v54 = vld [vmem:[%s17015_s0 + $0xa8] sm:$0xf] }
 0x1b7   :  { %v2204_v46 = vrot.slane %v2202_v11, 4  ;;  %v6824_v22 = vrot.slane %v6822_v35, 5  ;;  %v9592_v60 = vrot.slane %v1946_v5, 9  ;;  %v2212_v10 = vrot.slane %v12253_v28, 5 }
 0x1b8   :  { %11390 = vmatmul.mubr.msk.bf16.vlgmr.msra.gmra.mrb[0].mxu0 %vm981_vm4, %v14502_v26  ;;  %v6810_v58 = vrot.slane %v6809_v2, 4  ;;  %v6820_v63 = vrot.slane %v6819_v6, 4  ;;  %v2211_v29 = vrot.slane %v2209_v48, 4  ;;  %v6836_v3 = vshll.u32 %v10244_v9, 16  ;;  %v1947_v6 = vld [vmem:[%s17015_s0 + $0x168] sm:$0xe] }
 0x1b9   :  { %11454 = vmatpush3.bf16.msra.mxu0 %v14506_v21  ;;  %v14839_v35 = vsel %vm12910_vm7, %v2197_v37, %v2198_v33  ;;  %v6829_v5 = vrot.slane %v6827_v19, 4  ;;  %v6832_v36 = vrot.slane %v6830_v7, 5  ;;  %v6840_v28 = vshrl.u32 %v10244_v9, 16  ;;  %11393 = vmatprep.mubr.msk.bf16.mxu0 %vm981_vm4, %v14514_v61 }
 0x1ba   :  { %11092 = vmatmul.mubr.msk.bf16.gmra.mrb[32].mxu1 %vm981_vm4, %v9615_v52  ;;  %v6777_v25 = vsel %vm12435_vm3, %v6772_v16, %v14792_v49  ;;  %v14852_v43 = vsel %vm12910_vm7, %v9591_v17, %v2202_v11  ;;  %v10245_v52 = vld [vmem:[%s17015_s0 + $0xa4] sm:$0x1]  ;;  %v6851_v26 = vshrl.u32 %v10246_v54, 16  ;;  %v6854_v21 = vshll.u32 %v10246_v54, 16  ;;  %v10247_v49 = vld [vmem:[%s17015_s0 + $0xac] sm:$0xf] }
 0x1bb   :  { %11095 = vmatprep.mubr.msk.bf16.mxu1 %vm981_vm4, %v9616_v57  ;;  %v6791_v1 = vsel %vm12435_vm3, %v6786_v31, %v14760_v15  ;;  %v6801_v59 = vsel %vm12435_vm3, %v6796_v51, %v6800_v20  ;;  %v14864_v57 = vsel %vm12910_vm7, %v2204_v46, %v2205_v32  ;;  %v14868_v61 = vsel %vm12910_vm7, %v9592_v60, %v2209_v48  ;;  %v10249_v46 = vld [vmem:[%s17015_s0 + $0xb4] sm:$0xf] }
 0x1bc   :  { %v6815_v33 = vsel %vm12435_vm3, %v6810_v58, %v14772_v23  ;;  %v6825_v15 = vsel %vm12435_vm3, %v6820_v63, %v6824_v22  ;;  %v14880_v37 = vsel %vm12910_vm7, %v2211_v29, %v2212_v10  ;;  %v14882_v11 = vrot.slane %v6836_v3, 5  ;;  %v12254_v23 = vld [vmem:[%s17015_s0 + $0x16c] sm:$0xf]  ;;  %v10250_v58 = vld [vmem:[%s17015_s0 + $0xb8] sm:$0xf] }
 0x1bd   :  { %v6833_v16 = vor.u32 %v6832_v36, %v6829_v5  ;;  %v6842_v60 = vrot.slane %v6840_v28, 4  ;;  %v6846_v2 = vshll.u32 %v10245_v52, 16  ;;  %v2216_v48 = vrot.slane %v12254_v23, 5  ;;  %v10252_v63 = vld [vmem:[%s17015_s0 + $0xc0] sm:$0xf] }
 0x1be   :  { %v6853_v20 = vrot.slane %v6851_v26, 4  ;;  %v6856_v9 = vrot.slane %v6854_v21, 5  ;;  %v6860_v19 = vshll.u32 %v10247_v49, 16  ;;  %v6864_v7 = vshrl.u32 %v10247_v49, 16  ;;  %v12255_v5 = vld [vmem:[%s17015_s0 + $0x170] sm:$0x1] }
 0x1bf   :  { %v9622_v31 = vcombine.low %v14764_v12, %v14784_v53  ;;  %v14892_v51 = vcombine.low %v6767_v24, %v6777_v25  ;;  %v9623_v17 = vcombine.low %v14803_v13, %v14839_v35  ;;  %v14896_v32 = vcombine.low %v6791_v1, %v6801_v59  ;;  %v10253_v28 = vld [vmem:[%s17015_s0 + $0xc4] sm:$0xf]  ;;  %v1948_v52 = vld [vmem:[%s17015_s0 + $0x174] sm:$0xe]  ;;  %v10258_v12 = vld [vmem:[%s17015_s0 + $0xf0] sm:$0xf] }
 0x1c0   :  { %11394 = vmatmul.mubr.msk.bf16.gmra.mrb[4].mxu0 %vm981_vm4, %v14581_v4  ;;  %v9624_v22 = vcombine.low %v14852_v43, %v14864_v57  ;;  %v14905_v10 = vcombine.low %v6815_v33, %v6825_v15  ;;  %v9625_v24 = vcombine.low %v14868_v61, %v14880_v37  ;;  %v9593_v54 = vrot.slane %v1947_v6, 9  ;;  %v10263_v43 = vld [vmem:[%s17015_s0 + $0x104] sm:$0x1] }
 0x1c1   :  { %11397 = vmatprep.mubr.msk.bf16.mxu0 %vm981_vm4, %v14703_v18  ;;  %v6843_v4 = vor.u32 %v6842_v60, %v14882_v11  ;;  %v14922_v29 = vrot.slane %v6846_v2, 5  ;;  %v2218_v3 = vrot.slane %v2216_v48, 4  ;;  %v2219_v36 = vrot.slane %v12255_v5, 5 }
 0x1c2   :  { %11096 = vmatmul.mubr.msk.bf16.gmra.mrb[36].mxu1 %vm981_vm4, %v9617_v62  ;;  %v14934_v42 = vrot.slane %v6833_v16, 4  ;;  %v6857_v62 = vor.u32 %v6856_v9, %v6853_v20  ;;  %v14939_v18 = vrot.slane %v6860_v19, 5  ;;  %v6866_v25 = vrot.slane %v6864_v7, 4  ;;  %v12256_v20 = vld [vmem:[%s17015_s0 + $0x178] sm:$0xf] }
 0x1c3   :  { %11099 = vmatprep.mubr.msk.bf16.mxu1 %vm981_vm4, %v9618_v40  ;;  %v6875_v26 = vshrl.u32 %v10249_v46, 16  ;;  %v6878_v21 = vshll.u32 %v10249_v46, 16  ;;  %v6884_v1 = vshll.u32 %v10250_v58, 16  ;;  %v6888_v27 = vshrl.u32 %v10250_v58, 16 }
 0x1c4   :  { %v6899_v39 = vshrl.u32 %v10252_v63, 16  ;;  %v6902_v40 = vshll.u32 %v10252_v63, 16  ;;  %v6908_v59 = vshll.u32 %v10253_v28, 16  ;;  %v6912_v49 = vshrl.u32 %v10253_v28, 16 }
 0x1c5   :  { %v14944_v33 = vrot.slane %v6843_v4, 4  ;;  %v14948_v15 = vsel %vm12910_vm7, %v9593_v54, %v2216_v48  ;;  %v14952_v16 = vsel %vm12910_vm7, %v2218_v3, %v2219_v36  ;;  %v6870_v60 = vshll.u32 %v10248_v8, 16  ;;  %v10251_v48 = vld [vmem:[%s17015_s0 + $0xbc] sm:$0x1] }
 0x1c6   :  { %v14954_v2 = vrot.slane %v6857_v62, 4  ;;  %v6867_v6 = vor.u32 %v6866_v25, %v14939_v18  ;;  %v9594_v23 = vrot.slane %v1948_v52, 9  ;;  %v2223_v9 = vrot.slane %v12256_v20, 5  ;;  %v10256_v62 = vld [vmem:[%s17015_s0 + $0xd0] sm:$0xf] }
 0x1c7   :  { %v6877_v19 = vrot.slane %v6875_v26, 4  ;;  %v6880_v7 = vrot.slane %v6878_v21, 5  ;;  %v14963_v46 = vrot.slane %v6884_v1, 5  ;;  %v6890_v54 = vrot.slane %v6888_v27, 4  ;;  %v12258_v26 = vld [vmem:[%s17015_s0 + $0x184] sm:$0xf] }
 0x1c8   :  { %11398 = vmatmul.mubr.msk.bf16.gmra.mrb[8].mxu0 %vm981_vm4, %v14712_v0  ;;  %v6901_v58 = vrot.slane %v6899_v39, 4  ;;  %v6904_v63 = vrot.slane %v6902_v40, 5  ;;  %v14967_v4 = vrot.slane %v6908_v59, 5  ;;  %v6914_v3 = vrot.slane %v6912_v49, 4 }
 0x1c9   :  { %11401 = vmatprep.mubr.msk.bf16.mxu0 %vm981_vm4, %v14719_v55  ;;  %v6839_v5 = vsel %vm12435_vm3, %v14934_v42, %v14882_v11  ;;  %v6849_v0 = vsel %vm12435_vm3, %v14944_v33, %v14922_v29  ;;  %v9626_v36 = vcombine.low %v14948_v15, %v14952_v16  ;;  %v6872_v28 = vrot.slane %v6870_v60, 5  ;;  %v12257_v29 = vld [vmem:[%s17015_s0 + $0x17c] sm:$0x1] }
 0x1ca   :  { %11100 = vmatmul.mubr.msk.bf16.gmra.mrb[40].mxu1 %vm981_vm4, %v9619_v45  ;;  %v17079_v45 = vcombine.low %v14661_v50, %v14673_v44  ;;  %v6868_v55 = vrot.slane %v6867_v6, 4  ;;  %v2225_v11 = vrot.slane %v2223_v9, 4  ;;  %v2226_v42 = vrot.slane %v12257_v29, 5  ;;  %v1949_v44 = vld [vmem:[%s17015_s0 + $0x180] sm:$0xe] }
 0x1cb   :  { %v6894_v8 = vshll.u32 %v10251_v48, 16  ;;  %v15003_v25 = vsel %vm12910_vm7, %v9594_v23, %v2223_v9  ;;  %v6881_v52 = vor.u32 %v6880_v7, %v6877_v19  ;;  %v6891_v50 = vor.u32 %v6890_v54, %v14963_v46 }
 0x1cc   :  { %11103 = vmatprep.mubr.msk.bf16.mxu1 %vm981_vm4, %v17079_v45  ;;  %v2230_v21 = vrot.slane %v12258_v26, 5  ;;  %v6863_v1 = vsel %vm12435_vm3, %v14954_v2, %v14939_v18  ;;  %v6905_v27 = vor.u32 %v6904_v63, %v6901_v58  ;;  %v6915_v39 = vor.u32 %v6914_v3, %v14967_v4  ;;  %v12259_v2 = vld [vmem:[%s17015_s0 + $0x188] sm:$0x1]  ;;  %v1950_v3 = vld [vmem:[%s17015_s0 + $0x18c] sm:$0xe] }
 0x1cd   :  { %v6918_v40 = vshll.u32 %v10254_v56, 16  ;;  %v6923_v59 = vshrl.u32 %v10255_v38, 16  ;;  %v6926_v49 = vshll.u32 %v10255_v38, 16  ;;  %v6932_v33 = vshll.u32 %v10256_v62, 16  ;;  %v10261_v26 = vld [vmem:[%s17015_s0 + $0xfc] sm:$0xf] }
 0x1ce   :  { %v6936_v60 = vshrl.u32 %v10256_v62, 16  ;;  %v6873_v6 = vsel %vm12435_vm3, %v6868_v55, %v6872_v28  ;;  %v15021_v23 = vsel %vm12910_vm7, %v2225_v11, %v2226_v42  ;;  %v6896_v20 = vrot.slane %v6894_v8, 5  ;;  %v12260_v28 = vld [vmem:[%s17015_s0 + $0x190] sm:$0xf]  ;;  %v10259_v8 = vld [vmem:[%s17015_s0 + $0xf4] sm:$0xf] }
 0x1cf   :  { %v9595_v9 = vrot.slane %v1949_v44, 9  ;;  %v6882_v48 = vrot.slane %v6881_v52, 4  ;;  %v6892_v19 = vrot.slane %v6891_v50, 4  ;;  %v2232_v18 = vrot.slane %v2230_v21, 4  ;;  %v12261_v50 = vld [vmem:[%s17015_s0 + $0x194] sm:$0x1] }
 0x1d0   :  { %v2233_v7 = vrot.slane %v12259_v2, 5  ;;  %11402 = vmatmul.mubr.msk.bf16.gmra.mrb[12].mxu0 %vm981_vm4, %v14780_v41  ;;  %v6906_v54 = vrot.slane %v6905_v27, 4  ;;  %v6916_v58 = vrot.slane %v6915_v39, 4  ;;  %v6920_v63 = vrot.slane %v6918_v40, 5 }
 0x1d1   :  { %v2237_v56 = vrot.slane %v12260_v28, 5  ;;  %v17080_v38 = vcombine.low %v14677_v47, %v14689_v14  ;;  %11405 = vmatprep.mubr.msk.bf16.mxu0 %vm981_vm4, %v14892_v51  ;;  %v6925_v41 = vrot.slane %v6923_v59, 4  ;;  %v6928_v45 = vrot.slane %v6926_v49, 5  ;;  %v10257_v51 = vld [vmem:[%s17015_s0 + $0xd4] sm:$0x1] }
 0x1d2   :  { %v15040_v55 = vrot.slane %v6932_v33, 5  ;;  %v6938_v11 = vrot.slane %v6936_v60, 4  ;;  %v15046_v29 = vcombine.low %v6839_v5, %v6849_v0  ;;  %v15048_v42 = vcombine.low %v6863_v1, %v6873_v6  ;;  %v10265_v28 = vld [vmem:[%s17015_s0 + $0x10c] sm:$0xf] }
 0x1d3   :  { %11104 = vmatmul.mubr.msk.bf16.gmra.mrb[44].mxu1 %vm981_vm4, %v17080_v38  ;;  %v9627_v47 = vcombine.low %v15003_v25, %v15021_v23  ;;  %v15054_v14 = vsel %vm12910_vm7, %v9595_v9, %v2230_v21  ;;  %v6887_v53 = vsel %vm12435_vm3, %v6882_v48, %v14963_v46  ;;  %v15069_v5 = vsel %vm12910_vm7, %v2232_v18, %v2233_v7 }
 0x1d4   :  { %11107 = vmatprep.mubr.msk.bf16.mxu1 %vm981_vm4, %v9622_v31  ;;  %v6897_v31 = vsel %vm12435_vm3, %v6892_v19, %v6896_v20  ;;  %v9596_v0 = vrot.slane %v1950_v3, 9  ;;  %v6911_v62 = vsel %vm12435_vm3, %v6906_v54, %v14967_v4  ;;  %v6921_v52 = vsel %vm12435_vm3, %v6916_v58, %v6920_v63  ;;  %v10262_v4 = vld [vmem:[%s17015_s0 + $0x100] sm:$0xf]  ;;  %v10260_v20 = vld [vmem:[%s17015_s0 + $0xf8] sm:$0x1] }
 0x1d5   :  { %v2239_v46 = vrot.slane %v2237_v56, 4  ;;  %v2240_v44 = vrot.slane %v12261_v50, 5  ;;  %v6929_v21 = vor.u32 %v6928_v45, %v6925_v41  ;;  %v6939_v1 = vor.u32 %v6938_v11, %v15040_v55  ;;  %v10264_v54 = vld [vmem:[%s17015_s0 + $0x108] sm:$0xf] }
 0x1d6   :  { %v6942_v27 = vshll.u32 %v10257_v51, 16  ;;  %v6947_v39 = vshrl.u32 %v10258_v12, 16  ;;  %v9628_v40 = vcombine.low %v15054_v14, %v15069_v5  ;;  %v6950_v59 = vshll.u32 %v10258_v12, 16  ;;  %v10268_v51 = vld [vmem:[%s17015_s0 + $0x118] sm:$0xf] }
 0x1d7   :  { %v6956_v49 = vshll.u32 %v10259_v8, 16  ;;  %v6960_v33 = vshrl.u32 %v10259_v8, 16  ;;  %v15091_v60 = vcombine.low %v6887_v53, %v6897_v31  ;;  %v15095_v6 = vsel %vm12910_vm7, %v9596_v0, %v2237_v56  ;;  %v10267_v56 = vld [vmem:[%s17015_s0 + $0x114] sm:$0xf] }
 0x1d8   :  { %v6971_v9 = vshrl.u32 %v10261_v26, 16  ;;  %v6974_v48 = vshll.u32 %v10261_v26, 16  ;;  %11406 = vmatmul.mubr.msk.bf16.gmra.mrb[16].mxu0 %vm981_vm4, %v14896_v32  ;;  %v15102_v19 = vcombine.low %v6911_v62, %v6921_v52  ;;  %v15106_v18 = vsel %vm12910_vm7, %v2239_v46, %v2240_v44  ;;  %v10270_v26 = vld [vmem:[%s17015_s0 + $0x120] sm:$0xf] }
 0x1d9   :  { %v6980_v2 = vshll.u32 %v10262_v4, 16  ;;  %v6984_v7 = vshrl.u32 %v10262_v4, 16  ;;  %11409 = vmatprep.mubr.msk.bf16.mxu0 %vm981_vm4, %v14905_v10  ;;  %v15117_v32 = vrot.slane %v6929_v21, 4  ;;  %v15119_v58 = vrot.slane %v6939_v1, 4 }
 0x1da   :  { %v15121_v63 = vrot.slane %v6942_v27, 5  ;;  %v6949_v3 = vrot.slane %v6947_v39, 4  ;;  %v6952_v13 = vrot.slane %v6950_v59, 5  ;;  %v15130_v35 = vrot.slane %v6956_v49, 5  ;;  %v10266_v59 = vld [vmem:[%s17015_s0 + $0x110] sm:$0x1] }
 0x1db   :  { %11108 = vmatmul.mubr.msk.bf16.gmra.mrb[48].mxu1 %vm981_vm4, %v9623_v17  ;;  %v6962_v17 = vrot.slane %v6960_v33, 4  ;;  %v6966_v10 = vshll.u32 %v10260_v20, 16  ;;  %v6973_v38 = vrot.slane %v6971_v9, 4  ;;  %v6976_v41 = vrot.slane %v6974_v48, 5  ;;  %v10271_v9 = vld [vmem:[%s17015_s0 + $0x124] sm:$0xf] }
 0x1dc   :  { %11111 = vmatprep.mubr.msk.bf16.mxu1 %vm981_vm4, %v9624_v22  ;;  %v6995_v45 = vshrl.u32 %v10264_v54, 16  ;;  %v6998_v11 = vshll.u32 %v10264_v54, 16  ;;  %v15141_v57 = vrot.slane %v6980_v2, 5  ;;  %v6986_v22 = vrot.slane %v6984_v7, 4 }
 0x1dd   :  { %v7004_v12 = vshll.u32 %v10265_v28, 16  ;;  %v7008_v53 = vshrl.u32 %v10265_v28, 16  ;;  %v6935_v31 = vsel %vm12435_vm3, %v15117_v32, %v15040_v55  ;;  %v6945_v0 = vsel %vm12435_vm3, %v15119_v58, %v15121_v63  ;;  %v10269_v63 = vld [vmem:[%s17015_s0 + $0x11c] sm:$0x1] }
 0x1de   :  { %v7019_v8 = vshrl.u32 %v10267_v56, 16  ;;  %v7022_v62 = vshll.u32 %v10267_v56, 16  ;;  %v6953_v52 = vor.u32 %v6952_v13, %v6949_v3  ;;  %v6963_v46 = vor.u32 %v6962_v17, %v15130_v35 }
 0x1df   :  { %v7028_v50 = vshll.u32 %v10268_v51, 16  ;;  %v7032_v44 = vshrl.u32 %v10268_v51, 16  ;;  %v6977_v21 = vor.u32 %v6976_v41, %v6973_v38  ;;  %v6990_v1 = vshll.u32 %v10263_v43, 16 }
 0x1e0   :  { %v6997_v27 = vrot.slane %v6995_v45, 4  ;;  %v7000_v55 = vrot.slane %v6998_v11, 5  ;;  %11410 = vmatmul.mubr.msk.bf16.gmra.mrb[20].mxu0 %vm981_vm4, %v15046_v29  ;;  %v6968_v39 = vrot.slane %v6966_v10, 5  ;;  %v6987_v4 = vor.u32 %v6986_v22, %v15141_v57  ;;  %v10273_v11 = vld [vmem:[%s17015_s0 + $0x12c] sm:$0xf] }
 0x1e1   :  { %v15161_v49 = vrot.slane %v7004_v12, 5  ;;  %v7010_v33 = vrot.slane %v7008_v53, 4  ;;  %11413 = vmatprep.mubr.msk.bf16.mxu0 %vm981_vm4, %v15048_v42  ;;  %v7021_v20 = vrot.slane %v7019_v8, 4  ;;  %v7024_v29 = vrot.slane %v7022_v62, 5 }
 0x1e2   :  { %v7043_v48 = vshrl.u32 %v10270_v26, 16  ;;  %v7046_v2 = vshll.u32 %v10270_v26, 16  ;;  %v6954_v7 = vrot.slane %v6953_v52, 4  ;;  %v6964_v61 = vrot.slane %v6963_v46, 4 }
 0x1e3   :  { %11112 = vmatmul.mubr.msk.bf16.gmra.mrb[52].mxu1 %vm981_vm4, %v9625_v24  ;;  %v15176_v37 = vrot.slane %v7028_v50, 5  ;;  %v7034_v24 = vrot.slane %v7032_v44, 4  ;;  %v6978_v54 = vrot.slane %v6977_v21, 4  ;;  %v6992_v42 = vrot.slane %v6990_v1, 5 }
 0x1e4   :  { %11115 = vmatprep.mubr.msk.bf16.mxu1 %vm981_vm4, %v9626_v36  ;;  %v7001_v32 = vor.u32 %v7000_v55, %v6997_v27  ;;  %v7014_v58 = vshll.u32 %v10266_v59, 16  ;;  %v6988_v3 = vrot.slane %v6987_v4, 4  ;;  %v7011_v28 = vor.u32 %v7010_v33, %v15161_v49  ;;  %v9842_v59 = vld [vmem:[%s17015_s0 + $0xf0] sm:$0xf] }
 0x1e5   :  { %v7052_v13 = vshll.u32 %v10271_v9, 16  ;;  %v7056_v15 = vshrl.u32 %v10271_v9, 16  ;;  %v9629_v16 = vcombine.low %v15095_v6, %v15106_v18  ;;  %v7025_v36 = vor.u32 %v7024_v29, %v7021_v20  ;;  %v10275_v20 = vld [vmem:[%s17015_s0 + $0x134] sm:$0x1] }
 0x1e6   :  { %v7045_v17 = vrot.slane %v7043_v48, 4  ;;  %v7048_v10 = vrot.slane %v7046_v2, 5  ;;  %v10322_v56 = vcombine.low %v6935_v31, %v6945_v0  ;;  %v6959_v38 = vsel %vm12435_vm3, %v6954_v7, %v15130_v35  ;;  %v10274_v35 = vld [vmem:[%s17015_s0 + $0x130] sm:$0xf]  ;;  %v10272_v0 = vld [vmem:[%s17015_s0 + $0x128] sm:$0x1] }
 0x1e7   :  { %v7035_v41 = vor.u32 %v7034_v24, %v15176_v37  ;;  %v7038_v45 = vshll.u32 %v10269_v63, 16  ;;  %v6969_v51 = vsel %vm12435_vm3, %v6964_v61, %v6968_v39  ;;  %v6983_v6 = vsel %vm12435_vm3, %v6978_v54, %v15141_v57  ;;  %v10276_v57 = vld [vmem:[%s17015_s0 + $0x138] sm:$0xf] }
 0x1e8   :  { %v7002_v18 = vrot.slane %v7001_v32, 4  ;;  %v7016_v43 = vrot.slane %v7014_v58, 5  ;;  %11414 = vmatmul.mubr.msk.bf16.gmra.mrb[24].mxu0 %vm981_vm4, %v15091_v60  ;;  %v6993_v22 = vsel %vm12435_vm3, %v6988_v3, %v6992_v42  ;;  %v7012_v12 = vrot.slane %v7011_v28, 4 }
 0x1e9   :  { %v15203_v53 = vrot.slane %v7052_v13, 5  ;;  %v7058_v31 = vrot.slane %v7056_v15, 4  ;;  %11417 = vmatprep.mubr.msk.bf16.mxu0 %vm981_vm4, %v15102_v19  ;;  %v7026_v60 = vrot.slane %v7025_v36, 4  ;;  %v7049_v8 = vor.u32 %v7048_v10, %v7045_v17  ;;  %v10277_v19 = vld [vmem:[%s17015_s0 + $0x13c] sm:$0xf] }
 0x1ea   :  { %v7067_v62 = vshrl.u32 %v10273_v11, 16  ;;  %v7070_v52 = vshll.u32 %v10273_v11, 16  ;;  %v7036_v46 = vrot.slane %v7035_v41, 4  ;;  %v7040_v25 = vrot.slane %v7038_v45, 5  ;;  %v10280_v15 = vld [vmem:[%s17015_s0 + $0x148] sm:$0xf] }
 0x1eb   :  { %11116 = vmatmul.mubr.msk.bf16.gmra.mrb[56].mxu1 %vm981_vm4, %v9627_v47  ;;  %v7076_v23 = vshll.u32 %v10274_v35, 16  ;;  %v7080_v47 = vshrl.u32 %v10274_v35, 16  ;;  %v10323_v50 = vcombine.low %v6959_v38, %v6969_v51  ;;  %v15221_v44 = vcombine.low %v6983_v6, %v6993_v22  ;;  %v10282_v10 = vld [vmem:[%s17015_s0 + $0x150] sm:$0xf]  ;;  %v10278_v38 = vld [vmem:[%s17015_s0 + $0x140] sm:$0x1] }
 0x1ec   :  { %11119 = vmatprep.mubr.msk.bf16.mxu1 %vm981_vm4, %v9628_v40  ;;  %v7091_v26 = vshrl.u32 %v10276_v57, 16  ;;  %v7094_v21 = vshll.u32 %v10276_v57, 16  ;;  %v7007_v1 = vsel %vm12435_vm3, %v7002_v18, %v15161_v49  ;;  %v7017_v14 = vsel %vm12435_vm3, %v7012_v12, %v7016_v43  ;;  %v12107_v49 = vld [vmem:[%s17015_s0 + $0xc] sm:$0xff]   ;;  %v12108_v6 = vld [vmem:[%s17015_s0 + $0x18] sm:$0xff]   ;;  %v17081_v22 = vld [vmem:[#allocation6_spill] sm:$0xff] }
 0x1ed   :  { %v7059_v5 = vor.u32 %v7058_v31, %v15203_v53  ;;  %v7062_v40 = vshll.u32 %v10272_v0, 16  ;;  %v7031_v27 = vsel %vm12435_vm3, %v7026_v60, %v15176_v37  ;;  %v15235_v55 = vrot.slane %v7049_v8, 4  ;;  %v10279_v37 = vld [vmem:[%s17015_s0 + $0x144] sm:$0xf]  ;;  %v17082_v12 = vld [vmem:[#allocation7_spill] sm:$0xff] }
 0x1ee   :  { %v7069_v39 = vrot.slane %v7067_v62, 4  ;;  %v7072_v4 = vrot.slane %v7070_v52, 5  ;;  %v7041_v33 = vsel %vm12435_vm3, %v7036_v46, %v7040_v25  ;;  %v15248_v29 = vrot.slane %v7076_v23, 5  ;;  %v12109_v31 = vld [vmem:[%s17015_s0 + $0x24] sm:$0xff]   ;;  %v10283_v60 = vld [vmem:[%s17015_s0 + $0x154] sm:$0xf] }
 0x1ef   :  { %v7082_v9 = vrot.slane %v7080_v47, 4  ;;  %v7100_v48 = vshll.u32 %v10277_v19, 16  ;;  %v7093_v2 = vrot.slane %v7091_v26, 4  ;;  %v7096_v7 = vrot.slane %v7094_v21, 5  ;;  %v10285_v47 = vld [vmem:[%s17015_s0 + $0x15c] sm:$0xf] }
 0x1f0   :  { %v7104_v61 = vshrl.u32 %v10277_v19, 16  ;;  %v3976_v24 = vshrl.u32 %v9842_v59, 16  ;;  %11418 = vmatmul.mubr.msk.bf16.gmra.mrb[28].mxu0 %vm981_vm4, %v10322_v56  ;;  %v10325_v54 = vcombine.low %v7007_v1, %v7017_v14  ;;  %v15254_v42 = vrot.slane %v7059_v5, 4  ;;  %v10286_v21 = vld [vmem:[%s17015_s0 + $0x160] sm:$0xf] }
 0x1f1   :  { %v15256_v32 = vrot.slane %v7062_v40, 5  ;;  %v3979_v58 = vshll.u32 %v9842_v59, 16  ;;  %11421 = vmatprep.mubr.msk.bf16.mxu0 %vm981_vm4, %v10323_v50  ;;  %v15260_v63 = vcombine.low %v7031_v27, %v7041_v33  ;;  %v7055_v3 = vsel %vm12435_vm3, %v15235_v55, %v15203_v53  ;;  %v10281_v14 = vld [vmem:[%s17015_s0 + $0x14c] sm:$0x1]  ;;  %v17084_v33 = vld [vmem:[#allocation2_spill] sm:$0xff] }
 0x1f2   :  { %v7073_v28 = vor.u32 %v7072_v4, %v7069_v39  ;;  %v7086_v13 = vshll.u32 %v10275_v20, 16  ;;  %v7083_v36 = vor.u32 %v7082_v9, %v15248_v29  ;;  %v7115_v17 = vshrl.u32 %v10279_v37, 16 }
 0x1f3   :  { %11120 = vmatmul.mubr.msk.bf16.gmra.mrb[60].mxu1 %vm981_vm4, %v9629_v16  ;;  %v15271_v16 = vrot.slane %v7100_v48, 5  ;;  %v3978_v56 = vrot.slane %v3976_v24, 4  ;;  %v7097_v41 = vor.u32 %v7096_v7, %v7093_v2  ;;  %v7106_v45 = vrot.slane %v7104_v61, 4 }
 0x1f4   :  { %11125 = vmatprep.mubr.msk.bf16.mxu1 %vm981_vm4, %v12107_v49  ;;  %v7118_v11 = vshll.u32 %v10279_v37, 16  ;;  %v3981_v51 = vrot.slane %v3979_v58, 5  ;;  %v7065_v18 = vsel %vm12435_vm3, %v15254_v42, %v15256_v32  ;;  %v7124_v43 = vshll.u32 %v10280_v15, 16  ;;  %v17083_v49 = vld [vmem:[#allocation3_spill] sm:$0xff]  ;;  %v10284_v32 = vld [vmem:[%s17015_s0 + $0x158] sm:$0x1] }
 0x1f5   :  { %v7128_v35 = vshrl.u32 %v10280_v15, 16  ;;  %v3998_v53 = vsel %vm12435_vm3, %v17082_v12, %v17081_v22  ;;  %v15293_v57 = vrot.slane %v7086_v13, 5  ;;  %v7139_v0 = vshrl.u32 %v10282_v10, 16  ;;  %v12110_v13 = vld [vmem:[%s17015_s0 + $0x30] sm:$0xff]   ;;  %v12111_v15 = vld [vmem:[%s17015_s0 + $0x3c] sm:$0xff]  }
 0x1f6   :  { %v7142_v8 = vshll.u32 %v10282_v10, 16  ;;  %v3982_v62 = vor.u32 %v3981_v51, %v3978_v56  ;;  %v15298_v52 = vrot.slane %v7073_v28, 4  ;;  %v15300_v46 = vrot.slane %v7083_v36, 4  ;;  %v10288_v56 = vld [vmem:[%s17015_s0 + $0x168] sm:$0xf] }
 0x1f7   :  { %v7110_v25 = vshll.u32 %v10278_v38, 16  ;;  %v7117_v23 = vrot.slane %v7115_v17, 4  ;;  %v15305_v50 = vrot.slane %v7097_v41, 4  ;;  %v7107_v19 = vor.u32 %v7106_v45, %v15271_v16 }
 0x1f8   :  { %v7120_v26 = vrot.slane %v7118_v11, 5  ;;  %v3983_v1 = vrot.slane %v3982_v62, 4  ;;  %11422 = vmatmul.mubr.msk.bf16.gmra.mrb[32].mxu0 %vm981_vm4, %v15221_v44  ;;  %v15316_v5 = vrot.slane %v7124_v43, 5  ;;  %v7130_v40 = vrot.slane %v7128_v35, 4  ;;  %v10289_v11 = vld [vmem:[%s17015_s0 + $0x16c] sm:$0xf] }
 0x1f9   :  { %v7148_v27 = vshll.u32 %v10283_v60, 16  ;;  %v7152_v55 = vshrl.u32 %v10283_v60, 16  ;;  %11425 = vmatprep.mubr.msk.bf16.mxu0 %vm981_vm4, %v10325_v54  ;;  %v7141_v39 = vrot.slane %v7139_v0, 4  ;;  %v7144_v4 = vrot.slane %v7142_v8, 5  ;;  %v10287_v43 = vld [vmem:[%s17015_s0 + $0x164] sm:$0x1] }
 0x1fa   :  { %v7163_v59 = vshrl.u32 %v10285_v47, 16  ;;  %v3988_v44 = vsel %vm12435_vm3, %v3983_v1, %v17083_v49  ;;  %v7166_v20 = vshll.u32 %v10285_v47, 16  ;;  %v7172_v9 = vshll.u32 %v10286_v21, 16  ;;  %v10290_v47 = vld [vmem:[%s17015_s0 + $0x170] sm:$0x1] }
 0x1fb   :  { %11126 = vmatmul.mubr.msk.bf16.vlgmr.msra.gmra.mrb[0].mxu1 %vm981_vm4, %v12108_v6  ;;  %v7176_v48 = vshrl.u32 %v10286_v21, 16  ;;  %v15325_v2 = vcombine.low %v3988_v44, %v3998_v53  ;;  %v7108_v7 = vrot.slane %v7107_v19, 4  ;;  %v7112_v61 = vrot.slane %v7110_v25, 5  ;;  %v12112_v19 = vld [vmem:[%s17015_s0 + $0x48] sm:$0xff]  }
 0x1fc   :  { %11520 = vmatpush3.bf16.msra.mxu1 %v17084_v33  ;;  %11129 = vmatprep.mubr.msk.bf16.mxu1 %vm981_vm4, %v12109_v31  ;;  %v7121_v37 = vor.u32 %v7120_v26, %v7117_v23  ;;  %v7134_v24 = vshll.u32 %v10281_v14, 16  ;;  %v10327_v54 = vcombine.low %v7055_v3, %v7065_v18  ;;  %v7131_v42 = vor.u32 %v7130_v40, %v15316_v5 }
 0x1fd   :  { %v15331_v58 = vrot.slane %v7148_v27, 5  ;;  %v7154_v28 = vrot.slane %v7152_v55, 4  ;;  %v7079_v3 = vsel %vm12435_vm3, %v15298_v52, %v15248_v29  ;;  %v7089_v36 = vsel %vm12435_vm3, %v15300_v46, %v15293_v57 }
 0x1fe   :  { %v7103_v17 = vsel %vm12435_vm3, %v15305_v50, %v15271_v16  ;;  %v7145_v10 = vor.u32 %v7144_v4, %v7141_v39  ;;  %v7165_v38 = vrot.slane %v7163_v59, 4  ;;  %v7168_v41 = vrot.slane %v7166_v20, 5  ;;  %v10292_v50 = vld [vmem:[%s17015_s0 + $0x178] sm:$0xf]  ;;  %v10295_v4 = vld [vmem:[%s17015_s0 + $0x184] sm:$0xf] }
 0x1ff   :  { %v15354_v45 = vrot.slane %v7172_v9, 5  ;;  %v7178_v29 = vrot.slane %v7176_v48, 4  ;;  %v7113_v51 = vsel %vm12435_vm3, %v7108_v7, %v7112_v61  ;;  %v7122_v6 = vrot.slane %v7121_v37, 4  ;;  %v12113_v59 = vld [vmem:[%s17015_s0 + $0x54] sm:$0xff]  }
 0x200   :  { %v7136_v18 = vrot.slane %v7134_v24, 5  ;;  %v7158_v16 = vshll.u32 %v10284_v32, 16  ;;  %11426 = vmatmul.mubr.msk.bf16.gmra.mrb[36].mxu0 %vm981_vm4, %v15260_v63  ;;  %v7132_v35 = vrot.slane %v7131_v42, 4  ;;  %v7155_v22 = vor.u32 %v7154_v28, %v15331_v58  ;;  %v10291_v63 = vld [vmem:[%s17015_s0 + $0x174] sm:$0xf] }
 0x201   :  { %v7187_v12 = vshrl.u32 %v10288_v56, 16  ;;  %v7190_v53 = vshll.u32 %v10288_v56, 16  ;;  %11429 = vmatprep.mubr.msk.bf16.mxu0 %vm981_vm4, %v10327_v54  ;;  %v7196_v31 = vshll.u32 %v10289_v11, 16  ;;  %v7200_v57 = vshrl.u32 %v10289_v11, 16 }
 0x202   :  { %v7146_v60 = vrot.slane %v7145_v10, 4  ;;  %v7169_v0 = vor.u32 %v7168_v41, %v7165_v38  ;;  %v7179_v8 = vor.u32 %v7178_v29, %v15354_v45  ;;  %v7182_v62 = vshll.u32 %v10287_v43, 16  ;;  %v10297_v29 = vld [vmem:[%s17015_s0 + $0x18c] sm:$0xf] }
 0x203   :  { %11130 = vmatmul.mubr.msk.bf16.gmra.mrb[4].mxu1 %vm981_vm4, %v12110_v13  ;;  %v10328_v52 = vcombine.low %v7079_v3, %v7089_v36  ;;  %v10329_v46 = vcombine.low %v7103_v17, %v7113_v51  ;;  %v7127_v25 = vsel %vm12435_vm3, %v7122_v6, %v15316_v5  ;;  %v7160_v23 = vrot.slane %v7158_v16, 5  ;;  %v10294_v5 = vld [vmem:[%s17015_s0 + $0x180] sm:$0xf]  ;;  %v10293_v17 = vld [vmem:[%s17015_s0 + $0x17c] sm:$0x1] }
 0x204   :  { %11133 = vmatprep.mubr.msk.bf16.mxu1 %vm981_vm4, %v12111_v15  ;;  %v7137_v26 = vsel %vm12435_vm3, %v7132_v35, %v7136_v18  ;;  %v7156_v21 = vrot.slane %v7155_v22, 4  ;;  %v7189_v1 = vrot.slane %v7187_v12, 4  ;;  %v7192_v14 = vrot.slane %v7190_v53, 5  ;;  %v12114_v16 = vld [vmem:[%s17015_s0 + $0x60] sm:$0xff]   ;;  %v10298_v53 = vld [vmem:[%s17015_s0 + $0x190] sm:$0xf] }
 0x205   :  { %v15391_v40 = vrot.slane %v7196_v31, 5  ;;  %v7202_v27 = vrot.slane %v7200_v57, 4  ;;  %v7211_v55 = vshrl.u32 %v10291_v63, 16  ;;  %v7214_v39 = vshll.u32 %v10291_v63, 16  ;;  %v12115_v31 = vld [vmem:[%s17015_s0 + $0x6c] sm:$0xff]  }
 0x206   :  { %v7151_v49 = vsel %vm12435_vm3, %v7146_v60, %v15331_v58  ;;  %v7170_v44 = vrot.slane %v7169_v0, 4  ;;  %v7180_v33 = vrot.slane %v7179_v8, 4  ;;  %v7184_v20 = vrot.slane %v7182_v62, 5  ;;  %v10300_v63 = vld [vmem:[%s17015_s0 + $0x198] sm:$0xf] }
 0x207   :  { %v7220_v9 = vshll.u32 %v10292_v50, 16  ;;  %v7224_v48 = vshrl.u32 %v10292_v50, 16  ;;  %v7235_v7 = vshrl.u32 %v10294_v5, 16  ;;  %v7238_v61 = vshll.u32 %v10294_v5, 16 }
 0x208   :  { %11430 = vmatmul.mubr.msk.bf16.gmra.mrb[40].mxu0 %vm981_vm4, %v10328_v52  ;;  %v7161_v37 = vsel %vm12435_vm3, %v7156_v21, %v7160_v23  ;;  %v7206_v24 = vshll.u32 %v10290_v47, 16  ;;  %v7244_v54 = vshll.u32 %v10295_v4, 16  ;;  %v7248_v42 = vshrl.u32 %v10295_v4, 16  ;;  %v10301_v52 = vld [vmem:[%s17015_s0 + $0x19c] sm:$0xf] }
 0x209   :  { %11433 = vmatprep.mubr.msk.bf16.mxu0 %vm981_vm4, %v10329_v46  ;;  %v7193_v32 = vor.u32 %v7192_v14, %v7189_v1  ;;  %v7203_v58 = vor.u32 %v7202_v27, %v15391_v40  ;;  %v7213_v28 = vrot.slane %v7211_v55, 4  ;;  %v7216_v13 = vrot.slane %v7214_v39, 5 }
 0x20a   :  { %v10330_v15 = vcombine.low %v7127_v25, %v7137_v26  ;;  %v7175_v3 = vsel %vm12435_vm3, %v7170_v44, %v15354_v45  ;;  %v7185_v36 = vsel %vm12435_vm3, %v7180_v33, %v7184_v20  ;;  %v15417_v10 = vrot.slane %v7220_v9, 5  ;;  %v10296_v45 = vld [vmem:[%s17015_s0 + $0x188] sm:$0x1] }
 0x20b   :  { %11134 = vmatmul.mubr.msk.bf16.gmra.mrb[8].mxu1 %vm981_vm4, %v12112_v19  ;;  %v7226_v56 = vrot.slane %v7224_v48, 4  ;;  %v7237_v38 = vrot.slane %v7235_v7, 4  ;;  %v7240_v41 = vrot.slane %v7238_v61, 5  ;;  %v10331_v11 = vcombine.low %v7151_v49, %v7161_v37  ;;  %v12116_v49 = vld [vmem:[%s17015_s0 + $0x78] sm:$0xff]   ;;  %v12117_v9 = vld [vmem:[%s17015_s0 + $0x84] sm:$0xff]  }
 0x20c   :  { %11137 = vmatprep.mubr.msk.bf16.mxu1 %vm981_vm4, %v12113_v59  ;;  %v7208_v51 = vrot.slane %v7206_v24, 5  ;;  %v15425_v6 = vrot.slane %v7244_v54, 5  ;;  %v7250_v18 = vrot.slane %v7248_v42, 4  ;;  %v7194_v43 = vrot.slane %v7193_v32, 4  ;;  %v10299_v7 = vld [vmem:[%s17015_s0 + $0x194] sm:$0x1] }
 0x20d   :  { %v7204_v35 = vrot.slane %v7203_v58, 4  ;;  %v7217_v22 = vor.u32 %v7216_v13, %v7213_v28  ;;  %v7230_v12 = vshll.u32 %v10293_v17, 16  ;;  %v10332_v57 = vcombine.low %v7175_v3, %v7185_v36  ;;  %v10303_v61 = vld [vmem:[%s17015_s0 + $0x1a4] sm:$0xf]  ;;  %v10304_v32 = vld [vmem:[%s17015_s0 + $0x1a8] sm:$0xf] }
 0x20e   :  { %v7227_v60 = vor.u32 %v7226_v56, %v15417_v10  ;;  %v7241_v0 = vor.u32 %v7240_v41, %v7237_v38  ;;  %v7254_v8 = vshll.u32 %v10296_v45, 16  ;;  %v7259_v62 = vshrl.u32 %v10297_v29, 16 }
 0x20f   :  { %v7251_v46 = vor.u32 %v7250_v18, %v15425_v6  ;;  %v7262_v25 = vshll.u32 %v10297_v29, 16  ;;  %v7268_v23 = vshll.u32 %v10298_v53, 16  ;;  %v7272_v47 = vshrl.u32 %v10298_v53, 16 }
 0x210   :  { %11434 = vmatmul.mubr.msk.bf16.gmra.mrb[44].mxu0 %vm981_vm4, %v10330_v15  ;;  %v7199_v50 = vsel %vm12435_vm3, %v7194_v43, %v15391_v40  ;;  %v7209_v19 = vsel %vm12435_vm3, %v7204_v35, %v7208_v51  ;;  %v7218_v26 = vrot.slane %v7217_v22, 4  ;;  %v7232_v21 = vrot.slane %v7230_v12, 5  ;;  %v10302_v15 = vld [vmem:[%s17015_s0 + $0x1a0] sm:$0x1]  ;;  %v12118_v22 = vld [vmem:[%s17015_s0 + $0x90] sm:$0xff]  }
 0x211   :  { %11437 = vmatprep.mubr.msk.bf16.mxu0 %vm981_vm4, %v10331_v11  ;;  %v7283_v1 = vshrl.u32 %v10300_v63, 16  ;;  %v7286_v14 = vshll.u32 %v10300_v63, 16  ;;  %v7292_v5 = vshll.u32 %v10301_v52, 16  ;;  %v7296_v27 = vshrl.u32 %v10301_v52, 16  ;;  %v10305_v63 = vld [vmem:[%s17015_s0 + $0x1ac] sm:$0x1] }
 0x212   :  { %v7228_v55 = vrot.slane %v7227_v60, 4  ;;  %v7242_v39 = vrot.slane %v7241_v0, 4  ;;  %v7256_v4 = vrot.slane %v7254_v8, 5  ;;  %v7261_v59 = vrot.slane %v7259_v62, 4  ;;  %v12119_v60 = vld [vmem:[%s17015_s0 + $0x9c] sm:$0xff]  }
 0x213   :  { %11138 = vmatmul.mubr.msk.bf16.gmra.mrb[12].mxu1 %vm981_vm4, %v12114_v16  ;;  %v7252_v40 = vrot.slane %v7251_v46, 4  ;;  %v7264_v44 = vrot.slane %v7262_v25, 5  ;;  %v7270_v33 = vrot.slane %v7268_v23, 5  ;;  %v7274_v20 = vrot.slane %v7272_v47, 4 }
 0x214   :  { %11141 = vmatprep.mubr.msk.bf16.mxu1 %vm981_vm4, %v12115_v31  ;;  %v10333_v48 = vcombine.low %v7199_v50, %v7209_v19  ;;  %v7285_v37 = vrot.slane %v7283_v1, 4  ;;  %v7288_v24 = vrot.slane %v7286_v14, 5  ;;  %v7294_v54 = vrot.slane %v7292_v5, 5  ;;  %v10371_v1 = vld [vmem:[%s17015_s0 + $0x18] sm:$0xe]  ;;  %v12120_v5 = vld [vmem:[%s17015_s0 + $0xa8] sm:$0xff]  }
 0x215   :  { %v7298_v42 = vrot.slane %v7296_v27, 4  ;;  %v7223_v58 = vsel %vm12435_vm3, %v7218_v26, %v15417_v10  ;;  %v7233_v28 = vsel %vm12435_vm3, %v7228_v55, %v7232_v21  ;;  %v7247_v13 = vsel %vm12435_vm3, %v7242_v39, %v15425_v6  ;;  %v12262_v26 = vld [vmem:[%s17015_s0 + $0x1c] sm:$0xf] }
 0x216   :  { %v7257_v3 = vsel %vm12435_vm3, %v7252_v40, %v7256_v4  ;;  %v7265_v36 = vor.u32 %v7264_v44, %v7261_v59  ;;  %v7275_v17 = vor.u32 %v7274_v20, %v7270_v33  ;;  %v7278_v56 = vshll.u32 %v10299_v7, 16  ;;  %v12121_v59 = vld [vmem:[%s17015_s0 + $0xb4] sm:$0xff]   ;;  %v12263_v44 = vld [vmem:[%s17015_s0 + $0x20] sm:$0x1]  ;;  %v12264_v20 = vld [vmem:[%s17015_s0 + $0x28] sm:$0xf] }
 0x217   :  { %v7307_v10 = vshrl.u32 %v10303_v61, 16  ;;  %v7310_v38 = vshll.u32 %v10303_v61, 16  ;;  %v7316_v41 = vshll.u32 %v10304_v32, 16  ;;  %v7320_v29 = vshrl.u32 %v10304_v32, 16  ;;  %v10372_v61 = vld [vmem:[%s17015_s0 + $0x24] sm:$0xe] }
 0x218   :  { %11438 = vmatmul.mubr.msk.bf16.gmra.mrb[48].mxu0 %vm981_vm4, %v10332_v57  ;;  %v7289_v11 = vor.u32 %v7288_v24, %v7285_v37  ;;  %v7299_v51 = vor.u32 %v7298_v42, %v7294_v54  ;;  %v7302_v45 = vshll.u32 %v10302_v15, 16  ;;  %v10334_v6 = vcombine.low %v7223_v58, %v7233_v28  ;;  %v10373_v32 = vld [vmem:[%s17015_s0 + $0x30] sm:$0xe]  ;;  %v12266_v15 = vld [vmem:[%s17015_s0 + $0x2c] sm:$0x1] }
 0x219   :  { %11441 = vmatprep.mubr.msk.bf16.mxu0 %vm981_vm4, %v10333_v48  ;;  %v10335_v18 = vcombine.low %v7247_v13, %v7257_v3  ;;  %v7266_v16 = vrot.slane %v7265_v36, 4  ;;  %v7276_v43 = vrot.slane %v7275_v17, 4  ;;  %v7280_v35 = vrot.slane %v7278_v56, 5  ;;  %v12122_v36 = vld [vmem:[%s17015_s0 + $0xc0] sm:$0xff]  }
 0x21a   :  { %v7309_v12 = vrot.slane %v7307_v10, 4  ;;  %v7312_v53 = vrot.slane %v7310_v38, 5  ;;  %v7318_v31 = vrot.slane %v7316_v41, 5  ;;  %v7322_v57 = vrot.slane %v7320_v29, 4  ;;  %v12123_v56 = vld [vmem:[%s17015_s0 + $0xe4] sm:$0xff]  }
 0x21b   :  { %11142 = vmatmul.mubr.msk.bf16.gmra.mrb[16].mxu1 %vm981_vm4, %v12116_v49  ;;  %v7290_v0 = vrot.slane %v7289_v11, 4  ;;  %v7300_v8 = vrot.slane %v7299_v51, 4  ;;  %v7304_v62 = vrot.slane %v7302_v45, 5  ;;  %v7271_v52 = vsel %vm12435_vm3, %v7266_v16, %v7270_v33  ;;  %v12267_v41 = vld [vmem:[%s17015_s0 + $0x38] sm:$0x1] }
 0x21c   :  { %11145 = vmatprep.mubr.msk.bf16.mxu1 %vm981_vm4, %v12117_v9  ;;  %v7281_v46 = vsel %vm12435_vm3, %v7276_v43, %v7280_v35  ;;  %v7313_v25 = vor.u32 %v7312_v53, %v7309_v12  ;;  %v7323_v23 = vor.u32 %v7322_v57, %v7318_v31  ;;  %v7326_v47 = vshll.u32 %v10305_v63, 16  ;;  %v10374_v45 = vld [vmem:[%s17015_s0 + $0x3c] sm:$0xe]  ;;  %v10375_v16 = vld [vmem:[%s17015_s0 + $0x48] sm:$0xe] }
 0x21d   :  { %v7295_v50 = vsel %vm12435_vm3, %v7290_v0, %v7294_v54  ;;  %v7305_v19 = vsel %vm12435_vm3, %v7300_v8, %v7304_v62  ;;  %v8010_v21 = vrot.slane %v12262_v26, 5  ;;  %v10336_v14 = vcombine.low %v7271_v52, %v7281_v46  ;;  %v12265_v54 = vld [vmem:[%s17015_s0 + $0x34] sm:$0xf]  ;;  %v12269_v43 = vld [vmem:[%s17015_s0 + $0x4c] sm:$0xf] }
 0x21e   :  { %v10337_v27 = vcombine.low %v7295_v50, %v7305_v19  ;;  %v7314_v55 = vrot.slane %v7313_v25, 4  ;;  %v7324_v39 = vrot.slane %v7323_v23, 4  ;;  %v7328_v4 = vrot.slane %v7326_v47, 5  ;;  %v12270_v12 = vld [vmem:[%s17015_s0 + $0x58] sm:$0xf] }
 0x21f   :  { %v10403_v49 = vrot.slane %v10371_v1, 9  ;;  %v8012_v40 = vrot.slane %v8010_v21, 4  ;;  %v8013_v33 = vrot.slane %v12263_v44, 5  ;;  %v8017_v9 = vrot.slane %v12264_v20, 5  ;;  %v12271_v0 = vld [vmem:[%s17015_s0 + $0x64] sm:$0xf] }
 0x220   :  { %11442 = vmatmul.mubr.msk.bf16.gmra.mrb[52].mxu0 %vm981_vm4, %v10334_v6  ;;  %v7319_v48 = vsel %vm12435_vm3, %v7314_v55, %v7318_v31  ;;  %v7329_v7 = vsel %vm12435_vm3, %v7324_v39, %v7328_v4  ;;  %v8024_v42 = vrot.slane %v12265_v54, 5  ;;  %v10404_v28 = vrot.slane %v10372_v61, 9  ;;  %v12268_v6 = vld [vmem:[%s17015_s0 + $0x40] sm:$0xf]  ;;  %v12272_v52 = vld [vmem:[%s17015_s0 + $0x44] sm:$0x1] }
 0x221   :  { %11445 = vmatprep.mubr.msk.bf16.mxu0 %vm981_vm4, %v10335_v18  ;;  %v8011_v37 = vsel %vm12910_vm7, %v10403_v49, %v8010_v21  ;;  %v8014_v24 = vsel %vm12910_vm7, %v8012_v40, %v8013_v33  ;;  %v10338_v58 = vcombine.low %v7319_v48, %v7329_v7  ;;  %v8019_v13 = vrot.slane %v8017_v9, 4  ;;  %v12273_v50 = vld [vmem:[%s17015_s0 + $0x50] sm:$0x1]  ;;  %v12125_v39 = vld [vmem:[%s17015_s0 + $0xfc] sm:$0xff]   ;;  %v10378_v40 = vld [vmem:[%s17015_s0 + $0x6c] sm:$0xe] }
 0x222   :  { %v8020_v3 = vrot.slane %v12266_v15, 5  ;;  %v10436_v17 = vcombine.low %v8011_v37, %v8014_v24  ;;  %v10405_v10 = vrot.slane %v10373_v32, 9  ;;  %v8026_v38 = vrot.slane %v8024_v42, 4  ;;  %v12124_v21 = vld [vmem:[%s17015_s0 + $0xf0] sm:$0xff]   ;;  %v10379_v37 = vld [vmem:[%s17015_s0 + $0x78] sm:$0xe] }
 0x223   :  { %11146 = vmatmul.mubr.msk.bf16.gmra.mrb[20].mxu1 %vm981_vm4, %v12118_v22  ;;  %v8027_v29 = vrot.slane %v12267_v41, 5  ;;  %v8018_v11 = vsel %vm12910_vm7, %v10404_v28, %v8017_v9  ;;  %v8031_v18 = vrot.slane %v12268_v6, 5  ;;  %v8038_v35 = vrot.slane %v12269_v43, 5  ;;  %v10376_v22 = vld [vmem:[%s17015_s0 + $0x54] sm:$0xe] }
 0x224   :  { %11149 = vmatprep.mubr.msk.bf16.mxu1 %vm981_vm4, %v12119_v60  ;;  %v8021_v51 = vsel %vm12910_vm7, %v8019_v13, %v8020_v3  ;;  %v8045_v53 = vrot.slane %v12270_v12, 5  ;;  %v8025_v31 = vsel %vm12910_vm7, %v10405_v10, %v8024_v42  ;;  %v10377_v60 = vld [vmem:[%s17015_s0 + $0x60] sm:$0xe]  ;;  %v8052_v8 = vrot.slane %v12271_v0, 5  ;;  %v12276_v44 = vld [vmem:[%s17015_s0 + $0x70] sm:$0xf] }
 0x225   :  { %v8028_v57 = vsel %vm12910_vm7, %v8026_v38, %v8027_v29  ;;  %v10437_v62 = vcombine.low %v8018_v11, %v8021_v51  ;;  %v10406_v63 = vrot.slane %v10374_v45, 9  ;;  %v8034_v46 = vrot.slane %v12272_v52, 5  ;;  %v10380_v24 = vld [vmem:[%s17015_s0 + $0x84] sm:$0xe]  ;;  %v12278_v3 = vld [vmem:[%s17015_s0 + $0x74] sm:$0x1] }
 0x226   :  { %v10407_v25 = vrot.slane %v10375_v16, 9  ;;  %v8033_v23 = vrot.slane %v8031_v18, 4  ;;  %v8040_v47 = vrot.slane %v8038_v35, 4  ;;  %v8041_v19 = vrot.slane %v12273_v50, 5  ;;  %v10381_v51 = vld [vmem:[%s17015_s0 + $0x90] sm:$0xe] }
 0x227   :  { %v10408_v26 = vrot.slane %v10376_v22, 9  ;;  %v10438_v1 = vcombine.low %v8025_v31, %v8028_v57  ;;  %v10409_v55 = vrot.slane %v10377_v60, 9  ;;  %v8054_v4 = vrot.slane %v8052_v8, 4  ;;  %v12126_v45 = vld [vmem:[%s17015_s0 + $0x108] sm:$0xff]   ;;  %v12280_v43 = vld [vmem:[%s17015_s0 + $0x80] sm:$0x1] }
 0x228   :  { %11446 = vmatmul.mubr.msk.bf16.gmra.mrb[56].mxu0 %vm981_vm4, %v10336_v14  ;;  %v8047_v14 = vrot.slane %v8045_v53, 4  ;;  %v8059_v33 = vrot.slane %v12276_v44, 5  ;;  %v8032_v20 = vsel %vm12910_vm7, %v10406_v63, %v8031_v18  ;;  %v8035_v9 = vsel %vm12910_vm7, %v8033_v23, %v8034_v46  ;;  %v9839_v22 = vld [vmem:[%s17015_s0 + $0xe4] sm:$0xf]  ;;  %v12127_v12 = vld [vmem:[%s17015_s0 + $0x114] sm:$0xff]  }
 0x229   :  { %11449 = vmatprep.mubr.msk.bf16.mxu0 %vm981_vm4, %v10337_v27  ;;  %v8039_v48 = vsel %vm12910_vm7, %v10407_v25, %v8038_v35  ;;  %v8042_v7 = vsel %vm12910_vm7, %v8040_v47, %v8041_v19  ;;  %v15628_v61 = vsel %vm12910_vm7, %v10408_v26, %v8045_v53  ;;  %v15644_v42 = vsel %vm12910_vm7, %v10409_v55, %v8052_v8  ;;  %v12281_v57 = vld [vmem:[%s17015_s0 + $0x8c] sm:$0x1]  ;;  %v12282_v0 = vld [vmem:[%s17015_s0 + $0x94] sm:$0xf]  ;;  %v10382_v46 = vld [vmem:[%s17015_s0 + $0x9c] sm:$0xe] }
 0x22a   :  { %v10410_v32 = vrot.slane %v10378_v40, 9  ;;  %v8061_v15 = vrot.slane %v8059_v33, 4  ;;  %v10411_v10 = vrot.slane %v10379_v37, 9  ;;  %v10412_v38 = vrot.slane %v10380_v24, 9  ;;  %v12283_v25 = vld [vmem:[%s17015_s0 + $0xa0] sm:$0xf] }
 0x22b   :  { %11150 = vmatmul.mubr.msk.bf16.gmra.mrb[24].mxu1 %vm981_vm4, %v12120_v5  ;;  %v12274_v5 = vld [vmem:[%s17015_s0 + $0x5c] sm:$0x1]  ;;  %v10439_v41 = vcombine.low %v8032_v20, %v8035_v9  ;;  %v10440_v29 = vcombine.low %v8039_v48, %v8042_v7  ;;  %v8069_v35 = vrot.slane %v12280_v43, 5  ;;  %v8076_v60 = vrot.slane %v12281_v57, 5  ;;  %v10383_v47 = vld [vmem:[%s17015_s0 + $0xa8] sm:$0xe] }
 0x22c   :  { %11153 = vmatprep.mubr.msk.bf16.mxu1 %vm981_vm4, %v12121_v59  ;;  %v8048_v27 = vrot.slane %v12274_v5, 5  ;;  %v12275_v59 = vld [vmem:[%s17015_s0 + $0x68] sm:$0x1]  ;;  %v15672_v18 = vsel %vm12910_vm7, %v10410_v32, %v8059_v33  ;;  %v8080_v8 = vrot.slane %v12282_v0, 5  ;;  %v10413_v52 = vrot.slane %v10381_v51, 9 }
 0x22d   :  { %v8055_v49 = vrot.slane %v12275_v59, 5  ;;  %v8087_v23 = vrot.slane %v12283_v25, 5  ;;  %v10384_v50 = vld [vmem:[%s17015_s0 + $0xb4] sm:$0xe]  ;;  %v3952_v19 = vshrl.u32 %v9839_v22, 16  ;;  %v3955_v26 = vshll.u32 %v9839_v22, 16 }
 0x22e   :  { %v15640_v54 = vsel %vm12910_vm7, %v8047_v14, %v8048_v27  ;;  %v12285_v55 = vld [vmem:[%s17015_s0 + $0x98] sm:$0x1]  ;;  %v8082_v40 = vrot.slane %v8080_v8, 4  ;;  %v10414_v44 = vrot.slane %v10382_v46, 9  ;;  %v12288_v48 = vld [vmem:[%s17015_s0 + $0xa4] sm:$0x1] }
 0x22f   :  { %v15652_v13 = vsel %vm12910_vm7, %v8054_v4, %v8055_v49  ;;  %v10441_v11 = vcombine.low %v15628_v61, %v15640_v54  ;;  %v12286_v4 = vld [vmem:[%s17015_s0 + $0xac] sm:$0xf]  ;;  %v12287_v33 = vld [vmem:[%s17015_s0 + $0xb8] sm:$0xf]  ;;  %v8089_v9 = vrot.slane %v8087_v23, 4  ;;  %v8090_v7 = vrot.slane %v12288_v48, 5 }
 0x230   :  { %11450 = vmatmul.mubr.msk.bf16.gmra.mrb[60].mxu0 %vm981_vm4, %v10338_v58  ;;  %v12277_v58 = vld [vmem:[%s17015_s0 + $0x7c] sm:$0xf]  ;;  %v10442_v6 = vcombine.low %v15644_v42, %v15652_v13  ;;  %v8094_v59 = vrot.slane %v12286_v4, 5  ;;  %v8101_v20 = vrot.slane %v12287_v33, 5  ;;  %v10415_v37 = vrot.slane %v10383_v47, 9 }
 0x231   :  { %11455 = vmatprep.mubr.msk.bf16.mxu0 %vm981_vm4, %v10436_v17  ;;  %v8066_v28 = vrot.slane %v12277_v58, 5  ;;  %v12279_v17 = vld [vmem:[%s17015_s0 + $0x88] sm:$0xf]  ;;  %v10416_v24 = vrot.slane %v10384_v50, 9  ;;  %v3954_v32 = vrot.slane %v3952_v19, 4  ;;  %v3957_v58 = vrot.slane %v3955_v26, 5 }
 0x232   :  { %v12292_v22 = vld [vmem:[%s17015_s0 + $0xd0] sm:$0xf]  ;;  %v15779_v57 = vsel %vm12910_vm7, %v8089_v9, %v8090_v7  ;;  %v10386_v0 = vld [vmem:[%s17015_s0 + $0xcc] sm:$0xe]  ;;  %v12294_v47 = vld [vmem:[%s17015_s0 + $0xec] sm:$0x1] }
 0x233   :  { %11154 = vmatmul.mubr.msk.bf16.gmra.mrb[28].mxu1 %vm981_vm4, %v12122_v36  ;;  %v8062_v36 = vrot.slane %v12278_v3, 5  ;;  %v8068_v16 = vrot.slane %v8066_v28, 4  ;;  %v12128_v3 = vld [vmem:[%s17015_s0 + $0x120] sm:$0xff]   ;;  %v15797_v46 = vsel %vm12910_vm7, %v10416_v24, %v8101_v20  ;;  %v3958_v25 = vor.u32 %v3957_v58, %v3954_v32  ;;  %v10387_v19 = vld [vmem:[%s17015_s0 + $0xf0] sm:$0xe] }
 0x234   :  { %11157 = vmatprep.mubr.msk.bf16.mxu1 %vm981_vm4, %v12123_v56  ;;  %v8073_v56 = vrot.slane %v12279_v17, 5  ;;  %v8096_v17 = vrot.slane %v8094_v59, 4  ;;  %v3971_v50 = vshll.u32 %v12294_v47, 16  ;;  %v12295_v26 = vld [vmem:[%s17015_s0 + $0xc8] sm:$0x1]  ;;  %v10418_v42 = vrot.slane %v10386_v0, 9 }
 0x235   :  { %v15685_v53 = vsel %vm12910_vm7, %v8061_v15, %v8062_v36  ;;  %v15723_v27 = vsel %vm12910_vm7, %v8068_v16, %v8069_v35  ;;  %v15749_v36 = vsel %vm12910_vm7, %v10413_v52, %v8080_v8  ;;  %v12291_v16 = vld [vmem:[%s17015_s0 + $0xbc] sm:$0x1]  ;;  %v10385_v35 = vld [vmem:[%s17015_s0 + $0xc0] sm:$0xe]  ;;  %v12293_v8 = vld [vmem:[%s17015_s0 + $0xf4] sm:$0xf] }
 0x236   :  { %v8075_v31 = vrot.slane %v8073_v56, 4  ;;  %v15699_v63 = vsel %vm12910_vm7, %v10412_v38, %v8073_v56  ;;  %v10443_v5 = vcombine.low %v15672_v18, %v15685_v53  ;;  %v12289_v56 = vld [vmem:[%s17015_s0 + $0xb0] sm:$0x1]  ;;  %v12290_v38 = vld [vmem:[%s17015_s0 + $0xc4] sm:$0xf]  ;;  %v8104_v43 = vrot.slane %v12291_v16, 5 }
 0x237   :  { %v8122_v52 = vrot.slane %v12293_v8, 5  ;;  %v10417_v54 = vrot.slane %v10385_v35, 9  ;;  %v3959_v33 = vrot.slane %v3958_v25, 4  ;;  %v3973_v9 = vrot.slane %v3971_v50, 5  ;;  %v9845_v48 = vld [vmem:[%s17015_s0 + $0xfc] sm:$0xf] }
 0x238   :  { %11456 = vmatmul.mubr.msk.bf16.vlgmr.msra.gmra.mrb[0].mxu0 %vm981_vm4, %v10437_v62  ;;  %v15695_v62 = vsel %vm12910_vm7, %v10411_v10, %v8066_v28  ;;  %v15734_v49 = vsel %vm12910_vm7, %v8075_v31, %v8076_v60  ;;  %v8097_v10 = vrot.slane %v12289_v56, 5  ;;  %v15775_v31 = vsel %vm12910_vm7, %v10414_v44, %v8087_v23  ;;  %v12131_v32 = vld [vmem:[%s17015_s0 + $0x144] sm:$0xff]   ;;  %v12298_v35 = vld [vmem:[%s17015_s0 + $0x100] sm:$0xf] }
 0x239   :  { %11459 = vmatprep.mubr.msk.bf16.mxu0 %vm981_vm4, %v10438_v1  ;;  %v15783_v60 = vsel %vm12910_vm7, %v10415_v37, %v8094_v59  ;;  %v8124_v4 = vrot.slane %v8122_v52, 4  ;;  %v12297_v59 = vld [vmem:[%s17015_s0 + $0xf8] sm:$0x1]  ;;  %v10445_v44 = vcombine.low %v15699_v63, %v15734_v49  ;;  %v10447_v7 = vcombine.low %v15775_v31, %v15779_v57  ;;  %v9848_v56 = vld [vmem:[%s17015_s0 + $0x108] sm:$0xf] }
 0x23a   :  { %v15813_v61 = vsel %vm12910_vm7, %v8096_v17, %v8097_v10  ;;  %v4024_v18 = vshrl.u32 %v9848_v56, 16  ;;  %v4027_v53 = vshll.u32 %v9848_v56, 16  ;;  %v12306_v63 = vld [vmem:[%s17015_s0 + $0x110] sm:$0x1] }
 0x23b   :  { %11158 = vmatmul.mubr.msk.bf16.gmra.mrb[32].mxu1 %vm981_vm4, %v12124_v21  ;;  %v12284_v21 = vld [vmem:[%s17015_s0 + $0xe8] sm:$0xf]  ;;  %v10448_v37 = vcombine.low %v15783_v60, %v15813_v61  ;;  %v8139_v49 = vrot.slane %v12306_v63, 5 }
 0x23c   :  { %11161 = vmatprep.mubr.msk.bf16.mxu1 %vm981_vm4, %v12125_v39  ;;  %v3961_v1 = vshll.u32 %v12284_v21, 16  ;;  %v3965_v14 = vshrl.u32 %v12284_v21, 16  ;;  %v8083_v39 = vrot.slane %v12285_v55, 5  ;;  %v8111_v21 = vrot.slane %v12295_v26, 5 }
 0x23d   :  { %v10444_v55 = vcombine.low %v15695_v62, %v15723_v27  ;;  %v12130_v62 = vld [vmem:[%s17015_s0 + $0x138] sm:$0xff]  }
 0x23e   :  { %v15742_v28 = vrot.slane %v3961_v1, 5  ;;  %v3967_v15 = vrot.slane %v3965_v14, 4  ;;  %v15762_v51 = vsel %vm12910_vm7, %v8082_v40, %v8083_v39  ;;  %v10419_v39 = vrot.slane %v10387_v19, 9  ;;  %v12301_v19 = vld [vmem:[%s17015_s0 + $0x104] sm:$0x1] }
 0x23f   :  { %v8125_v40 = vrot.slane %v12297_v59, 5  ;;  %v10446_v27 = vcombine.low %v15749_v36, %v15762_v51  ;;  %v4026_v59 = vrot.slane %v4024_v18, 4 }
 0x240   :  { %11460 = vmatmul.mubr.msk.bf16.gmra.mrb[4].mxu0 %vm981_vm4, %v10439_v41  ;;  %v8108_v41 = vrot.slane %v12290_v38, 5  ;;  %v3968_v23 = vor.u32 %v3967_v15, %v15742_v28  ;;  %v15871_v10 = vsel %vm12910_vm7, %v10419_v39, %v8122_v52  ;;  %v3964_v16 = vsel %vm12435_vm3, %v3959_v33, %v15742_v28 }
 0x241   :  { %11463 = vmatprep.mubr.msk.bf16.mxu0 %vm981_vm4, %v10440_v29  ;;  %v12129_v29 = vld [vmem:[%s17015_s0 + $0x12c] sm:$0xff]   ;;  %v15875_v38 = vsel %vm12910_vm7, %v8124_v4, %v8125_v40  ;;  %v4029_v40 = vrot.slane %v4027_v53, 5  ;;  %v12305_v53 = vld [vmem:[%s17015_s0 + $0x118] sm:$0xf] }
 0x242   :  { %v15852_v58 = vsel %vm12910_vm7, %v10417_v54, %v8108_v41  ;;  %v10452_v50 = vcombine.low %v15871_v10, %v15875_v38  ;;  %v8132_v54 = vrot.slane %v12301_v19, 5  ;;  %v12132_v4 = vld [vmem:[%s17015_s0 + $0x150] sm:$0xff]  }
 0x243   :  { %11162 = vmatmul.mubr.msk.bf16.gmra.mrb[36].mxu1 %vm981_vm4, %v12126_v45  ;;  %v8103_v45 = vrot.slane %v8101_v20, 4  ;;  %v3969_v20 = vrot.slane %v3968_v23, 4  ;;  %v12300_v23 = vld [vmem:[%s17015_s0 + $0x100] sm:$0xf] }
 0x244   :  { %11165 = vmatprep.mubr.msk.bf16.mxu1 %vm981_vm4, %v12127_v12  ;;  %v8115_v12 = vrot.slane %v12292_v22, 5  ;;  %v4009_v22 = vshll.u32 %v12298_v35, 16  ;;  %v8129_v47 = vrot.slane %v12300_v23, 5  ;;  %v10390_v23 = vld [vmem:[%s17015_s0 + $0x114] sm:$0xe] }
 0x245   :  { %v15821_v1 = vsel %vm12910_vm7, %v8103_v45, %v8104_v43  ;;  %v4003_v45 = vshll.u32 %v9845_v48, 16  ;;  %v3974_v43 = vsel %vm12435_vm3, %v3969_v20, %v3973_v9  ;;  %v12133_v9 = vld [vmem:[%s17015_s0 + $0x15c] sm:$0xff]  }
 0x246   :  { %v8117_v13 = vrot.slane %v8115_v12, 4  ;;  %v10449_v24 = vcombine.low %v15797_v46, %v15821_v1 }
 0x247   :  { %v4005_v26 = vrot.slane %v4003_v45, 5 }
 0x248   :  { %11464 = vmatmul.mubr.msk.bf16.gmra.mrb[8].mxu0 %vm981_vm4, %v10441_v11  ;;  %v8110_v11 = vrot.slane %v8108_v41, 4  ;;  %v10388_v41 = vld [vmem:[%s17015_s0 + $0xfc] sm:$0xe] }
 0x249   :  { %11467 = vmatprep.mubr.msk.bf16.mxu0 %vm981_vm4, %v10442_v6  ;;  %v12296_v6 = vld [vmem:[%s17015_s0 + $0xd4] sm:$0x1]  ;;  %v10420_v25 = vrot.slane %v10388_v41, 9 }
 0x24a   :  { %v8118_v14 = vrot.slane %v12296_v6, 5  ;;  %v15856_v15 = vsel %vm12910_vm7, %v8110_v11, %v8111_v21  ;;  %v9851_v21 = vld [vmem:[%s17015_s0 + $0x114] sm:$0xf] }
 0x24b   :  { %11166 = vmatmul.mubr.msk.bf16.gmra.mrb[40].mxu1 %vm981_vm4, %v12128_v3  ;;  %v15860_v3 = vsel %vm12910_vm7, %v10418_v42, %v8115_v12  ;;  %v4013_v12 = vshrl.u32 %v12298_v35, 16  ;;  %v10450_v8 = vcombine.low %v15852_v58, %v15856_v15  ;;  %v15913_v42 = vcombine.low %v3964_v16, %v3974_v43  ;;  %v12304_v16 = vld [vmem:[%s17015_s0 + $0x118] sm:$0xf]  ;;  %v9863_v15 = vld [vmem:[%s17015_s0 + $0x144] sm:$0xf] }
 0x24c   :  { %11169 = vmatprep.mubr.msk.bf16.mxu1 %vm981_vm4, %v12129_v29  ;;  %v15864_v17 = vsel %vm12910_vm7, %v8117_v13, %v8118_v14  ;;  %v4000_v29 = vshrl.u32 %v9845_v48, 16  ;;  %v15915_v13 = vrot.slane %v4009_v22, 5  ;;  %v10389_v14 = vld [vmem:[%s17015_s0 + $0x108] sm:$0xe]  ;;  %v8131_v48 = vrot.slane %v8129_v47, 4 }
 0x24d   :  { %v10451_v52 = vcombine.low %v15860_v3, %v15864_v17  ;;  %v4015_v6 = vrot.slane %v4013_v12, 4  ;;  %v4048_v56 = vshrl.u32 %v9851_v21, 16  ;;  %v4051_v41 = vshll.u32 %v9851_v21, 16 }
 0x24e   :  { %v4002_v11 = vrot.slane %v4000_v29, 4  ;;  %v10421_v45 = vrot.slane %v10389_v14, 9  ;;  %v4057_v43 = vshll.u32 %v12304_v16, 16  ;;  %v4061_v35 = vshrl.u32 %v12304_v16, 16 }
 0x24f   :  { %v15943_v22 = vsel %vm12910_vm7, %v10420_v25, %v8129_v47  ;;  %v4016_v12 = vor.u32 %v4015_v6, %v15915_v13  ;;  %v15967_v36 = vsel %vm12910_vm7, %v8131_v48, %v8132_v54  ;;  %v4053_v47 = vrot.slane %v4051_v41, 5  ;;  %v9854_v6 = vld [vmem:[%s17015_s0 + $0x120] sm:$0xf]  ;;  %v12308_v54 = vld [vmem:[%s17015_s0 + $0x11c] sm:$0x1] }
 0x250   :  { %11468 = vmatmul.mubr.msk.bf16.gmra.mrb[12].mxu0 %vm981_vm4, %v10443_v5  ;;  %v12299_v5 = vld [vmem:[%s17015_s0 + $0x10c] sm:$0xf]  ;;  %v4006_v29 = vor.u32 %v4005_v26, %v4002_v11  ;;  %v15973_v26 = vrot.slane %v4057_v43, 5  ;;  %v4063_v21 = vrot.slane %v4061_v35, 4  ;;  %v12309_v41 = vld [vmem:[%s17015_s0 + $0x124] sm:$0xf] }
 0x251   :  { %11471 = vmatprep.mubr.msk.bf16.mxu0 %vm981_vm4, %v10444_v55  ;;  %v4033_v28 = vshll.u32 %v12299_v5, 16  ;;  %v4037_v0 = vshrl.u32 %v12299_v5, 16  ;;  %v12302_v55 = vld [vmem:[%s17015_s0 + $0x10c] sm:$0xf]  ;;  %v8143_v5 = vrot.slane %v12305_v53, 5  ;;  %v4017_v14 = vrot.slane %v4016_v12, 4 }
 0x252   :  { %v8136_v39 = vrot.slane %v12302_v55, 5  ;;  %v4007_v19 = vrot.slane %v4006_v29, 4  ;;  %v10422_v55 = vrot.slane %v10390_v23, 9  ;;  %v8150_v29 = vrot.slane %v12309_v41, 5  ;;  %v12310_v35 = vld [vmem:[%s17015_s0 + $0x11c] sm:$0x1] }
 0x253   :  { %11170 = vmatmul.mubr.msk.bf16.gmra.mrb[44].mxu1 %vm981_vm4, %v12130_v62  ;;  %v15926_v33 = vrot.slane %v4033_v28, 5  ;;  %v4039_v20 = vrot.slane %v4037_v0, 4  ;;  %v12303_v62 = vld [vmem:[%s17015_s0 + $0x104] sm:$0x1]  ;;  %v12307_v0 = vld [vmem:[%s17015_s0 + $0x110] sm:$0x1]  ;;  %v4064_v43 = vor.u32 %v4063_v21, %v15973_v26 }
 0x254   :  { %11173 = vmatprep.mubr.msk.bf16.mxu1 %vm981_vm4, %v12131_v32  ;;  %v4019_v32 = vshll.u32 %v12303_v62, 16  ;;  %v8138_v18 = vrot.slane %v8136_v39, 4  ;;  %v4043_v25 = vshll.u32 %v12307_v0, 16  ;;  %v15971_v11 = vsel %vm12910_vm7, %v10421_v45, %v8136_v39  ;;  %v12134_v39 = vld [vmem:[%s17015_s0 + $0x168] sm:$0xff]   ;;  %v12135_v62 = vld [vmem:[%s17015_s0 + $0x174] sm:$0xff]  }
 0x255   :  { %v4040_v28 = vor.u32 %v4039_v20, %v15926_v33  ;;  %v4072_v45 = vshrl.u32 %v9854_v6, 16  ;;  %v4075_v16 = vshll.u32 %v9854_v6, 16  ;;  %v4067_v12 = vshll.u32 %v12310_v35, 16 }
 0x256   :  { %v4021_v51 = vrot.slane %v4019_v32, 5  ;;  %v4045_v48 = vrot.slane %v4043_v25, 5  ;;  %v8152_v23 = vrot.slane %v8150_v29, 4 }
 0x257   :  { %v4074_v60 = vrot.slane %v4072_v45, 4  ;;  %v4077_v61 = vrot.slane %v4075_v16, 5  ;;  %v12314_v16 = vld [vmem:[%s17015_s0 + $0x130] sm:$0xf] }
 0x258   :  { %11472 = vmatmul.mubr.msk.bf16.gmra.mrb[16].mxu0 %vm981_vm4, %v10445_v44  ;;  %v4030_v44 = vor.u32 %v4029_v40, %v4026_v59  ;;  %v8146_v59 = vrot.slane %v12308_v54, 5  ;;  %v15986_v40 = vsel %vm12910_vm7, %v8138_v18, %v8139_v49  ;;  %v12311_v18 = vld [vmem:[%s17015_s0 + $0x124] sm:$0xf]  ;;  %v4012_v49 = vsel %vm12435_vm3, %v4007_v19, %v15915_v13  ;;  %v12312_v13 = vld [vmem:[%s17015_s0 + $0x128] sm:$0x1] }
 0x259   :  { %11475 = vmatprep.mubr.msk.bf16.mxu0 %vm981_vm4, %v10446_v27  ;;  %v4050_v27 = vrot.slane %v4048_v56, 4  ;;  %v10391_v56 = vld [vmem:[%s17015_s0 + $0x120] sm:$0xe]  ;;  %v4081_v53 = vshll.u32 %v12311_v18, 16  ;;  %v4085_v63 = vshrl.u32 %v12311_v18, 16  ;;  %v10453_v19 = vcombine.low %v15943_v22, %v15967_v36 }
 0x25a   :  { %v4031_v20 = vrot.slane %v4030_v44, 4  ;;  %v4022_v44 = vsel %vm12435_vm3, %v4017_v14, %v4021_v51  ;;  %v4069_v51 = vrot.slane %v4067_v12, 5  ;;  %v10454_v6 = vcombine.low %v15971_v11, %v15986_v40  ;;  %v9869_v11 = vld [vmem:[%s17015_s0 + $0x15c] sm:$0xf] }
 0x25b   :  { %11174 = vmatmul.mubr.msk.bf16.gmra.mrb[48].mxu1 %vm981_vm4, %v12132_v4  ;;  %v8145_v4 = vrot.slane %v8143_v5, 4  ;;  %v4054_v32 = vor.u32 %v4053_v47, %v4050_v27  ;;  %v16038_v27 = vrot.slane %v4081_v53, 5  ;;  %v4087_v47 = vrot.slane %v4085_v63, 4  ;;  %v12315_v53 = vld [vmem:[%s17015_s0 + $0x13c] sm:$0xf] }
 0x25c   :  { %11177 = vmatprep.mubr.msk.bf16.mxu1 %vm981_vm4, %v12133_v9  ;;  %v4041_v9 = vrot.slane %v4040_v28, 4  ;;  %v16015_v28 = vsel %vm12910_vm7, %v10422_v55, %v8143_v5  ;;  %v4036_v31 = vsel %vm12435_vm3, %v4031_v20, %v15926_v33  ;;  %v8153_v5 = vrot.slane %v12312_v13, 5  ;;  %v12136_v55 = vld [vmem:[%s17015_s0 + $0x180] sm:$0xff]   ;;  %v9860_v20 = vld [vmem:[%s17015_s0 + $0x138] sm:$0xf] }
 0x25d   :  { %v16019_v0 = vsel %vm12910_vm7, %v8145_v4, %v8146_v59  ;;  %v4055_v25 = vrot.slane %v4054_v32, 4  ;;  %v4065_v33 = vrot.slane %v4064_v43, 4  ;;  %v16042_v21 = vcombine.low %v4012_v49, %v4022_v44  ;;  %v12316_v13 = vld [vmem:[%s17015_s0 + $0x130] sm:$0xf] }
 0x25e   :  { %v4046_v57 = vsel %vm12435_vm3, %v4041_v9, %v4045_v48  ;;  %v10455_v14 = vcombine.low %v16015_v28, %v16019_v0  ;;  %v12137_v9 = vld [vmem:[%s17015_s0 + $0x18c] sm:$0xff]   ;;  %v4078_v32 = vor.u32 %v4077_v61, %v4074_v60  ;;  %v4105_v43 = vshll.u32 %v12314_v16, 16  ;;  %v10393_v61 = vld [vmem:[%s17015_s0 + $0x138] sm:$0xe] }
 0x25f   :  { %v16051_v4 = vcombine.low %v4036_v31, %v4046_v57  ;;  %v4060_v48 = vsel %vm12435_vm3, %v4055_v25, %v15973_v26  ;;  %v4070_v45 = vsel %vm12435_vm3, %v4065_v33, %v4069_v51  ;;  %v4088_v26 = vor.u32 %v4087_v47, %v16038_v27 }
 0x260   :  { %11476 = vmatmul.mubr.msk.bf16.gmra.mrb[20].mxu0 %vm981_vm4, %v10447_v7  ;;  %v10423_v7 = vrot.slane %v10391_v56, 9  ;;  %v12313_v56 = vld [vmem:[%s17015_s0 + $0x128] sm:$0x1]  ;;  %v4109_v35 = vshrl.u32 %v12314_v16, 16  ;;  %v4120_v12 = vshrl.u32 %v9860_v20, 16  ;;  %v4123_v18 = vshll.u32 %v9860_v20, 16 }
 0x261   :  { %11479 = vmatprep.mubr.msk.bf16.mxu0 %vm981_vm4, %v10448_v37  ;;  %v9857_v37 = vld [vmem:[%s17015_s0 + $0x12c] sm:$0xf]  ;;  %v4091_v41 = vshll.u32 %v12313_v56, 16  ;;  %v4129_v63 = vshll.u32 %v12315_v53, 16  ;;  %v4133_v49 = vshrl.u32 %v12315_v53, 16  ;;  %v16100_v31 = vcombine.low %v4060_v48, %v4070_v45 }
 0x262   :  { %v16055_v54 = vsel %vm12910_vm7, %v10423_v7, %v8150_v29  ;;  %v4096_v59 = vshrl.u32 %v9857_v37, 16  ;;  %v16076_v29 = vld [vmem:[%s17015_s0 + $0x12c] sm:$0xe]  ;;  %v4079_v57 = vrot.slane %v4078_v32, 4  ;;  %v8157_v58 = vrot.slane %v12316_v13, 5 }
 0x263   :  { %11178 = vmatmul.mubr.msk.bf16.gmra.mrb[52].mxu1 %vm981_vm4, %v12134_v39  ;;  %v4099_v39 = vshll.u32 %v9857_v37, 16  ;;  %v10424_v1 = vrot.slane %v16076_v29, 9  ;;  %v4093_v7 = vrot.slane %v4091_v41, 5  ;;  %v4111_v60 = vrot.slane %v4109_v35, 4  ;;  %v12319_v41 = vld [vmem:[%s17015_s0 + $0x148] sm:$0xf] }
 0x264   :  { %11181 = vmatprep.mubr.msk.bf16.mxu1 %vm981_vm4, %v12135_v62  ;;  %v16068_v62 = vsel %vm12910_vm7, %v8152_v23, %v8153_v5  ;;  %v12317_v5 = vld [vmem:[%s17015_s0 + $0x134] sm:$0x1]  ;;  %v16111_v23 = vrot.slane %v4105_v43, 5  ;;  %v4122_v37 = vrot.slane %v4120_v12, 4  ;;  %v4125_v33 = vrot.slane %v4123_v18, 5 }
 0x265   :  { %v10456_v46 = vcombine.low %v16055_v54, %v16068_v62  ;;  %v4101_v44 = vrot.slane %v4099_v39, 5  ;;  %v8160_v25 = vrot.slane %v12317_v5, 5  ;;  %v16116_v51 = vrot.slane %v4129_v63, 5  ;;  %v12318_v39 = vld [vmem:[%s17015_s0 + $0x13c] sm:$0xf] }
 0x266   :  { %v4135_v47 = vrot.slane %v4133_v49, 4  ;;  %v8164_v20 = vrot.slane %v12318_v39, 5  ;;  %v4147_v48 = vshll.u32 %v9863_v15, 16  ;;  %v4084_v32 = vsel %vm12435_vm3, %v4079_v57, %v16038_v27  ;;  %v12320_v43 = vld [vmem:[%s17015_s0 + $0x134] sm:$0x1] }
 0x267   :  { %v8159_v56 = vrot.slane %v8157_v58, 4  ;;  %v4153_v29 = vshll.u32 %v12319_v41, 16  ;;  %v4157_v45 = vshrl.u32 %v12319_v41, 16  ;;  %v4112_v16 = vor.u32 %v4111_v60, %v16111_v23  ;;  %v12321_v27 = vld [vmem:[%s17015_s0 + $0x140] sm:$0x1] }
 0x268   :  { %11480 = vmatmul.mubr.msk.bf16.gmra.mrb[24].mxu0 %vm981_vm4, %v10449_v24  ;;  %v4098_v24 = vrot.slane %v4096_v59, 4  ;;  %v4115_v35 = vshll.u32 %v12320_v43, 16  ;;  %v10425_v12 = vrot.slane %v10393_v61, 9  ;;  %v8167_v18 = vrot.slane %v12321_v27, 5  ;;  %v12322_v49 = vld [vmem:[%s17015_s0 + $0x140] sm:$0x1] }
 0x269   :  { %11483 = vmatprep.mubr.msk.bf16.mxu0 %vm981_vm4, %v10450_v8  ;;  %v4089_v8 = vrot.slane %v4088_v26, 4  ;;  %v4126_v53 = vor.u32 %v4125_v33, %v4122_v37  ;;  %v4136_v63 = vor.u32 %v4135_v47, %v16116_v51  ;;  %v8166_v17 = vrot.slane %v8164_v20, 4  ;;  %v10394_v61 = vld [vmem:[%s17015_s0 + $0x144] sm:$0xe] }
 0x26a   :  { %v4102_v59 = vor.u32 %v4101_v44, %v4098_v24  ;;  %v4139_v24 = vshll.u32 %v12322_v49, 16  ;;  %v4149_v44 = vrot.slane %v4147_v48, 5  ;;  %v16156_v57 = vsel %vm12910_vm7, %v10424_v1, %v8157_v58  ;;  %v9866_v1 = vld [vmem:[%s17015_s0 + $0x150] sm:$0xf] }
 0x26b   :  { %11182 = vmatmul.mubr.msk.bf16.gmra.mrb[56].mxu1 %vm981_vm4, %v12136_v55  ;;  %v12138_v55 = vld [vmem:[%s17015_s0 + $0x198] sm:$0xff]   ;;  %v4094_v26 = vsel %vm12435_vm3, %v4089_v8, %v4093_v7  ;;  %v16160_v7 = vsel %vm12910_vm7, %v8159_v56, %v8160_v25  ;;  %v16162_v13 = vrot.slane %v4153_v29, 5  ;;  %v4159_v10 = vrot.slane %v4157_v45, 4  ;;  %v12323_v8 = vld [vmem:[%s17015_s0 + $0x148] sm:$0xf] }
 0x26c   :  { %11185 = vmatprep.mubr.msk.bf16.mxu1 %vm981_vm4, %v12137_v9  ;;  %v4144_v9 = vshrl.u32 %v9863_v15, 16  ;;  %v4103_v3 = vrot.slane %v4102_v59, 4  ;;  %v16164_v38 = vcombine.low %v4084_v32, %v4094_v26  ;;  %v4117_v15 = vrot.slane %v4115_v35, 5  ;;  %v12326_v45 = vld [vmem:[%s17015_s0 + $0x14c] sm:$0x1] }
 0x26d   :  { %v16174_v58 = vsel %vm12910_vm7, %v10425_v12, %v8164_v20  ;;  %v4127_v5 = vrot.slane %v4126_v53, 4  ;;  %v4137_v25 = vrot.slane %v4136_v63, 4  ;;  %v4141_v60 = vrot.slane %v4139_v24, 5  ;;  %v10395_v20 = vld [vmem:[%s17015_s0 + $0x150] sm:$0xe] }
 0x26e   :  { %v4108_v37 = vsel %vm12435_vm3, %v4103_v3, %v16111_v23  ;;  %v16184_v33 = vsel %vm12910_vm7, %v8166_v17, %v8167_v18  ;;  %v4160_v39 = vor.u32 %v4159_v10, %v16162_v13  ;;  %v12325_v23 = vld [vmem:[%s17015_s0 + $0x154] sm:$0xf]  ;;  %v4168_v48 = vshrl.u32 %v9866_v1, 16  ;;  %v9872_v10 = vld [vmem:[%s17015_s0 + $0x168] sm:$0xf] }
 0x26f   :  { %v4171_v32 = vshll.u32 %v9866_v1, 16  ;;  %v10426_v41 = vrot.slane %v10394_v61, 9  ;;  %v8174_v26 = vrot.slane %v12326_v45, 5  ;;  %v4142_v43 = vsel %vm12435_vm3, %v4137_v25, %v4141_v60  ;;  %v12327_v35 = vld [vmem:[%s17015_s0 + $0x154] sm:$0xf] }
 0x270   :  { %11484 = vmatmul.mubr.msk.bf16.gmra.mrb[28].mxu0 %vm981_vm4, %v10451_v52  ;;  %v4146_v52 = vrot.slane %v4144_v9, 4  ;;  %v8178_v9 = vrot.slane %v12325_v23, 5  ;;  %v4177_v12 = vshll.u32 %v12327_v35, 16  ;;  %v4181_v27 = vshrl.u32 %v12327_v35, 16 }
 0x271   :  { %11487 = vmatprep.mubr.msk.bf16.mxu0 %vm981_vm4, %v10452_v50  ;;  %v4113_v50 = vrot.slane %v4112_v16, 4  ;;  %v4132_v16 = vsel %vm12435_vm3, %v4127_v5, %v16116_v51  ;;  %v12328_v51 = vld [vmem:[%s17015_s0 + $0x158] sm:$0x1]  ;;  %v4161_v53 = vrot.slane %v4160_v39, 4  ;;  %v4170_v49 = vrot.slane %v4168_v48, 4 }
 0x272   :  { %v4150_v47 = vor.u32 %v4149_v44, %v4146_v52  ;;  %v8181_v18 = vrot.slane %v12328_v51, 5  ;;  %v8180_v63 = vrot.slane %v8178_v9, 4  ;;  %v10457_v40 = vcombine.low %v16156_v57, %v16160_v7  ;;  %v12331_v48 = vld [vmem:[%s17015_s0 + $0x160] sm:$0xf]  ;;  %v12338_v7 = vld [vmem:[%s17015_s0 + $0x170] sm:$0x1] }
 0x273   :  { %11186 = vmatmul.mubr.msk.bf16.gmra.mrb[60].mxu1 %vm981_vm4, %v12138_v55  ;;  %v12324_v55 = vld [vmem:[%s17015_s0 + $0x14c] sm:$0x1]  ;;  %v4118_v56 = vsel %vm12435_vm3, %v4113_v50, %v4117_v15  ;;  %v10458_v24 = vcombine.low %v16174_v58, %v16184_v33  ;;  %v16243_v52 = vrot.slane %v4177_v12, 5  ;;  %v4183_v44 = vrot.slane %v4181_v27, 4  ;;  %v12333_v12 = vld [vmem:[%s17015_s0 + $0x164] sm:$0x1] }
 0x274   :  { %11223 = vmatprep.mubr.msk.bf16.mxu1 %vm981_vm4, %v15913_v42  ;;  %v8171_v42 = vrot.slane %v12323_v8, 5  ;;  %v4163_v59 = vshll.u32 %v12324_v55, 16  ;;  %v4151_v22 = vrot.slane %v4150_v47, 4  ;;  %v10396_v8 = vld [vmem:[%s17015_s0 + $0x15c] sm:$0xe]  ;;  %v4195_v1 = vshll.u32 %v9869_v11, 16 }
 0x275   :  { %v16262_v25 = vsel %vm12910_vm7, %v8180_v63, %v8181_v18  ;;  %v4219_v39 = vshll.u32 %v9872_v10, 16  ;;  %v4184_v23 = vor.u32 %v4183_v44, %v16243_v52  ;;  %v8188_v27 = vrot.slane %v12333_v12, 5  ;;  %v10397_v18 = vld [vmem:[%s17015_s0 + $0x168] sm:$0xe] }
 0x276   :  { %v8173_v29 = vrot.slane %v8171_v42, 4  ;;  %v4165_v36 = vrot.slane %v4163_v59, 5  ;;  %v16235_v3 = vsel %vm12910_vm7, %v10426_v41, %v8171_v42  ;;  %v4156_v50 = vsel %vm12435_vm3, %v4151_v22, %v16162_v13  ;;  %v12329_v13 = vld [vmem:[%s17015_s0 + $0x158] sm:$0x1]  ;;  %v12334_v22 = vld [vmem:[%s17015_s0 + $0x164] sm:$0x1] }
 0x277   :  { %v4192_v42 = vshrl.u32 %v9869_v11, 16  ;;  %v4187_v61 = vshll.u32 %v12329_v13, 16  ;;  %v4216_v59 = vshrl.u32 %v9872_v10, 16  ;;  %v4197_v0 = vrot.slane %v4195_v1, 5  ;;  %v12335_v11 = vld [vmem:[%s17015_s0 + $0x178] sm:$0xf] }
 0x278   :  { %11488 = vmatmul.mubr.msk.bf16.gmra.mrb[32].mxu0 %vm981_vm4, %v10453_v19  ;;  %v10427_v19 = vrot.slane %v10395_v20, 9  ;;  %v16241_v17 = vsel %vm12910_vm7, %v8173_v29, %v8174_v26  ;;  %v4166_v5 = vsel %vm12435_vm3, %v4161_v53, %v4165_v36  ;;  %v16304_v35 = vrot.slane %v4184_v23, 4 }
 0x279   :  { %11491 = vmatprep.mubr.msk.bf16.mxu0 %vm981_vm4, %v10454_v6  ;;  %v16229_v6 = vcombine.low %v4108_v37, %v4118_v56  ;;  %v12330_v37 = vld [vmem:[%s17015_s0 + $0x160] sm:$0xf]  ;;  %v10459_v20 = vcombine.low %v16235_v3, %v16241_v17  ;;  %v4194_v28 = vrot.slane %v4192_v42, 4  ;;  %v16291_v29 = vcombine.low %v4156_v50, %v4166_v5  ;;  %v12336_v42 = vld [vmem:[%s17015_s0 + $0x16c] sm:$0xf] }
 0x27a   :  { %v16253_v15 = vsel %vm12910_vm7, %v10427_v19, %v8178_v9  ;;  %v4201_v47 = vshll.u32 %v12330_v37, 16  ;;  %v4205_v55 = vshrl.u32 %v12330_v37, 16  ;;  %v10428_v9 = vrot.slane %v10396_v8, 9  ;;  %v12337_v37 = vld [vmem:[%s17015_s0 + $0x170] sm:$0x1] }
 0x27b   :  { %11224 = vmatmul.mubr.msk.bf16.vlgmr.msra.gmra.mrb[32].mxu1 %vm981_vm4, %v15325_v2  ;;  %v4173_v2 = vrot.slane %v4171_v32, 5  ;;  %v8185_v32 = vrot.slane %v12331_v48, 5  ;;  %v16297_v54 = vrot.slane %v4187_v61, 5  ;;  %v4218_v26 = vrot.slane %v4216_v59, 4 }
 0x27c   :  { %11227 = vmatprep.mubr.msk.bf16.mxu1 %vm981_vm4, %v16042_v21  ;;  %v16237_v21 = vcombine.low %v4132_v16, %v4142_v43  ;;  %v16299_v62 = vrot.slane %v4201_v47, 5  ;;  %v4221_v16 = vrot.slane %v4219_v39, 5  ;;  %v9875_v43 = vld [vmem:[%s17015_s0 + $0x174] sm:$0xf]  ;;  %v4211_v36 = vshll.u32 %v12334_v22, 16 }
 0x27d   :  { %v4174_v60 = vor.u32 %v4173_v2, %v4170_v49  ;;  %v16314_v19 = vsel %vm12910_vm7, %v10428_v9, %v8185_v32  ;;  %v4198_v51 = vor.u32 %v4197_v0, %v4194_v28  ;;  %v4240_v49 = vshrl.u32 %v9875_v43, 16  ;;  %v12339_v39 = vld [vmem:[%s17015_s0 + $0x178] sm:$0xf]  ;;  %v10399_v22 = vld [vmem:[%s17015_s0 + $0x180] sm:$0xe] }
 0x27e   :  { %v4243_v2 = vshll.u32 %v9875_v43, 16  ;;  %v4249_v44 = vshll.u32 %v12335_v11, 16  ;;  %v4253_v10 = vshrl.u32 %v12335_v11, 16  ;;  %v8192_v1 = vrot.slane %v12336_v42, 5  ;;  %v12341_v43 = vld [vmem:[%s17015_s0 + $0x17c] sm:$0x1] }
 0x27f   :  { %v16295_v45 = vrot.slane %v4174_v60, 4  ;;  %v4222_v5 = vor.u32 %v4221_v16, %v4218_v26  ;;  %v16340_v13 = vrot.slane %v4211_v36, 5  ;;  %v10429_v61 = vrot.slane %v10397_v18, 9  ;;  %v12340_v26 = vld [vmem:[%s17015_s0 + $0x17c] sm:$0x1] }
 0x280   :  { %11492 = vmatmul.mubr.msk.bf16.gmra.mrb[36].mxu0 %vm981_vm4, %v10455_v14  ;;  %v12332_v14 = vld [vmem:[%s17015_s0 + $0x16c] sm:$0xf]  ;;  %v4235_v47 = vshll.u32 %v12337_v37, 16  ;;  %v16354_v57 = vrot.slane %v4198_v51, 4  ;;  %v8199_v23 = vrot.slane %v12339_v39, 5  ;;  %v4245_v58 = vrot.slane %v4243_v2, 5 }
 0x281   :  { %11495 = vmatprep.mubr.msk.bf16.mxu0 %vm981_vm4, %v10456_v46  ;;  %v4225_v56 = vshll.u32 %v12332_v14, 16  ;;  %v4229_v41 = vshrl.u32 %v12332_v14, 16  ;;  %v4207_v46 = vrot.slane %v4205_v55, 4  ;;  %v4180_v50 = vsel %vm12435_vm3, %v16295_v45, %v16243_v52  ;;  %v10398_v55 = vld [vmem:[%s17015_s0 + $0x174] sm:$0xe] }
 0x282   :  { %v16365_v33 = vrot.slane %v4249_v44, 5  ;;  %v8194_v48 = vrot.slane %v8192_v1, 4  ;;  %v10430_v28 = vrot.slane %v10398_v55, 9  ;;  %v4190_v0 = vsel %vm12435_vm3, %v16304_v35, %v16297_v54  ;;  %v9878_v35 = vld [vmem:[%s17015_s0 + $0x180] sm:$0xf] }
 0x283   :  { %11228 = vmatmul.mubr.msk.bf16.gmra.mrb[36].mxu1 %vm981_vm4, %v16051_v4  ;;  %v10460_v4 = vcombine.low %v16253_v15, %v16262_v25  ;;  %v16319_v53 = vrot.slane %v4225_v56, 5  ;;  %v4231_v63 = vrot.slane %v4229_v41, 4  ;;  %v4208_v8 = vor.u32 %v4207_v46, %v16299_v62  ;;  %v12342_v36 = vld [vmem:[%s17015_s0 + $0x184] sm:$0xf]  ;;  %v12344_v15 = vld [vmem:[%s17015_s0 + $0x188] sm:$0x1] }
 0x284   :  { %11231 = vmatprep.mubr.msk.bf16.mxu1 %vm981_vm4, %v16100_v31  ;;  %v8187_v31 = vrot.slane %v8185_v32, 4  ;;  %v4223_v32 = vrot.slane %v4222_v5, 4  ;;  %v4237_v56 = vrot.slane %v4235_v47, 5  ;;  %v8201_v46 = vrot.slane %v8199_v23, 4  ;;  %v12343_v11 = vld [vmem:[%s17015_s0 + $0x184] sm:$0xf] }
 0x285   :  { %v4232_v59 = vor.u32 %v4231_v63, %v16319_v53  ;;  %v4209_v9 = vrot.slane %v4208_v8, 4  ;;  %v8202_v16 = vrot.slane %v12340_v26, 5  ;;  %v4259_v54 = vshll.u32 %v12341_v43, 16  ;;  %v10400_v52 = vld [vmem:[%s17015_s0 + $0x18c] sm:$0xe] }
 0x286   :  { %v16338_v60 = vsel %vm12910_vm7, %v8187_v31, %v8188_v27  ;;  %v4204_v31 = vsel %vm12435_vm3, %v16354_v57, %v16299_v62  ;;  %v4228_v62 = vsel %vm12435_vm3, %v4223_v32, %v16319_v53  ;;  %v16407_v63 = vsel %vm12910_vm7, %v10430_v28, %v8199_v23  ;;  %v9881_v53 = vld [vmem:[%s17015_s0 + $0x18c] sm:$0xf]  ;;  %v12348_v26 = vld [vmem:[%s17015_s0 + $0x19c] sm:$0xf]  ;;  %v10401_v43 = vld [vmem:[%s17015_s0 + $0x198] sm:$0xe] }
 0x287   :  { %v10461_v14 = vcombine.low %v16314_v19, %v16338_v60  ;;  %v4233_v41 = vrot.slane %v4232_v59, 4  ;;  %v8206_v19 = vrot.slane %v12342_v36, 5  ;;  %v4214_v51 = vsel %vm12435_vm3, %v4209_v9, %v16340_v13  ;;  %v12345_v60 = vld [vmem:[%s17015_s0 + $0x190] sm:$0xf] }
 0x288   :  { %11496 = vmatmul.mubr.msk.bf16.gmra.mrb[40].mxu0 %vm981_vm4, %v10457_v40  ;;  %v8195_v40 = vrot.slane %v12338_v7, 5  ;;  %v4267_v2 = vshll.u32 %v9878_v35, 16  ;;  %v4273_v44 = vshll.u32 %v12343_v11, 16  ;;  %v16429_v17 = vsel %vm12910_vm7, %v8201_v46, %v8202_v16 }
 0x289   :  { %11499 = vmatprep.mubr.msk.bf16.mxu0 %vm981_vm4, %v10458_v24  ;;  %v4255_v24 = vrot.slane %v4253_v10, 4  ;;  %v4277_v10 = vshrl.u32 %v12343_v11, 16  ;;  %v4238_v3 = vsel %vm12435_vm3, %v4233_v41, %v4237_v56  ;;  %v10431_v8 = vrot.slane %v10399_v22, 9 }
 0x28a   :  { %v8196_v18 = vsel %vm12910_vm7, %v8194_v48, %v8195_v40  ;;  %v8209_v25 = vrot.slane %v12344_v15, 5  ;;  %v4291_v5 = vshll.u32 %v9881_v53, 16  ;;  %v4297_v13 = vshll.u32 %v12345_v60, 16  ;;  %v9884_v48 = vld [vmem:[%s17015_s0 + $0x198] sm:$0xf] }
 0x28b   :  { %11232 = vmatmul.mubr.msk.bf16.gmra.mrb[40].mxu1 %vm981_vm4, %v16164_v38  ;;  %v4242_v38 = vrot.slane %v4240_v49, 4  ;;  %v4256_v27 = vor.u32 %v4255_v24, %v16365_v33  ;;  %v4264_v49 = vshrl.u32 %v9878_v35, 16  ;;  %v4269_v47 = vrot.slane %v4267_v2, 5  ;;  %v12351_v2 = vld [vmem:[%s17015_s0 + $0x194] sm:$0x1] }
 0x28c   :  { %11235 = vmatprep.mubr.msk.bf16.mxu1 %vm981_vm4, %v16229_v6  ;;  %v16375_v6 = vsel %vm12910_vm7, %v10429_v61, %v8192_v1  ;;  %v4301_v61 = vshrl.u32 %v12345_v60, 16  ;;  %v16439_v55 = vrot.slane %v4273_v44, 5  ;;  %v9913_v57 = vcombine.low %v4180_v50, %v4190_v0  ;;  %v12346_v0 = vld [vmem:[%s17015_s0 + $0x188] sm:$0x1] }
 0x28d   :  { %v4246_v12 = vor.u32 %v4245_v58, %v4242_v38  ;;  %v4257_v1 = vrot.slane %v4256_v27, 4  ;;  %v4266_v37 = vrot.slane %v4264_v49, 4  ;;  %v9914_v7 = vcombine.low %v4204_v31, %v4214_v51  ;;  %v12349_v31 = vld [vmem:[%s17015_s0 + $0x19c] sm:$0xf]  ;;  %v12350_v51 = vld [vmem:[%s17015_s0 + $0x194] sm:$0x1] }
 0x28e   :  { %v10462_v40 = vcombine.low %v16375_v6, %v8196_v18  ;;  %v9915_v59 = vcombine.low %v4228_v62, %v4238_v3  ;;  %v10463_v39 = vcombine.low %v16407_v63, %v16429_v17  ;;  %v8207_v38 = vsel %vm12910_vm7, %v10431_v8, %v8206_v19  ;;  %v12352_v3 = vld [vmem:[%s17015_s0 + $0x1a0] sm:$0x1] }
 0x28f   :  { %v4247_v42 = vrot.slane %v4246_v12, 4  ;;  %v4293_v50 = vrot.slane %v4291_v5, 5  ;;  %v16459_v24 = vrot.slane %v4297_v13, 5  ;;  %v4303_v9 = vrot.slane %v4301_v61, 4 }
 0x290   :  { %11500 = vmatmul.mubr.msk.bf16.gmra.mrb[44].mxu0 %vm981_vm4, %v10459_v20  ;;  %v4261_v20 = vrot.slane %v4259_v54, 5  ;;  %v4270_v32 = vor.u32 %v4269_v47, %v4266_v37  ;;  %v4283_v6 = vshll.u32 %v12346_v0, 16  ;;  %v10432_v41 = vrot.slane %v10400_v52, 9  ;;  %v12353_v37 = vld [vmem:[%s17015_s0 + $0x1a8] sm:$0xf] }
 0x291   :  { %11503 = vmatprep.mubr.msk.bf16.mxu0 %vm981_vm4, %v10460_v4  ;;  %v4288_v4 = vshrl.u32 %v9881_v53, 16  ;;  %v4252_v23 = vsel %vm12435_vm3, %v4247_v42, %v16365_v33  ;;  %v8220_v16 = vrot.slane %v12348_v26, 5  ;;  %v4312_v54 = vshrl.u32 %v9884_v48, 16 }
 0x292   :  { %v4262_v33 = vsel %vm12435_vm3, %v4257_v1, %v4261_v20  ;;  %v4315_v35 = vshll.u32 %v9884_v48, 16  ;;  %v4321_v12 = vshll.u32 %v12349_v31, 16  ;;  %v4325_v27 = vshrl.u32 %v12349_v31, 16 }
 0x293   :  { %11236 = vmatmul.mubr.msk.bf16.gmra.mrb[44].mxu1 %vm981_vm4, %v16237_v21  ;;  %v8208_v21 = vrot.slane %v8206_v19, 4  ;;  %v4290_v45 = vrot.slane %v4288_v4, 4  ;;  %v9916_v22 = vcombine.low %v4252_v23, %v4262_v33  ;;  %v4304_v19 = vor.u32 %v4303_v9, %v16459_v24  ;;  %v12355_v9 = vld [vmem:[%s17015_s0 + $0x1ac] sm:$0x1] }
 0x294   :  { %11239 = vmatprep.mubr.msk.bf16.mxu1 %vm981_vm4, %v16291_v29  ;;  %v4279_v29 = vrot.slane %v4277_v10, 4  ;;  %v4307_v18 = vshll.u32 %v12350_v51, 16  ;;  %v4271_v62 = vrot.slane %v4270_v32, 4  ;;  %v4285_v49 = vrot.slane %v4283_v6, 5 }
 0x295   :  { %v8210_v58 = vsel %vm12910_vm7, %v8208_v21, %v8209_v25  ;;  %v4294_v36 = vor.u32 %v4293_v50, %v4290_v45  ;;  %v8216_v11 = vrot.slane %v12351_v2, 5  ;;  %v10433_v10 = vrot.slane %v10401_v43, 9 }
 0x296   :  { %v4280_v28 = vor.u32 %v4279_v29, %v16439_v55  ;;  %v10464_v56 = vcombine.low %v8207_v38, %v8210_v58  ;;  %v8222_v53 = vrot.slane %v8220_v16, 4  ;;  %v8223_v17 = vrot.slane %v12352_v3, 5 }
 0x297   :  { %v4314_v20 = vrot.slane %v4312_v54, 4  ;;  %v4317_v8 = vrot.slane %v4315_v35, 5  ;;  %v4323_v42 = vrot.slane %v4321_v12, 5  ;;  %v4327_v1 = vrot.slane %v4325_v27, 4 }
 0x298   :  { %11504 = vmatmul.mubr.msk.bf16.gmra.mrb[48].mxu0 %vm981_vm4, %v10461_v14  ;;  %v12347_v14 = vld [vmem:[%s17015_s0 + $0x190] sm:$0xf]  ;;  %v4281_v63 = vrot.slane %v4280_v28, 4  ;;  %v4295_v21 = vrot.slane %v4294_v36, 4  ;;  %v4305_v15 = vrot.slane %v4304_v19, 4  ;;  %v4309_v25 = vrot.slane %v4307_v18, 5 }
 0x299   :  { %11507 = vmatprep.mubr.msk.bf16.mxu0 %vm981_vm4, %v10462_v40  ;;  %v8213_v46 = vrot.slane %v12347_v14, 5  ;;  %v4276_v4 = vsel %vm12435_vm3, %v4271_v62, %v16439_v55  ;;  %v8221_v61 = vsel %vm12910_vm7, %v10433_v10, %v8220_v16  ;;  %v8227_v47 = vrot.slane %v12353_v37, 5 }
 0x29a   :  { %v4286_v60 = vsel %vm12435_vm3, %v4281_v63, %v4285_v49  ;;  %v8224_v55 = vsel %vm12910_vm7, %v8222_v53, %v8223_v17  ;;  %v4318_v29 = vor.u32 %v4317_v8, %v4314_v20  ;;  %v4310_v23 = vsel %vm12435_vm3, %v4305_v15, %v4309_v25 }
 0x29b   :  { %11240 = vmatmul.mubr.msk.bf16.gmra.mrb[48].mxu1 %vm981_vm4, %v9913_v57  ;;  %v8215_v44 = vrot.slane %v8213_v46, 4  ;;  %v8214_v5 = vsel %vm12910_vm7, %v10432_v41, %v8213_v46  ;;  %v4328_v57 = vor.u32 %v4327_v1, %v4323_v42  ;;  %v9917_v38 = vcombine.low %v4276_v4, %v4286_v60 }
 0x29c   :  { %11243 = vmatprep.mubr.msk.bf16.mxu1 %vm981_vm4, %v9914_v7  ;;  %v12354_v7 = vld [vmem:[%s17015_s0 + $0x1a0] sm:$0x1]  ;;  %v10466_v52 = vcombine.low %v8221_v61, %v8224_v55  ;;  %v8229_v50 = vrot.slane %v8227_v47, 4  ;;  %v8230_v48 = vrot.slane %v12355_v9, 5  ;;  %v4319_v32 = vrot.slane %v4318_v29, 4 }
 0x29d   :  { %v8217_v13 = vsel %vm12910_vm7, %v8215_v44, %v8216_v11  ;;  %v4331_v40 = vshll.u32 %v12354_v7, 16  ;;  %v4329_v28 = vrot.slane %v4328_v57, 4 }
 0x29e   :  { %v10465_v58 = vcombine.low %v8214_v5, %v8217_v13  ;;  %v8231_v6 = vsel %vm12910_vm7, %v8229_v50, %v8230_v48 }
 0x29f   :  { %v4333_v0 = vrot.slane %v4331_v40, 5 }
 0x2a0   :  { %11508 = vmatmul.mubr.msk.bf16.gmra.mrb[52].mxu0 %vm981_vm4, %v10463_v39  ;;  %v4300_v39 = vsel %vm12435_vm3, %v4295_v21, %v16459_v24 }
 0x2a1   :  { %11511 = vmatprep.mubr.msk.bf16.mxu0 %vm981_vm4, %v10464_v56  ;;  %v9918_v33 = vcombine.low %v4300_v39, %v4310_v23  ;;  %v4324_v56 = vsel %vm12435_vm3, %v4319_v32, %v4323_v42  ;;  %v4334_v41 = vsel %vm12435_vm3, %v4329_v28, %v4333_v0 }
 0x2a2   :  { %v9919_v46 = vcombine.low %v4324_v56, %v4334_v41 }
 0x2a3   :  { %11244 = vmatmul.mubr.msk.bf16.gmra.mrb[52].mxu1 %vm981_vm4, %v9915_v59  ;;  %v10402_v59 = vld [vmem:[%s17015_s0 + $0x1a4] sm:$0xe] }
 0x2a4   :  { %11247 = vmatprep.mubr.msk.bf16.mxu1 %vm981_vm4, %v9916_v22  ;;  %v10434_v45 = vrot.slane %v10402_v59, 9 }
 0x2a6   :  { %v8228_v24 = vsel %vm12910_vm7, %v10434_v45, %v8227_v47 }
 0x2a7   :  { %v10467_v14 = vcombine.low %v8228_v24, %v8231_v6 }
 0x2a8   :  { %11512 = vmatmul.mubr.msk.bf16.gmra.mrb[56].mxu0 %vm981_vm4, %v10465_v58 }
 0x2a9   :  { %11515 = vmatprep.mubr.msk.bf16.mxu0 %vm981_vm4, %v10466_v52 }
 0x2ab   :  { %11248 = vmatmul.mubr.msk.bf16.gmra.mrb[56].mxu1 %vm981_vm4, %v9917_v38 }
 0x2ac   :  { %11251 = vmatprep.mubr.msk.bf16.mxu1 %vm981_vm4, %v9918_v33 }
 0x2b0   :  { %11516 = vmatmul.mubr.msk.bf16.gmra.mrb[60].mxu0 %vm981_vm4, %v10467_v14 }
 0x2b3   :  { %11252 = vmatmul.mubr.msk.bf16.gmra.mrb[60].mxu1 %vm981_vm4, %v9919_v46 }
 0x2ce   :  { %v11127_v26 = vpop.f32.mrb[0].mxu1 }
 0x2cf   :  { %v3152_v16 = vpop.f32.mrb[1].mxu1 }
 0x2d0   :  { %v11128_v43 = vpop.f32.mrb[2].mxu1 }
 0x2d1   :  { %v3155_v54 = vpop.f32.mrb[3].mxu1 }
 0x2d6   :  { %v11131_v34 = vpop.f32.mrb[4].mxu1 }
 0x2d7   :  { %v3168_v35 = vpop.f32.mrb[5].mxu1 }
 0x2d8   :  { %v16544_v31 = vpop.f32.mrb[6].mxu1 }
 0x2d9   :  { %v16546_v12 = vpop.f32.mrb[7].mxu1 }
 0x2de   :  { %v16548_v27 = vpop.f32.mrb[8].mxu1 }
 0x2df   :  { %v16550_v30 = vpop.f32.mrb[9].mxu1 }
 0x2e0   :  { %v16552_v22 = vpop.f32.mrb[10].mxu1 }
 0x2e1   :  { %v16554_v36 = vpop.f32.mrb[11].mxu1 }
 0x2e6   :  { %v16556_v19 = vpop.f32.mrb[12].mxu1 }
 0x2e7   :  { %v16558_v51 = vpop.f32.mrb[13].mxu1 }
 0x2e8   :  { %v16560_v18 = vpop.f32.mrb[14].mxu1 }
 0x2e9   :  { %v16562_v62 = vpop.f32.mrb[15].mxu1 }
 0x2ee   :  { %v16564_v63 = vpop.f32.mrb[16].mxu1 }
 0x2ef   :  { %v16566_v49 = vpop.f32.mrb[17].mxu1 }
 0x2f0   :  { %v16568_v2 = vpop.f32.mrb[18].mxu1 }
 0x2f1   :  { %v16570_v11 = vpop.f32.mrb[19].mxu1 }
 0x2f6   :  { %v16572_v44 = vpop.f32.mrb[20].mxu1 }
 0x2f7   :  { %v16574_v10 = vpop.f32.mrb[21].mxu1 }
 0x2f8   :  { %v16576_v53 = vpop.f32.mrb[22].mxu1 }
 0x2f9   :  { %v16578_v3 = vpop.f32.mrb[23].mxu1 }
 0x2fe   :  { %v16580_v17 = vpop.f32.mrb[24].mxu1 }
 0x2ff   :  { %v16582_v20 = vpop.f32.mrb[25].mxu1 }
 0x300   :  { %v16584_v8 = vpop.f32.mrb[26].mxu1 }
 0x301   :  { %v16586_v42 = vpop.f32.mrb[27].mxu1 }
 0x306   :  { %v16588_v1 = vpop.f32.mrb[28].mxu1 }
 0x307   :  { %v16590_v21 = vpop.f32.mrb[29].mxu1 }
 0x308   :  { %v16592_v15 = vpop.f32.mrb[30].mxu1 }
 0x309   :  { %v16594_v25 = vpop.f32.mrb[31].mxu1 }
 0x30b   :  { %v11457_v4 = vpop.f32.mrb[0].mxu0 }
 0x30c   :  { %v11521_v5 = vadd.f32 %v11457_v4, %v11127_v26  ;;  %v8463_v60 = vpop.f32.mrb[1].mxu0 }
 0x30d   :  { %v11522_v13 = vadd.f32 %v8463_v60, %v3152_v16  ;;  %v11458_v61 = vpop.f32.mrb[2].mxu0 }
 0x30e   :  { %v10566_v37 = vpack.c.bf16 %v11521_v5, %v11521_v5  ;;  %v11523_v47 = vadd.f32 %v11458_v61, %v11128_v43  ;;  %v8466_v55 = vpop.f32.mrb[3].mxu0  ;;  %v9233_v40 = vmul.f32 %v11521_v5, %v11521_v5  ;;  %v9107_v50 = vsel %vm9103_vm9, %v11521_v5, 0.0 }
 0x30f   :  { %v10564_v29 = vpack.c.bf16 %v11522_v13, %v11522_v13  ;;  %v9231_v57 = vmul.f32 %v11522_v13, %v11522_v13  ;;  %v11524_v7 = vadd.f32 %v8466_v55, %v3155_v54  ;;  %v9104_v39 = vsel %vm9103_vm9, %v11522_v13, 0.0 }
 0x310   :  { %9041 = vst.msk [vmem:[%s17016_s2 + $0x8] sm:$0xf] %vm9038_vm8, %v10566_v37  ;;  %v10567_v59 = vpack.c.bf16 %v11523_v47, %v11523_v47  ;;  %v9234_v52 = vmul.f32 %v11523_v47, %v11523_v47  ;;  %v9298_v6 = vsel %vm9103_vm9, %v9233_v40, 0.0  ;;  %v9109_v14 = vsel %vm9103_vm9, %v11523_v47, 0.0 }
 0x311   :  { %9039 = vst.msk [vmem:[%s17016_s2] sm:$0xf] %vm9038_vm8, %v10564_v29  ;;  %v10565_v23 = vpack.c.bf16 %v11524_v7, %v11524_v7  ;;  %v9105_v38 = vsel %vm9103_vm9, %v11524_v7, 0.0  ;;  %v9232_v58 = vmul.f32 %v11524_v7, %v11524_v7  ;;  %v9295_v9 = vsel %vm9103_vm9, %v9231_v57, 0.0 }
 0x312   :  { %9042 = vst.msk [vmem:[%s17016_s2 + $0xc] sm:$0xf] %vm9038_vm8, %v10567_v59  ;;  %v9106_v45 = vadd.f32 %v9105_v38, %v9104_v39  ;;  %v9300_v46 = vsel %vm9103_vm9, %v9234_v52, 0.0 }
 0x313   :  { %9040 = vst.msk [vmem:[%s17016_s2 + $0x4] sm:$0xf] %vm9038_vm8, %v10565_v23  ;;  %v9296_v48 = vsel %vm9103_vm9, %v9232_v58, 0.0  ;;  %v11461_v33 = vpop.f32.mrb[4].mxu0 }
 0x314   :  { %v9108_v32 = vadd.f32 %v9107_v50, %v9106_v45  ;;  %v9297_v28 = vadd.f32 %v9296_v48, %v9295_v9  ;;  %v11525_v0 = vadd.f32 %v11461_v33, %v11131_v34  ;;  %v8479_v24 = vpop.f32.mrb[5].mxu0 }
 0x315   :  { %v11526_v56 = vadd.f32 %v8479_v24, %v3168_v35  ;;  %v11462_v41 = vpop.f32.mrb[6].mxu0 }
 0x316   :  { %v9299_v26 = vadd.f32 %v9298_v6, %v9297_v28  ;;  %v10570_v16 = vpack.c.bf16 %v11525_v0, %v11525_v0  ;;  %v8482_v43 = vpop.f32.mrb[7].mxu0  ;;  %v9110_v4 = vadd.f32 %v9109_v14, %v9108_v32  ;;  %v11527_v35 = vadd.f32 %v11462_v41, %v16544_v31 }
 0x317   :  { %v10568_v54 = vpack.c.bf16 %v11526_v56, %v11526_v56  ;;  %v9111_v5 = vsel %vm9103_vm9, %v11526_v56, 0.0  ;;  %v9235_v60 = vmul.f32 %v11526_v56, %v11526_v56  ;;  %v11528_v13 = vadd.f32 %v8482_v43, %v16546_v12 }
 0x318   :  { %9045 = vst.msk [vmem:[%s17016_s2 + $0x18] sm:$0xf] %vm9038_vm8, %v10570_v16  ;;  %v9301_v34 = vadd.f32 %v9300_v46, %v9299_v26  ;;  %v9112_v61 = vadd.f32 %v9111_v5, %v9110_v4  ;;  %v9237_v47 = vmul.f32 %v11525_v0, %v11525_v0  ;;  %v10571_v29 = vpack.c.bf16 %v11527_v35, %v11527_v35 }
 0x319   :  { %9043 = vst.msk [vmem:[%s17016_s2 + $0x10] sm:$0xf] %vm9038_vm8, %v10568_v54  ;;  %v9302_v37 = vsel %vm9103_vm9, %v9235_v60, 0.0  ;;  %v10569_v57 = vpack.c.bf16 %v11528_v13, %v11528_v13  ;;  %v9113_v7 = vsel %vm9103_vm9, %v11528_v13, 0.0  ;;  %v9236_v40 = vmul.f32 %v11528_v13, %v11528_v13 }
 0x31a   :  { %v9303_v55 = vadd.f32 %v9302_v37, %v9301_v34  ;;  %9046 = vst.msk [vmem:[%s17016_s2 + $0x1c] sm:$0xf] %vm9038_vm8, %v10571_v29  ;;  %v9114_v31 = vadd.f32 %v9113_v7, %v9112_v61  ;;  %v9115_v23 = vsel %vm9103_vm9, %v11525_v0, 0.0  ;;  %v9238_v38 = vmul.f32 %v11527_v35, %v11527_v35 }
 0x31b   :  { %v11465_v59 = vpop.f32.mrb[8].mxu0  ;;  %9044 = vst.msk [vmem:[%s17016_s2 + $0x14] sm:$0xf] %vm9038_vm8, %v10569_v57  ;;  %v9304_v58 = vsel %vm9103_vm9, %v9236_v40, 0.0  ;;  %v9306_v50 = vsel %vm9103_vm9, %v9237_v47, 0.0  ;;  %v9117_v32 = vsel %vm9103_vm9, %v11527_v35, 0.0 }
 0x31c   :  { %v11529_v12 = vadd.f32 %v11465_v59, %v16548_v27  ;;  %v8495_v39 = vpop.f32.mrb[9].mxu0  ;;  %v9116_v9 = vadd.f32 %v9115_v23, %v9114_v31  ;;  %v9305_v48 = vadd.f32 %v9304_v58, %v9303_v55  ;;  %v9308_v14 = vsel %vm9103_vm9, %v9238_v38, 0.0 }
 0x31d   :  { %v11530_v52 = vadd.f32 %v8495_v39, %v16550_v30  ;;  %v11466_v45 = vpop.f32.mrb[10].mxu0 }
 0x31e   :  { %v10574_v33 = vpack.c.bf16 %v11529_v12, %v11529_v12  ;;  %v8498_v27 = vpop.f32.mrb[11].mxu0  ;;  %v9307_v6 = vadd.f32 %v9306_v50, %v9305_v48  ;;  %v9118_v30 = vadd.f32 %v9117_v32, %v9116_v9  ;;  %v11531_v56 = vadd.f32 %v11466_v45, %v16552_v22 }
 0x31f   :  { %v10572_v28 = vpack.c.bf16 %v11530_v52, %v11530_v52  ;;  %v9119_v0 = vsel %vm9103_vm9, %v11530_v52, 0.0  ;;  %v9239_v24 = vmul.f32 %v11530_v52, %v11530_v52  ;;  %v11532_v41 = vadd.f32 %v8498_v27, %v16554_v36 }
 0x320   :  { %9049 = vst.msk [vmem:[%s17016_s2 + $0x28] sm:$0xf] %vm9038_vm8, %v10574_v33  ;;  %v9241_v26 = vmul.f32 %v11529_v12, %v11529_v12  ;;  %v9120_v16 = vadd.f32 %v9119_v0, %v9118_v30  ;;  %v9309_v43 = vadd.f32 %v9308_v14, %v9307_v6  ;;  %v10575_v54 = vpack.c.bf16 %v11531_v56, %v11531_v56 }
 0x321   :  { %9047 = vst.msk [vmem:[%s17016_s2 + $0x20] sm:$0xf] %vm9038_vm8, %v10572_v28  ;;  %v9310_v46 = vsel %vm9103_vm9, %v9239_v24, 0.0  ;;  %v10573_v4 = vpack.c.bf16 %v11532_v41, %v11532_v41  ;;  %v9121_v5 = vsel %vm9103_vm9, %v11532_v41, 0.0  ;;  %v9240_v60 = vmul.f32 %v11532_v41, %v11532_v41 }
 0x322   :  { %v9311_v34 = vadd.f32 %v9310_v46, %v9309_v43  ;;  %9050 = vst.msk [vmem:[%s17016_s2 + $0x2c] sm:$0xf] %vm9038_vm8, %v10575_v54  ;;  %v9122_v36 = vadd.f32 %v9121_v5, %v9120_v16  ;;  %v9123_v61 = vsel %vm9103_vm9, %v11529_v12, 0.0  ;;  %v9242_v37 = vmul.f32 %v11531_v56, %v11531_v56 }
 0x323   :  { %v11469_v22 = vpop.f32.mrb[12].mxu0  ;;  %9048 = vst.msk [vmem:[%s17016_s2 + $0x24] sm:$0xf] %vm9038_vm8, %v10573_v4  ;;  %v9312_v47 = vsel %vm9103_vm9, %v9240_v60, 0.0  ;;  %v9314_v57 = vsel %vm9103_vm9, %v9241_v26, 0.0  ;;  %v9125_v31 = vsel %vm9103_vm9, %v11531_v56, 0.0 }
 0x324   :  { %v11533_v35 = vadd.f32 %v11469_v22, %v16556_v19  ;;  %v8511_v13 = vpop.f32.mrb[13].mxu0  ;;  %v9124_v7 = vadd.f32 %v9123_v61, %v9122_v36  ;;  %v9313_v40 = vadd.f32 %v9312_v47, %v9311_v34  ;;  %v9316_v45 = vsel %vm9103_vm9, %v9242_v37, 0.0 }
 0x325   :  { %v11534_v55 = vadd.f32 %v8511_v13, %v16558_v51  ;;  %v11470_v29 = vpop.f32.mrb[14].mxu0 }
 0x326   :  { %v10578_v59 = vpack.c.bf16 %v11533_v35, %v11533_v35  ;;  %v8514_v19 = vpop.f32.mrb[15].mxu0  ;;  %v9315_v38 = vadd.f32 %v9314_v57, %v9313_v40  ;;  %v9126_v51 = vadd.f32 %v9125_v31, %v9124_v7  ;;  %v11535_v58 = vadd.f32 %v11470_v29, %v16560_v18 }
 0x327   :  { %v10576_v12 = vpack.c.bf16 %v11534_v55, %v11534_v55  ;;  %v9127_v39 = vsel %vm9103_vm9, %v11534_v55, 0.0  ;;  %v9243_v23 = vmul.f32 %v11534_v55, %v11534_v55  ;;  %v11536_v52 = vadd.f32 %v8514_v19, %v16562_v62 }
 0x328   :  { %9053 = vst.msk [vmem:[%s17016_s2 + $0x38] sm:$0xf] %vm9038_vm8, %v10578_v59  ;;  %v9245_v9 = vmul.f32 %v11533_v35, %v11533_v35  ;;  %v9128_v48 = vadd.f32 %v9127_v39, %v9126_v51  ;;  %v9317_v33 = vadd.f32 %v9316_v45, %v9315_v38  ;;  %v10579_v27 = vpack.c.bf16 %v11535_v58, %v11535_v58 }
 0x329   :  { %9051 = vst.msk [vmem:[%s17016_s2 + $0x30] sm:$0xf] %vm9038_vm8, %v10576_v12  ;;  %v9318_v50 = vsel %vm9103_vm9, %v9243_v23, 0.0  ;;  %v10577_v32 = vpack.c.bf16 %v11536_v52, %v11536_v52  ;;  %v9129_v28 = vsel %vm9103_vm9, %v11536_v52, 0.0  ;;  %v9244_v0 = vmul.f32 %v11536_v52, %v11536_v52 }
 0x32a   :  { %v9319_v24 = vadd.f32 %v9318_v50, %v9317_v33  ;;  %9054 = vst.msk [vmem:[%s17016_s2 + $0x3c] sm:$0xf] %vm9038_vm8, %v10579_v27  ;;  %v9130_v62 = vadd.f32 %v9129_v28, %v9128_v48  ;;  %v9131_v56 = vsel %vm9103_vm9, %v11533_v35, 0.0  ;;  %v9246_v41 = vmul.f32 %v11535_v58, %v11535_v58 }
 0x32b   :  { %v11473_v18 = vpop.f32.mrb[16].mxu0  ;;  %9052 = vst.msk [vmem:[%s17016_s2 + $0x34] sm:$0xf] %vm9038_vm8, %v10577_v32  ;;  %v9320_v14 = vsel %vm9103_vm9, %v9244_v0, 0.0  ;;  %v9322_v16 = vsel %vm9103_vm9, %v9245_v9, 0.0  ;;  %v9133_v5 = vsel %vm9103_vm9, %v11535_v58, 0.0 }
 0x32c   :  { %v11537_v6 = vadd.f32 %v11473_v18, %v16564_v63  ;;  %v8527_v30 = vpop.f32.mrb[17].mxu0  ;;  %v9132_v43 = vadd.f32 %v9131_v56, %v9130_v62  ;;  %v9321_v54 = vadd.f32 %v9320_v14, %v9319_v24  ;;  %v9324_v61 = vsel %vm9103_vm9, %v9246_v41, 0.0 }
 0x32d   :  { %v11538_v46 = vadd.f32 %v8527_v30, %v16566_v49  ;;  %v11474_v26 = vpop.f32.mrb[18].mxu0 }
 0x32e   :  { %v10582_v4 = vpack.c.bf16 %v11537_v6, %v11537_v6  ;;  %v8530_v63 = vpop.f32.mrb[19].mxu0  ;;  %v9323_v36 = vadd.f32 %v9322_v16, %v9321_v54  ;;  %v9134_v49 = vadd.f32 %v9133_v5, %v9132_v43  ;;  %v11539_v35 = vadd.f32 %v11474_v26, %v16568_v2 }
 0x32f   :  { %v10580_v60 = vpack.c.bf16 %v11538_v46, %v11538_v46  ;;  %v9135_v22 = vsel %vm9103_vm9, %v11538_v46, 0.0  ;;  %v9247_v34 = vmul.f32 %v11538_v46, %v11538_v46  ;;  %v11540_v13 = vadd.f32 %v8530_v63, %v16570_v11 }
 0x330   :  { %9057 = vst.msk [vmem:[%s17016_s2 + $0x48] sm:$0xf] %vm9038_vm8, %v10582_v4  ;;  %v9249_v47 = vmul.f32 %v11537_v6, %v11537_v6  ;;  %v9136_v55 = vadd.f32 %v9135_v22, %v9134_v49  ;;  %v9325_v29 = vadd.f32 %v9324_v61, %v9323_v36  ;;  %v10583_v57 = vpack.c.bf16 %v11539_v35, %v11539_v35 }
 0x331   :  { %9055 = vst.msk [vmem:[%s17016_s2 + $0x40] sm:$0xf] %vm9038_vm8, %v10580_v60  ;;  %v9326_v37 = vsel %vm9103_vm9, %v9247_v34, 0.0  ;;  %v10581_v7 = vpack.c.bf16 %v11540_v13, %v11540_v13  ;;  %v9137_v40 = vsel %vm9103_vm9, %v11540_v13, 0.0  ;;  %v9248_v59 = vmul.f32 %v11540_v13, %v11540_v13 }
 0x332   :  { %v9327_v19 = vadd.f32 %v9326_v37, %v9325_v29  ;;  %9058 = vst.msk [vmem:[%s17016_s2 + $0x4c] sm:$0xf] %vm9038_vm8, %v10583_v57  ;;  %v9138_v11 = vadd.f32 %v9137_v40, %v9136_v55  ;;  %v9139_v39 = vsel %vm9103_vm9, %v11537_v6, 0.0  ;;  %v9250_v23 = vmul.f32 %v11539_v35, %v11539_v35 }
 0x333   :  { %v11477_v2 = vpop.f32.mrb[20].mxu0  ;;  %9056 = vst.msk [vmem:[%s17016_s2 + $0x44] sm:$0xf] %vm9038_vm8, %v10581_v7  ;;  %v9328_v38 = vsel %vm9103_vm9, %v9248_v59, 0.0  ;;  %v9330_v52 = vsel %vm9103_vm9, %v9249_v47, 0.0  ;;  %v9141_v48 = vsel %vm9103_vm9, %v11539_v35, 0.0 }
 0x334   :  { %v11541_v31 = vadd.f32 %v11477_v2, %v16572_v44  ;;  %v8543_v12 = vpop.f32.mrb[21].mxu0  ;;  %v9140_v45 = vadd.f32 %v9139_v39, %v9138_v11  ;;  %v9329_v50 = vadd.f32 %v9328_v38, %v9327_v19  ;;  %v9332_v24 = vsel %vm9103_vm9, %v9250_v23, 0.0 }
 0x335   :  { %v11542_v51 = vadd.f32 %v8543_v12, %v16574_v10  ;;  %v11478_v58 = vpop.f32.mrb[22].mxu0 }
 0x336   :  { %v10586_v9 = vpack.c.bf16 %v11541_v31, %v11541_v31  ;;  %v8546_v44 = vpop.f32.mrb[23].mxu0  ;;  %v9331_v28 = vadd.f32 %v9330_v52, %v9329_v50  ;;  %v9142_v10 = vadd.f32 %v9141_v48, %v9140_v45  ;;  %v11543_v0 = vadd.f32 %v11478_v58, %v16576_v53 }
 0x337   :  { %v10584_v33 = vpack.c.bf16 %v11542_v51, %v11542_v51  ;;  %v9143_v27 = vsel %vm9103_vm9, %v11542_v51, 0.0  ;;  %v9251_v32 = vmul.f32 %v11542_v51, %v11542_v51  ;;  %v11544_v18 = vadd.f32 %v8546_v44, %v16578_v3 }
 0x338   :  { %9061 = vst.msk [vmem:[%s17016_s2 + $0x58] sm:$0xf] %vm9038_vm8, %v10586_v9  ;;  %v9253_v6 = vmul.f32 %v11541_v31, %v11541_v31  ;;  %v9144_v30 = vadd.f32 %v9143_v27, %v9142_v10  ;;  %v9333_v56 = vadd.f32 %v9332_v24, %v9331_v28  ;;  %v10587_v41 = vpack.c.bf16 %v11543_v0, %v11543_v0 }
 0x339   :  { %9059 = vst.msk [vmem:[%s17016_s2 + $0x50] sm:$0xf] %vm9038_vm8, %v10584_v33  ;;  %v9334_v62 = vsel %vm9103_vm9, %v9251_v32, 0.0  ;;  %v10585_v14 = vpack.c.bf16 %v11544_v18, %v11544_v18  ;;  %v9145_v46 = vsel %vm9103_vm9, %v11544_v18, 0.0  ;;  %v9252_v26 = vmul.f32 %v11544_v18, %v11544_v18 }
 0x33a   :  { %v9335_v16 = vadd.f32 %v9334_v62, %v9333_v56  ;;  %9062 = vst.msk [vmem:[%s17016_s2 + $0x5c] sm:$0xf] %vm9038_vm8, %v10587_v41  ;;  %v9146_v3 = vadd.f32 %v9145_v46, %v9144_v30  ;;  %v9147_v4 = vsel %vm9103_vm9, %v11541_v31, 0.0  ;;  %v9254_v63 = vmul.f32 %v11543_v0, %v11543_v0 }
 0x33b   :  { %v11481_v53 = vpop.f32.mrb[24].mxu0  ;;  %9060 = vst.msk [vmem:[%s17016_s2 + $0x54] sm:$0xf] %vm9038_vm8, %v10585_v14  ;;  %v9336_v5 = vsel %vm9103_vm9, %v9252_v26, 0.0  ;;  %v9338_v34 = vsel %vm9103_vm9, %v9253_v6, 0.0  ;;  %v9149_v13 = vsel %vm9103_vm9, %v11543_v0, 0.0 }
 0x33c   :  { %v11545_v43 = vadd.f32 %v11481_v53, %v16580_v17  ;;  %v8559_v54 = vpop.f32.mrb[25].mxu0  ;;  %v9148_v36 = vadd.f32 %v9147_v4, %v9146_v3  ;;  %v9337_v49 = vadd.f32 %v9336_v5, %v9335_v16  ;;  %v9340_v7 = vsel %vm9103_vm9, %v9254_v63, 0.0 }
 0x33d   :  { %v11546_v60 = vadd.f32 %v8559_v54, %v16582_v20  ;;  %v11482_v22 = vpop.f32.mrb[26].mxu0 }
 0x33e   :  { %v10590_v35 = vpack.c.bf16 %v11545_v43, %v11545_v43  ;;  %v8562_v17 = vpop.f32.mrb[27].mxu0  ;;  %v9339_v55 = vadd.f32 %v9338_v34, %v9337_v49  ;;  %v9150_v20 = vadd.f32 %v9149_v13, %v9148_v36  ;;  %v11547_v29 = vadd.f32 %v11482_v22, %v16584_v8 }
 0x33f   :  { %v10588_v61 = vpack.c.bf16 %v11546_v60, %v11546_v60  ;;  %v9151_v37 = vsel %vm9103_vm9, %v11546_v60, 0.0  ;;  %v9255_v47 = vmul.f32 %v11546_v60, %v11546_v60  ;;  %v11548_v57 = vadd.f32 %v8562_v17, %v16586_v42 }
 0x340   :  { %9065 = vst.msk [vmem:[%s17016_s2 + $0x68] sm:$0xf] %vm9038_vm8, %v10590_v35  ;;  %v9257_v59 = vmul.f32 %v11545_v43, %v11545_v43  ;;  %v9152_v2 = vadd.f32 %v9151_v37, %v9150_v20  ;;  %v9341_v19 = vadd.f32 %v9340_v7, %v9339_v55  ;;  %v10591_v11 = vpack.c.bf16 %v11547_v29, %v11547_v29 }
 0x341   :  { %9063 = vst.msk [vmem:[%s17016_s2 + $0x60] sm:$0xf] %vm9038_vm8, %v10588_v61  ;;  %v9342_v40 = vsel %vm9103_vm9, %v9255_v47, 0.0  ;;  %v10589_v31 = vpack.c.bf16 %v11548_v57, %v11548_v57  ;;  %v9153_v12 = vsel %vm9103_vm9, %v11548_v57, 0.0  ;;  %v9256_v39 = vmul.f32 %v11548_v57, %v11548_v57 }
 0x342   :  { %v9343_v23 = vadd.f32 %v9342_v40, %v9341_v19  ;;  %9066 = vst.msk [vmem:[%s17016_s2 + $0x6c] sm:$0xf] %vm9038_vm8, %v10591_v11  ;;  %v9154_v42 = vadd.f32 %v9153_v12, %v9152_v2  ;;  %v9155_v58 = vsel %vm9103_vm9, %v11545_v43, 0.0  ;;  %v9258_v52 = vmul.f32 %v11547_v29, %v11547_v29 }
 0x343   :  { %v11485_v8 = vpop.f32.mrb[28].mxu0  ;;  %9064 = vst.msk [vmem:[%s17016_s2 + $0x64] sm:$0xf] %vm9038_vm8, %v10589_v31  ;;  %v9344_v45 = vsel %vm9103_vm9, %v9256_v39, 0.0  ;;  %v9346_v44 = vsel %vm9103_vm9, %v9257_v59, 0.0  ;;  %v9157_v32 = vsel %vm9103_vm9, %v11547_v29, 0.0 }
 0x344   :  { %v11549_v38 = vadd.f32 %v11485_v8, %v16588_v1  ;;  %v8575_v51 = vpop.f32.mrb[29].mxu0  ;;  %v9156_v48 = vadd.f32 %v9155_v58, %v9154_v42  ;;  %v9345_v33 = vadd.f32 %v9344_v45, %v9343_v23  ;;  %v9348_v6 = vsel %vm9103_vm9, %v9258_v52, 0.0 }
 0x345   :  { %v11550_v50 = vadd.f32 %v8575_v51, %v16590_v21  ;;  %v11486_v9 = vpop.f32.mrb[30].mxu0 }
 0x346   :  { %v10594_v27 = vpack.c.bf16 %v11549_v38, %v11549_v38  ;;  %v8578_v1 = vpop.f32.mrb[31].mxu0  ;;  %v9347_v18 = vadd.f32 %v9346_v44, %v9345_v33  ;;  %v9158_v21 = vadd.f32 %v9157_v32, %v9156_v48  ;;  %v11551_v24 = vadd.f32 %v11486_v9, %v16592_v15 }
 0x347   :  { %v10592_v28 = vpack.c.bf16 %v11550_v50, %v11550_v50  ;;  %v9159_v10 = vsel %vm9103_vm9, %v11550_v50, 0.0  ;;  %v9259_v0 = vmul.f32 %v11550_v50, %v11550_v50  ;;  %v11552_v62 = vadd.f32 %v8578_v1, %v16594_v25 }
 0x348   :  { %9069 = vst.msk [vmem:[%s17016_s2 + $0x78] sm:$0xf] %vm9038_vm8, %v10594_v27  ;;  %v9160_v56 = vadd.f32 %v9159_v10, %v9158_v21  ;;  %v9349_v41 = vadd.f32 %v9348_v6, %v9347_v18  ;;  %v10595_v14 = vpack.c.bf16 %v11551_v24, %v11551_v24  ;;  %v9261_v46 = vmul.f32 %v11549_v38, %v11549_v38 }
 0x349   :  { %9067 = vst.msk [vmem:[%s17016_s2 + $0x70] sm:$0xf] %vm9038_vm8, %v10592_v28  ;;  %v9350_v30 = vsel %vm9103_vm9, %v9259_v0, 0.0  ;;  %v10593_v26 = vpack.c.bf16 %v11552_v62, %v11552_v62  ;;  %v9161_v53 = vsel %vm9103_vm9, %v11552_v62, 0.0  ;;  %v9260_v16 = vmul.f32 %v11552_v62, %v11552_v62 }
 0x34a   :  { %v9351_v3 = vadd.f32 %v9350_v30, %v9349_v41  ;;  %9070 = vst.msk [vmem:[%s17016_s2 + $0x7c] sm:$0xf] %vm9038_vm8, %v10595_v14  ;;  %v9162_v25 = vadd.f32 %v9161_v53, %v9160_v56  ;;  %v9163_v4 = vsel %vm9103_vm9, %v11549_v38, 0.0  ;;  %v9262_v63 = vmul.f32 %v11551_v24, %v11551_v24 }
 0x34b   :  { %v11489_v15 = vpop.f32.mrb[32].mxu0  ;;  %9068 = vst.msk [vmem:[%s17016_s2 + $0x74] sm:$0xf] %vm9038_vm8, %v10593_v26  ;;  %v9352_v5 = vsel %vm9103_vm9, %v9260_v16, 0.0  ;;  %v9354_v61 = vsel %vm9103_vm9, %v9261_v46, 0.0  ;;  %v9165_v37 = vsel %vm9103_vm9, %v11551_v24, 0.0 }
 0x34c   :  { %v8591_v54 = vpop.f32.mrb[33].mxu0  ;;  %v9164_v36 = vadd.f32 %v9163_v4, %v9162_v25  ;;  %v9353_v49 = vadd.f32 %v9352_v5, %v9351_v3  ;;  %v9356_v59 = vsel %vm9103_vm9, %v9262_v63, 0.0 }
 0x34d   :  { %v11490_v34 = vpop.f32.mrb[34].mxu0 }
 0x34e   :  { %v11225_v43 = vpop.f32.mrb[32].mxu1  ;;  %v8594_v13 = vpop.f32.mrb[35].mxu0  ;;  %v9355_v29 = vadd.f32 %v9354_v61, %v9353_v49  ;;  %v9166_v7 = vadd.f32 %v9165_v37, %v9164_v36 }
 0x34f   :  { %v11553_v60 = vadd.f32 %v11489_v15, %v11225_v43  ;;  %v4694_v22 = vpop.f32.mrb[33].mxu1 }
 0x350   :  { %v11554_v35 = vadd.f32 %v8591_v54, %v4694_v22  ;;  %v11226_v17 = vpop.f32.mrb[34].mxu1  ;;  %v9357_v12 = vadd.f32 %v9356_v59, %v9355_v29 }
 0x351   :  { %v10598_v47 = vpack.c.bf16 %v11553_v60, %v11553_v60  ;;  %v11555_v55 = vadd.f32 %v11490_v34, %v11226_v17  ;;  %v4697_v20 = vpop.f32.mrb[35].mxu1  ;;  %v9265_v11 = vmul.f32 %v11553_v60, %v11553_v60  ;;  %v9171_v33 = vsel %vm9103_vm9, %v11553_v60, 0.0 }
 0x352   :  { %v10596_v57 = vpack.c.bf16 %v11554_v35, %v11554_v35  ;;  %v9167_v40 = vsel %vm9103_vm9, %v11554_v35, 0.0  ;;  %v9263_v2 = vmul.f32 %v11554_v35, %v11554_v35  ;;  %v11556_v39 = vadd.f32 %v8594_v13, %v4697_v20 }
 0x353   :  { %9073 = vst.msk [vmem:[%s17016_s2 + $0x88] sm:$0xf] %vm9038_vm8, %v10598_v47  ;;  %v10599_v19 = vpack.c.bf16 %v11555_v55, %v11555_v55  ;;  %v9168_v31 = vadd.f32 %v9167_v40, %v9166_v7  ;;  %v11493_v23 = vpop.f32.mrb[36].mxu0  ;;  %v9362_v27 = vsel %vm9103_vm9, %v9265_v11, 0.0  ;;  %v9266_v10 = vmul.f32 %v11555_v55, %v11555_v55 }
 0x354   :  { %9071 = vst.msk [vmem:[%s17016_s2 + $0x80] sm:$0xf] %vm9038_vm8, %v10596_v57  ;;  %v9358_v8 = vsel %vm9103_vm9, %v9263_v2, 0.0  ;;  %v10597_v38 = vpack.c.bf16 %v11556_v39, %v11556_v39  ;;  %v9169_v51 = vsel %vm9103_vm9, %v11556_v39, 0.0  ;;  %v8607_v52 = vpop.f32.mrb[37].mxu0  ;;  %v9264_v50 = vmul.f32 %v11556_v39, %v11556_v39 }
 0x355   :  { %9074 = vst.msk [vmem:[%s17016_s2 + $0x8c] sm:$0xf] %vm9038_vm8, %v10599_v19  ;;  %v9359_v42 = vadd.f32 %v9358_v8, %v9357_v12  ;;  %v9170_v45 = vadd.f32 %v9169_v51, %v9168_v31  ;;  %v11494_v48 = vpop.f32.mrb[38].mxu0  ;;  %v9173_v62 = vsel %vm9103_vm9, %v11555_v55, 0.0  ;;  %v9364_v15 = vsel %vm9103_vm9, %v9266_v10, 0.0 }
 0x356   :  { %v11229_v58 = vpop.f32.mrb[36].mxu1  ;;  %9072 = vst.msk [vmem:[%s17016_s2 + $0x84] sm:$0xf] %vm9038_vm8, %v10597_v38  ;;  %v8610_v28 = vpop.f32.mrb[39].mxu0  ;;  %v9360_v18 = vsel %vm9103_vm9, %v9264_v50, 0.0 }
 0x357   :  { %v11557_v9 = vadd.f32 %v11493_v23, %v11229_v58  ;;  %v4710_v44 = vpop.f32.mrb[37].mxu1  ;;  %v9172_v0 = vadd.f32 %v9171_v33, %v9170_v45  ;;  %v9361_v6 = vadd.f32 %v9360_v18, %v9359_v42 }
 0x358   :  { %v11558_v1 = vadd.f32 %v8607_v52, %v4710_v44  ;;  %v11230_v32 = vpop.f32.mrb[38].mxu1 }
 0x359   :  { %v10602_v21 = vpack.c.bf16 %v11557_v9, %v11557_v9  ;;  %v4713_v24 = vpop.f32.mrb[39].mxu1  ;;  %v9174_v41 = vadd.f32 %v9173_v62, %v9172_v0  ;;  %v11559_v46 = vadd.f32 %v11494_v48, %v11230_v32  ;;  %v9363_v53 = vadd.f32 %v9362_v27, %v9361_v6 }
 0x35a   :  { %v10600_v30 = vpack.c.bf16 %v11558_v1, %v11558_v1  ;;  %v9175_v56 = vsel %vm9103_vm9, %v11558_v1, 0.0  ;;  %v9267_v14 = vmul.f32 %v11558_v1, %v11558_v1  ;;  %v11560_v26 = vadd.f32 %v8610_v28, %v4713_v24 }
 0x35b   :  { %9077 = vst.msk [vmem:[%s17016_s2 + $0x98] sm:$0xf] %vm9038_vm8, %v10602_v21  ;;  %v9269_v16 = vmul.f32 %v11557_v9, %v11557_v9  ;;  %v9176_v3 = vadd.f32 %v9175_v56, %v9174_v41  ;;  %v10603_v43 = vpack.c.bf16 %v11559_v46, %v11559_v46  ;;  %v11497_v54 = vpop.f32.mrb[40].mxu0  ;;  %v9365_v4 = vadd.f32 %v9364_v15, %v9363_v53 }
 0x35c   :  { %9075 = vst.msk [vmem:[%s17016_s2 + $0x90] sm:$0xf] %vm9038_vm8, %v10600_v30  ;;  %v9366_v25 = vsel %vm9103_vm9, %v9267_v14, 0.0  ;;  %v10601_v63 = vpack.c.bf16 %v11560_v26, %v11560_v26  ;;  %v9177_v5 = vsel %vm9103_vm9, %v11560_v26, 0.0  ;;  %v8623_v22 = vpop.f32.mrb[41].mxu0  ;;  %v9268_v36 = vmul.f32 %v11560_v26, %v11560_v26 }
 0x35d   :  { %9078 = vst.msk [vmem:[%s17016_s2 + $0x9c] sm:$0xf] %vm9038_vm8, %v10603_v43  ;;  %v9178_v34 = vadd.f32 %v9177_v5, %v9176_v3  ;;  %v11498_v17 = vpop.f32.mrb[42].mxu0  ;;  %v9179_v13 = vsel %vm9103_vm9, %v11557_v9, 0.0  ;;  %v9370_v61 = vsel %vm9103_vm9, %v9269_v16, 0.0  ;;  %v9367_v37 = vadd.f32 %v9366_v25, %v9365_v4 }
 0x35e   :  { %v11233_v60 = vpop.f32.mrb[40].mxu1  ;;  %9076 = vst.msk [vmem:[%s17016_s2 + $0x94] sm:$0xf] %vm9038_vm8, %v10601_v63  ;;  %v8626_v20 = vpop.f32.mrb[43].mxu0  ;;  %v9270_v29 = vmul.f32 %v11559_v46, %v11559_v46  ;;  %v9368_v7 = vsel %vm9103_vm9, %v9268_v36, 0.0  ;;  %v9181_v2 = vsel %vm9103_vm9, %v11559_v46, 0.0 }
 0x35f   :  { %v11561_v49 = vadd.f32 %v11497_v54, %v11233_v60  ;;  %v4726_v35 = vpop.f32.mrb[41].mxu1  ;;  %v9180_v57 = vadd.f32 %v9179_v13, %v9178_v34  ;;  %v9369_v19 = vadd.f32 %v9368_v7, %v9367_v37 }
 0x360   :  { %v11562_v47 = vadd.f32 %v8623_v22, %v4726_v35  ;;  %v11234_v55 = vpop.f32.mrb[42].mxu1  ;;  %v9372_v51 = vsel %vm9103_vm9, %v9270_v29, 0.0 }
 0x361   :  { %v10606_v40 = vpack.c.bf16 %v11561_v49, %v11561_v49  ;;  %v4729_v59 = vpop.f32.mrb[43].mxu1  ;;  %v9182_v12 = vadd.f32 %v9181_v2, %v9180_v57  ;;  %v11563_v8 = vadd.f32 %v11498_v17, %v11234_v55  ;;  %v9371_v42 = vadd.f32 %v9370_v61, %v9369_v19 }
 0x362   :  { %v10604_v11 = vpack.c.bf16 %v11562_v47, %v11562_v47  ;;  %v9183_v31 = vsel %vm9103_vm9, %v11562_v47, 0.0  ;;  %v9271_v39 = vmul.f32 %v11562_v47, %v11562_v47  ;;  %v11564_v23 = vadd.f32 %v8626_v20, %v4729_v59 }
 0x363   :  { %9081 = vst.msk [vmem:[%s17016_s2 + $0xa8] sm:$0xf] %vm9038_vm8, %v10606_v40  ;;  %v9273_v38 = vmul.f32 %v11561_v49, %v11561_v49  ;;  %v9184_v58 = vadd.f32 %v9183_v31, %v9182_v12  ;;  %v10607_v45 = vpack.c.bf16 %v11563_v8, %v11563_v8  ;;  %v11501_v50 = vpop.f32.mrb[44].mxu0  ;;  %v9373_v9 = vadd.f32 %v9372_v51, %v9371_v42 }
 0x364   :  { %9079 = vst.msk [vmem:[%s17016_s2 + $0xa0] sm:$0xf] %vm9038_vm8, %v10604_v11  ;;  %v9374_v52 = vsel %vm9103_vm9, %v9271_v39, 0.0  ;;  %v10605_v44 = vpack.c.bf16 %v11564_v23, %v11564_v23  ;;  %v9185_v48 = vsel %vm9103_vm9, %v11564_v23, 0.0  ;;  %v8639_v27 = vpop.f32.mrb[45].mxu0  ;;  %v9272_v32 = vmul.f32 %v11564_v23, %v11564_v23 }
 0x365   :  { %9082 = vst.msk [vmem:[%s17016_s2 + $0xac] sm:$0xf] %vm9038_vm8, %v10607_v45  ;;  %v9186_v1 = vadd.f32 %v9185_v48, %v9184_v58  ;;  %v11502_v0 = vpop.f32.mrb[46].mxu0  ;;  %v9187_v18 = vsel %vm9103_vm9, %v11561_v49, 0.0  ;;  %v9378_v21 = vsel %vm9103_vm9, %v9273_v38, 0.0  ;;  %v9375_v24 = vadd.f32 %v9374_v52, %v9373_v9 }
 0x366   :  { %v11237_v33 = vpop.f32.mrb[44].mxu1  ;;  %9080 = vst.msk [vmem:[%s17016_s2 + $0xa4] sm:$0xf] %vm9038_vm8, %v10605_v44  ;;  %v8642_v30 = vpop.f32.mrb[47].mxu0  ;;  %v9274_v56 = vmul.f32 %v11563_v8, %v11563_v8  ;;  %v9376_v14 = vsel %vm9103_vm9, %v9272_v32, 0.0  ;;  %v9189_v53 = vsel %vm9103_vm9, %v11563_v8, 0.0 }
 0x367   :  { %v11565_v28 = vadd.f32 %v11501_v50, %v11237_v33  ;;  %v4742_v10 = vpop.f32.mrb[45].mxu1  ;;  %v9188_v41 = vadd.f32 %v9187_v18, %v9186_v1  ;;  %v9377_v16 = vadd.f32 %v9376_v14, %v9375_v24 }
 0x368   :  { %v11566_v62 = vadd.f32 %v8639_v27, %v4742_v10  ;;  %v11238_v6 = vpop.f32.mrb[46].mxu1  ;;  %v9380_v60 = vsel %vm9103_vm9, %v9274_v56, 0.0 }
 0x369   :  { %v10610_v46 = vpack.c.bf16 %v11565_v28, %v11565_v28  ;;  %v4745_v26 = vpop.f32.mrb[47].mxu1  ;;  %v9190_v25 = vadd.f32 %v9189_v53, %v9188_v41  ;;  %v11567_v54 = vadd.f32 %v11502_v0, %v11238_v6  ;;  %v9379_v63 = vadd.f32 %v9378_v21, %v9377_v16 }
 0x36a   :  { %v10608_v15 = vpack.c.bf16 %v11566_v62, %v11566_v62  ;;  %v9191_v3 = vsel %vm9103_vm9, %v11566_v62, 0.0  ;;  %v9275_v43 = vmul.f32 %v11566_v62, %v11566_v62  ;;  %v11568_v4 = vadd.f32 %v8642_v30, %v4745_v26 }
 0x36b   :  { %9085 = vst.msk [vmem:[%s17016_s2 + $0xb8] sm:$0xf] %vm9038_vm8, %v10610_v46  ;;  %v9277_v5 = vmul.f32 %v11565_v28, %v11565_v28  ;;  %v9192_v22 = vadd.f32 %v9191_v3, %v9190_v25  ;;  %v10611_v36 = vpack.c.bf16 %v11567_v54, %v11567_v54  ;;  %v11505_v49 = vpop.f32.mrb[48].mxu0  ;;  %v9381_v35 = vadd.f32 %v9380_v60, %v9379_v63 }
 0x36c   :  { %9083 = vst.msk [vmem:[%s17016_s2 + $0xb0] sm:$0xf] %vm9038_vm8, %v10608_v15  ;;  %v9382_v34 = vsel %vm9103_vm9, %v9275_v43, 0.0  ;;  %v10609_v17 = vpack.c.bf16 %v11568_v4, %v11568_v4  ;;  %v9193_v13 = vsel %vm9103_vm9, %v11568_v4, 0.0  ;;  %v8655_v37 = vpop.f32.mrb[49].mxu0  ;;  %v9276_v55 = vmul.f32 %v11568_v4, %v11568_v4 }
 0x36d   :  { %9086 = vst.msk [vmem:[%s17016_s2 + $0xbc] sm:$0xf] %vm9038_vm8, %v10611_v36  ;;  %v9194_v47 = vadd.f32 %v9193_v13, %v9192_v22  ;;  %v11506_v57 = vpop.f32.mrb[50].mxu0  ;;  %v9195_v7 = vsel %vm9103_vm9, %v11565_v28, 0.0  ;;  %v9386_v40 = vsel %vm9103_vm9, %v9277_v5, 0.0  ;;  %v9383_v59 = vadd.f32 %v9382_v34, %v9381_v35 }
 0x36e   :  { %v11241_v61 = vpop.f32.mrb[48].mxu1  ;;  %9084 = vst.msk [vmem:[%s17016_s2 + $0xb4] sm:$0xf] %vm9038_vm8, %v10609_v17  ;;  %v8658_v11 = vpop.f32.mrb[51].mxu0  ;;  %v9278_v31 = vmul.f32 %v11567_v54, %v11567_v54  ;;  %v9384_v39 = vsel %vm9103_vm9, %v9276_v55, 0.0  ;;  %v9197_v42 = vsel %vm9103_vm9, %v11567_v54, 0.0 }
 0x36f   :  { %v11569_v20 = vadd.f32 %v11505_v49, %v11241_v61  ;;  %v4758_v29 = vpop.f32.mrb[49].mxu1  ;;  %v9196_v12 = vadd.f32 %v9195_v7, %v9194_v47  ;;  %v9385_v38 = vadd.f32 %v9384_v39, %v9383_v59 }
 0x370   :  { %v11570_v2 = vadd.f32 %v8655_v37, %v4758_v29  ;;  %v11242_v19 = vpop.f32.mrb[50].mxu1  ;;  %v9388_v33 = vsel %vm9103_vm9, %v9278_v31, 0.0 }
 0x371   :  { %v10614_v8 = vpack.c.bf16 %v11569_v20, %v11569_v20  ;;  %v4761_v23 = vpop.f32.mrb[51].mxu1  ;;  %v9198_v52 = vadd.f32 %v9197_v42, %v9196_v12  ;;  %v11571_v50 = vadd.f32 %v11506_v57, %v11242_v19  ;;  %v9387_v44 = vadd.f32 %v9386_v40, %v9385_v38 }
 0x372   :  { %v10612_v51 = vpack.c.bf16 %v11570_v2, %v11570_v2  ;;  %v9199_v58 = vsel %vm9103_vm9, %v11570_v2, 0.0  ;;  %v9279_v45 = vmul.f32 %v11570_v2, %v11570_v2  ;;  %v11572_v9 = vadd.f32 %v8658_v11, %v4761_v23 }
 0x373   :  { %9089 = vst.msk [vmem:[%s17016_s2 + $0xc8] sm:$0xf] %vm9038_vm8, %v10614_v8  ;;  %v9281_v48 = vmul.f32 %v11569_v20, %v11569_v20  ;;  %v9200_v27 = vadd.f32 %v9199_v58, %v9198_v52  ;;  %v10615_v32 = vpack.c.bf16 %v11571_v50, %v11571_v50  ;;  %v11509_v28 = vpop.f32.mrb[52].mxu0  ;;  %v9389_v10 = vadd.f32 %v9388_v33, %v9387_v44 }
 0x374   :  { %9087 = vst.msk [vmem:[%s17016_s2 + $0xc0] sm:$0xf] %vm9038_vm8, %v10612_v51  ;;  %v9390_v1 = vsel %vm9103_vm9, %v9279_v45, 0.0  ;;  %v10613_v0 = vpack.c.bf16 %v11572_v9, %v11572_v9  ;;  %v9201_v18 = vsel %vm9103_vm9, %v11572_v9, 0.0  ;;  %v8671_v24 = vpop.f32.mrb[53].mxu0  ;;  %v9280_v6 = vmul.f32 %v11572_v9, %v11572_v9 }
 0x375   :  { %9090 = vst.msk [vmem:[%s17016_s2 + $0xcc] sm:$0xf] %vm9038_vm8, %v10615_v32  ;;  %v9202_v62 = vadd.f32 %v9201_v18, %v9200_v27  ;;  %v11510_v41 = vpop.f32.mrb[54].mxu0  ;;  %v9203_v14 = vsel %vm9103_vm9, %v11569_v20, 0.0  ;;  %v9394_v46 = vsel %vm9103_vm9, %v9281_v48, 0.0  ;;  %v9391_v26 = vadd.f32 %v9390_v1, %v9389_v10 }
 0x376   :  { %v11245_v21 = vpop.f32.mrb[52].mxu1  ;;  %9088 = vst.msk [vmem:[%s17016_s2 + $0xc4] sm:$0xf] %vm9038_vm8, %v10613_v0  ;;  %v8674_v15 = vpop.f32.mrb[55].mxu0  ;;  %v9282_v3 = vmul.f32 %v11571_v50, %v11571_v50  ;;  %v9392_v43 = vsel %vm9103_vm9, %v9280_v6, 0.0  ;;  %v9205_v63 = vsel %vm9103_vm9, %v11571_v50, 0.0 }
 0x377   :  { %v11573_v30 = vadd.f32 %v11509_v28, %v11245_v21  ;;  %v4774_v56 = vpop.f32.mrb[53].mxu1  ;;  %v9204_v25 = vadd.f32 %v9203_v14, %v9202_v62  ;;  %v9393_v5 = vadd.f32 %v9392_v43, %v9391_v26 }
 0x378   :  { %v11574_v53 = vadd.f32 %v8671_v24, %v4774_v56  ;;  %v11246_v16 = vpop.f32.mrb[54].mxu1  ;;  %v9396_v61 = vsel %vm9103_vm9, %v9282_v3, 0.0 }
 0x379   :  { %v10618_v54 = vpack.c.bf16 %v11573_v30, %v11573_v30  ;;  %v4777_v4 = vpop.f32.mrb[55].mxu1  ;;  %v9206_v34 = vadd.f32 %v9205_v63, %v9204_v25  ;;  %v11575_v49 = vadd.f32 %v11510_v41, %v11246_v16  ;;  %v9395_v17 = vadd.f32 %v9394_v46, %v9393_v5 }
 0x37a   :  { %v10616_v60 = vpack.c.bf16 %v11574_v53, %v11574_v53  ;;  %v9207_v22 = vsel %vm9103_vm9, %v11574_v53, 0.0  ;;  %v9283_v36 = vmul.f32 %v11574_v53, %v11574_v53  ;;  %v11576_v35 = vadd.f32 %v8674_v15, %v4777_v4 }
 0x37b   :  { %9093 = vst.msk [vmem:[%s17016_s2 + $0xd8] sm:$0xf] %vm9038_vm8, %v10618_v54  ;;  %v9285_v13 = vmul.f32 %v11573_v30, %v11573_v30  ;;  %v9208_v37 = vadd.f32 %v9207_v22, %v9206_v34  ;;  %v10619_v55 = vpack.c.bf16 %v11575_v49, %v11575_v49  ;;  %v11513_v20 = vpop.f32.mrb[56].mxu0  ;;  %v9397_v29 = vadd.f32 %v9396_v61, %v9395_v17 }
 0x37c   :  { %9091 = vst.msk [vmem:[%s17016_s2 + $0xd0] sm:$0xf] %vm9038_vm8, %v10616_v60  ;;  %v9398_v47 = vsel %vm9103_vm9, %v9283_v36, 0.0  ;;  %v10617_v57 = vpack.c.bf16 %v11576_v35, %v11576_v35  ;;  %v9209_v7 = vsel %vm9103_vm9, %v11576_v35, 0.0  ;;  %v8687_v59 = vpop.f32.mrb[57].mxu0  ;;  %v9284_v19 = vmul.f32 %v11576_v35, %v11576_v35 }
 0x37d   :  { %9094 = vst.msk [vmem:[%s17016_s2 + $0xdc] sm:$0xf] %vm9038_vm8, %v10619_v55  ;;  %v9210_v2 = vadd.f32 %v9209_v7, %v9208_v37  ;;  %v11514_v12 = vpop.f32.mrb[58].mxu0  ;;  %v9211_v39 = vsel %vm9103_vm9, %v11573_v30, 0.0  ;;  %v9402_v8 = vsel %vm9103_vm9, %v9285_v13, 0.0  ;;  %v9399_v23 = vadd.f32 %v9398_v47, %v9397_v29 }
 0x37e   :  { %v11249_v40 = vpop.f32.mrb[56].mxu1  ;;  %9092 = vst.msk [vmem:[%s17016_s2 + $0xd4] sm:$0xf] %vm9038_vm8, %v10617_v57  ;;  %v8690_v51 = vpop.f32.mrb[59].mxu0  ;;  %v9286_v58 = vmul.f32 %v11575_v49, %v11575_v49  ;;  %v9400_v45 = vsel %vm9103_vm9, %v9284_v19, 0.0  ;;  %v9213_v44 = vsel %vm9103_vm9, %v11575_v49, 0.0 }
 0x37f   :  { %v11577_v11 = vadd.f32 %v11513_v20, %v11249_v40  ;;  %v4790_v31 = vpop.f32.mrb[57].mxu1  ;;  %v9212_v52 = vadd.f32 %v9211_v39, %v9210_v2  ;;  %v9401_v48 = vadd.f32 %v9400_v45, %v9399_v23 }
 0x380   :  { %v11578_v42 = vadd.f32 %v8687_v59, %v4790_v31  ;;  %v11250_v38 = vpop.f32.mrb[58].mxu1  ;;  %v9404_v21 = vsel %vm9103_vm9, %v9286_v58, 0.0 }
 0x381   :  { %v10622_v50 = vpack.c.bf16 %v11577_v11, %v11577_v11  ;;  %v4793_v9 = vpop.f32.mrb[59].mxu1  ;;  %v9214_v1 = vadd.f32 %v9213_v44, %v9212_v52  ;;  %v11579_v28 = vadd.f32 %v11514_v12, %v11250_v38  ;;  %v9403_v0 = vadd.f32 %v9402_v8, %v9401_v48 }
 0x382   :  { %v10620_v33 = vpack.c.bf16 %v11578_v42, %v11578_v42  ;;  %v9215_v27 = vsel %vm9103_vm9, %v11578_v42, 0.0  ;;  %v9287_v32 = vmul.f32 %v11578_v42, %v11578_v42  ;;  %v11580_v10 = vadd.f32 %v8690_v51, %v4793_v9 }
 0x383   :  { %9097 = vst.msk [vmem:[%s17016_s2 + $0xe8] sm:$0xf] %vm9038_vm8, %v10622_v50  ;;  %v9289_v18 = vmul.f32 %v11577_v11, %v11577_v11  ;;  %v9216_v24 = vadd.f32 %v9215_v27, %v9214_v1  ;;  %v10623_v6 = vpack.c.bf16 %v11579_v28, %v11579_v28  ;;  %v11517_v30 = vpop.f32.mrb[60].mxu0  ;;  %v9405_v56 = vadd.f32 %v9404_v21, %v9403_v0 }
 0x384   :  { %9095 = vst.msk [vmem:[%s17016_s2 + $0xe0] sm:$0xf] %vm9038_vm8, %v10620_v33  ;;  %v9406_v62 = vsel %vm9103_vm9, %v9287_v32, 0.0  ;;  %v10621_v41 = vpack.c.bf16 %v11580_v10, %v11580_v10  ;;  %v9217_v14 = vsel %vm9103_vm9, %v11580_v10, 0.0  ;;  %v8703_v26 = vpop.f32.mrb[61].mxu0  ;;  %v9288_v16 = vmul.f32 %v11580_v10, %v11580_v10 }
 0x385   :  { %9098 = vst.msk [vmem:[%s17016_s2 + $0xec] sm:$0xf] %vm9038_vm8, %v10623_v6  ;;  %v9218_v53 = vadd.f32 %v9217_v14, %v9216_v24  ;;  %v11518_v25 = vpop.f32.mrb[62].mxu0  ;;  %v9219_v43 = vsel %vm9103_vm9, %v11577_v11, 0.0  ;;  %v9410_v54 = vsel %vm9103_vm9, %v9289_v18, 0.0  ;;  %v9407_v4 = vadd.f32 %v9406_v62, %v9405_v56 }
 0x386   :  { %v11253_v46 = vpop.f32.mrb[60].mxu1  ;;  %9096 = vst.msk [vmem:[%s17016_s2 + $0xe4] sm:$0xf] %vm9038_vm8, %v10621_v41  ;;  %v8706_v60 = vpop.f32.mrb[63].mxu0  ;;  %v9290_v22 = vmul.f32 %v11579_v28, %v11579_v28  ;;  %v9408_v36 = vsel %vm9103_vm9, %v9288_v16, 0.0  ;;  %v9221_v17 = vsel %vm9103_vm9, %v11579_v28, 0.0 }
 0x387   :  { %v11581_v15 = vadd.f32 %v11517_v30, %v11253_v46  ;;  %v4806_v3 = vpop.f32.mrb[61].mxu1  ;;  %v9220_v34 = vadd.f32 %v9219_v43, %v9218_v53  ;;  %v9409_v13 = vadd.f32 %v9408_v36, %v9407_v4 }
 0x388   :  { %v11582_v63 = vadd.f32 %v8703_v26, %v4806_v3  ;;  %v11254_v5 = vpop.f32.mrb[62].mxu1  ;;  %v9412_v7 = vsel %vm9103_vm9, %v9290_v22, 0.0 }
 0x389   :  { %v10626_v49 = vpack.c.bf16 %v11581_v15, %v11581_v15  ;;  %v4809_v35 = vpop.f32.mrb[63].mxu1  ;;  %v9222_v47 = vadd.f32 %v9221_v17, %v9220_v34  ;;  %v11583_v20 = vadd.f32 %v11518_v25, %v11254_v5  ;;  %v9411_v57 = vadd.f32 %v9410_v54, %v9409_v13 }
 0x38a   :  { %v10624_v61 = vpack.c.bf16 %v11582_v63, %v11582_v63  ;;  %v9223_v37 = vsel %vm9103_vm9, %v11582_v63, 0.0  ;;  %v9291_v55 = vmul.f32 %v11582_v63, %v11582_v63  ;;  %v11584_v29 = vadd.f32 %v8706_v60, %v4809_v35 }
 0x38b   :  { %9101 = vst.msk [vmem:[%s17016_s2 + $0xf8] sm:$0xf] %vm9038_vm8, %v10626_v49  ;;  %v9224_v40 = vadd.f32 %v9223_v37, %v9222_v47  ;;  %v10627_v2 = vpack.c.bf16 %v11583_v20, %v11583_v20  ;;  %v9413_v19 = vadd.f32 %v9412_v7, %v9411_v57  ;;  %v9293_v12 = vmul.f32 %v11581_v15, %v11581_v15 }
 0x38c   :  { %9099 = vst.msk [vmem:[%s17016_s2 + $0xf0] sm:$0xf] %vm9038_vm8, %v10624_v61  ;;  %v9414_v59 = vsel %vm9103_vm9, %v9291_v55, 0.0  ;;  %v10625_v11 = vpack.c.bf16 %v11584_v29, %v11584_v29  ;;  %v9225_v31 = vsel %vm9103_vm9, %v11584_v29, 0.0  ;;  %v9292_v8 = vmul.f32 %v11584_v29, %v11584_v29 }
 0x38d   :  { %9102 = vst.msk [vmem:[%s17016_s2 + $0xfc] sm:$0xf] %vm9038_vm8, %v10627_v2  ;;  %v9226_v39 = vadd.f32 %v9225_v31, %v9224_v40  ;;  %v9227_v23 = vsel %vm9103_vm9, %v11581_v15, 0.0  ;;  %v9415_v42 = vadd.f32 %v9414_v59, %v9413_v19  ;;  %v9294_v38 = vmul.f32 %v11583_v20, %v11583_v20 }
 0x38e   :  { %9100 = vst.msk [vmem:[%s17016_s2 + $0xf4] sm:$0xf] %vm9038_vm8, %v10625_v11  ;;  %v9416_v58 = vsel %vm9103_vm9, %v9292_v8, 0.0  ;;  %v9229_v52 = vsel %vm9103_vm9, %v11583_v20, 0.0  ;;  %v9418_v50 = vsel %vm9103_vm9, %v9293_v12, 0.0 }
 0x38f   :  { %v9228_v51 = vadd.f32 %v9227_v23, %v9226_v39  ;;  %v9417_v45 = vadd.f32 %v9416_v58, %v9415_v42  ;;  %v9420_v48 = vsel %vm9103_vm9, %v9294_v38, 0.0 }
 0x391   :  { %v9230_v9 = vadd.f32 %v9229_v52, %v9228_v51  ;;  %v9419_v44 = vadd.f32 %v9418_v50, %v9417_v45 }
 0x393   :  { %9422 = vst.msk [vmem:[%s17017_s3] sm:$0xff] %vm9103_vm9, %v9230_v9  ;;  %v9421_v33 = vadd.f32 %v9420_v48, %v9419_v44 }
 0x395   :  { %9423 = vst.msk [vmem:[%s17018_s4] sm:$0xff] %vm9103_vm9, %v9421_v33 }

</bundles_post_ra>
